<compile_context>
chip_gen: v7x
topology: tpu7x:2x2x1
jax: 0.10.0
libtpu: 0.0.40
codegen_flags: <defaults>
</compile_context>

<pallas_src>
import jax
import jax.numpy as jnp
from jax import lax
from jax.experimental import pallas as pl
from jax.experimental.pallas import tpu as pltpu

# ----------------------------- static config -------------------------------
NUM_MODELS = 7
NUM_OUT = 4            # len(Config().v('check_id_list')) implied by the i_m*4 indexing
BN_EPS = 1e-5

B = 2                  # batch
CIN = 4                # input channels
H = W = 16             # toy spatial size (real model uses ~300)
C = 64                 # conv channels
H2, W2 = H // 2, W // 2
H4, W4 = H // 4, W // 4
K1 = 9 * CIN           # conv1 im2col depth
F = H4 * W4 * C        # flattened feature dim (1024 here; 360000 at real scale)

TAPS = [(t // 3, t % 3) for t in range(9)]   # (dy, dx) in kernel row-major order


# ------------------------------ fused kernel -------------------------------
def vgg7_fused_kernel(a1_ref, w2_ref, s2_ref, b2_ref,
                      w3_ref, s3_ref, b3_ref,
                      wl_ref, bl_ref,
                      out_ref, p2pad_ref):
    # ---- zero ONLY the 1-wide halo ring of the pooled-conv2 scratch ----
    # (interior is fully overwritten below; ~10 KB of stores per step instead
    #  of the previous ~216 KB full-buffer zero)
    p2pad_ref[:, 0:1, :, :] = jnp.zeros((B, 1, W2 + 2, C), jnp.float32)
    p2pad_ref[:, H2 + 1:H2 + 2, :, :] = jnp.zeros((B, 1, W2 + 2, C), jnp.float32)
    p2pad_ref[:, 1:H2 + 1, 0:1, :] = jnp.zeros((B, H2, 1, C), jnp.float32)
    p2pad_ref[:, 1:H2 + 1, W2 + 1:W2 + 2, :] = jnp.zeros((B, H2, 1, C), jnp.float32)

    s2, c2 = s2_ref[0], b2_ref[0]          # (1, C)
    s3, c3 = s3_ref[0], b3_ref[0]          # (1, C)
    bl = bl_ref[0]                         # (1, NUM_OUT)

    # ---- conv2 + fused BN + fused 2x2/2 maxpool -------------------------
    # 9 accumulate-dots per 256-row M chunk (one image): no im2col buffer,
    # no partial-lane col stores; bf16 operands, f32 accumulation.
    for ib in range(B):
        acc = None
        for t, (dy, dx) in enumerate(TAPS):
            win = a1_ref[0, ib, dy:dy + H, dx:dx + W, :].reshape(H * W, C)
            part = jnp.dot(win.astype(jnp.bfloat16),
                           w2_ref[0, t * C:(t + 1) * C, :],
                           preferred_element_type=jnp.float32)
            acc = part if acc is None else acc + part
        a2 = acc * s2 + c2                                   # (H*W, C)
        a2 = a2.reshape(H2, 2, W2, 2, C)
        p2 = jnp.maximum(jnp.maximum(a2[:, 0, :, 0, :], a2[:, 0, :, 1, :]),
                         jnp.maximum(a2[:, 1, :, 0, :], a2[:, 1, :, 1, :]))
        p2pad_ref[ib, 1:H2 + 1, 1:W2 + 1, :] = p2            # single interior store

    # ---- conv3 + fused BN + fused 2x2/2 maxpool (batch merged into M) ----
    acc = None
    for t, (dy, dx) in enumerate(TAPS):
        win = p2pad_ref[:, dy:dy + H2, dx:dx + W2, :].reshape(B * H2 * W2, C)
        part = jnp.dot(win.astype(jnp.bfloat16),
                       w3_ref[0, t * C:(t + 1) * C, :],
                       preferred_element_type=jnp.float32)
        acc = part if acc is None else acc + part
    a3 = acc * s3 + c3                                       # (B*H2*W2, C)
    a3 = a3.reshape(B * H4, 2, W4, 2, C)
    p3 = jnp.maximum(jnp.maximum(a3[:, 0, :, 0, :], a3[:, 0, :, 1, :]),
                     jnp.maximum(a3[:, 1, :, 0, :], a3[:, 1, :, 1, :]))
    p3 = p3.reshape(B, H4, W4, C)                            # (B, H4, W4, C)

    # ---- linear head + sigmoid: contract (h, w, c) via per-position dots ----
    # wl is pre-packed as (H4*W4, C, NUM_OUT) in PyTorch NCHW-flatten order,
    # so no flatten stores / feature buffer are needed at all.
    y = jnp.zeros((B, NUM_OUT), jnp.float32)
    for p in range(H4 * W4):
        y = y + jnp.dot(p3[:, p // W4, p % W4, :], wl_ref[0, p],
                        preferred_element_type=jnp.float32)
    y = y + bl
    out_ref[0] = 1.0 / (1.0 + jnp.exp(-y))


# ------------------------------ forward wrapper -----------------------------
@jax.jit
def vgg_sim_z_d7_forward(x_nchw, sp):
    # ---- XLA prep: conv1 (+BN) for ALL 7 models as ONE wide N=448 matmul ----
    x = jnp.transpose(x_nchw, (0, 2, 3, 1))                       # NHWC
    xp = jnp.pad(x, ((0, 0), (1, 1), (1, 1), (0, 0)))
    col1 = jnp.concatenate([xp[:, dy:dy + H, dx:dx + W, :] for dy, dx in TAPS],
                           axis=-1).reshape(B * H * W, K1)        # (B*H*W, 36)
    w1_all = jnp.transpose(sp['w1'], (1, 0, 2)).reshape(K1, NUM_MODELS * C)
    a1 = jnp.dot(col1, w1_all, precision=lax.Precision.HIGHEST)   # (B*H*W, 7*C)
    a1 = a1.reshape(B, H, W, NUM_MODELS, C)
    a1 = a1 * sp['s1'].reshape(NUM_MODELS, C) + sp['b1'].reshape(NUM_MODELS, C)
    a1 = jnp.transpose(a1, (3, 0, 1, 2, 4))                       # (7, B, H, W, C)
    a1pad = jnp.pad(a1, ((0, 0), (0, 0), (1, 1), (1, 1), (0, 0)))  # zero halo

    out = pl.pallas_call(
        vgg7_fused_kernel,
        out_shape=jax.ShapeDtypeStruct((NUM_MODELS, B, NUM_OUT), jnp.float32),
        grid=(NUM_MODELS,),
        in_specs=[
            pl.BlockSpec((1, B, H + 2, W + 2, C), lambda m: (m, 0, 0, 0, 0)),  # a1 (padded)
            pl.BlockSpec((1, 9 * C, C), lambda m: (m, 0, 0)),                  # w2 (bf16)
            pl.BlockSpec((1, 1, C), lambda m: (m, 0, 0)),                      # s2
            pl.BlockSpec((1, 1, C), lambda m: (m, 0, 0)),                      # b2
            pl.BlockSpec((1, 9 * C, C), lambda m: (m, 0, 0)),                  # w3 (bf16)
            pl.BlockSpec((1, 1, C), lambda m: (m, 0, 0)),                      # s3
            pl.BlockSpec((1, 1, C), lambda m: (m, 0, 0)),                      # b3
            pl.BlockSpec((1, H4 * W4, C, NUM_OUT), lambda m: (m, 0, 0, 0)),    # wl
            pl.BlockSpec((1, 1, NUM_OUT), lambda m: (m, 0, 0)),                # bl
        ],
        out_specs=pl.BlockSpec((1, B, NUM_OUT), lambda m: (m, 0, 0)),
        scratch_shapes=[
            pltpu.VMEM((B, H2 + 2, W2 + 2, C), jnp.float32),   # pooled conv2 + halo
        ],
        compiler_params=pltpu.CompilerParams(
            dimension_semantics=("parallel",)),
    )(a1pad, sp['w2'], sp['s2'], sp['b2'],
      sp['w3'], sp['s3'], sp['b3'], sp['wl'], sp['bl'])

    # (7, B, 4) -> (B, 28), matching the PyTorch eval-phase output ordering
    return jnp.transpose(out, (1, 0, 2)).reshape(B, NUM_MODELS * NUM_OUT)


# --------------------------- parameter construction -------------------------
def init_model_params(key):
    """Raw PyTorch-layout parameters for one VGG_SIM_Z model (eval mode)."""
    ks = jax.random.split(key, 11)

    def conv_p(kw, kb, cin, cout):
        w = jax.random.normal(kw, (cout, cin, 3, 3), jnp.float32) * 0.05
        b = jax.random.normal(kb, (cout,), jnp.float32) * 0.05
        return w, b

    def bn_p(k, c):
        kg, kb2, km, kv = jax.random.split(k, 4)
        gamma = 1.0 + 0.1 * jax.random.normal(kg, (c,), jnp.float32)
        beta = 0.1 * jax.random.normal(kb2, (c,), jnp.float32)
        mean = 0.1 * jax.random.normal(km, (c,), jnp.float32)
        var = 1.0 + 0.1 * jax.random.uniform(kv, (c,), jnp.float32)
        return (gamma, beta, mean, var)

    w1t, b1t = conv_p(ks[0], ks[1], CIN, C)
    bn1 = bn_p(ks[2], C)
    w2t, b2t = conv_p(ks[3], ks[4], C, C)
    bn2 = bn_p(ks[5], C)
    w3t, b3t = conv_p(ks[6], ks[7], C, C)
    bn3 = bn_p(ks[8], C)
    wlt = jax.random.normal(ks[9], (NUM_OUT, F), jnp.float32) * 0.01
    blt = jax.random.normal(ks[10], (NUM_OUT,), jnp.float32) * 0.01
    return dict(w1t=w1t, b1t=b1t, bn1=bn1, w2t=w2t, b2t=b2t, bn2=bn2,
                w3t=w3t, b3t=b3t, bn3=bn3, wlt=wlt, blt=blt)


def _fold_conv_bn(w_t, b_c, bn):
    gamma, beta, mean, var = bn
    scale = gamma / jnp.sqrt(var + BN_EPS)           # eval-mode BN fold
    bias = beta + (b_c - mean) * scale
    cout, cin = w_t.shape[0], w_t.shape[1]
    # (Cout, Cin, kh, kw) -> (kh, kw, Cin, Cout) -> (9*Cin, Cout) im2col weight
    w9 = jnp.transpose(w_t, (2, 3, 1, 0)).reshape(9 * cin, cout)
    return w9, scale.reshape(1, cout), bias.reshape(1, cout)


def pack_params(params_list):
    """Fold BN, cast conv2/3 weights to bf16, permute wl for (h,w,c) features."""
    packed = []
    for p in params_list:
        w1, s1, b1 = _fold_conv_bn(p['w1t'], p['b1t'], p['bn1'])
        w2, s2, b2 = _fold_conv_bn(p['w2t'], p['b2t'], p['bn2'])
        w3, s3, b3 = _fold_conv_bn(p['w3t'], p['b3t'], p['bn3'])
        # PyTorch flatten is NCHW (c, h, w); kernel features are (h, w, c).
        wl = jnp.transpose(p['wlt'].reshape(NUM_OUT, C, H4, W4),
                           (2, 3, 1, 0)).reshape(H4 * W4, C, NUM_OUT)
        packed.append(dict(
            w1=w1, s1=s1, b1=b1,
            w2=w2.astype(jnp.bfloat16), s2=s2, b2=b2,
            w3=w3.astype(jnp.bfloat16), s3=s3, b3=b3,
            wl=wl, bl=p['blt'].reshape(1, NUM_OUT)))
    return {k: jnp.stack([q[k] for q in packed], axis=0) for k in packed[0]}


# ------------------------------ pure-JAX reference ---------------------------
def ref_forward(x_nchw, params_list):
    outs = []
    for p in params_list:
        x = x_nchw
        for i in (1, 2, 3):
            w, bc = p[f'w{i}t'], p[f'b{i}t']
            gamma, beta, mean, var = p[f'bn{i}']
            x = lax.conv_general_dilated(
                x, w, (1, 1), 'SAME',
                dimension_numbers=('NCHW', 'OIHW', 'NCHW'),
                precision=lax.Precision.HIGHEST)
            x = x + bc[None, :, None, None]
            x = ((x - mean[None, :, None, None])
                 / jnp.sqrt(var[None, :, None, None] + BN_EPS)
                 * gamma[None, :, None, None] + beta[None, :, None, None])
            if i >= 2:
                bq, cq, hq, wq = x.shape
                x = x.reshape(bq, cq, hq // 2, 2, wq // 2, 2).max(axis=(3, 5))
        flat = x.reshape(x.shape[0], -1)                 # NCHW flatten
        y = jnp.dot(flat, p['wlt'].T, precision=lax.Precision.HIGHEST) + p['blt']
        outs.append(jax.nn.sigmoid(y))
    return jnp.concatenate(outs, axis=1)


# ---------------------------------- main -------------------------------------
if __name__ == "__main__":
    key = jax.random.PRNGKey(0)
    x = jax.random.normal(key, (B, CIN, H, W), jnp.float32)

    pkey = jax.random.PRNGKey(0)
    params_list = [init_model_params(jax.random.fold_in(pkey, m + 1))
                   for m in range(NUM_MODELS)]
    sp = pack_params(params_list)

    out = vgg_sim_z_d7_forward(x, sp)
    out = jax.block_until_ready(out)

    assert out.shape == (B, NUM_MODELS * NUM_OUT), out.shape
    assert bool(jnp.all(jnp.isfinite(out)))
    assert bool(jnp.all((out >= 0.0) & (out <= 1.0)))    # sigmoid range

    ref = ref_forward(x, params_list)
    max_err = float(jnp.max(jnp.abs(out - ref)))
    # conv2/conv3 matmul operands are bf16 (f32 accumulation), so tolerance is
    # set by bf16 quantization (~1e-3 expected), not f32 roundoff.
    assert max_err < 1e-2, f"max |pallas - ref| = {max_err}"

    print("KERNEL_OK")
</pallas_src>

<mosaic_0001>
module attributes {stable_mosaic.version = 11 : i64} {
  func.func @vgg7_fused_kernel(%arg0: i32, %arg1: memref<1x2x18x18x64xf32, #tpu.memory_space<vmem>>, %arg2: memref<1x576x64xbf16, #tpu.memory_space<vmem>>, %arg3: memref<1x1x64xf32, #tpu.memory_space<vmem>>, %arg4: memref<1x1x64xf32, #tpu.memory_space<vmem>>, %arg5: memref<1x576x64xbf16, #tpu.memory_space<vmem>>, %arg6: memref<1x1x64xf32, #tpu.memory_space<vmem>>, %arg7: memref<1x1x64xf32, #tpu.memory_space<vmem>>, %arg8: memref<1x16x64x4xf32, #tpu.memory_space<vmem>>, %arg9: memref<1x1x4xf32, #tpu.memory_space<vmem>>, %arg10: memref<1x2x4xf32, #tpu.memory_space<vmem>>, %arg11: memref<2x10x10x64xf32, #tpu.memory_space<vmem>>) attributes {dimension_semantics = [#tpu.dimension_semantics<parallel>], iteration_bounds = array<i64: 7>, scalar_prefetch = 0 : i64, scratch_operands = 1 : i64, tpu.core_type = #tpu.core_type<tc>, window_params = [{transform_indices = @transform_0, window_bounds = array<i64: 1, 2, 18, 18, 64>}, {transform_indices = @transform_1, window_bounds = array<i64: 1, 576, 64>}, {transform_indices = @transform_2, window_bounds = array<i64: 1, 1, 64>}, {transform_indices = @transform_3, window_bounds = array<i64: 1, 1, 64>}, {transform_indices = @transform_4, window_bounds = array<i64: 1, 576, 64>}, {transform_indices = @transform_5, window_bounds = array<i64: 1, 1, 64>}, {transform_indices = @transform_6, window_bounds = array<i64: 1, 1, 64>}, {transform_indices = @transform_7, window_bounds = array<i64: 1, 16, 64, 4>}, {transform_indices = @transform_8, window_bounds = array<i64: 1, 1, 4>}, {transform_indices = @transform_9, window_bounds = array<i64: 1, 2, 4>}]} {
    %cst = arith.constant 0.000000e+00 : f32
    %0 = vector.broadcast %cst : f32 to vector<2x1x10x64xf32>
    %c0 = arith.constant 0 : index
    %c0_0 = arith.constant 0 : index
    %c0_1 = arith.constant 0 : index
    %c0_2 = arith.constant 0 : index
    %1 = vector.load %arg11[%c0, %c0_0, %c0_1, %c0_2] : memref<2x10x10x64xf32, #tpu.memory_space<vmem>>, vector<2x1x10x64xf32>
    tpu.vector_store %arg11[%c0, %c0_0, %c0_1, %c0_2], %0 {strides = array<i32>} : memref<2x10x10x64xf32, #tpu.memory_space<vmem>>, vector<2x1x10x64xf32>,
    %cst_3 = arith.constant 0.000000e+00 : f32
    %2 = vector.broadcast %cst_3 : f32 to vector<2x1x10x64xf32>
    %c0_4 = arith.constant 0 : index
    %c9 = arith.constant 9 : index
    %c0_5 = arith.constant 0 : index
    %c0_6 = arith.constant 0 : index
    %3 = vector.load %arg11[%c0_4, %c9, %c0_5, %c0_6] : memref<2x10x10x64xf32, #tpu.memory_space<vmem>>, vector<2x1x10x64xf32>
    tpu.vector_store %arg11[%c0_4, %c9, %c0_5, %c0_6], %2 {strides = array<i32>} : memref<2x10x10x64xf32, #tpu.memory_space<vmem>>, vector<2x1x10x64xf32>,
    %cst_7 = arith.constant 0.000000e+00 : f32
    %4 = vector.broadcast %cst_7 : f32 to vector<2x8x1x64xf32>
    %c0_8 = arith.constant 0 : index
    %c1 = arith.constant 1 : index
    %c0_9 = arith.constant 0 : index
    %c0_10 = arith.constant 0 : index
    %5 = vector.load %arg11[%c0_8, %c1, %c0_9, %c0_10] : memref<2x10x10x64xf32, #tpu.memory_space<vmem>>, vector<2x8x1x64xf32>
    tpu.vector_store %arg11[%c0_8, %c1, %c0_9, %c0_10], %4 {strides = array<i32>} : memref<2x10x10x64xf32, #tpu.memory_space<vmem>>, vector<2x8x1x64xf32>,
    %cst_11 = arith.constant 0.000000e+00 : f32
    %6 = vector.broadcast %cst_11 : f32 to vector<2x8x1x64xf32>
    %c0_12 = arith.constant 0 : index
    %c1_13 = arith.constant 1 : index
    %c9_14 = arith.constant 9 : index
    %c0_15 = arith.constant 0 : index
    %7 = vector.load %arg11[%c0_12, %c1_13, %c9_14, %c0_15] : memref<2x10x10x64xf32, #tpu.memory_space<vmem>>, vector<2x8x1x64xf32>
    tpu.vector_store %arg11[%c0_12, %c1_13, %c9_14, %c0_15], %6 {strides = array<i32>} : memref<2x10x10x64xf32, #tpu.memory_space<vmem>>, vector<2x8x1x64xf32>,
    %c0_16 = arith.constant 0 : index
    %c0_17 = arith.constant 0 : index
    %c0_18 = arith.constant 0 : index
    %8 = vector.load %arg3[%c0_16, %c0_17, %c0_18] : memref<1x1x64xf32, #tpu.memory_space<vmem>>, vector<1x1x64xf32>
    %9 = vector.shape_cast %8 : vector<1x1x64xf32> to vector<1x64xf32>
    %c0_19 = arith.constant 0 : index
    %c0_20 = arith.constant 0 : index
    %c0_21 = arith.constant 0 : index
    %10 = vector.load %arg4[%c0_19, %c0_20, %c0_21] : memref<1x1x64xf32, #tpu.memory_space<vmem>>, vector<1x1x64xf32>
    %11 = vector.shape_cast %10 : vector<1x1x64xf32> to vector<1x64xf32>
    %c0_22 = arith.constant 0 : index
    %c0_23 = arith.constant 0 : index
    %c0_24 = arith.constant 0 : index
    %12 = vector.load %arg6[%c0_22, %c0_23, %c0_24] : memref<1x1x64xf32, #tpu.memory_space<vmem>>, vector<1x1x64xf32>
    %13 = vector.shape_cast %12 : vector<1x1x64xf32> to vector<1x64xf32>
    %c0_25 = arith.constant 0 : index
    %c0_26 = arith.constant 0 : index
    %c0_27 = arith.constant 0 : index
    %14 = vector.load %arg7[%c0_25, %c0_26, %c0_27] : memref<1x1x64xf32, #tpu.memory_space<vmem>>, vector<1x1x64xf32>
    %15 = vector.shape_cast %14 : vector<1x1x64xf32> to vector<1x64xf32>
    %c0_28 = arith.constant 0 : index
    %c0_29 = arith.constant 0 : index
    %c0_30 = arith.constant 0 : index
    %16 = vector.load %arg9[%c0_28, %c0_29, %c0_30] : memref<1x1x4xf32, #tpu.memory_space<vmem>>, vector<1x1x4xf32>
    %17 = vector.shape_cast %16 : vector<1x1x4xf32> to vector<1x4xf32>
    %c0_31 = arith.constant 0 : index
    %c0_32 = arith.constant 0 : index
    %c0_33 = arith.constant 0 : index
    %c0_34 = arith.constant 0 : index
    %c0_35 = arith.constant 0 : index
    %18 = vector.load %arg1[%c0_31, %c0_32, %c0_33, %c0_34, %c0_35] : memref<1x2x18x18x64xf32, #tpu.memory_space<vmem>>, vector<1x1x16x16x64xf32>
    %19 = vector.shape_cast %18 : vector<1x1x16x16x64xf32> to vector<16x16x64xf32>
    %20 = vector.shape_cast %19 : vector<16x16x64xf32> to vector<256x64xf32>
    %21 = arith.truncf %20 : vector<256x64xf32> to vector<256x64xbf16>
    %c0_36 = arith.constant 0 : index
    %c0_37 = arith.constant 0 : index
    %c0_38 = arith.constant 0 : index
    %22 = vector.load %arg2[%c0_36, %c0_37, %c0_38] : memref<1x576x64xbf16, #tpu.memory_space<vmem>>, vector<1x64x64xbf16>
    %23 = vector.shape_cast %22 : vector<1x64x64xbf16> to vector<64x64xbf16>
    %cst_39 = arith.constant dense<0.000000e+00> : vector<256x64xf32>
    %24 = tpu.matmul %21, %23, %cst_39 {dimension_numbers = #tpu.dot_dimension_numbers<[1], [0], [0], [1], [0, 0, 1, 1], [], []>} : vector<256x64xbf16>, vector<64x64xbf16>, vector<256x64xf32> -> vector<256x64xf32>
    %c0_40 = arith.constant 0 : index
    %c0_41 = arith.constant 0 : index
    %c0_42 = arith.constant 0 : index
    %c1_43 = arith.constant 1 : index
    %c0_44 = arith.constant 0 : index
    %25 = vector.load %arg1[%c0_40, %c0_41, %c0_42, %c1_43, %c0_44] : memref<1x2x18x18x64xf32, #tpu.memory_space<vmem>>, vector<1x1x16x16x64xf32>
    %26 = vector.shape_cast %25 : vector<1x1x16x16x64xf32> to vector<16x16x64xf32>
    %27 = vector.shape_cast %26 : vector<16x16x64xf32> to vector<256x64xf32>
    %28 = arith.truncf %27 : vector<256x64xf32> to vector<256x64xbf16>
    %c0_45 = arith.constant 0 : index
    %c64 = arith.constant 64 : index
    %c0_46 = arith.constant 0 : index
    %29 = vector.load %arg2[%c0_45, %c64, %c0_46] : memref<1x576x64xbf16, #tpu.memory_space<vmem>>, vector<1x64x64xbf16>
    %30 = vector.shape_cast %29 : vector<1x64x64xbf16> to vector<64x64xbf16>
    %cst_47 = arith.constant dense<0.000000e+00> : vector<256x64xf32>
    %31 = tpu.matmul %28, %30, %cst_47 {dimension_numbers = #tpu.dot_dimension_numbers<[1], [0], [0], [1], [0, 0, 1, 1], [], []>} : vector<256x64xbf16>, vector<64x64xbf16>, vector<256x64xf32> -> vector<256x64xf32>
    %32 = arith.addf %24, %31 : vector<256x64xf32>
    %c0_48 = arith.constant 0 : index
    %c0_49 = arith.constant 0 : index
    %c0_50 = arith.constant 0 : index
    %c2 = arith.constant 2 : index
    %c0_51 = arith.constant 0 : index
    %33 = vector.load %arg1[%c0_48, %c0_49, %c0_50, %c2, %c0_51] : memref<1x2x18x18x64xf32, #tpu.memory_space<vmem>>, vector<1x1x16x16x64xf32>
    %34 = vector.shape_cast %33 : vector<1x1x16x16x64xf32> to vector<16x16x64xf32>
    %35 = vector.shape_cast %34 : vector<16x16x64xf32> to vector<256x64xf32>
    %36 = arith.truncf %35 : vector<256x64xf32> to vector<256x64xbf16>
    %c0_52 = arith.constant 0 : index
    %c128 = arith.constant 128 : index
    %c0_53 = arith.constant 0 : index
    %37 = vector.load %arg2[%c0_52, %c128, %c0_53] : memref<1x576x64xbf16, #tpu.memory_space<vmem>>, vector<1x64x64xbf16>
    %38 = vector.shape_cast %37 : vector<1x64x64xbf16> to vector<64x64xbf16>
    %cst_54 = arith.constant dense<0.000000e+00> : vector<256x64xf32>
    %39 = tpu.matmul %36, %38, %cst_54 {dimension_numbers = #tpu.dot_dimension_numbers<[1], [0], [0], [1], [0, 0, 1, 1], [], []>} : vector<256x64xbf16>, vector<64x64xbf16>, vector<256x64xf32> -> vector<256x64xf32>
    %40 = arith.addf %32, %39 : vector<256x64xf32>
    %c0_55 = arith.constant 0 : index
    %c0_56 = arith.constant 0 : index
    %c1_57 = arith.constant 1 : index
    %c0_58 = arith.constant 0 : index
    %c0_59 = arith.constant 0 : index
    %41 = vector.load %arg1[%c0_55, %c0_56, %c1_57, %c0_58, %c0_59] : memref<1x2x18x18x64xf32, #tpu.memory_space<vmem>>, vector<1x1x16x16x64xf32>
    %42 = vector.shape_cast %41 : vector<1x1x16x16x64xf32> to vector<16x16x64xf32>
    %43 = vector.shape_cast %42 : vector<16x16x64xf32> to vector<256x64xf32>
    %44 = arith.truncf %43 : vector<256x64xf32> to vector<256x64xbf16>
    %c0_60 = arith.constant 0 : index
    %c192 = arith.constant 192 : index
    %c0_61 = arith.constant 0 : index
    %45 = vector.load %arg2[%c0_60, %c192, %c0_61] : memref<1x576x64xbf16, #tpu.memory_space<vmem>>, vector<1x64x64xbf16>
    %46 = vector.shape_cast %45 : vector<1x64x64xbf16> to vector<64x64xbf16>
    %cst_62 = arith.constant dense<0.000000e+00> : vector<256x64xf32>
    %47 = tpu.matmul %44, %46, %cst_62 {dimension_numbers = #tpu.dot_dimension_numbers<[1], [0], [0], [1], [0, 0, 1, 1], [], []>} : vector<256x64xbf16>, vector<64x64xbf16>, vector<256x64xf32> -> vector<256x64xf32>
    %48 = arith.addf %40, %47 : vector<256x64xf32>
    %c0_63 = arith.constant 0 : index
    %c0_64 = arith.constant 0 : index
    %c1_65 = arith.constant 1 : index
    %c1_66 = arith.constant 1 : index
    %c0_67 = arith.constant 0 : index
    %49 = vector.load %arg1[%c0_63, %c0_64, %c1_65, %c1_66, %c0_67] : memref<1x2x18x18x64xf32, #tpu.memory_space<vmem>>, vector<1x1x16x16x64xf32>
    %50 = vector.shape_cast %49 : vector<1x1x16x16x64xf32> to vector<16x16x64xf32>
    %51 = vector.shape_cast %50 : vector<16x16x64xf32> to vector<256x64xf32>
    %52 = arith.truncf %51 : vector<256x64xf32> to vector<256x64xbf16>
    %c0_68 = arith.constant 0 : index
    %c256 = arith.constant 256 : index
    %c0_69 = arith.constant 0 : index
    %53 = vector.load %arg2[%c0_68, %c256, %c0_69] : memref<1x576x64xbf16, #tpu.memory_space<vmem>>, vector<1x64x64xbf16>
    %54 = vector.shape_cast %53 : vector<1x64x64xbf16> to vector<64x64xbf16>
    %cst_70 = arith.constant dense<0.000000e+00> : vector<256x64xf32>
    %55 = tpu.matmul %52, %54, %cst_70 {dimension_numbers = #tpu.dot_dimension_numbers<[1], [0], [0], [1], [0, 0, 1, 1], [], []>} : vector<256x64xbf16>, vector<64x64xbf16>, vector<256x64xf32> -> vector<256x64xf32>
    %56 = arith.addf %48, %55 : vector<256x64xf32>
    %c0_71 = arith.constant 0 : index
    %c0_72 = arith.constant 0 : index
    %c1_73 = arith.constant 1 : index
    %c2_74 = arith.constant 2 : index
    %c0_75 = arith.constant 0 : index
    %57 = vector.load %arg1[%c0_71, %c0_72, %c1_73, %c2_74, %c0_75] : memref<1x2x18x18x64xf32, #tpu.memory_space<vmem>>, vector<1x1x16x16x64xf32>
    %58 = vector.shape_cast %57 : vector<1x1x16x16x64xf32> to vector<16x16x64xf32>
    %59 = vector.shape_cast %58 : vector<16x16x64xf32> to vector<256x64xf32>
    %60 = arith.truncf %59 : vector<256x64xf32> to vector<256x64xbf16>
    %c0_76 = arith.constant 0 : index
    %c320 = arith.constant 320 : index
    %c0_77 = arith.constant 0 : index
    %61 = vector.load %arg2[%c0_76, %c320, %c0_77] : memref<1x576x64xbf16, #tpu.memory_space<vmem>>, vector<1x64x64xbf16>
    %62 = vector.shape_cast %61 : vector<1x64x64xbf16> to vector<64x64xbf16>
    %cst_78 = arith.constant dense<0.000000e+00> : vector<256x64xf32>
    %63 = tpu.matmul %60, %62, %cst_78 {dimension_numbers = #tpu.dot_dimension_numbers<[1], [0], [0], [1], [0, 0, 1, 1], [], []>} : vector<256x64xbf16>, vector<64x64xbf16>, vector<256x64xf32> -> vector<256x64xf32>
    %64 = arith.addf %56, %63 : vector<256x64xf32>
    %c0_79 = arith.constant 0 : index
    %c0_80 = arith.constant 0 : index
    %c2_81 = arith.constant 2 : index
    %c0_82 = arith.constant 0 : index
    %c0_83 = arith.constant 0 : index
    %65 = vector.load %arg1[%c0_79, %c0_80, %c2_81, %c0_82, %c0_83] : memref<1x2x18x18x64xf32, #tpu.memory_space<vmem>>, vector<1x1x16x16x64xf32>
    %66 = vector.shape_cast %65 : vector<1x1x16x16x64xf32> to vector<16x16x64xf32>
    %67 = vector.shape_cast %66 : vector<16x16x64xf32> to vector<256x64xf32>
    %68 = arith.truncf %67 : vector<256x64xf32> to vector<256x64xbf16>
    %c0_84 = arith.constant 0 : index
    %c384 = arith.constant 384 : index
    %c0_85 = arith.constant 0 : index
    %69 = vector.load %arg2[%c0_84, %c384, %c0_85] : memref<1x576x64xbf16, #tpu.memory_space<vmem>>, vector<1x64x64xbf16>
    %70 = vector.shape_cast %69 : vector<1x64x64xbf16> to vector<64x64xbf16>
    %cst_86 = arith.constant dense<0.000000e+00> : vector<256x64xf32>
    %71 = tpu.matmul %68, %70, %cst_86 {dimension_numbers = #tpu.dot_dimension_numbers<[1], [0], [0], [1], [0, 0, 1, 1], [], []>} : vector<256x64xbf16>, vector<64x64xbf16>, vector<256x64xf32> -> vector<256x64xf32>
    %72 = arith.addf %64, %71 : vector<256x64xf32>
    %c0_87 = arith.constant 0 : index
    %c0_88 = arith.constant 0 : index
    %c2_89 = arith.constant 2 : index
    %c1_90 = arith.constant 1 : index
    %c0_91 = arith.constant 0 : index
    %73 = vector.load %arg1[%c0_87, %c0_88, %c2_89, %c1_90, %c0_91] : memref<1x2x18x18x64xf32, #tpu.memory_space<vmem>>, vector<1x1x16x16x64xf32>
    %74 = vector.shape_cast %73 : vector<1x1x16x16x64xf32> to vector<16x16x64xf32>
    %75 = vector.shape_cast %74 : vector<16x16x64xf32> to vector<256x64xf32>
    %76 = arith.truncf %75 : vector<256x64xf32> to vector<256x64xbf16>
    %c0_92 = arith.constant 0 : index
    %c448 = arith.constant 448 : index
    %c0_93 = arith.constant 0 : index
    %77 = vector.load %arg2[%c0_92, %c448, %c0_93] : memref<1x576x64xbf16, #tpu.memory_space<vmem>>, vector<1x64x64xbf16>
    %78 = vector.shape_cast %77 : vector<1x64x64xbf16> to vector<64x64xbf16>
    %cst_94 = arith.constant dense<0.000000e+00> : vector<256x64xf32>
    %79 = tpu.matmul %76, %78, %cst_94 {dimension_numbers = #tpu.dot_dimension_numbers<[1], [0], [0], [1], [0, 0, 1, 1], [], []>} : vector<256x64xbf16>, vector<64x64xbf16>, vector<256x64xf32> -> vector<256x64xf32>
    %80 = arith.addf %72, %79 : vector<256x64xf32>
    %c0_95 = arith.constant 0 : index
    %c0_96 = arith.constant 0 : index
    %c2_97 = arith.constant 2 : index
    %c2_98 = arith.constant 2 : index
    %c0_99 = arith.constant 0 : index
    %81 = vector.load %arg1[%c0_95, %c0_96, %c2_97, %c2_98, %c0_99] : memref<1x2x18x18x64xf32, #tpu.memory_space<vmem>>, vector<1x1x16x16x64xf32>
    %82 = vector.shape_cast %81 : vector<1x1x16x16x64xf32> to vector<16x16x64xf32>
    %83 = vector.shape_cast %82 : vector<16x16x64xf32> to vector<256x64xf32>
    %84 = arith.truncf %83 : vector<256x64xf32> to vector<256x64xbf16>
    %c0_100 = arith.constant 0 : index
    %c512 = arith.constant 512 : index
    %c0_101 = arith.constant 0 : index
    %85 = vector.load %arg2[%c0_100, %c512, %c0_101] : memref<1x576x64xbf16, #tpu.memory_space<vmem>>, vector<1x64x64xbf16>
    %86 = vector.shape_cast %85 : vector<1x64x64xbf16> to vector<64x64xbf16>
    %cst_102 = arith.constant dense<0.000000e+00> : vector<256x64xf32>
    %87 = tpu.matmul %84, %86, %cst_102 {dimension_numbers = #tpu.dot_dimension_numbers<[1], [0], [0], [1], [0, 0, 1, 1], [], []>} : vector<256x64xbf16>, vector<64x64xbf16>, vector<256x64xf32> -> vector<256x64xf32>
    %88 = arith.addf %80, %87 : vector<256x64xf32>
    %89 = vector.broadcast %9 : vector<1x64xf32> to vector<256x64xf32>
    %90 = arith.mulf %88, %89 : vector<256x64xf32>
    %91 = vector.broadcast %11 : vector<1x64xf32> to vector<256x64xf32>
    %92 = arith.addf %90, %91 : vector<256x64xf32>
    %93 = vector.shape_cast %92 : vector<256x64xf32> to vector<8x2x8x2x64xf32>
    %94 = vector.extract_strided_slice %93 {offsets = [0, 0, 0, 0, 0], sizes = [8, 1, 8, 1, 64], strides = [1, 1, 1, 1, 1]} : vector<8x2x8x2x64xf32> to vector<8x1x8x1x64xf32>
    %95 = vector.shape_cast %94 : vector<8x1x8x1x64xf32> to vector<8x8x64xf32>
    %96 = vector.extract_strided_slice %93 {offsets = [0, 0, 0, 1, 0], sizes = [8, 1, 8, 1, 64], strides = [1, 1, 1, 1, 1]} : vector<8x2x8x2x64xf32> to vector<8x1x8x1x64xf32>
    %97 = vector.shape_cast %96 : vector<8x1x8x1x64xf32> to vector<8x8x64xf32>
    %98 = arith.maximumf %95, %97 : vector<8x8x64xf32>
    %99 = vector.extract_strided_slice %93 {offsets = [0, 1, 0, 0, 0], sizes = [8, 1, 8, 1, 64], strides = [1, 1, 1, 1, 1]} : vector<8x2x8x2x64xf32> to vector<8x1x8x1x64xf32>
    %100 = vector.shape_cast %99 : vector<8x1x8x1x64xf32> to vector<8x8x64xf32>
    %101 = vector.extract_strided_slice %93 {offsets = [0, 1, 0, 1, 0], sizes = [8, 1, 8, 1, 64], strides = [1, 1, 1, 1, 1]} : vector<8x2x8x2x64xf32> to vector<8x1x8x1x64xf32>
    %102 = vector.shape_cast %101 : vector<8x1x8x1x64xf32> to vector<8x8x64xf32>
    %103 = arith.maximumf %100, %102 : vector<8x8x64xf32>
    %104 = arith.maximumf %98, %103 : vector<8x8x64xf32>
    %c0_103 = arith.constant 0 : index
    %c1_104 = arith.constant 1 : index
    %c1_105 = arith.constant 1 : index
    %c0_106 = arith.constant 0 : index
    %105 = vector.load %arg11[%c0_103, %c1_104, %c1_105, %c0_106] : memref<2x10x10x64xf32, #tpu.memory_space<vmem>>, vector<1x8x8x64xf32>
    %106 = vector.shape_cast %105 : vector<1x8x8x64xf32> to vector<8x8x64xf32>
    %107 = vector.shape_cast %104 : vector<8x8x64xf32> to vector<1x8x8x64xf32>
    tpu.vector_store %arg11[%c0_103, %c1_104, %c1_105, %c0_106], %107 {strides = array<i32>} : memref<2x10x10x64xf32, #tpu.memory_space<vmem>>, vector<1x8x8x64xf32>,
    %c0_107 = arith.constant 0 : index
    %c1_108 = arith.constant 1 : index
    %c0_109 = arith.constant 0 : index
    %c0_110 = arith.constant 0 : index
    %c0_111 = arith.constant 0 : index
    %108 = vector.load %arg1[%c0_107, %c1_108, %c0_109, %c0_110, %c0_111] : memref<1x2x18x18x64xf32, #tpu.memory_space<vmem>>, vector<1x1x16x16x64xf32>
    %109 = vector.shape_cast %108 : vector<1x1x16x16x64xf32> to vector<16x16x64xf32>
    %110 = vector.shape_cast %109 : vector<16x16x64xf32> to vector<256x64xf32>
    %111 = arith.truncf %110 : vector<256x64xf32> to vector<256x64xbf16>
    %c0_112 = arith.constant 0 : index
    %c0_113 = arith.constant 0 : index
    %c0_114 = arith.constant 0 : index
    %112 = vector.load %arg2[%c0_112, %c0_113, %c0_114] : memref<1x576x64xbf16, #tpu.memory_space<vmem>>, vector<1x64x64xbf16>
    %113 = vector.shape_cast %112 : vector<1x64x64xbf16> to vector<64x64xbf16>
    %cst_115 = arith.constant dense<0.000000e+00> : vector<256x64xf32>
    %114 = tpu.matmul %111, %113, %cst_115 {dimension_numbers = #tpu.dot_dimension_numbers<[1], [0], [0], [1], [0, 0, 1, 1], [], []>} : vector<256x64xbf16>, vector<64x64xbf16>, vector<256x64xf32> -> vector<256x64xf32>
    %c0_116 = arith.constant 0 : index
    %c1_117 = arith.constant 1 : index
    %c0_118 = arith.constant 0 : index
    %c1_119 = arith.constant 1 : index
    %c0_120 = arith.constant 0 : index
    %115 = vector.load %arg1[%c0_116, %c1_117, %c0_118, %c1_119, %c0_120] : memref<1x2x18x18x64xf32, #tpu.memory_space<vmem>>, vector<1x1x16x16x64xf32>
    %116 = vector.shape_cast %115 : vector<1x1x16x16x64xf32> to vector<16x16x64xf32>
    %117 = vector.shape_cast %116 : vector<16x16x64xf32> to vector<256x64xf32>
    %118 = arith.truncf %117 : vector<256x64xf32> to vector<256x64xbf16>
    %c0_121 = arith.constant 0 : index
    %c64_122 = arith.constant 64 : index
    %c0_123 = arith.constant 0 : index
    %119 = vector.load %arg2[%c0_121, %c64_122, %c0_123] : memref<1x576x64xbf16, #tpu.memory_space<vmem>>, vector<1x64x64xbf16>
    %120 = vector.shape_cast %119 : vector<1x64x64xbf16> to vector<64x64xbf16>
    %cst_124 = arith.constant dense<0.000000e+00> : vector<256x64xf32>
    %121 = tpu.matmul %118, %120, %cst_124 {dimension_numbers = #tpu.dot_dimension_numbers<[1], [0], [0], [1], [0, 0, 1, 1], [], []>} : vector<256x64xbf16>, vector<64x64xbf16>, vector<256x64xf32> -> vector<256x64xf32>
    %122 = arith.addf %114, %121 : vector<256x64xf32>
    %c0_125 = arith.constant 0 : index
    %c1_126 = arith.constant 1 : index
    %c0_127 = arith.constant 0 : index
    %c2_128 = arith.constant 2 : index
    %c0_129 = arith.constant 0 : index
    %123 = vector.load %arg1[%c0_125, %c1_126, %c0_127, %c2_128, %c0_129] : memref<1x2x18x18x64xf32, #tpu.memory_space<vmem>>, vector<1x1x16x16x64xf32>
    %124 = vector.shape_cast %123 : vector<1x1x16x16x64xf32> to vector<16x16x64xf32>
    %125 = vector.shape_cast %124 : vector<16x16x64xf32> to vector<256x64xf32>
    %126 = arith.truncf %125 : vector<256x64xf32> to vector<256x64xbf16>
    %c0_130 = arith.constant 0 : index
    %c128_131 = arith.constant 128 : index
    %c0_132 = arith.constant 0 : index
    %127 = vector.load %arg2[%c0_130, %c128_131, %c0_132] : memref<1x576x64xbf16, #tpu.memory_space<vmem>>, vector<1x64x64xbf16>
    %128 = vector.shape_cast %127 : vector<1x64x64xbf16> to vector<64x64xbf16>
    %cst_133 = arith.constant dense<0.000000e+00> : vector<256x64xf32>
    %129 = tpu.matmul %126, %128, %cst_133 {dimension_numbers = #tpu.dot_dimension_numbers<[1], [0], [0], [1], [0, 0, 1, 1], [], []>} : vector<256x64xbf16>, vector<64x64xbf16>, vector<256x64xf32> -> vector<256x64xf32>
    %130 = arith.addf %122, %129 : vector<256x64xf32>
    %c0_134 = arith.constant 0 : index
    %c1_135 = arith.constant 1 : index
    %c1_136 = arith.constant 1 : index
    %c0_137 = arith.constant 0 : index
    %c0_138 = arith.constant 0 : index
    %131 = vector.load %arg1[%c0_134, %c1_135, %c1_136, %c0_137, %c0_138] : memref<1x2x18x18x64xf32, #tpu.memory_space<vmem>>, vector<1x1x16x16x64xf32>
    %132 = vector.shape_cast %131 : vector<1x1x16x16x64xf32> to vector<16x16x64xf32>
    %133 = vector.shape_cast %132 : vector<16x16x64xf32> to vector<256x64xf32>
    %134 = arith.truncf %133 : vector<256x64xf32> to vector<256x64xbf16>
    %c0_139 = arith.constant 0 : index
    %c192_140 = arith.constant 192 : index
    %c0_141 = arith.constant 0 : index
    %135 = vector.load %arg2[%c0_139, %c192_140, %c0_141] : memref<1x576x64xbf16, #tpu.memory_space<vmem>>, vector<1x64x64xbf16>
    %136 = vector.shape_cast %135 : vector<1x64x64xbf16> to vector<64x64xbf16>
    %cst_142 = arith.constant dense<0.000000e+00> : vector<256x64xf32>
    %137 = tpu.matmul %134, %136, %cst_142 {dimension_numbers = #tpu.dot_dimension_numbers<[1], [0], [0], [1], [0, 0, 1, 1], [], []>} : vector<256x64xbf16>, vector<64x64xbf16>, vector<256x64xf32> -> vector<256x64xf32>
    %138 = arith.addf %130, %137 : vector<256x64xf32>
    %c0_143 = arith.constant 0 : index
    %c1_144 = arith.constant 1 : index
    %c1_145 = arith.constant 1 : index
    %c1_146 = arith.constant 1 : index
    %c0_147 = arith.constant 0 : index
    %139 = vector.load %arg1[%c0_143, %c1_144, %c1_145, %c1_146, %c0_147] : memref<1x2x18x18x64xf32, #tpu.memory_space<vmem>>, vector<1x1x16x16x64xf32>
    %140 = vector.shape_cast %139 : vector<1x1x16x16x64xf32> to vector<16x16x64xf32>
    %141 = vector.shape_cast %140 : vector<16x16x64xf32> to vector<256x64xf32>
    %142 = arith.truncf %141 : vector<256x64xf32> to vector<256x64xbf16>
    %c0_148 = arith.constant 0 : index
    %c256_149 = arith.constant 256 : index
    %c0_150 = arith.constant 0 : index
    %143 = vector.load %arg2[%c0_148, %c256_149, %c0_150] : memref<1x576x64xbf16, #tpu.memory_space<vmem>>, vector<1x64x64xbf16>
    %144 = vector.shape_cast %143 : vector<1x64x64xbf16> to vector<64x64xbf16>
    %cst_151 = arith.constant dense<0.000000e+00> : vector<256x64xf32>
    %145 = tpu.matmul %142, %144, %cst_151 {dimension_numbers = #tpu.dot_dimension_numbers<[1], [0], [0], [1], [0, 0, 1, 1], [], []>} : vector<256x64xbf16>, vector<64x64xbf16>, vector<256x64xf32> -> vector<256x64xf32>
    %146 = arith.addf %138, %145 : vector<256x64xf32>
    %c0_152 = arith.constant 0 : index
    %c1_153 = arith.constant 1 : index
    %c1_154 = arith.constant 1 : index
    %c2_155 = arith.constant 2 : index
    %c0_156 = arith.constant 0 : index
    %147 = vector.load %arg1[%c0_152, %c1_153, %c1_154, %c2_155, %c0_156] : memref<1x2x18x18x64xf32, #tpu.memory_space<vmem>>, vector<1x1x16x16x64xf32>
    %148 = vector.shape_cast %147 : vector<1x1x16x16x64xf32> to vector<16x16x64xf32>
    %149 = vector.shape_cast %148 : vector<16x16x64xf32> to vector<256x64xf32>
    %150 = arith.truncf %149 : vector<256x64xf32> to vector<256x64xbf16>
    %c0_157 = arith.constant 0 : index
    %c320_158 = arith.constant 320 : index
    %c0_159 = arith.constant 0 : index
    %151 = vector.load %arg2[%c0_157, %c320_158, %c0_159] : memref<1x576x64xbf16, #tpu.memory_space<vmem>>, vector<1x64x64xbf16>
    %152 = vector.shape_cast %151 : vector<1x64x64xbf16> to vector<64x64xbf16>
    %cst_160 = arith.constant dense<0.000000e+00> : vector<256x64xf32>
    %153 = tpu.matmul %150, %152, %cst_160 {dimension_numbers = #tpu.dot_dimension_numbers<[1], [0], [0], [1], [0, 0, 1, 1], [], []>} : vector<256x64xbf16>, vector<64x64xbf16>, vector<256x64xf32> -> vector<256x64xf32>
    %154 = arith.addf %146, %153 : vector<256x64xf32>
    %c0_161 = arith.constant 0 : index
    %c1_162 = arith.constant 1 : index
    %c2_163 = arith.constant 2 : index
    %c0_164 = arith.constant 0 : index
    %c0_165 = arith.constant 0 : index
    %155 = vector.load %arg1[%c0_161, %c1_162, %c2_163, %c0_164, %c0_165] : memref<1x2x18x18x64xf32, #tpu.memory_space<vmem>>, vector<1x1x16x16x64xf32>
    %156 = vector.shape_cast %155 : vector<1x1x16x16x64xf32> to vector<16x16x64xf32>
    %157 = vector.shape_cast %156 : vector<16x16x64xf32> to vector<256x64xf32>
    %158 = arith.truncf %157 : vector<256x64xf32> to vector<256x64xbf16>
    %c0_166 = arith.constant 0 : index
    %c384_167 = arith.constant 384 : index
    %c0_168 = arith.constant 0 : index
    %159 = vector.load %arg2[%c0_166, %c384_167, %c0_168] : memref<1x576x64xbf16, #tpu.memory_space<vmem>>, vector<1x64x64xbf16>
    %160 = vector.shape_cast %159 : vector<1x64x64xbf16> to vector<64x64xbf16>
    %cst_169 = arith.constant dense<0.000000e+00> : vector<256x64xf32>
    %161 = tpu.matmul %158, %160, %cst_169 {dimension_numbers = #tpu.dot_dimension_numbers<[1], [0], [0], [1], [0, 0, 1, 1], [], []>} : vector<256x64xbf16>, vector<64x64xbf16>, vector<256x64xf32> -> vector<256x64xf32>
    %162 = arith.addf %154, %161 : vector<256x64xf32>
    %c0_170 = arith.constant 0 : index
    %c1_171 = arith.constant 1 : index
    %c2_172 = arith.constant 2 : index
    %c1_173 = arith.constant 1 : index
    %c0_174 = arith.constant 0 : index
    %163 = vector.load %arg1[%c0_170, %c1_171, %c2_172, %c1_173, %c0_174] : memref<1x2x18x18x64xf32, #tpu.memory_space<vmem>>, vector<1x1x16x16x64xf32>
    %164 = vector.shape_cast %163 : vector<1x1x16x16x64xf32> to vector<16x16x64xf32>
    %165 = vector.shape_cast %164 : vector<16x16x64xf32> to vector<256x64xf32>
    %166 = arith.truncf %165 : vector<256x64xf32> to vector<256x64xbf16>
    %c0_175 = arith.constant 0 : index
    %c448_176 = arith.constant 448 : index
    %c0_177 = arith.constant 0 : index
    %167 = vector.load %arg2[%c0_175, %c448_176, %c0_177] : memref<1x576x64xbf16, #tpu.memory_space<vmem>>, vector<1x64x64xbf16>
    %168 = vector.shape_cast %167 : vector<1x64x64xbf16> to vector<64x64xbf16>
    %cst_178 = arith.constant dense<0.000000e+00> : vector<256x64xf32>
    %169 = tpu.matmul %166, %168, %cst_178 {dimension_numbers = #tpu.dot_dimension_numbers<[1], [0], [0], [1], [0, 0, 1, 1], [], []>} : vector<256x64xbf16>, vector<64x64xbf16>, vector<256x64xf32> -> vector<256x64xf32>
    %170 = arith.addf %162, %169 : vector<256x64xf32>
    %c0_179 = arith.constant 0 : index
    %c1_180 = arith.constant 1 : index
    %c2_181 = arith.constant 2 : index
    %c2_182 = arith.constant 2 : index
    %c0_183 = arith.constant 0 : index
    %171 = vector.load %arg1[%c0_179, %c1_180, %c2_181, %c2_182, %c0_183] : memref<1x2x18x18x64xf32, #tpu.memory_space<vmem>>, vector<1x1x16x16x64xf32>
    %172 = vector.shape_cast %171 : vector<1x1x16x16x64xf32> to vector<16x16x64xf32>
    %173 = vector.shape_cast %172 : vector<16x16x64xf32> to vector<256x64xf32>
    %174 = arith.truncf %173 : vector<256x64xf32> to vector<256x64xbf16>
    %c0_184 = arith.constant 0 : index
    %c512_185 = arith.constant 512 : index
    %c0_186 = arith.constant 0 : index
    %175 = vector.load %arg2[%c0_184, %c512_185, %c0_186] : memref<1x576x64xbf16, #tpu.memory_space<vmem>>, vector<1x64x64xbf16>
    %176 = vector.shape_cast %175 : vector<1x64x64xbf16> to vector<64x64xbf16>
    %cst_187 = arith.constant dense<0.000000e+00> : vector<256x64xf32>
    %177 = tpu.matmul %174, %176, %cst_187 {dimension_numbers = #tpu.dot_dimension_numbers<[1], [0], [0], [1], [0, 0, 1, 1], [], []>} : vector<256x64xbf16>, vector<64x64xbf16>, vector<256x64xf32> -> vector<256x64xf32>
    %178 = arith.addf %170, %177 : vector<256x64xf32>
    %179 = vector.broadcast %9 : vector<1x64xf32> to vector<256x64xf32>
    %180 = arith.mulf %178, %179 : vector<256x64xf32>
    %181 = vector.broadcast %11 : vector<1x64xf32> to vector<256x64xf32>
    %182 = arith.addf %180, %181 : vector<256x64xf32>
    %183 = vector.shape_cast %182 : vector<256x64xf32> to vector<8x2x8x2x64xf32>
    %184 = vector.extract_strided_slice %183 {offsets = [0, 0, 0, 0, 0], sizes = [8, 1, 8, 1, 64], strides = [1, 1, 1, 1, 1]} : vector<8x2x8x2x64xf32> to vector<8x1x8x1x64xf32>
    %185 = vector.shape_cast %184 : vector<8x1x8x1x64xf32> to vector<8x8x64xf32>
    %186 = vector.extract_strided_slice %183 {offsets = [0, 0, 0, 1, 0], sizes = [8, 1, 8, 1, 64], strides = [1, 1, 1, 1, 1]} : vector<8x2x8x2x64xf32> to vector<8x1x8x1x64xf32>
    %187 = vector.shape_cast %186 : vector<8x1x8x1x64xf32> to vector<8x8x64xf32>
    %188 = arith.maximumf %185, %187 : vector<8x8x64xf32>
    %189 = vector.extract_strided_slice %183 {offsets = [0, 1, 0, 0, 0], sizes = [8, 1, 8, 1, 64], strides = [1, 1, 1, 1, 1]} : vector<8x2x8x2x64xf32> to vector<8x1x8x1x64xf32>
    %190 = vector.shape_cast %189 : vector<8x1x8x1x64xf32> to vector<8x8x64xf32>
    %191 = vector.extract_strided_slice %183 {offsets = [0, 1, 0, 1, 0], sizes = [8, 1, 8, 1, 64], strides = [1, 1, 1, 1, 1]} : vector<8x2x8x2x64xf32> to vector<8x1x8x1x64xf32>
    %192 = vector.shape_cast %191 : vector<8x1x8x1x64xf32> to vector<8x8x64xf32>
    %193 = arith.maximumf %190, %192 : vector<8x8x64xf32>
    %194 = arith.maximumf %188, %193 : vector<8x8x64xf32>
    %c1_188 = arith.constant 1 : index
    %c1_189 = arith.constant 1 : index
    %c1_190 = arith.constant 1 : index
    %c0_191 = arith.constant 0 : index
    %195 = vector.load %arg11[%c1_188, %c1_189, %c1_190, %c0_191] : memref<2x10x10x64xf32, #tpu.memory_space<vmem>>, vector<1x8x8x64xf32>
    %196 = vector.shape_cast %195 : vector<1x8x8x64xf32> to vector<8x8x64xf32>
    %197 = vector.shape_cast %194 : vector<8x8x64xf32> to vector<1x8x8x64xf32>
    tpu.vector_store %arg11[%c1_188, %c1_189, %c1_190, %c0_191], %197 {strides = array<i32>} : memref<2x10x10x64xf32, #tpu.memory_space<vmem>>, vector<1x8x8x64xf32>,
    %c0_192 = arith.constant 0 : index
    %c0_193 = arith.constant 0 : index
    %c0_194 = arith.constant 0 : index
    %c0_195 = arith.constant 0 : index
    %198 = vector.load %arg11[%c0_192, %c0_193, %c0_194, %c0_195] : memref<2x10x10x64xf32, #tpu.memory_space<vmem>>, vector<2x8x8x64xf32>
    %199 = vector.shape_cast %198 : vector<2x8x8x64xf32> to vector<128x64xf32>
    %200 = arith.truncf %199 : vector<128x64xf32> to vector<128x64xbf16>
    %c0_196 = arith.constant 0 : index
    %c0_197 = arith.constant 0 : index
    %c0_198 = arith.constant 0 : index
    %201 = vector.load %arg5[%c0_196, %c0_197, %c0_198] : memref<1x576x64xbf16, #tpu.memory_space<vmem>>, vector<1x64x64xbf16>
    %202 = vector.shape_cast %201 : vector<1x64x64xbf16> to vector<64x64xbf16>
    %cst_199 = arith.constant dense<0.000000e+00> : vector<128x64xf32>
    %203 = tpu.matmul %200, %202, %cst_199 {dimension_numbers = #tpu.dot_dimension_numbers<[1], [0], [0], [1], [0, 0, 1, 1], [], []>} : vector<128x64xbf16>, vector<64x64xbf16>, vector<128x64xf32> -> vector<128x64xf32>
    %c0_200 = arith.constant 0 : index
    %c0_201 = arith.constant 0 : index
    %c1_202 = arith.constant 1 : index
    %c0_203 = arith.constant 0 : index
    %204 = vector.load %arg11[%c0_200, %c0_201, %c1_202, %c0_203] : memref<2x10x10x64xf32, #tpu.memory_space<vmem>>, vector<2x8x8x64xf32>
    %205 = vector.shape_cast %204 : vector<2x8x8x64xf32> to vector<128x64xf32>
    %206 = arith.truncf %205 : vector<128x64xf32> to vector<128x64xbf16>
    %c0_204 = arith.constant 0 : index
    %c64_205 = arith.constant 64 : index
    %c0_206 = arith.constant 0 : index
    %207 = vector.load %arg5[%c0_204, %c64_205, %c0_206] : memref<1x576x64xbf16, #tpu.memory_space<vmem>>, vector<1x64x64xbf16>
    %208 = vector.shape_cast %207 : vector<1x64x64xbf16> to vector<64x64xbf16>
    %cst_207 = arith.constant dense<0.000000e+00> : vector<128x64xf32>
    %209 = tpu.matmul %206, %208, %cst_207 {dimension_numbers = #tpu.dot_dimension_numbers<[1], [0], [0], [1], [0, 0, 1, 1], [], []>} : vector<128x64xbf16>, vector<64x64xbf16>, vector<128x64xf32> -> vector<128x64xf32>
    %210 = arith.addf %203, %209 : vector<128x64xf32>
    %c0_208 = arith.constant 0 : index
    %c0_209 = arith.constant 0 : index
    %c2_210 = arith.constant 2 : index
    %c0_211 = arith.constant 0 : index
    %211 = vector.load %arg11[%c0_208, %c0_209, %c2_210, %c0_211] : memref<2x10x10x64xf32, #tpu.memory_space<vmem>>, vector<2x8x8x64xf32>
    %212 = vector.shape_cast %211 : vector<2x8x8x64xf32> to vector<128x64xf32>
    %213 = arith.truncf %212 : vector<128x64xf32> to vector<128x64xbf16>
    %c0_212 = arith.constant 0 : index
    %c128_213 = arith.constant 128 : index
    %c0_214 = arith.constant 0 : index
    %214 = vector.load %arg5[%c0_212, %c128_213, %c0_214] : memref<1x576x64xbf16, #tpu.memory_space<vmem>>, vector<1x64x64xbf16>
    %215 = vector.shape_cast %214 : vector<1x64x64xbf16> to vector<64x64xbf16>
    %cst_215 = arith.constant dense<0.000000e+00> : vector<128x64xf32>
    %216 = tpu.matmul %213, %215, %cst_215 {dimension_numbers = #tpu.dot_dimension_numbers<[1], [0], [0], [1], [0, 0, 1, 1], [], []>} : vector<128x64xbf16>, vector<64x64xbf16>, vector<128x64xf32> -> vector<128x64xf32>
    %217 = arith.addf %210, %216 : vector<128x64xf32>
    %c0_216 = arith.constant 0 : index
    %c1_217 = arith.constant 1 : index
    %c0_218 = arith.constant 0 : index
    %c0_219 = arith.constant 0 : index
    %218 = vector.load %arg11[%c0_216, %c1_217, %c0_218, %c0_219] : memref<2x10x10x64xf32, #tpu.memory_space<vmem>>, vector<2x8x8x64xf32>
    %219 = vector.shape_cast %218 : vector<2x8x8x64xf32> to vector<128x64xf32>
    %220 = arith.truncf %219 : vector<128x64xf32> to vector<128x64xbf16>
    %c0_220 = arith.constant 0 : index
    %c192_221 = arith.constant 192 : index
    %c0_222 = arith.constant 0 : index
    %221 = vector.load %arg5[%c0_220, %c192_221, %c0_222] : memref<1x576x64xbf16, #tpu.memory_space<vmem>>, vector<1x64x64xbf16>
    %222 = vector.shape_cast %221 : vector<1x64x64xbf16> to vector<64x64xbf16>
    %cst_223 = arith.constant dense<0.000000e+00> : vector<128x64xf32>
    %223 = tpu.matmul %220, %222, %cst_223 {dimension_numbers = #tpu.dot_dimension_numbers<[1], [0], [0], [1], [0, 0, 1, 1], [], []>} : vector<128x64xbf16>, vector<64x64xbf16>, vector<128x64xf32> -> vector<128x64xf32>
    %224 = arith.addf %217, %223 : vector<128x64xf32>
    %c0_224 = arith.constant 0 : index
    %c1_225 = arith.constant 1 : index
    %c1_226 = arith.constant 1 : index
    %c0_227 = arith.constant 0 : index
    %225 = vector.load %arg11[%c0_224, %c1_225, %c1_226, %c0_227] : memref<2x10x10x64xf32, #tpu.memory_space<vmem>>, vector<2x8x8x64xf32>
    %226 = vector.shape_cast %225 : vector<2x8x8x64xf32> to vector<128x64xf32>
    %227 = arith.truncf %226 : vector<128x64xf32> to vector<128x64xbf16>
    %c0_228 = arith.constant 0 : index
    %c256_229 = arith.constant 256 : index
    %c0_230 = arith.constant 0 : index
    %228 = vector.load %arg5[%c0_228, %c256_229, %c0_230] : memref<1x576x64xbf16, #tpu.memory_space<vmem>>, vector<1x64x64xbf16>
    %229 = vector.shape_cast %228 : vector<1x64x64xbf16> to vector<64x64xbf16>
    %cst_231 = arith.constant dense<0.000000e+00> : vector<128x64xf32>
    %230 = tpu.matmul %227, %229, %cst_231 {dimension_numbers = #tpu.dot_dimension_numbers<[1], [0], [0], [1], [0, 0, 1, 1], [], []>} : vector<128x64xbf16>, vector<64x64xbf16>, vector<128x64xf32> -> vector<128x64xf32>
    %231 = arith.addf %224, %230 : vector<128x64xf32>
    %c0_232 = arith.constant 0 : index
    %c1_233 = arith.constant 1 : index
    %c2_234 = arith.constant 2 : index
    %c0_235 = arith.constant 0 : index
    %232 = vector.load %arg11[%c0_232, %c1_233, %c2_234, %c0_235] : memref<2x10x10x64xf32, #tpu.memory_space<vmem>>, vector<2x8x8x64xf32>
    %233 = vector.shape_cast %232 : vector<2x8x8x64xf32> to vector<128x64xf32>
    %234 = arith.truncf %233 : vector<128x64xf32> to vector<128x64xbf16>
    %c0_236 = arith.constant 0 : index
    %c320_237 = arith.constant 320 : index
    %c0_238 = arith.constant 0 : index
    %235 = vector.load %arg5[%c0_236, %c320_237, %c0_238] : memref<1x576x64xbf16, #tpu.memory_space<vmem>>, vector<1x64x64xbf16>
    %236 = vector.shape_cast %235 : vector<1x64x64xbf16> to vector<64x64xbf16>
    %cst_239 = arith.constant dense<0.000000e+00> : vector<128x64xf32>
    %237 = tpu.matmul %234, %236, %cst_239 {dimension_numbers = #tpu.dot_dimension_numbers<[1], [0], [0], [1], [0, 0, 1, 1], [], []>} : vector<128x64xbf16>, vector<64x64xbf16>, vector<128x64xf32> -> vector<128x64xf32>
    %238 = arith.addf %231, %237 : vector<128x64xf32>
    %c0_240 = arith.constant 0 : index
    %c2_241 = arith.constant 2 : index
    %c0_242 = arith.constant 0 : index
    %c0_243 = arith.constant 0 : index
    %239 = vector.load %arg11[%c0_240, %c2_241, %c0_242, %c0_243] : memref<2x10x10x64xf32, #tpu.memory_space<vmem>>, vector<2x8x8x64xf32>
    %240 = vector.shape_cast %239 : vector<2x8x8x64xf32> to vector<128x64xf32>
    %241 = arith.truncf %240 : vector<128x64xf32> to vector<128x64xbf16>
    %c0_244 = arith.constant 0 : index
    %c384_245 = arith.constant 384 : index
    %c0_246 = arith.constant 0 : index
    %242 = vector.load %arg5[%c0_244, %c384_245, %c0_246] : memref<1x576x64xbf16, #tpu.memory_space<vmem>>, vector<1x64x64xbf16>
    %243 = vector.shape_cast %242 : vector<1x64x64xbf16> to vector<64x64xbf16>
    %cst_247 = arith.constant dense<0.000000e+00> : vector<128x64xf32>
    %244 = tpu.matmul %241, %243, %cst_247 {dimension_numbers = #tpu.dot_dimension_numbers<[1], [0], [0], [1], [0, 0, 1, 1], [], []>} : vector<128x64xbf16>, vector<64x64xbf16>, vector<128x64xf32> -> vector<128x64xf32>
    %245 = arith.addf %238, %244 : vector<128x64xf32>
    %c0_248 = arith.constant 0 : index
    %c2_249 = arith.constant 2 : index
    %c1_250 = arith.constant 1 : index
    %c0_251 = arith.constant 0 : index
    %246 = vector.load %arg11[%c0_248, %c2_249, %c1_250, %c0_251] : memref<2x10x10x64xf32, #tpu.memory_space<vmem>>, vector<2x8x8x64xf32>
    %247 = vector.shape_cast %246 : vector<2x8x8x64xf32> to vector<128x64xf32>
    %248 = arith.truncf %247 : vector<128x64xf32> to vector<128x64xbf16>
    %c0_252 = arith.constant 0 : index
    %c448_253 = arith.constant 448 : index
    %c0_254 = arith.constant 0 : index
    %249 = vector.load %arg5[%c0_252, %c448_253, %c0_254] : memref<1x576x64xbf16, #tpu.memory_space<vmem>>, vector<1x64x64xbf16>
    %250 = vector.shape_cast %249 : vector<1x64x64xbf16> to vector<64x64xbf16>
    %cst_255 = arith.constant dense<0.000000e+00> : vector<128x64xf32>
    %251 = tpu.matmul %248, %250, %cst_255 {dimension_numbers = #tpu.dot_dimension_numbers<[1], [0], [0], [1], [0, 0, 1, 1], [], []>} : vector<128x64xbf16>, vector<64x64xbf16>, vector<128x64xf32> -> vector<128x64xf32>
    %252 = arith.addf %245, %251 : vector<128x64xf32>
    %c0_256 = arith.constant 0 : index
    %c2_257 = arith.constant 2 : index
    %c2_258 = arith.constant 2 : index
    %c0_259 = arith.constant 0 : index
    %253 = vector.load %arg11[%c0_256, %c2_257, %c2_258, %c0_259] : memref<2x10x10x64xf32, #tpu.memory_space<vmem>>, vector<2x8x8x64xf32>
    %254 = vector.shape_cast %253 : vector<2x8x8x64xf32> to vector<128x64xf32>
    %255 = arith.truncf %254 : vector<128x64xf32> to vector<128x64xbf16>
    %c0_260 = arith.constant 0 : index
    %c512_261 = arith.constant 512 : index
    %c0_262 = arith.constant 0 : index
    %256 = vector.load %arg5[%c0_260, %c512_261, %c0_262] : memref<1x576x64xbf16, #tpu.memory_space<vmem>>, vector<1x64x64xbf16>
    %257 = vector.shape_cast %256 : vector<1x64x64xbf16> to vector<64x64xbf16>
    %cst_263 = arith.constant dense<0.000000e+00> : vector<128x64xf32>
    %258 = tpu.matmul %255, %257, %cst_263 {dimension_numbers = #tpu.dot_dimension_numbers<[1], [0], [0], [1], [0, 0, 1, 1], [], []>} : vector<128x64xbf16>, vector<64x64xbf16>, vector<128x64xf32> -> vector<128x64xf32>
    %259 = arith.addf %252, %258 : vector<128x64xf32>
    %260 = vector.broadcast %13 : vector<1x64xf32> to vector<128x64xf32>
    %261 = arith.mulf %259, %260 : vector<128x64xf32>
    %262 = vector.broadcast %15 : vector<1x64xf32> to vector<128x64xf32>
    %263 = arith.addf %261, %262 : vector<128x64xf32>
    %264 = vector.shape_cast %263 : vector<128x64xf32> to vector<8x2x4x2x64xf32>
    %265 = vector.extract_strided_slice %264 {offsets = [0, 0, 0, 0, 0], sizes = [8, 1, 4, 1, 64], strides = [1, 1, 1, 1, 1]} : vector<8x2x4x2x64xf32> to vector<8x1x4x1x64xf32>
    %266 = vector.shape_cast %265 : vector<8x1x4x1x64xf32> to vector<8x4x64xf32>
    %267 = vector.extract_strided_slice %264 {offsets = [0, 0, 0, 1, 0], sizes = [8, 1, 4, 1, 64], strides = [1, 1, 1, 1, 1]} : vector<8x2x4x2x64xf32> to vector<8x1x4x1x64xf32>
    %268 = vector.shape_cast %267 : vector<8x1x4x1x64xf32> to vector<8x4x64xf32>
    %269 = arith.maximumf %266, %268 : vector<8x4x64xf32>
    %270 = vector.extract_strided_slice %264 {offsets = [0, 1, 0, 0, 0], sizes = [8, 1, 4, 1, 64], strides = [1, 1, 1, 1, 1]} : vector<8x2x4x2x64xf32> to vector<8x1x4x1x64xf32>
    %271 = vector.shape_cast %270 : vector<8x1x4x1x64xf32> to vector<8x4x64xf32>
    %272 = vector.extract_strided_slice %264 {offsets = [0, 1, 0, 1, 0], sizes = [8, 1, 4, 1, 64], strides = [1, 1, 1, 1, 1]} : vector<8x2x4x2x64xf32> to vector<8x1x4x1x64xf32>
    %273 = vector.shape_cast %272 : vector<8x1x4x1x64xf32> to vector<8x4x64xf32>
    %274 = arith.maximumf %271, %273 : vector<8x4x64xf32>
    %275 = arith.maximumf %269, %274 : vector<8x4x64xf32>
    %276 = vector.shape_cast %275 : vector<8x4x64xf32> to vector<2x4x4x64xf32>
    %cst_264 = arith.constant 0.000000e+00 : f32
    %277 = vector.broadcast %cst_264 : f32 to vector<2x4xf32>
    %278 = vector.extract_strided_slice %276 {offsets = [0, 0, 0, 0], sizes = [2, 1, 1, 64], strides = [1, 1, 1, 1]} : vector<2x4x4x64xf32> to vector<2x1x1x64xf32>
    %279 = vector.shape_cast %278 : vector<2x1x1x64xf32> to vector<2x64xf32>
    %c0_265 = arith.constant 0 : index
    %c0_266 = arith.constant 0 : index
    %c0_267 = arith.constant 0 : index
    %c0_268 = arith.constant 0 : index
    %280 = vector.load %arg8[%c0_265, %c0_266, %c0_267, %c0_268] : memref<1x16x64x4xf32, #tpu.memory_space<vmem>>, vector<1x1x64x4xf32>
    %281 = vector.shape_cast %280 : vector<1x1x64x4xf32> to vector<64x4xf32>
    %cst_269 = arith.constant dense<0.000000e+00> : vector<2x4xf32>
    %282 = tpu.matmul %279, %281, %cst_269 {dimension_numbers = #tpu.dot_dimension_numbers<[1], [0], [0], [1], [0, 0, 1, 1], [], []>} : vector<2x64xf32>, vector<64x4xf32>, vector<2x4xf32> -> vector<2x4xf32>
    %283 = arith.addf %277, %282 : vector<2x4xf32>
    %284 = vector.extract_strided_slice %276 {offsets = [0, 0, 1, 0], sizes = [2, 1, 1, 64], strides = [1, 1, 1, 1]} : vector<2x4x4x64xf32> to vector<2x1x1x64xf32>
    %285 = vector.shape_cast %284 : vector<2x1x1x64xf32> to vector<2x64xf32>
    %c0_270 = arith.constant 0 : index
    %c1_271 = arith.constant 1 : index
    %c0_272 = arith.constant 0 : index
    %c0_273 = arith.constant 0 : index
    %286 = vector.load %arg8[%c0_270, %c1_271, %c0_272, %c0_273] : memref<1x16x64x4xf32, #tpu.memory_space<vmem>>, vector<1x1x64x4xf32>
    %287 = vector.shape_cast %286 : vector<1x1x64x4xf32> to vector<64x4xf32>
    %cst_274 = arith.constant dense<0.000000e+00> : vector<2x4xf32>
    %288 = tpu.matmul %285, %287, %cst_274 {dimension_numbers = #tpu.dot_dimension_numbers<[1], [0], [0], [1], [0, 0, 1, 1], [], []>} : vector<2x64xf32>, vector<64x4xf32>, vector<2x4xf32> -> vector<2x4xf32>
    %289 = arith.addf %283, %288 : vector<2x4xf32>
    %290 = vector.extract_strided_slice %276 {offsets = [0, 0, 2, 0], sizes = [2, 1, 1, 64], strides = [1, 1, 1, 1]} : vector<2x4x4x64xf32> to vector<2x1x1x64xf32>
    %291 = vector.shape_cast %290 : vector<2x1x1x64xf32> to vector<2x64xf32>
    %c0_275 = arith.constant 0 : index
    %c2_276 = arith.constant 2 : index
    %c0_277 = arith.constant 0 : index
    %c0_278 = arith.constant 0 : index
    %292 = vector.load %arg8[%c0_275, %c2_276, %c0_277, %c0_278] : memref<1x16x64x4xf32, #tpu.memory_space<vmem>>, vector<1x1x64x4xf32>
    %293 = vector.shape_cast %292 : vector<1x1x64x4xf32> to vector<64x4xf32>
    %cst_279 = arith.constant dense<0.000000e+00> : vector<2x4xf32>
    %294 = tpu.matmul %291, %293, %cst_279 {dimension_numbers = #tpu.dot_dimension_numbers<[1], [0], [0], [1], [0, 0, 1, 1], [], []>} : vector<2x64xf32>, vector<64x4xf32>, vector<2x4xf32> -> vector<2x4xf32>
    %295 = arith.addf %289, %294 : vector<2x4xf32>
    %296 = vector.extract_strided_slice %276 {offsets = [0, 0, 3, 0], sizes = [2, 1, 1, 64], strides = [1, 1, 1, 1]} : vector<2x4x4x64xf32> to vector<2x1x1x64xf32>
    %297 = vector.shape_cast %296 : vector<2x1x1x64xf32> to vector<2x64xf32>
    %c0_280 = arith.constant 0 : index
    %c3 = arith.constant 3 : index
    %c0_281 = arith.constant 0 : index
    %c0_282 = arith.constant 0 : index
    %298 = vector.load %arg8[%c0_280, %c3, %c0_281, %c0_282] : memref<1x16x64x4xf32, #tpu.memory_space<vmem>>, vector<1x1x64x4xf32>
    %299 = vector.shape_cast %298 : vector<1x1x64x4xf32> to vector<64x4xf32>
    %cst_283 = arith.constant dense<0.000000e+00> : vector<2x4xf32>
    %300 = tpu.matmul %297, %299, %cst_283 {dimension_numbers = #tpu.dot_dimension_numbers<[1], [0], [0], [1], [0, 0, 1, 1], [], []>} : vector<2x64xf32>, vector<64x4xf32>, vector<2x4xf32> -> vector<2x4xf32>
    %301 = arith.addf %295, %300 : vector<2x4xf32>
    %302 = vector.extract_strided_slice %276 {offsets = [0, 1, 0, 0], sizes = [2, 1, 1, 64], strides = [1, 1, 1, 1]} : vector<2x4x4x64xf32> to vector<2x1x1x64xf32>
    %303 = vector.shape_cast %302 : vector<2x1x1x64xf32> to vector<2x64xf32>
    %c0_284 = arith.constant 0 : index
    %c4 = arith.constant 4 : index
    %c0_285 = arith.constant 0 : index
    %c0_286 = arith.constant 0 : index
    %304 = vector.load %arg8[%c0_284, %c4, %c0_285, %c0_286] : memref<1x16x64x4xf32, #tpu.memory_space<vmem>>, vector<1x1x64x4xf32>
    %305 = vector.shape_cast %304 : vector<1x1x64x4xf32> to vector<64x4xf32>
    %cst_287 = arith.constant dense<0.000000e+00> : vector<2x4xf32>
    %306 = tpu.matmul %303, %305, %cst_287 {dimension_numbers = #tpu.dot_dimension_numbers<[1], [0], [0], [1], [0, 0, 1, 1], [], []>} : vector<2x64xf32>, vector<64x4xf32>, vector<2x4xf32> -> vector<2x4xf32>
    %307 = arith.addf %301, %306 : vector<2x4xf32>
    %308 = vector.extract_strided_slice %276 {offsets = [0, 1, 1, 0], sizes = [2, 1, 1, 64], strides = [1, 1, 1, 1]} : vector<2x4x4x64xf32> to vector<2x1x1x64xf32>
    %309 = vector.shape_cast %308 : vector<2x1x1x64xf32> to vector<2x64xf32>
    %c0_288 = arith.constant 0 : index
    %c5 = arith.constant 5 : index
    %c0_289 = arith.constant 0 : index
    %c0_290 = arith.constant 0 : index
    %310 = vector.load %arg8[%c0_288, %c5, %c0_289, %c0_290] : memref<1x16x64x4xf32, #tpu.memory_space<vmem>>, vector<1x1x64x4xf32>
    %311 = vector.shape_cast %310 : vector<1x1x64x4xf32> to vector<64x4xf32>
    %cst_291 = arith.constant dense<0.000000e+00> : vector<2x4xf32>
    %312 = tpu.matmul %309, %311, %cst_291 {dimension_numbers = #tpu.dot_dimension_numbers<[1], [0], [0], [1], [0, 0, 1, 1], [], []>} : vector<2x64xf32>, vector<64x4xf32>, vector<2x4xf32> -> vector<2x4xf32>
    %313 = arith.addf %307, %312 : vector<2x4xf32>
    %314 = vector.extract_strided_slice %276 {offsets = [0, 1, 2, 0], sizes = [2, 1, 1, 64], strides = [1, 1, 1, 1]} : vector<2x4x4x64xf32> to vector<2x1x1x64xf32>
    %315 = vector.shape_cast %314 : vector<2x1x1x64xf32> to vector<2x64xf32>
    %c0_292 = arith.constant 0 : index
    %c6 = arith.constant 6 : index
    %c0_293 = arith.constant 0 : index
    %c0_294 = arith.constant 0 : index
    %316 = vector.load %arg8[%c0_292, %c6, %c0_293, %c0_294] : memref<1x16x64x4xf32, #tpu.memory_space<vmem>>, vector<1x1x64x4xf32>
    %317 = vector.shape_cast %316 : vector<1x1x64x4xf32> to vector<64x4xf32>
    %cst_295 = arith.constant dense<0.000000e+00> : vector<2x4xf32>
    %318 = tpu.matmul %315, %317, %cst_295 {dimension_numbers = #tpu.dot_dimension_numbers<[1], [0], [0], [1], [0, 0, 1, 1], [], []>} : vector<2x64xf32>, vector<64x4xf32>, vector<2x4xf32> -> vector<2x4xf32>
    %319 = arith.addf %313, %318 : vector<2x4xf32>
    %320 = vector.extract_strided_slice %276 {offsets = [0, 1, 3, 0], sizes = [2, 1, 1, 64], strides = [1, 1, 1, 1]} : vector<2x4x4x64xf32> to vector<2x1x1x64xf32>
    %321 = vector.shape_cast %320 : vector<2x1x1x64xf32> to vector<2x64xf32>
    %c0_296 = arith.constant 0 : index
    %c7 = arith.constant 7 : index
    %c0_297 = arith.constant 0 : index
    %c0_298 = arith.constant 0 : index
    %322 = vector.load %arg8[%c0_296, %c7, %c0_297, %c0_298] : memref<1x16x64x4xf32, #tpu.memory_space<vmem>>, vector<1x1x64x4xf32>
    %323 = vector.shape_cast %322 : vector<1x1x64x4xf32> to vector<64x4xf32>
    %cst_299 = arith.constant dense<0.000000e+00> : vector<2x4xf32>
    %324 = tpu.matmul %321, %323, %cst_299 {dimension_numbers = #tpu.dot_dimension_numbers<[1], [0], [0], [1], [0, 0, 1, 1], [], []>} : vector<2x64xf32>, vector<64x4xf32>, vector<2x4xf32> -> vector<2x4xf32>
    %325 = arith.addf %319, %324 : vector<2x4xf32>
    %326 = vector.extract_strided_slice %276 {offsets = [0, 2, 0, 0], sizes = [2, 1, 1, 64], strides = [1, 1, 1, 1]} : vector<2x4x4x64xf32> to vector<2x1x1x64xf32>
    %327 = vector.shape_cast %326 : vector<2x1x1x64xf32> to vector<2x64xf32>
    %c0_300 = arith.constant 0 : index
    %c8 = arith.constant 8 : index
    %c0_301 = arith.constant 0 : index
    %c0_302 = arith.constant 0 : index
    %328 = vector.load %arg8[%c0_300, %c8, %c0_301, %c0_302] : memref<1x16x64x4xf32, #tpu.memory_space<vmem>>, vector<1x1x64x4xf32>
    %329 = vector.shape_cast %328 : vector<1x1x64x4xf32> to vector<64x4xf32>
    %cst_303 = arith.constant dense<0.000000e+00> : vector<2x4xf32>
    %330 = tpu.matmul %327, %329, %cst_303 {dimension_numbers = #tpu.dot_dimension_numbers<[1], [0], [0], [1], [0, 0, 1, 1], [], []>} : vector<2x64xf32>, vector<64x4xf32>, vector<2x4xf32> -> vector<2x4xf32>
    %331 = arith.addf %325, %330 : vector<2x4xf32>
    %332 = vector.extract_strided_slice %276 {offsets = [0, 2, 1, 0], sizes = [2, 1, 1, 64], strides = [1, 1, 1, 1]} : vector<2x4x4x64xf32> to vector<2x1x1x64xf32>
    %333 = vector.shape_cast %332 : vector<2x1x1x64xf32> to vector<2x64xf32>
    %c0_304 = arith.constant 0 : index
    %c9_305 = arith.constant 9 : index
    %c0_306 = arith.constant 0 : index
    %c0_307 = arith.constant 0 : index
    %334 = vector.load %arg8[%c0_304, %c9_305, %c0_306, %c0_307] : memref<1x16x64x4xf32, #tpu.memory_space<vmem>>, vector<1x1x64x4xf32>
    %335 = vector.shape_cast %334 : vector<1x1x64x4xf32> to vector<64x4xf32>
    %cst_308 = arith.constant dense<0.000000e+00> : vector<2x4xf32>
    %336 = tpu.matmul %333, %335, %cst_308 {dimension_numbers = #tpu.dot_dimension_numbers<[1], [0], [0], [1], [0, 0, 1, 1], [], []>} : vector<2x64xf32>, vector<64x4xf32>, vector<2x4xf32> -> vector<2x4xf32>
    %337 = arith.addf %331, %336 : vector<2x4xf32>
    %338 = vector.extract_strided_slice %276 {offsets = [0, 2, 2, 0], sizes = [2, 1, 1, 64], strides = [1, 1, 1, 1]} : vector<2x4x4x64xf32> to vector<2x1x1x64xf32>
    %339 = vector.shape_cast %338 : vector<2x1x1x64xf32> to vector<2x64xf32>
    %c0_309 = arith.constant 0 : index
    %c10 = arith.constant 10 : index
    %c0_310 = arith.constant 0 : index
    %c0_311 = arith.constant 0 : index
    %340 = vector.load %arg8[%c0_309, %c10, %c0_310, %c0_311] : memref<1x16x64x4xf32, #tpu.memory_space<vmem>>, vector<1x1x64x4xf32>
    %341 = vector.shape_cast %340 : vector<1x1x64x4xf32> to vector<64x4xf32>
    %cst_312 = arith.constant dense<0.000000e+00> : vector<2x4xf32>
    %342 = tpu.matmul %339, %341, %cst_312 {dimension_numbers = #tpu.dot_dimension_numbers<[1], [0], [0], [1], [0, 0, 1, 1], [], []>} : vector<2x64xf32>, vector<64x4xf32>, vector<2x4xf32> -> vector<2x4xf32>
    %343 = arith.addf %337, %342 : vector<2x4xf32>
    %344 = vector.extract_strided_slice %276 {offsets = [0, 2, 3, 0], sizes = [2, 1, 1, 64], strides = [1, 1, 1, 1]} : vector<2x4x4x64xf32> to vector<2x1x1x64xf32>
    %345 = vector.shape_cast %344 : vector<2x1x1x64xf32> to vector<2x64xf32>
    %c0_313 = arith.constant 0 : index
    %c11 = arith.constant 11 : index
    %c0_314 = arith.constant 0 : index
    %c0_315 = arith.constant 0 : index
    %346 = vector.load %arg8[%c0_313, %c11, %c0_314, %c0_315] : memref<1x16x64x4xf32, #tpu.memory_space<vmem>>, vector<1x1x64x4xf32>
    %347 = vector.shape_cast %346 : vector<1x1x64x4xf32> to vector<64x4xf32>
    %cst_316 = arith.constant dense<0.000000e+00> : vector<2x4xf32>
    %348 = tpu.matmul %345, %347, %cst_316 {dimension_numbers = #tpu.dot_dimension_numbers<[1], [0], [0], [1], [0, 0, 1, 1], [], []>} : vector<2x64xf32>, vector<64x4xf32>, vector<2x4xf32> -> vector<2x4xf32>
    %349 = arith.addf %343, %348 : vector<2x4xf32>
    %350 = vector.extract_strided_slice %276 {offsets = [0, 3, 0, 0], sizes = [2, 1, 1, 64], strides = [1, 1, 1, 1]} : vector<2x4x4x64xf32> to vector<2x1x1x64xf32>
    %351 = vector.shape_cast %350 : vector<2x1x1x64xf32> to vector<2x64xf32>
    %c0_317 = arith.constant 0 : index
    %c12 = arith.constant 12 : index
    %c0_318 = arith.constant 0 : index
    %c0_319 = arith.constant 0 : index
    %352 = vector.load %arg8[%c0_317, %c12, %c0_318, %c0_319] : memref<1x16x64x4xf32, #tpu.memory_space<vmem>>, vector<1x1x64x4xf32>
    %353 = vector.shape_cast %352 : vector<1x1x64x4xf32> to vector<64x4xf32>
    %cst_320 = arith.constant dense<0.000000e+00> : vector<2x4xf32>
    %354 = tpu.matmul %351, %353, %cst_320 {dimension_numbers = #tpu.dot_dimension_numbers<[1], [0], [0], [1], [0, 0, 1, 1], [], []>} : vector<2x64xf32>, vector<64x4xf32>, vector<2x4xf32> -> vector<2x4xf32>
    %355 = arith.addf %349, %354 : vector<2x4xf32>
    %356 = vector.extract_strided_slice %276 {offsets = [0, 3, 1, 0], sizes = [2, 1, 1, 64], strides = [1, 1, 1, 1]} : vector<2x4x4x64xf32> to vector<2x1x1x64xf32>
    %357 = vector.shape_cast %356 : vector<2x1x1x64xf32> to vector<2x64xf32>
    %c0_321 = arith.constant 0 : index
    %c13 = arith.constant 13 : index
    %c0_322 = arith.constant 0 : index
    %c0_323 = arith.constant 0 : index
    %358 = vector.load %arg8[%c0_321, %c13, %c0_322, %c0_323] : memref<1x16x64x4xf32, #tpu.memory_space<vmem>>, vector<1x1x64x4xf32>
    %359 = vector.shape_cast %358 : vector<1x1x64x4xf32> to vector<64x4xf32>
    %cst_324 = arith.constant dense<0.000000e+00> : vector<2x4xf32>
    %360 = tpu.matmul %357, %359, %cst_324 {dimension_numbers = #tpu.dot_dimension_numbers<[1], [0], [0], [1], [0, 0, 1, 1], [], []>} : vector<2x64xf32>, vector<64x4xf32>, vector<2x4xf32> -> vector<2x4xf32>
    %361 = arith.addf %355, %360 : vector<2x4xf32>
    %362 = vector.extract_strided_slice %276 {offsets = [0, 3, 2, 0], sizes = [2, 1, 1, 64], strides = [1, 1, 1, 1]} : vector<2x4x4x64xf32> to vector<2x1x1x64xf32>
    %363 = vector.shape_cast %362 : vector<2x1x1x64xf32> to vector<2x64xf32>
    %c0_325 = arith.constant 0 : index
    %c14 = arith.constant 14 : index
    %c0_326 = arith.constant 0 : index
    %c0_327 = arith.constant 0 : index
    %364 = vector.load %arg8[%c0_325, %c14, %c0_326, %c0_327] : memref<1x16x64x4xf32, #tpu.memory_space<vmem>>, vector<1x1x64x4xf32>
    %365 = vector.shape_cast %364 : vector<1x1x64x4xf32> to vector<64x4xf32>
    %cst_328 = arith.constant dense<0.000000e+00> : vector<2x4xf32>
    %366 = tpu.matmul %363, %365, %cst_328 {dimension_numbers = #tpu.dot_dimension_numbers<[1], [0], [0], [1], [0, 0, 1, 1], [], []>} : vector<2x64xf32>, vector<64x4xf32>, vector<2x4xf32> -> vector<2x4xf32>
    %367 = arith.addf %361, %366 : vector<2x4xf32>
    %368 = vector.extract_strided_slice %276 {offsets = [0, 3, 3, 0], sizes = [2, 1, 1, 64], strides = [1, 1, 1, 1]} : vector<2x4x4x64xf32> to vector<2x1x1x64xf32>
    %369 = vector.shape_cast %368 : vector<2x1x1x64xf32> to vector<2x64xf32>
    %c0_329 = arith.constant 0 : index
    %c15 = arith.constant 15 : index
    %c0_330 = arith.constant 0 : index
    %c0_331 = arith.constant 0 : index
    %370 = vector.load %arg8[%c0_329, %c15, %c0_330, %c0_331] : memref<1x16x64x4xf32, #tpu.memory_space<vmem>>, vector<1x1x64x4xf32>
    %371 = vector.shape_cast %370 : vector<1x1x64x4xf32> to vector<64x4xf32>
    %cst_332 = arith.constant dense<0.000000e+00> : vector<2x4xf32>
    %372 = tpu.matmul %369, %371, %cst_332 {dimension_numbers = #tpu.dot_dimension_numbers<[1], [0], [0], [1], [0, 0, 1, 1], [], []>} : vector<2x64xf32>, vector<64x4xf32>, vector<2x4xf32> -> vector<2x4xf32>
    %373 = arith.addf %367, %372 : vector<2x4xf32>
    %374 = vector.broadcast %17 : vector<1x4xf32> to vector<2x4xf32>
    %375 = arith.addf %373, %374 : vector<2x4xf32>
    %cst_333 = arith.constant 0.000000e+00 : f32
    %376 = vector.broadcast %cst_333 : f32 to vector<2x4xf32>
    %377 = arith.subf %376, %375 : vector<2x4xf32>
    %378 = math.exp %377 : vector<2x4xf32>
    %cst_334 = arith.constant 1.000000e+00 : f32
    %379 = vector.broadcast %cst_334 : f32 to vector<2x4xf32>
    %380 = arith.addf %379, %378 : vector<2x4xf32>
    %cst_335 = arith.constant 1.000000e+00 : f32
    %381 = vector.broadcast %cst_335 : f32 to vector<2x4xf32>
    %382 = arith.divf %381, %380 : vector<2x4xf32>
    %c0_336 = arith.constant 0 : index
    %c0_337 = arith.constant 0 : index
    %c0_338 = arith.constant 0 : index
    %383 = vector.load %arg10[%c0_336, %c0_337, %c0_338] : memref<1x2x4xf32, #tpu.memory_space<vmem>>, vector<1x2x4xf32>
    %384 = vector.shape_cast %383 : vector<1x2x4xf32> to vector<2x4xf32>
    %385 = vector.shape_cast %382 : vector<2x4xf32> to vector<1x2x4xf32>
    tpu.vector_store %arg10[%c0_336, %c0_337, %c0_338], %385 {strides = array<i32>} : memref<1x2x4xf32, #tpu.memory_space<vmem>>, vector<1x2x4xf32>,
    return
  }
  func.func @transform_0(%arg0: i32) -> (i32, i32, i32, i32, i32) {
    %c0_i32 = arith.constant 0 : i32
    %c0_i32_0 = arith.constant 0 : i32
    %c0_i32_1 = arith.constant 0 : i32
    %c0_i32_2 = arith.constant 0 : i32
    %c0_i32_3 = arith.constant 0 : i32
    return %arg0, %c0_i32, %c0_i32_0, %c0_i32_1, %c0_i32_2 : i32, i32, i32, i32, i32
  }
  func.func @transform_1(%arg0: i32) -> (i32, i32, i32) {
    %c0_i32 = arith.constant 0 : i32
    %c0_i32_0 = arith.constant 0 : i32
    %c0_i32_1 = arith.constant 0 : i32
    return %arg0, %c0_i32, %c0_i32_0 : i32, i32, i32
  }
  func.func @transform_2(%arg0: i32) -> (i32, i32, i32) {
    %c0_i32 = arith.constant 0 : i32
    %c0_i32_0 = arith.constant 0 : i32
    %c0_i32_1 = arith.constant 0 : i32
    return %arg0, %c0_i32, %c0_i32_0 : i32, i32, i32
  }
  func.func @transform_3(%arg0: i32) -> (i32, i32, i32) {
    %c0_i32 = arith.constant 0 : i32
    %c0_i32_0 = arith.constant 0 : i32
    %c0_i32_1 = arith.constant 0 : i32
    return %arg0, %c0_i32, %c0_i32_0 : i32, i32, i32
  }
  func.func @transform_4(%arg0: i32) -> (i32, i32, i32) {
    %c0_i32 = arith.constant 0 : i32
    %c0_i32_0 = arith.constant 0 : i32
    %c0_i32_1 = arith.constant 0 : i32
    return %arg0, %c0_i32, %c0_i32_0 : i32, i32, i32
  }
  func.func @transform_5(%arg0: i32) -> (i32, i32, i32) {
    %c0_i32 = arith.constant 0 : i32
    %c0_i32_0 = arith.constant 0 : i32
    %c0_i32_1 = arith.constant 0 : i32
    return %arg0, %c0_i32, %c0_i32_0 : i32, i32, i32
  }
  func.func @transform_6(%arg0: i32) -> (i32, i32, i32) {
    %c0_i32 = arith.constant 0 : i32
    %c0_i32_0 = arith.constant 0 : i32
    %c0_i32_1 = arith.constant 0 : i32
    return %arg0, %c0_i32, %c0_i32_0 : i32, i32, i32
  }
  func.func @transform_7(%arg0: i32) -> (i32, i32, i32, i32) {
    %c0_i32 = arith.constant 0 : i32
    %c0_i32_0 = arith.constant 0 : i32
    %c0_i32_1 = arith.constant 0 : i32
    %c0_i32_2 = arith.constant 0 : i32
    return %arg0, %c0_i32, %c0_i32_0, %c0_i32_1 : i32, i32, i32, i32
  }
  func.func @transform_8(%arg0: i32) -> (i32, i32, i32) {
    %c0_i32 = arith.constant 0 : i32
    %c0_i32_0 = arith.constant 0 : i32
    %c0_i32_1 = arith.constant 0 : i32
    return %arg0, %c0_i32, %c0_i32_0 : i32, i32, i32
  }
  func.func @transform_9(%arg0: i32) -> (i32, i32, i32) {
    %c0_i32 = arith.constant 0 : i32
    %c0_i32_0 = arith.constant 0 : i32
    %c0_i32_1 = arith.constant 0 : i32
    return %arg0, %c0_i32, %c0_i32_0 : i32, i32, i32
  }
}

</mosaic_0001>

<bundles_post_ra>
// kernel: vgg_sim_z_d7_forward.1
= control target key start
LH: loop header
LB: loop body
LE: loop exit
PB: predicated region body
PF: predicated region fallthrough
CT: control target
= control target key end

     0   :  { %s17994_s30 = smov 0   ;;  %s21249_s0 = inlined_call_operand.vmem [shape: f32[7,2,18,18,64], index: 0, kind: input, shape index: {}]   ;;  %s21250_s1 = inlined_call_operand.vmem [shape: bf16[7,576,64], index: 1, kind: input, shape index: {}]   ;;  %s21251_s2 = inlined_call_operand.vmem [shape: f32[7,1,64], index: 2, kind: input, shape index: {}]   ;;  %s21252_s3 = inlined_call_operand.vmem [shape: f32[7,1,64], index: 3, kind: input, shape index: {}]   ;;  %s21253_s4 = inlined_call_operand.vmem [shape: bf16[7,576,64], index: 4, kind: input, shape index: {}]   ;;  %s21254_s5 = inlined_call_operand.vmem [shape: f32[7,1,64], index: 5, kind: input, shape index: {}]   ;;  %s21255_s6 = inlined_call_operand.vmem [shape: f32[7,1,64], index: 6, kind: input, shape index: {}]   ;;  %s21256_s7 = inlined_call_operand.vmem [shape: f32[7,16,64,4], index: 7, kind: input, shape index: {}]   ;;  %s21257_s8 = inlined_call_operand.vmem [shape: f32[7,1,4], index: 8, kind: input, shape index: {}]   ;;  %s21258_s9 = inlined_call_operand.vmem [shape: f32[7,2,4], index: 9, kind: output, shape index: {}]  }
   0x1 LB: > { %s13683_s10 = sadd.s32 4294967295, %s17938_s30   ;;  %p13687_p0 = scmp.ge.s32.totalorder %s17938_s30, 1  ;;  %s17938_s30 = sphi %s17994_s30, %s19_s30  }
   0x2   : > { %p357_p1 = scmp.lt.s32.totalorder %s17938_s30, 8 }
   0x4   : > { %p358_p2 = pnand %p13687_p0, %p357_p1 }
   0x6   : > { %361 = sbr.rel (%p358_p2) target bundleno = 2078 (0x81e), region = 56 }
   0xd   : > { %p422_p3 = scmp.lt.s32.totalorder %s13683_s10, 6  ;;  %vm462_vm0 = vcmask 523264   ;;  %vm5015_vm1 = vcmask 1041409   ;;  %vm5017_vm2 = vcmask 1042434   ;;  %vm5019_vm3 = vcmask 1043459  }
   0xe   : > { %vm5021_vm4 = vcmask 1044484   ;;  %vm5023_vm5 = vcmask 1045509   ;;  %vm5025_vm6 = vcmask 1046534   ;;  %vm5027_vm7 = vcmask 1047559  }
   0xf   : > { %s21423_s10 = smov (!%p422_p3, %s13683_s10), 6  ;;  %vm464_vm8 = vcmask 517120   ;;  %vm474_vm9 = vcmask 516096   ;;  %vm17943_vm10 = vmmov 0   ;;  %vm13547_vm11 = vcmask 25600  }
  0x10   : > { %s17798_s11 = smul.u32 864, %s21423_s10  ;;  %s19202_s24 = scalar_lea.vmem %s21251_s2, %s21423_s10 }
  0x11   : > { %s17799_s12 = smul.u32 288, %s21423_s10  ;;  %s19208_s27 = scalar_lea.vmem %s21252_s3, %s21423_s10 }
  0x12   : > { %s18009_s15 = scalar_lea.vmem %s21249_s0, %s17798_s11  ;;  %s15105_s28 = sshll.u32 %s21423_s10, 10 }
  0x13   : > { %s18016_s18 = scalar_lea.vmem %s21250_s1, %s17799_s12  ;;  %v568_v0 = vld [vmem:[%s18009_s15 + $0x1] sm:$0xff]  ;;  %v569_v1 = vld [vmem:[%s18009_s15 + $0x9] sm:$0xff]  ;;  %v14228_v9 = vld [vmem:[%s18009_s15 + $0x1b1] sm:$0xff]  ;;  %s19195_s21 = scalar_lea.vmem %s21253_s4, %s17799_s12 }
  0x14   : > { %v17812_v2 = vld [vmem:[%s18016_s18 + $0x20] sm:$0xff]   ;;  %v600_v3 = vpack.c.bf16 %v569_v1, %v568_v0  ;;  %v17814_v5 = vld [vmem:[%s18016_s18 + $0x28] sm:$0xff]   ;;  %v17816_v7 = vld [vmem:[%s18016_s18 + $0x30] sm:$0xff]   ;;  %s20546_s12 = scalar_lea.vmem %s21256_s7, %s15105_s28  ;;  %s13693_s22 = sshll.u32 %s21423_s10, 1 }
  0x15   : > { %v17813_v4 = vld [vmem:[%s18016_s18 + $0x20] sm:$0xff]   ;;  %15718 = vmatprep.subr.bf16.mxu0 %v17812_v2  ;;  %v17815_v6 = vld [vmem:[%s18016_s18 + $0x28] sm:$0xff]   ;;  %v17817_v8 = vld [vmem:[%s18016_s18 + $0x30] sm:$0xff]   ;;  %s460_s25 = scalar_lea.vmem %s21258_s9, %s13693_s22 }
  0x16   : > { %15726 = vmatprep.mubr.msk.bf16.mxu0 %vm462_vm0, %v600_v3  ;;  %16078 = vmatprep.subr.bf16.mxu1 %v17813_v4  ;;  %v17818_v10 = vld [vmem:[%s18016_s18 + $0x38] sm:$0xff]   ;;  %v571_v15 = vld [vmem:[%s18009_s15 + $0x21] sm:$0xff]  ;;  %v14230_v17 = vld [vmem:[%s18009_s15 + $0x1c9] sm:$0xff] }
  0x17   : > { %15719 = vmatpush3.bf16.msra.mxu0 %v17812_v2  ;;  %16079 = vmatpush3.bf16.msra.mxu1 %v17813_v4  ;;  %v14229_v11 = vld [vmem:[%s18009_s15 + $0x1b9] sm:$0xff]  ;;  %v14231_v18 = vld [vmem:[%s18009_s15 + $0x1d1] sm:$0xff]  ;;  %v14232_v21 = vld [vmem:[%s18009_s15 + $0x1e1] sm:$0xff] }
  0x18   : > { %15720 = vmatprep.subr.bf16.mxu0 %v17814_v5  ;;  %16080 = vmatprep.subr.bf16.mxu1 %v17815_v6  ;;  %v17819_v12 = vld [vmem:[%s18016_s18 + $0x38] sm:$0xff]   ;;  %v5183_v13 = vpack.c.bf16 %v14229_v11, %v14228_v9  ;;  %v17820_v16 = vld [vmem:[%s18016_s18] sm:$0xff]   ;;  %v14233_v22 = vld [vmem:[%s18009_s15 + $0x1e9] sm:$0xff]  ;;  %v5184_v24 = vpack.c.bf16 %v14231_v18, %v14230_v17 }
  0x19   : > { %v570_v14 = vld [vmem:[%s18009_s15 + $0x19] sm:$0xff]  ;;  %v572_v19 = vld [vmem:[%s18009_s15 + $0x31] sm:$0xff]  ;;  %v5185_v26 = vpack.c.bf16 %v14233_v22, %v14232_v21  ;;  %v17821_v27 = vld [vmem:[%s18016_s18 + $0x8] sm:$0xff]  }
  0x1a   : > { %16086 = vmatprep.mubr.msk.bf16.mxu1 %vm462_vm0, %v5183_v13  ;;  %v573_v20 = vld [vmem:[%s18009_s15 + $0x39] sm:$0xff]  ;;  %v601_v23 = vpack.c.bf16 %v571_v15, %v570_v14  ;;  %v574_v29 = vld [vmem:[%s18009_s15 + $0x49] sm:$0xff]  ;;  %v575_v30 = vld [vmem:[%s18009_s15 + $0x51] sm:$0xff] }
  0x1b   : > { %15721 = vmatpush3.bf16.msra.mxu0 %v17814_v5  ;;  %16081 = vmatpush3.bf16.msra.mxu1 %v17815_v6  ;;  %v602_v25 = vpack.c.bf16 %v573_v20, %v572_v19  ;;  %v17822_v28 = vld [vmem:[%s18016_s18] sm:$0xff]   ;;  %v577_v34 = vld [vmem:[%s18009_s15 + $0x69] sm:$0xff]  ;;  %v14236_v35 = vld [vmem:[%s18009_s15 + $0x211] sm:$0xff]  ;;  %v603_v37 = vpack.c.bf16 %v575_v30, %v574_v29 }
  0x1c   : > { %15722 = vmatprep.subr.bf16.mxu0 %v17816_v7  ;;  %16082 = vmatprep.subr.bf16.mxu1 %v17817_v8  ;;  %v14234_v31 = vld [vmem:[%s18009_s15 + $0x1f9] sm:$0xff]  ;;  %v14235_v32 = vld [vmem:[%s18009_s15 + $0x201] sm:$0xff]  ;;  %v17823_v40 = vld [vmem:[%s18016_s18 + $0x10] sm:$0xff]  }
  0x1d   : > { %v576_v33 = vld [vmem:[%s18009_s15 + $0x61] sm:$0xff]  ;;  %v14237_v36 = vld [vmem:[%s18009_s15 + $0x219] sm:$0xff]  ;;  %v5186_v38 = vpack.c.bf16 %v14235_v32, %v14234_v31  ;;  %v14238_v45 = vld [vmem:[%s18009_s15 + $0x229] sm:$0xff] }
  0x1e   : > { %v604_v39 = vpack.c.bf16 %v577_v34, %v576_v33  ;;  %v5187_v41 = vpack.c.bf16 %v14237_v36, %v14236_v35  ;;  %v17824_v42 = vld [vmem:[%s18016_s18 + $0x8] sm:$0xff]   ;;  %v578_v43 = vld [vmem:[%s18009_s15 + $0x79] sm:$0xff]  ;;  %v14239_v46 = vld [vmem:[%s18009_s15 + $0x231] sm:$0xff] }
  0x1f   : > { %15723 = vmatpush3.bf16.msra.mxu0 %v17816_v7  ;;  %16083 = vmatpush3.bf16.msra.mxu1 %v17817_v8  ;;  %v579_v44 = vld [vmem:[%s18009_s15 + $0x81] sm:$0xff]  ;;  %v580_v47 = vld [vmem:[%s18009_s15 + $0x91] sm:$0xff]  ;;  %v581_v48 = vld [vmem:[%s18009_s15 + $0x99] sm:$0xff]  ;;  %v5188_v53 = vpack.c.bf16 %v14239_v46, %v14238_v45 }
  0x20   : > { %15724 = vmatprep.subr.bf16.mxu0 %v17818_v10  ;;  %16084 = vmatprep.subr.bf16.mxu1 %v17819_v12  ;;  %v14240_v49 = vld [vmem:[%s18009_s15 + $0x241] sm:$0xff]  ;;  %v14241_v50 = vld [vmem:[%s18009_s15 + $0x249] sm:$0xff]  ;;  %v605_v51 = vpack.c.bf16 %v579_v44, %v578_v43  ;;  %v17825_v52 = vld [vmem:[%s18016_s18 + $0x18] sm:$0xff]   ;;  %v606_v54 = vpack.c.bf16 %v581_v48, %v580_v47 }
  0x21   : > { %v5189_v55 = vpack.c.bf16 %v14241_v50, %v14240_v49  ;;  %v17826_v56 = vld [vmem:[%s18016_s18 + $0x10] sm:$0xff]   ;;  %v14242_v59 = vld [vmem:[%s18009_s15 + $0x259] sm:$0xff]  ;;  %v14243_v60 = vld [vmem:[%s18009_s15 + $0x261] sm:$0xff] }
  0x22   : > { %v582_v57 = vld [vmem:[%s18009_s15 + $0xa9] sm:$0xff]  ;;  %v583_v58 = vld [vmem:[%s18009_s15 + $0xb1] sm:$0xff]  ;;  %v584_v61 = vld [vmem:[%s18009_s15 + $0xc1] sm:$0xff]  ;;  %v5190_v3 = vpack.c.bf16 %v14243_v60, %v14242_v59 }
  0x23   : > { %15725 = vmatpush3.bf16.msra.mxu0 %v17818_v10  ;;  %16085 = vmatpush3.bf16.msra.mxu1 %v17819_v12  ;;  %v585_v62 = vld [vmem:[%s18009_s15 + $0xc9] sm:$0xff]  ;;  %v17827_v63 = vld [vmem:[%s18016_s18 + $0x18] sm:$0xff]   ;;  %v607_v2 = vpack.c.bf16 %v583_v58, %v582_v57  ;;  %v18085_v5 = vld [vmem:[%s18016_s18 + $0x40] sm:$0xff]  }
  0x24   : > { %15758 = vmatprep.subr.bf16.mxu0 %v17820_v16  ;;  %16118 = vmatprep.subr.bf16.mxu1 %v17822_v28  ;;  %v14244_v0 = vld [vmem:[%s18009_s15 + $0x271] sm:$0xff]  ;;  %v14245_v1 = vld [vmem:[%s18009_s15 + $0x279] sm:$0xff]  ;;  %v608_v4 = vpack.c.bf16 %v585_v62, %v584_v61  ;;  %v587_v8 = vld [vmem:[%s18009_s15 + $0xe1] sm:$0xff] }
  0x25   : > { %v5191_v6 = vpack.c.bf16 %v14245_v1, %v14244_v0  ;;  %v586_v7 = vld [vmem:[%s18009_s15 + $0xd9] sm:$0xff]  ;;  %v14246_v9 = vld [vmem:[%s18009_s15 + $0x289] sm:$0xff]  ;;  %v14247_v10 = vld [vmem:[%s18009_s15 + $0x291] sm:$0xff] }
  0x26   : > { %15727 = vmatmul.mubr.msk.bf16.vlgmr.msra.gmra.mrb[0].mxu0 %vm462_vm0, %v601_v23  ;;  %16087 = vmatmul.mubr.msk.bf16.vlgmr.msra.gmra.mrb[0].mxu1 %vm462_vm0, %v5184_v24  ;;  %v588_v11 = vld [vmem:[%s18009_s15 + $0xf1] sm:$0xff]  ;;  %v589_v12 = vld [vmem:[%s18009_s15 + $0xf9] sm:$0xff]  ;;  %v14248_v13 = vld [vmem:[%s18009_s15 + $0x2a1] sm:$0xff]  ;;  %v609_v15 = vpack.c.bf16 %v587_v8, %v586_v7 }
  0x27   : > { %15759 = vmatpush3.bf16.msra.mxu0 %v17820_v16  ;;  %15730 = vmatprep.mubr.msk.bf16.mxu0 %vm462_vm0, %v602_v25  ;;  %v14249_v14 = vld [vmem:[%s18009_s15 + $0x2a9] sm:$0xff]  ;;  %v5192_v16 = vpack.c.bf16 %v14247_v10, %v14246_v9  ;;  %v610_v17 = vpack.c.bf16 %v589_v12, %v588_v11  ;;  %v18101_v18 = vld [vmem:[%s18016_s18 + $0x40] sm:$0xff]   ;;  %v591_v21 = vld [vmem:[%s18009_s15 + $0x111] sm:$0xff] }
  0x28   : > { %16090 = vmatprep.mubr.msk.bf16.mxu1 %vm462_vm0, %v5185_v26  ;;  %15760 = vmatprep.subr.bf16.mxu0 %v17821_v27  ;;  %v5193_v19 = vpack.c.bf16 %v14249_v14, %v14248_v13  ;;  %v590_v20 = vld [vmem:[%s18009_s15 + $0x109] sm:$0xff]  ;;  %v14250_v22 = vld [vmem:[%s18009_s15 + $0x2b9] sm:$0xff]  ;;  %v14251_v23 = vld [vmem:[%s18009_s15 + $0x2c1] sm:$0xff] }
  0x29   : > { %16119 = vmatpush3.bf16.msra.mxu1 %v17822_v28  ;;  %v592_v24 = vld [vmem:[%s18009_s15 + $0x121] sm:$0xff]  ;;  %v593_v25 = vld [vmem:[%s18009_s15 + $0x129] sm:$0xff]  ;;  %v14252_v26 = vld [vmem:[%s18009_s15 + $0x2d1] sm:$0xff]  ;;  %v611_v28 = vpack.c.bf16 %v591_v21, %v590_v20  ;;  %v5194_v29 = vpack.c.bf16 %v14251_v23, %v14250_v22 }
  0x2a   : > { %16120 = vmatprep.subr.bf16.mxu1 %v17824_v42  ;;  %v612_v30 = vpack.c.bf16 %v593_v25, %v592_v24  ;;  %v594_v32 = vld [vmem:[%s18009_s15 + $0x139] sm:$0xff]  ;;  %v595_v33 = vld [vmem:[%s18009_s15 + $0x141] sm:$0xff]  ;;  %v14254_v34 = vld [vmem:[%s18009_s15 + $0x2e9] sm:$0xff] }
  0x2b   : > { %15761 = vmatpush3.bf16.msra.mxu0 %v17821_v27  ;;  %v14253_v27 = vld [vmem:[%s18009_s15 + $0x2d9] sm:$0xff]  ;;  %v14255_v35 = vld [vmem:[%s18009_s15 + $0x2f1] sm:$0xff]  ;;  %v598_v44 = vld [vmem:[%s18009_s15 + $0x169] sm:$0xff] }
  0x2c   : > { %15762 = vmatprep.subr.bf16.mxu0 %v17823_v40  ;;  %v5195_v31 = vpack.c.bf16 %v14253_v27, %v14252_v26  ;;  %v596_v36 = vld [vmem:[%s18009_s15 + $0x151] sm:$0xff]  ;;  %v14258_v46 = vld [vmem:[%s18009_s15 + $0x319] sm:$0xff]  ;;  %v14259_v47 = vld [vmem:[%s18009_s15 + $0x321] sm:$0xff] }
  0x2d   : > { %16121 = vmatpush3.bf16.msra.mxu1 %v17824_v42  ;;  %v599_v45 = vld [vmem:[%s18009_s15 + $0x171] sm:$0xff]  ;;  %v512_v48 = vld [vmem:[%s18009_s15] sm:$0xff]  ;;  %v513_v49 = vld [vmem:[%s18009_s15 + $0x8] sm:$0xff] }
  0x2e   : > { %15731 = vmatmul.mubr.msk.bf16.gmra.mrb[4].mxu0 %vm462_vm0, %v603_v37  ;;  %16091 = vmatmul.mubr.msk.bf16.gmra.mrb[4].mxu1 %vm462_vm0, %v5186_v38  ;;  %v597_v37 = vld [vmem:[%s18009_s15 + $0x159] sm:$0xff]  ;;  %v14256_v38 = vld [vmem:[%s18009_s15 + $0x301] sm:$0xff]  ;;  %v14196_v50 = vld [vmem:[%s18009_s15 + $0x1b0] sm:$0xff] }
  0x2f   : > { %15734 = vmatprep.mubr.msk.bf16.mxu0 %vm462_vm0, %v604_v39  ;;  %16094 = vmatprep.mubr.msk.bf16.mxu1 %vm462_vm0, %v5187_v41  ;;  %v14257_v39 = vld [vmem:[%s18009_s15 + $0x309] sm:$0xff]  ;;  %v5196_v41 = vpack.c.bf16 %v14255_v35, %v14254_v34  ;;  %v614_v42 = vpack.c.bf16 %v597_v37, %v596_v36  ;;  %v515_v57 = vld [vmem:[%s18009_s15 + $0x20] sm:$0xff]  ;;  %v517_v61 = vld [vmem:[%s18009_s15 + $0x38] sm:$0xff] }
  0x30   : > { %15763 = vmatpush3.bf16.msra.mxu0 %v17823_v40  ;;  %16122 = vmatprep.subr.bf16.mxu1 %v17826_v56  ;;  %v613_v40 = vpack.c.bf16 %v595_v33, %v594_v32  ;;  %v5197_v43 = vpack.c.bf16 %v14257_v39, %v14256_v38  ;;  %v14198_v58 = vld [vmem:[%s18009_s15 + $0x1c8] sm:$0xff]  ;;  %v14199_v59 = vld [vmem:[%s18009_s15 + $0x1d0] sm:$0xff]  ;;  %v14200_v62 = vld [vmem:[%s18009_s15 + $0x1e0] sm:$0xff] }
  0x31   : > { %15764 = vmatprep.subr.bf16.mxu0 %v17825_v52  ;;  %16123 = vmatpush3.bf16.msra.mxu1 %v17826_v56  ;;  %v514_v56 = vld [vmem:[%s18009_s15 + $0x18] sm:$0xff]  ;;  %v516_v60 = vld [vmem:[%s18009_s15 + $0x30] sm:$0xff]  ;;  %v18154_v1 = vpack.c.bf16 %v14199_v59, %v14198_v58  ;;  %v17832_v9 = vld [vmem:[%s18016_s18 + $0x48] sm:$0xff]  }
  0x32   : > { %16124 = vmatprep.subr.bf16.mxu1 %v17827_v63  ;;  %v18152_v0 = vpack.c.bf16 %v515_v57, %v514_v56  ;;  %v519_v7 = vld [vmem:[%s18009_s15 + $0x50] sm:$0xff]  ;;  %v14202_v8 = vld [vmem:[%s18009_s15 + $0x1f8] sm:$0xff]  ;;  %v14203_v10 = vld [vmem:[%s18009_s15 + $0x200] sm:$0xff] }
  0x33   : > { %v520_v11 = vld [vmem:[%s18009_s15 + $0x60] sm:$0xff]  ;;  %v521_v12 = vld [vmem:[%s18009_s15 + $0x68] sm:$0xff]  ;;  %v17831_v13 = vld [vmem:[%s18016_s18 + $0x50] sm:$0xff]  }
  0x34   : > { %15765 = vmatpush3.bf16.msra.mxu0 %v17825_v52  ;;  %v615_v52 = vpack.c.bf16 %v599_v45, %v598_v44  ;;  %v14204_v14 = vld [vmem:[%s18009_s15 + $0x210] sm:$0xff]  ;;  %v17835_v21 = vld [vmem:[%s18016_s18 + $0x58] sm:$0xff]   ;;  %v523_v23 = vld [vmem:[%s18009_s15 + $0x80] sm:$0xff] }
  0x35   : > { %16125 = vmatpush3.bf16.msra.mxu1 %v17827_v63  ;;  %15798 = vmatprep.subr.bf16.mxu0 %v18085_v5  ;;  %v14201_v63 = vld [vmem:[%s18009_s15 + $0x1e8] sm:$0xff]  ;;  %v522_v22 = vld [vmem:[%s18009_s15 + $0x78] sm:$0xff]  ;;  %v14207_v25 = vld [vmem:[%s18009_s15 + $0x230] sm:$0xff] }
  0x36   : > { %15735 = vmatmul.mubr.msk.bf16.gmra.mrb[8].mxu0 %vm462_vm0, %v605_v51  ;;  %16095 = vmatmul.mubr.msk.bf16.gmra.mrb[8].mxu1 %vm462_vm0, %v5188_v53  ;;  %v14197_v51 = vld [vmem:[%s18009_s15 + $0x1b8] sm:$0xff]  ;;  %v5198_v53 = vpack.c.bf16 %v14259_v47, %v14258_v46  ;;  %v14206_v24 = vld [vmem:[%s18009_s15 + $0x228] sm:$0xff]  ;;  %v524_v26 = vld [vmem:[%s18009_s15 + $0x90] sm:$0xff] }
  0x37   : > { %15738 = vmatprep.mubr.msk.bf16.mxu0 %vm462_vm0, %v606_v54  ;;  %16098 = vmatprep.mubr.msk.bf16.mxu1 %vm462_vm0, %v5189_v55  ;;  %v544_v54 = vpack.c.bf16 %v513_v49, %v512_v48  ;;  %v5127_v55 = vpack.c.bf16 %v14197_v51, %v14196_v50  ;;  %v525_v27 = vld [vmem:[%s18009_s15 + $0x98] sm:$0xff]  ;;  %v18214_v32 = vld [vmem:[%s18016_s18 + $0x60] sm:$0xff]   ;;  %v18216_v33 = vpack.c.bf16 %v14207_v25, %v14206_v24  ;;  %v526_v36 = vld [vmem:[%s18009_s15 + $0xa8] sm:$0xff] }
  0x38   : > { %16158 = vmatprep.subr.bf16.mxu1 %v18101_v18  ;;  %v18218_v34 = vpack.c.bf16 %v525_v27, %v524_v26  ;;  %v527_v37 = vld [vmem:[%s18009_s15 + $0xb0] sm:$0xff]  ;;  %v14210_v38 = vld [vmem:[%s18009_s15 + $0x258] sm:$0xff]  ;;  %v14211_v39 = vld [vmem:[%s18009_s15 + $0x260] sm:$0xff] }
  0x39   : > { %v18240_v44 = vpack.c.bf16 %v527_v37, %v526_v36  ;;  %v18242_v45 = vpack.c.bf16 %v14211_v39, %v14210_v38  ;;  %v530_v48 = vld [vmem:[%s18009_s15 + $0xd8] sm:$0xff]  ;;  %v531_v49 = vld [vmem:[%s18009_s15 + $0xe0] sm:$0xff]  ;;  %v14214_v50 = vld [vmem:[%s18009_s15 + $0x288] sm:$0xff] }
  0x3a   : > { %v14215_v51 = vld [vmem:[%s18009_s15 + $0x290] sm:$0xff]  ;;  %v18264_v56 = vpack.c.bf16 %v531_v49, %v530_v48  ;;  %v14226_v36 = vld [vmem:[%s18009_s15 + $0x318] sm:$0xff]  ;;  %v14227_v37 = vld [vmem:[%s18009_s15 + $0x320] sm:$0xff] }
  0x3b   : > { %v18266_v57 = vpack.c.bf16 %v14215_v51, %v14214_v50  ;;  %v1090_v38 = vld [vmem:[%s18009_s15 + $0x2] sm:$0xff]  ;;  %v1091_v39 = vld [vmem:[%s18009_s15 + $0xa] sm:$0xff]  ;;  %v1092_v50 = vld [vmem:[%s18009_s15 + $0x1a] sm:$0xff] }
  0x3c   : > { %v1122_v48 = vpack.c.bf16 %v1091_v39, %v1090_v38  ;;  %v1093_v51 = vld [vmem:[%s18009_s15 + $0x22] sm:$0xff]  ;;  %v17843_v39 = vld [vmem:[%s18016_s18 + $0x78] sm:$0xff]  }
  0x3e   : > { %15739 = vmatmul.mubr.msk.bf16.gmra.mrb[12].mxu0 %vm462_vm0, %v607_v2  ;;  %16099 = vmatmul.mubr.msk.bf16.gmra.mrb[12].mxu1 %vm462_vm0, %v5190_v3  ;;  %v18156_v2 = vpack.c.bf16 %v517_v61, %v516_v60  ;;  %v18158_v3 = vpack.c.bf16 %v14201_v63, %v14200_v62  ;;  %v534_v60 = vld [vmem:[%s18009_s15 + $0x108] sm:$0xff]  ;;  %v535_v61 = vld [vmem:[%s18009_s15 + $0x110] sm:$0xff]  ;;  %v14218_v62 = vld [vmem:[%s18009_s15 + $0x2b8] sm:$0xff] }
  0x3f   : > { %15742 = vmatprep.mubr.msk.bf16.mxu0 %vm462_vm0, %v608_v4  ;;  %16102 = vmatprep.mubr.msk.bf16.mxu1 %vm462_vm0, %v5191_v6  ;;  %v518_v4 = vld [vmem:[%s18009_s15 + $0x48] sm:$0xff]  ;;  %v14219_v63 = vld [vmem:[%s18009_s15 + $0x2c0] sm:$0xff] }
  0x40   : > { %v17829_v6 = vld [vmem:[%s18016_s18 + $0x48] sm:$0xff]  }
  0x46   : > { %15743 = vmatmul.mubr.msk.bf16.gmra.mrb[16].mxu0 %vm462_vm0, %v609_v15  ;;  %16103 = vmatmul.mubr.msk.bf16.gmra.mrb[16].mxu1 %vm462_vm0, %v5192_v16  ;;  %v14205_v15 = vld [vmem:[%s18009_s15 + $0x218] sm:$0xff]  ;;  %v18181_v16 = vpack.c.bf16 %v519_v7, %v518_v4  ;;  %v536_v4 = vld [vmem:[%s18009_s15 + $0x120] sm:$0xff]  ;;  %v14220_v7 = vld [vmem:[%s18009_s15 + $0x2d0] sm:$0xff] }
  0x47   : > { %15746 = vmatprep.mubr.msk.bf16.mxu0 %vm462_vm0, %v610_v17  ;;  %16106 = vmatprep.mubr.msk.bf16.mxu1 %vm462_vm0, %v5193_v19  ;;  %v18184_v17 = vpack.c.bf16 %v14203_v10, %v14202_v8  ;;  %v18186_v19 = vpack.c.bf16 %v521_v12, %v520_v11  ;;  %v18188_v20 = vpack.c.bf16 %v14205_v15, %v14204_v14  ;;  %v14221_v8 = vld [vmem:[%s18009_s15 + $0x2d8] sm:$0xff]  ;;  %v539_v14 = vld [vmem:[%s18009_s15 + $0x140] sm:$0xff]  ;;  %v14222_v15 = vld [vmem:[%s18009_s15 + $0x2e8] sm:$0xff] }
  0x48   : > { %v18290_v10 = vpack.c.bf16 %v14219_v63, %v14218_v62  ;;  %v18294_v12 = vpack.c.bf16 %v14221_v8, %v14220_v7  ;;  %v18354_v62 = vpack.c.bf16 %v1093_v51, %v1092_v50  ;;  %v17837_v7 = vld [vmem:[%s18016_s18 + $0x68] sm:$0xff]   ;;  %v1102_v50 = vld [vmem:[%s18009_s15 + $0x92] sm:$0xff]  ;;  %v1103_v51 = vld [vmem:[%s18009_s15 + $0x9a] sm:$0xff] }
  0x49   : > { %v1096_v8 = vld [vmem:[%s18009_s15 + $0x4a] sm:$0xff] }
  0x4e   : > { %15747 = vmatmul.mubr.msk.bf16.gmra.mrb[20].mxu0 %vm462_vm0, %v611_v28  ;;  %16107 = vmatmul.mubr.msk.bf16.gmra.mrb[20].mxu1 %vm462_vm0, %v5194_v29  ;;  %v14208_v28 = vld [vmem:[%s18009_s15 + $0x240] sm:$0xff]  ;;  %v14209_v29 = vld [vmem:[%s18009_s15 + $0x248] sm:$0xff] }
  0x4f   : > { %15750 = vmatprep.mubr.msk.bf16.mxu0 %vm462_vm0, %v612_v30  ;;  %16110 = vmatprep.mubr.msk.bf16.mxu1 %vm462_vm0, %v5195_v31  ;;  %v18209_v30 = vld [vmem:[%s18016_s18 + $0x60] sm:$0xff]   ;;  %v18211_v31 = vpack.c.bf16 %v523_v23, %v522_v22  ;;  %v18220_v35 = vpack.c.bf16 %v14209_v29, %v14208_v28  ;;  %v14225_v23 = vld [vmem:[%s18009_s15 + $0x308] sm:$0xff]  ;;  %v543_v29 = vld [vmem:[%s18009_s15 + $0x170] sm:$0xff] }
  0x50   : > { %v14224_v22 = vld [vmem:[%s18009_s15 + $0x300] sm:$0xff]  ;;  %v542_v28 = vld [vmem:[%s18009_s15 + $0x168] sm:$0xff] }
  0x51   : > { %v18318_v27 = vpack.c.bf16 %v14225_v23, %v14224_v22  ;;  %v17839_v22 = vld [vmem:[%s18016_s18 + $0x70] sm:$0xff]  }
  0x52   : > { %v14308_v23 = vld [vmem:[%s18009_s15 + $0x212] sm:$0xff] }
  0x56   : > { %15751 = vmatmul.mubr.msk.bf16.gmra.mrb[24].mxu0 %vm462_vm0, %v613_v40  ;;  %16111 = vmatmul.mubr.msk.bf16.gmra.mrb[24].mxu1 %vm462_vm0, %v5196_v41  ;;  %v528_v40 = vld [vmem:[%s18009_s15 + $0xc0] sm:$0xff]  ;;  %v529_v41 = vld [vmem:[%s18009_s15 + $0xc8] sm:$0xff] }
  0x57   : > { %15754 = vmatprep.mubr.msk.bf16.mxu0 %vm462_vm0, %v614_v42  ;;  %16114 = vmatprep.mubr.msk.bf16.mxu1 %vm462_vm0, %v5197_v43  ;;  %v14212_v42 = vld [vmem:[%s18009_s15 + $0x270] sm:$0xff]  ;;  %v14213_v43 = vld [vmem:[%s18009_s15 + $0x278] sm:$0xff]  ;;  %v18244_v46 = vpack.c.bf16 %v529_v41, %v528_v40 }
  0x58   : > { %v18246_v47 = vpack.c.bf16 %v14213_v43, %v14212_v42  ;;  %v14300_v40 = vld [vmem:[%s18009_s15 + $0x1b2] sm:$0xff]  ;;  %v14301_v41 = vld [vmem:[%s18009_s15 + $0x1ba] sm:$0xff]  ;;  %v18336_v42 = vpack.c.bf16 %v543_v29, %v542_v28  ;;  %v18338_v43 = vpack.c.bf16 %v14227_v37, %v14226_v36 }
  0x59   : > { %v5705_v49 = vpack.c.bf16 %v14301_v41, %v14300_v40  ;;  %v14309_v28 = vld [vmem:[%s18009_s15 + $0x21a] sm:$0xff]  ;;  %v17842_v29 = vld [vmem:[%s18016_s18 + $0x70] sm:$0xff]   ;;  %v1101_v41 = vld [vmem:[%s18009_s15 + $0x82] sm:$0xff] }
  0x5a   : > { %v18390_v38 = vpack.c.bf16 %v14309_v28, %v14308_v23  ;;  %v1100_v40 = vld [vmem:[%s18009_s15 + $0x7a] sm:$0xff] }
  0x5b   : > { %v14317_v23 = vld [vmem:[%s18009_s15 + $0x27a] sm:$0xff] }
  0x5e   : > { %15755 = vmatmul.mubr.msk.bf16.gmra.mrb[28].mxu0 %vm462_vm0, %v615_v52  ;;  %16115 = vmatmul.mubr.msk.bf16.gmra.mrb[28].mxu1 %vm462_vm0, %v5198_v53  ;;  %v532_v52 = vld [vmem:[%s18009_s15 + $0xf0] sm:$0xff]  ;;  %v533_v53 = vld [vmem:[%s18009_s15 + $0xf8] sm:$0xff] }
  0x5f   : > { %15766 = vmatprep.mubr.msk.bf16.mxu0 %vm462_vm0, %v544_v54  ;;  %16126 = vmatprep.mubr.msk.bf16.mxu1 %vm462_vm0, %v5127_v55  ;;  %v14216_v54 = vld [vmem:[%s18009_s15 + $0x2a0] sm:$0xff]  ;;  %v14217_v55 = vld [vmem:[%s18009_s15 + $0x2a8] sm:$0xff]  ;;  %v18268_v58 = vpack.c.bf16 %v533_v53, %v532_v52  ;;  %v14303_v53 = vld [vmem:[%s18009_s15 + $0x1d2] sm:$0xff] }
  0x60   : > { %v18270_v59 = vpack.c.bf16 %v14217_v55, %v14216_v54  ;;  %v14302_v52 = vld [vmem:[%s18009_s15 + $0x1ca] sm:$0xff]  ;;  %v1094_v54 = vld [vmem:[%s18009_s15 + $0x32] sm:$0xff]  ;;  %v1095_v55 = vld [vmem:[%s18009_s15 + $0x3a] sm:$0xff] }
  0x61   : > { %v18356_v63 = vpack.c.bf16 %v14303_v53, %v14302_v52  ;;  %v14312_v52 = vld [vmem:[%s18009_s15 + $0x242] sm:$0xff]  ;;  %v14313_v53 = vld [vmem:[%s18009_s15 + $0x24a] sm:$0xff] }
  0x66   : > { %15767 = vmatmul.mubr.msk.bf16.vlgmr.msra.gmra.mrb[0].mxu0 %vm462_vm0, %v18152_v0  ;;  %16127 = vmatmul.mubr.msk.bf16.vlgmr.msra.gmra.mrb[0].mxu1 %vm462_vm0, %v18154_v1 }
  0x67   : > { %15799 = vmatpush3.bf16.msra.mxu0 %v18085_v5  ;;  %15770 = vmatprep.mubr.msk.bf16.mxu0 %vm462_vm0, %v18156_v2  ;;  %v17834_v5 = vld [vmem:[%s18016_s18 + $0x50] sm:$0xff]  }
  0x68   : > { %16130 = vmatprep.mubr.msk.bf16.mxu1 %vm462_vm0, %v18158_v3  ;;  %15800 = vmatprep.subr.bf16.mxu0 %v17829_v6 }
  0x69   : > { %16159 = vmatpush3.bf16.msra.mxu1 %v18101_v18  ;;  %v17833_v18 = vld [vmem:[%s18016_s18 + $0x58] sm:$0xff]  }
  0x6a   : > { %16160 = vmatprep.subr.bf16.mxu1 %v17832_v9 }
  0x6b   : > { %15801 = vmatpush3.bf16.msra.mxu0 %v17829_v6  ;;  %v537_v6 = vld [vmem:[%s18009_s15 + $0x128] sm:$0xff] }
  0x6c   : > { %15802 = vmatprep.subr.bf16.mxu0 %v17831_v13  ;;  %v18292_v11 = vpack.c.bf16 %v537_v6, %v536_v4  ;;  %v18358_v4 = vpack.c.bf16 %v1095_v55, %v1094_v54  ;;  %v18411_v54 = vld [vmem:[%s18016_s18 + $0x80] sm:$0xff]   ;;  %v18413_v55 = vpack.c.bf16 %v1101_v41, %v1100_v40 }
  0x6d   : > { %16161 = vmatpush3.bf16.msra.mxu1 %v17832_v9  ;;  %v18288_v9 = vpack.c.bf16 %v535_v61, %v534_v60  ;;  %v14304_v60 = vld [vmem:[%s18009_s15 + $0x1e2] sm:$0xff]  ;;  %v14305_v61 = vld [vmem:[%s18009_s15 + $0x1ea] sm:$0xff]  ;;  %v1108_v40 = vld [vmem:[%s18009_s15 + $0xda] sm:$0xff] }
  0x6e   : > { %15771 = vmatmul.mubr.msk.bf16.gmra.mrb[4].mxu0 %vm462_vm0, %v18181_v16  ;;  %16162 = vmatprep.subr.bf16.mxu1 %v17834_v5  ;;  %v18360_v6 = vpack.c.bf16 %v14305_v61, %v14304_v60  ;;  %v18416_v60 = vld [vmem:[%s18016_s18 + $0x80] sm:$0xff]  }
  0x6f   : > { %16131 = vmatmul.mubr.msk.bf16.gmra.mrb[4].mxu1 %vm462_vm0, %v18184_v17  ;;  %15774 = vmatprep.mubr.msk.bf16.mxu0 %vm462_vm0, %v18186_v19  ;;  %v1109_v41 = vld [vmem:[%s18009_s15 + $0xe2] sm:$0xff] }
  0x70   : > { %16134 = vmatprep.mubr.msk.bf16.mxu1 %vm462_vm0, %v18188_v20  ;;  %15803 = vmatpush3.bf16.msra.mxu0 %v17831_v13  ;;  %v538_v13 = vld [vmem:[%s18009_s15 + $0x138] sm:$0xff] }
  0x71   : > { %15804 = vmatprep.subr.bf16.mxu0 %v17833_v18  ;;  %16163 = vmatpush3.bf16.msra.mxu1 %v17834_v5  ;;  %v14223_v5 = vld [vmem:[%s18009_s15 + $0x2f0] sm:$0xff]  ;;  %v18312_v24 = vpack.c.bf16 %v539_v14, %v538_v13  ;;  %v17840_v13 = vld [vmem:[%s18016_s18 + $0x68] sm:$0xff]  }
  0x72   : > { %16164 = vmatprep.subr.bf16.mxu1 %v17835_v21  ;;  %v18314_v25 = vpack.c.bf16 %v14223_v5, %v14222_v15  ;;  %v1097_v14 = vld [vmem:[%s18009_s15 + $0x52] sm:$0xff]  ;;  %v14306_v15 = vld [vmem:[%s18009_s15 + $0x1fa] sm:$0xff]  ;;  %v14307_v5 = vld [vmem:[%s18009_s15 + $0x202] sm:$0xff] }
  0x73   : > { %v18386_v36 = vpack.c.bf16 %v14307_v5, %v14306_v15  ;;  %v14314_v15 = vld [vmem:[%s18009_s15 + $0x25a] sm:$0xff]  ;;  %v14315_v5 = vld [vmem:[%s18009_s15 + $0x262] sm:$0xff] }
  0x74   : > { %15805 = vmatpush3.bf16.msra.mxu0 %v17833_v18  ;;  %v540_v18 = vld [vmem:[%s18009_s15 + $0x150] sm:$0xff] }
  0x75   : > { %16165 = vmatpush3.bf16.msra.mxu1 %v17835_v21  ;;  %15838 = vmatprep.subr.bf16.mxu0 %v18209_v30  ;;  %v541_v21 = vld [vmem:[%s18009_s15 + $0x158] sm:$0xff] }
  0x76   : > { %15775 = vmatmul.mubr.msk.bf16.gmra.mrb[8].mxu0 %vm462_vm0, %v18211_v31  ;;  %16198 = vmatprep.subr.bf16.mxu1 %v18214_v32  ;;  %v18316_v26 = vpack.c.bf16 %v541_v21, %v540_v18  ;;  %v1098_v18 = vld [vmem:[%s18009_s15 + $0x62] sm:$0xff]  ;;  %v1099_v21 = vld [vmem:[%s18009_s15 + $0x6a] sm:$0xff] }
  0x77   : > { %16135 = vmatmul.mubr.msk.bf16.gmra.mrb[8].mxu1 %vm462_vm0, %v18216_v33  ;;  %15778 = vmatprep.mubr.msk.bf16.mxu0 %vm462_vm0, %v18218_v34  ;;  %v18388_v37 = vpack.c.bf16 %v1099_v21, %v1098_v18  ;;  %v1106_v18 = vld [vmem:[%s18009_s15 + $0xc2] sm:$0xff]  ;;  %v1107_v21 = vld [vmem:[%s18009_s15 + $0xca] sm:$0xff] }
  0x78   : > { %16138 = vmatprep.mubr.msk.bf16.mxu1 %vm462_vm0, %v18220_v35 }
  0x7e   : > { %15779 = vmatmul.mubr.msk.bf16.gmra.mrb[12].mxu0 %vm462_vm0, %v18240_v44 }
  0x7f   : > { %16139 = vmatmul.mubr.msk.bf16.gmra.mrb[12].mxu1 %vm462_vm0, %v18242_v45  ;;  %15782 = vmatprep.mubr.msk.bf16.mxu0 %vm462_vm0, %v18244_v46 }
  0x80   : > { %16142 = vmatprep.mubr.msk.bf16.mxu1 %vm462_vm0, %v18246_v47 }
  0x86   : > { %15783 = vmatmul.mubr.msk.bf16.gmra.mrb[16].mxu0 %vm462_vm0, %v18264_v56 }
  0x87   : > { %16143 = vmatmul.mubr.msk.bf16.gmra.mrb[16].mxu1 %vm462_vm0, %v18266_v57  ;;  %15786 = vmatprep.mubr.msk.bf16.mxu0 %vm462_vm0, %v18268_v58 }
  0x88   : > { %16146 = vmatprep.mubr.msk.bf16.mxu1 %vm462_vm0, %v18270_v59 }
  0x8e   : > { %15787 = vmatmul.mubr.msk.bf16.gmra.mrb[20].mxu0 %vm462_vm0, %v18288_v9 }
  0x8f   : > { %16147 = vmatmul.mubr.msk.bf16.gmra.mrb[20].mxu1 %vm462_vm0, %v18290_v10  ;;  %15790 = vmatprep.mubr.msk.bf16.mxu0 %vm462_vm0, %v18292_v11 }
  0x90   : > { %16150 = vmatprep.mubr.msk.bf16.mxu1 %vm462_vm0, %v18294_v12 }
  0x96   : > { %15791 = vmatmul.mubr.msk.bf16.gmra.mrb[24].mxu0 %vm462_vm0, %v18312_v24 }
  0x97   : > { %16151 = vmatmul.mubr.msk.bf16.gmra.mrb[24].mxu1 %vm462_vm0, %v18314_v25  ;;  %15794 = vmatprep.mubr.msk.bf16.mxu0 %vm462_vm0, %v18316_v26 }
  0x98   : > { %16154 = vmatprep.mubr.msk.bf16.mxu1 %vm462_vm0, %v18318_v27 }
  0x9e   : > { %15795 = vmatmul.mubr.msk.bf16.gmra.mrb[28].mxu0 %vm462_vm0, %v18336_v42 }
  0x9f   : > { %16155 = vmatmul.mubr.msk.bf16.gmra.mrb[28].mxu1 %vm462_vm0, %v18338_v43  ;;  %15806 = vmatprep.mubr.msk.bf16.mxu0 %vm462_vm0, %v1122_v48  ;;  %v14310_v48 = vld [vmem:[%s18009_s15 + $0x22a] sm:$0xff] }
  0xa0   : > { %16166 = vmatprep.mubr.msk.bf16.mxu1 %vm462_vm0, %v5705_v49  ;;  %v14311_v49 = vld [vmem:[%s18009_s15 + $0x232] sm:$0xff] }
  0xa1   : > { %v18418_v61 = vpack.c.bf16 %v14311_v49, %v14310_v48  ;;  %v14318_v48 = vld [vmem:[%s18009_s15 + $0x28a] sm:$0xff]  ;;  %v14319_v49 = vld [vmem:[%s18009_s15 + $0x292] sm:$0xff] }
  0xa6   : > { %15807 = vmatmul.mubr.msk.bf16.vlgmr.msra.gmra.mrb[0].mxu0 %vm462_vm0, %v18354_v62 }
  0xa7   : > { %16167 = vmatmul.mubr.msk.bf16.vlgmr.msra.gmra.mrb[0].mxu1 %vm462_vm0, %v18356_v63  ;;  %15839 = vmatpush3.bf16.msra.mxu0 %v18209_v30  ;;  %v18383_v30 = vpack.c.bf16 %v1097_v14, %v1096_v8  ;;  %v18422_v8 = vpack.c.bf16 %v14313_v53, %v14312_v52  ;;  %v1105_v14 = vld [vmem:[%s18009_s15 + $0xb2] sm:$0xff]  ;;  %v14320_v52 = vld [vmem:[%s18009_s15 + $0x2a2] sm:$0xff]  ;;  %v14321_v53 = vld [vmem:[%s18009_s15 + $0x2aa] sm:$0xff] }
  0xa8   : > { %15810 = vmatprep.mubr.msk.bf16.mxu0 %vm462_vm0, %v18358_v4  ;;  %16170 = vmatprep.mubr.msk.bf16.mxu1 %vm462_vm0, %v18360_v6 }
  0xa9   : > { %15840 = vmatprep.subr.bf16.mxu0 %v17837_v7  ;;  %16199 = vmatpush3.bf16.msra.mxu1 %v18214_v32  ;;  %v17841_v32 = vld [vmem:[%s18016_s18 + $0x78] sm:$0xff]  }
  0xaa   : > { %16200 = vmatprep.subr.bf16.mxu1 %v17840_v13 }
  0xab   : > { %15841 = vmatpush3.bf16.msra.mxu0 %v17837_v7  ;;  %v18420_v7 = vpack.c.bf16 %v1103_v51, %v1102_v50  ;;  %v1110_v50 = vld [vmem:[%s18009_s15 + $0xf2] sm:$0xff]  ;;  %v1111_v51 = vld [vmem:[%s18009_s15 + $0xfa] sm:$0xff] }
  0xac   : > { %15842 = vmatprep.subr.bf16.mxu0 %v17839_v22 }
  0xad   : > { %16201 = vmatpush3.bf16.msra.mxu1 %v17840_v13  ;;  %v1104_v13 = vld [vmem:[%s18009_s15 + $0xaa] sm:$0xff] }
  0xae   : > { %15811 = vmatmul.mubr.msk.bf16.gmra.mrb[4].mxu0 %vm462_vm0, %v18383_v30  ;;  %16202 = vmatprep.subr.bf16.mxu1 %v17842_v29  ;;  %v18442_v28 = vpack.c.bf16 %v1105_v14, %v1104_v13  ;;  %v18466_v13 = vpack.c.bf16 %v1109_v41, %v1108_v40  ;;  %v18468_v14 = vpack.c.bf16 %v14319_v49, %v14318_v48  ;;  %v1114_v40 = vld [vmem:[%s18009_s15 + $0x122] sm:$0xff]  ;;  %v1115_v41 = vld [vmem:[%s18009_s15 + $0x12a] sm:$0xff]  ;;  %v14324_v48 = vld [vmem:[%s18009_s15 + $0x2d2] sm:$0xff] }
  0xaf   : > { %16171 = vmatmul.mubr.msk.bf16.gmra.mrb[4].mxu1 %vm462_vm0, %v18386_v36  ;;  %15814 = vmatprep.mubr.msk.bf16.mxu0 %vm462_vm0, %v18388_v37  ;;  %v14325_v49 = vld [vmem:[%s18009_s15 + $0x2da] sm:$0xff] }
  0xb0   : > { %16174 = vmatprep.mubr.msk.bf16.mxu1 %vm462_vm0, %v18390_v38  ;;  %15843 = vmatpush3.bf16.msra.mxu0 %v17839_v22  ;;  %v14316_v22 = vld [vmem:[%s18009_s15 + $0x272] sm:$0xff] }
  0xb1   : > { %15844 = vmatprep.subr.bf16.mxu0 %v17841_v32  ;;  %16203 = vmatpush3.bf16.msra.mxu1 %v17842_v29  ;;  %v18444_v29 = vpack.c.bf16 %v14315_v5, %v14314_v15  ;;  %v18470_v15 = vpack.c.bf16 %v1111_v51, %v1110_v50  ;;  %v18472_v5 = vpack.c.bf16 %v14321_v53, %v14320_v52 }
  0xb2   : > { %16204 = vmatprep.subr.bf16.mxu1 %v17843_v39  ;;  %v18494_v52 = vpack.c.bf16 %v1115_v41, %v1114_v40  ;;  %v18496_v53 = vpack.c.bf16 %v14325_v49, %v14324_v48  ;;  %v14328_v40 = vld [vmem:[%s18009_s15 + $0x302] sm:$0xff]  ;;  %v14329_v41 = vld [vmem:[%s18009_s15 + $0x30a] sm:$0xff] }
  0xb3   : > { %21296 = vst [vmem:[#allocation3_spill] sm:$0xff] %v18470_v15  ;;  %21297 = vst [vmem:[#allocation4_spill] sm:$0xff] %v18472_v5 }
  0xb4   : > { %15845 = vmatpush3.bf16.msra.mxu0 %v17841_v32  ;;  %v18446_v32 = vpack.c.bf16 %v1107_v21, %v1106_v18  ;;  %v1112_v18 = vld [vmem:[%s18009_s15 + $0x10a] sm:$0xff]  ;;  %v1113_v21 = vld [vmem:[%s18009_s15 + $0x112] sm:$0xff]  ;;  %21299 = vst [vmem:[#allocation6_spill] sm:$0xff] %v18494_v52  ;;  %21300 = vst [vmem:[#allocation7_spill] sm:$0xff] %v18496_v53 }
  0xb5   : > { %16205 = vmatpush3.bf16.msra.mxu1 %v17843_v39  ;;  %15878 = vmatprep.subr.bf16.mxu0 %v18411_v54  ;;  %v18448_v39 = vpack.c.bf16 %v14317_v23, %v14316_v22  ;;  %v14322_v22 = vld [vmem:[%s18009_s15 + $0x2ba] sm:$0xff]  ;;  %v14323_v23 = vld [vmem:[%s18009_s15 + $0x2c2] sm:$0xff]  ;;  %v18490_v50 = vpack.c.bf16 %v1113_v21, %v1112_v18  ;;  %v14326_v18 = vld [vmem:[%s18009_s15 + $0x2ea] sm:$0xff] }
  0xb6   : > { %15815 = vmatmul.mubr.msk.bf16.gmra.mrb[8].mxu0 %vm462_vm0, %v18413_v55  ;;  %16238 = vmatprep.subr.bf16.mxu1 %v18416_v60  ;;  %v18492_v51 = vpack.c.bf16 %v14323_v23, %v14322_v22  ;;  %v14327_v21 = vld [vmem:[%s18009_s15 + $0x2f2] sm:$0xff]  ;;  %v1119_v23 = vld [vmem:[%s18009_s15 + $0x15a] sm:$0xff] }
  0xb7   : > { %16175 = vmatmul.mubr.msk.bf16.gmra.mrb[8].mxu1 %vm462_vm0, %v18418_v61  ;;  %15818 = vmatprep.mubr.msk.bf16.mxu0 %vm462_vm0, %v18420_v7  ;;  %v1118_v22 = vld [vmem:[%s18009_s15 + $0x152] sm:$0xff]  ;;  %v18516_v49 = vpack.c.bf16 %v14327_v21, %v14326_v18  ;;  %v14331_v18 = vld [vmem:[%s18009_s15 + $0x322] sm:$0xff] }
  0xb8   : > { %16178 = vmatprep.mubr.msk.bf16.mxu1 %vm462_vm0, %v18422_v8  ;;  %21298 = vst [vmem:[#allocation5_spill] sm:$0xff] %v18492_v51 }
  0xbe   : > { %15819 = vmatmul.mubr.msk.bf16.gmra.mrb[12].mxu0 %vm462_vm0, %v18442_v28 }
  0xbf   : > { %16179 = vmatmul.mubr.msk.bf16.gmra.mrb[12].mxu1 %vm462_vm0, %v18444_v29  ;;  %15822 = vmatprep.mubr.msk.bf16.mxu0 %vm462_vm0, %v18446_v32 }
  0xc0   : > { %16182 = vmatprep.mubr.msk.bf16.mxu1 %vm462_vm0, %v18448_v39 }
  0xc6   : > { %15823 = vmatmul.mubr.msk.bf16.gmra.mrb[16].mxu0 %vm462_vm0, %v18466_v13 }
  0xc7   : > { %16183 = vmatmul.mubr.msk.bf16.gmra.mrb[16].mxu1 %vm462_vm0, %v18468_v14  ;;  %15826 = vmatprep.mubr.msk.bf16.mxu0 %vm462_vm0, %v18470_v15  ;;  %v1117_v15 = vld [vmem:[%s18009_s15 + $0x142] sm:$0xff] }
  0xc8   : > { %16186 = vmatprep.mubr.msk.bf16.mxu1 %vm462_vm0, %v18472_v5  ;;  %v1116_v5 = vld [vmem:[%s18009_s15 + $0x13a] sm:$0xff] }
  0xc9   : > { %v18514_v48 = vpack.c.bf16 %v1117_v15, %v1116_v5  ;;  %v1121_v15 = vld [vmem:[%s18009_s15 + $0x172] sm:$0xff]  ;;  %v14330_v5 = vld [vmem:[%s18009_s15 + $0x31a] sm:$0xff] }
  0xce   : > { %15827 = vmatmul.mubr.msk.bf16.gmra.mrb[20].mxu0 %vm462_vm0, %v18490_v50 }
  0xcf   : > { %16187 = vmatmul.mubr.msk.bf16.gmra.mrb[20].mxu1 %vm462_vm0, %v18492_v51  ;;  %15830 = vmatprep.mubr.msk.bf16.mxu0 %vm462_vm0, %v18494_v52  ;;  %v18518_v52 = vpack.c.bf16 %v1119_v23, %v1118_v22  ;;  %v18520_v51 = vpack.c.bf16 %v14329_v41, %v14328_v40  ;;  %v18536_v22 = vpack.c.bf16 %v14331_v18, %v14330_v5  ;;  %v17845_v23 = vld [vmem:[%s18016_s18 + $0x88] sm:$0xff]   ;;  %v14411_v5 = vld [vmem:[%s18009_s15 + $0x219] sm:$0xff] }
  0xd0   : > { %16190 = vmatprep.mubr.msk.bf16.mxu1 %vm462_vm0, %v18496_v53  ;;  %v1120_v53 = vld [vmem:[%s18009_s15 + $0x16a] sm:$0xff]  ;;  %v13814_v18 = vld [vmem:[%s18009_s15 + $0x79] sm:$0xff] }
  0xd1   : > { %v18534_v21 = vpack.c.bf16 %v1121_v15, %v1120_v53  ;;  %v17848_v53 = vld [vmem:[%s18016_s18 + $0x88] sm:$0xff]   ;;  %v14410_v15 = vld [vmem:[%s18009_s15 + $0x211] sm:$0xff] }
  0xd2   : > { %v17856_v40 = vld [vmem:[%s18016_s18 + $0xa8] sm:$0xff]  }
  0xd3   : > { %v13813_v41 = vld [vmem:[%s18009_s15 + $0x69] sm:$0xff] }
  0xd6   : > { %15831 = vmatmul.mubr.msk.bf16.gmra.mrb[24].mxu0 %vm462_vm0, %v18514_v48 }
  0xd7   : > { %16191 = vmatmul.mubr.msk.bf16.gmra.mrb[24].mxu1 %vm462_vm0, %v18516_v49  ;;  %15834 = vmatprep.mubr.msk.bf16.mxu0 %vm462_vm0, %v18518_v52 }
  0xd8   : > { %16194 = vmatprep.mubr.msk.bf16.mxu1 %vm462_vm0, %v18520_v51 }
  0xde   : > { %15835 = vmatmul.mubr.msk.bf16.gmra.mrb[28].mxu0 %vm462_vm0, %v18534_v21 }
  0xdf   : > { %16195 = vmatmul.mubr.msk.bf16.gmra.mrb[28].mxu1 %vm462_vm0, %v18536_v22  ;;  %15846 = vmatprep.mubr.msk.bf16.mxu0 %vm462_vm0, %v18152_v0  ;;  %v17847_v0 = vld [vmem:[%s18016_s18 + $0x90] sm:$0xff]  }
  0xe0   : > { %16206 = vmatprep.mubr.msk.bf16.mxu1 %vm462_vm0, %v18154_v1  ;;  %v17850_v1 = vld [vmem:[%s18016_s18 + $0x90] sm:$0xff]  }
  0xe6   : > { %15847 = vmatmul.mubr.msk.bf16.vlgmr.msra.gmra.mrb[0].mxu0 %vm462_vm0, %v18156_v2  ;;  %v17849_v2 = vld [vmem:[%s18016_s18 + $0x98] sm:$0xff]  }
  0xe7   : > { %16207 = vmatmul.mubr.msk.bf16.vlgmr.msra.gmra.mrb[0].mxu1 %vm462_vm0, %v18158_v3  ;;  %15879 = vmatpush3.bf16.msra.mxu0 %v18411_v54  ;;  %v17851_v3 = vld [vmem:[%s18016_s18 + $0x98] sm:$0xff]   ;;  %v17853_v54 = vld [vmem:[%s18016_s18 + $0xa8] sm:$0xff]  }
  0xe8   : > { %15850 = vmatprep.mubr.msk.bf16.mxu0 %vm462_vm0, %v18181_v16  ;;  %16210 = vmatprep.mubr.msk.bf16.mxu1 %vm462_vm0, %v18184_v17  ;;  %v17852_v16 = vld [vmem:[%s18016_s18 + $0xa0] sm:$0xff]  }
  0xe9   : > { %15880 = vmatprep.subr.bf16.mxu0 %v17845_v23  ;;  %16239 = vmatpush3.bf16.msra.mxu1 %v18416_v60  ;;  %v18572_v17 = vld [vmem:[%s18016_s18 + $0xa0] sm:$0xff]  }
  0xea   : > { %16240 = vmatprep.subr.bf16.mxu1 %v17848_v53  ;;  %v13812_v60 = vld [vmem:[%s18009_s15 + $0x61] sm:$0xff] }
  0xeb   : > { %15881 = vmatpush3.bf16.msra.mxu0 %v17845_v23  ;;  %v13815_v23 = vld [vmem:[%s18009_s15 + $0x81] sm:$0xff] }
  0xec   : > { %15882 = vmatprep.subr.bf16.mxu0 %v17847_v0 }
  0xed   : > { %16241 = vmatpush3.bf16.msra.mxu1 %v17848_v53  ;;  %v17855_v53 = vld [vmem:[%s18016_s18 + $0xb0] sm:$0xff]  }
  0xee   : > { %15851 = vmatmul.mubr.msk.bf16.gmra.mrb[4].mxu0 %vm462_vm0, %v18186_v19  ;;  %16242 = vmatprep.subr.bf16.mxu1 %v17850_v1  ;;  %v13784_v19 = vld [vmem:[%s18009_s15 + $0x180] sm:$0xff] }
  0xef   : > { %16211 = vmatmul.mubr.msk.bf16.gmra.mrb[4].mxu1 %vm462_vm0, %v18188_v20  ;;  %15854 = vmatprep.mubr.msk.bf16.mxu0 %vm462_vm0, %v18211_v31  ;;  %v13785_v20 = vld [vmem:[%s18009_s15 + $0x188] sm:$0xff]  ;;  %v14382_v31 = vld [vmem:[%s18009_s15 + $0x330] sm:$0xff] }
  0xf0   : > { %16214 = vmatprep.mubr.msk.bf16.mxu1 %vm462_vm0, %v18216_v33  ;;  %15883 = vmatpush3.bf16.msra.mxu0 %v17847_v0  ;;  %v14383_v33 = vld [vmem:[%s18009_s15 + $0x338] sm:$0xff]  ;;  %v14412_v0 = vld [vmem:[%s18009_s15 + $0x229] sm:$0xff] }
  0xf1   : > { %15884 = vmatprep.subr.bf16.mxu0 %v17849_v2  ;;  %16243 = vmatpush3.bf16.msra.mxu1 %v17850_v1  ;;  %v14413_v1 = vld [vmem:[%s18009_s15 + $0x231] sm:$0xff] }
  0xf2   : > { %16244 = vmatprep.subr.bf16.mxu1 %v17851_v3 }
  0xf4   : > { %15885 = vmatpush3.bf16.msra.mxu0 %v17849_v2  ;;  %v18669_v2 = vpack.c.bf16 %v13813_v41, %v13812_v60  ;;  %v14418_v60 = vld [vmem:[%s18009_s15 + $0x271] sm:$0xff]  ;;  %v13822_v41 = vld [vmem:[%s18009_s15 + $0xd9] sm:$0xff] }
  0xf5   : > { %16245 = vmatpush3.bf16.msra.mxu1 %v17851_v3  ;;  %15918 = vmatprep.subr.bf16.mxu0 %v17852_v16  ;;  %v17858_v3 = vld [vmem:[%s18016_s18 + $0xb0] sm:$0xff]  }
  0xf6   : > { %15855 = vmatmul.mubr.msk.bf16.gmra.mrb[8].mxu0 %vm462_vm0, %v18218_v34  ;;  %16278 = vmatprep.subr.bf16.mxu1 %v18572_v17  ;;  %v13806_v34 = vld [vmem:[%s18009_s15 + $0x19] sm:$0xff] }
  0xf7   : > { %16215 = vmatmul.mubr.msk.bf16.gmra.mrb[8].mxu1 %vm462_vm0, %v18220_v35  ;;  %15858 = vmatprep.mubr.msk.bf16.mxu0 %vm462_vm0, %v18240_v44  ;;  %v13807_v35 = vld [vmem:[%s18009_s15 + $0x21] sm:$0xff]  ;;  %v14404_v44 = vld [vmem:[%s18009_s15 + $0x1c9] sm:$0xff] }
  0xf8   : > { %16218 = vmatprep.mubr.msk.bf16.mxu1 %vm462_vm0, %v18242_v45  ;;  %v14405_v45 = vld [vmem:[%s18009_s15 + $0x1d1] sm:$0xff] }
  0xfe   : > { %15859 = vmatmul.mubr.msk.bf16.gmra.mrb[12].mxu0 %vm462_vm0, %v18244_v46  ;;  %v18623_v46 = vpack.c.bf16 %v13785_v20, %v13784_v19  ;;  %v18674_v19 = vpack.c.bf16 %v13815_v23, %v13814_v18  ;;  %v18676_v20 = vpack.c.bf16 %v14413_v1, %v14412_v0  ;;  %v14421_v18 = vld [vmem:[%s18009_s15 + $0x291] sm:$0xff] }
  0xff   : > { %16219 = vmatmul.mubr.msk.bf16.gmra.mrb[12].mxu1 %vm462_vm0, %v18246_v47  ;;  %15862 = vmatprep.mubr.msk.bf16.mxu0 %vm462_vm0, %v18264_v56  ;;  %v18625_v47 = vpack.c.bf16 %v14383_v33, %v14382_v31  ;;  %v1765_v56 = vpack.c.bf16 %v13807_v35, %v13806_v34  ;;  %v17859_v31 = vld [vmem:[%s18016_s18 + $0xb8] sm:$0xff]   ;;  %v14414_v35 = vld [vmem:[%s18009_s15 + $0x241] sm:$0xff] }
 0x100   : > { %16222 = vmatprep.mubr.msk.bf16.mxu1 %vm462_vm0, %v18266_v57  ;;  %v6348_v57 = vpack.c.bf16 %v14405_v45, %v14404_v44  ;;  %v13816_v33 = vld [vmem:[%s18009_s15 + $0x91] sm:$0xff]  ;;  %v13817_v34 = vld [vmem:[%s18009_s15 + $0x99] sm:$0xff]  ;;  %v14415_v44 = vld [vmem:[%s18009_s15 + $0x249] sm:$0xff] }
 0x101   : > { %v13818_v45 = vld [vmem:[%s18009_s15 + $0xa9] sm:$0xff] }
 0x106   : > { %15863 = vmatmul.mubr.msk.bf16.gmra.mrb[16].mxu0 %vm462_vm0, %v18268_v58  ;;  %v13808_v58 = vld [vmem:[%s18009_s15 + $0x31] sm:$0xff] }
 0x107   : > { %16223 = vmatmul.mubr.msk.bf16.gmra.mrb[16].mxu1 %vm462_vm0, %v18270_v59  ;;  %15866 = vmatprep.mubr.msk.bf16.mxu0 %vm462_vm0, %v18288_v9  ;;  %v13809_v59 = vld [vmem:[%s18009_s15 + $0x39] sm:$0xff]  ;;  %v14406_v9 = vld [vmem:[%s18009_s15 + $0x1e1] sm:$0xff] }
 0x108   : > { %16226 = vmatprep.mubr.msk.bf16.mxu1 %vm462_vm0, %v18290_v10  ;;  %v14407_v10 = vld [vmem:[%s18009_s15 + $0x1e9] sm:$0xff] }
 0x10e   : > { %15867 = vmatmul.mubr.msk.bf16.gmra.mrb[20].mxu0 %vm462_vm0, %v18292_v11  ;;  %v13810_v11 = vld [vmem:[%s18009_s15 + $0x49] sm:$0xff] }
 0x10f   : > { %16227 = vmatmul.mubr.msk.bf16.gmra.mrb[20].mxu1 %vm462_vm0, %v18294_v12  ;;  %15870 = vmatprep.mubr.msk.bf16.mxu0 %vm462_vm0, %v18312_v24  ;;  %v13811_v12 = vld [vmem:[%s18009_s15 + $0x51] sm:$0xff]  ;;  %v14408_v24 = vld [vmem:[%s18009_s15 + $0x1f9] sm:$0xff] }
 0x110   : > { %16230 = vmatprep.mubr.msk.bf16.mxu1 %vm462_vm0, %v18314_v25  ;;  %v14409_v25 = vld [vmem:[%s18009_s15 + $0x201] sm:$0xff] }
 0x116   : > { %15871 = vmatmul.mubr.msk.bf16.gmra.mrb[24].mxu0 %vm462_vm0, %v18316_v26  ;;  %v18641_v26 = vpack.c.bf16 %v13809_v59, %v13808_v58  ;;  %v14417_v58 = vld [vmem:[%s18009_s15 + $0x261] sm:$0xff] }
 0x117   : > { %16231 = vmatmul.mubr.msk.bf16.gmra.mrb[24].mxu1 %vm462_vm0, %v18318_v27  ;;  %15874 = vmatprep.mubr.msk.bf16.mxu0 %vm462_vm0, %v18336_v42  ;;  %v18643_v27 = vpack.c.bf16 %v14407_v10, %v14406_v9  ;;  %v18645_v42 = vpack.c.bf16 %v13811_v12, %v13810_v11  ;;  %v18697_v59 = vld [vmem:[%s18016_s18 + $0xc0] sm:$0xff]   ;;  %v18699_v9 = vpack.c.bf16 %v13817_v34, %v13816_v33  ;;  %v14423_v33 = vld [vmem:[%s18009_s15 + $0x2a9] sm:$0xff] }
 0x118   : > { %16234 = vmatprep.mubr.msk.bf16.mxu1 %vm462_vm0, %v18338_v43  ;;  %v18647_v43 = vpack.c.bf16 %v14409_v25, %v14408_v24  ;;  %v18702_v10 = vld [vmem:[%s18016_s18 + $0xc0] sm:$0xff]   ;;  %v18704_v11 = vpack.c.bf16 %v14415_v44, %v14414_v35  ;;  %v13826_v34 = vld [vmem:[%s18009_s15 + $0x109] sm:$0xff]  ;;  %v13827_v35 = vld [vmem:[%s18009_s15 + $0x111] sm:$0xff] }
 0x119   : > { %v13820_v25 = vld [vmem:[%s18009_s15 + $0xc1] sm:$0xff]  ;;  %v14424_v44 = vld [vmem:[%s18009_s15 + $0x2b9] sm:$0xff] }
 0x11e   : > { %15875 = vmatmul.mubr.msk.bf16.gmra.mrb[28].mxu0 %vm462_vm0, %v18623_v46 }
 0x11f   : > { %16235 = vmatmul.mubr.msk.bf16.gmra.mrb[28].mxu1 %vm462_vm0, %v18625_v47  ;;  %15886 = vmatprep.mubr.msk.bf16.mxu0 %vm462_vm0, %v1765_v56  ;;  %v13819_v56 = vld [vmem:[%s18009_s15 + $0xb1] sm:$0xff] }
 0x120   : > { %16246 = vmatprep.mubr.msk.bf16.mxu1 %vm462_vm0, %v6348_v57  ;;  %v14416_v57 = vld [vmem:[%s18009_s15 + $0x259] sm:$0xff]  ;;  %v18706_v12 = vpack.c.bf16 %v13819_v56, %v13818_v45  ;;  %v14425_v45 = vld [vmem:[%s18009_s15 + $0x2c1] sm:$0xff] }
 0x121   : > { %v18708_v24 = vpack.c.bf16 %v14417_v58, %v14416_v57  ;;  %v18756_v58 = vpack.c.bf16 %v13827_v35, %v13826_v34  ;;  %v13832_v35 = vld [vmem:[%s18009_s15 + $0x151] sm:$0xff] }
 0x126   : > { %15887 = vmatmul.mubr.msk.bf16.vlgmr.msra.gmra.mrb[0].mxu0 %vm462_vm0, %v18641_v26 }
 0x127   : > { %16247 = vmatmul.mubr.msk.bf16.vlgmr.msra.gmra.mrb[0].mxu1 %vm462_vm0, %v18643_v27  ;;  %15919 = vmatpush3.bf16.msra.mxu0 %v17852_v16  ;;  %v18672_v16 = vpack.c.bf16 %v14411_v5, %v14410_v15  ;;  %v13823_v15 = vld [vmem:[%s18009_s15 + $0xe1] sm:$0xff]  ;;  %v14420_v5 = vld [vmem:[%s18009_s15 + $0x289] sm:$0xff] }
 0x128   : > { %15890 = vmatprep.mubr.msk.bf16.mxu0 %vm462_vm0, %v18645_v42  ;;  %16250 = vmatprep.mubr.msk.bf16.mxu1 %vm462_vm0, %v18647_v43  ;;  %v18732_v0 = vpack.c.bf16 %v13823_v15, %v13822_v41  ;;  %v18734_v1 = vpack.c.bf16 %v14421_v18, %v14420_v5  ;;  %v14427_v41 = vld [vmem:[%s18009_s15 + $0x2d9] sm:$0xff]  ;;  %v13831_v5 = vld [vmem:[%s18009_s15 + $0x141] sm:$0xff]  ;;  %v14428_v18 = vld [vmem:[%s18009_s15 + $0x2e9] sm:$0xff] }
 0x129   : > { %15920 = vmatprep.subr.bf16.mxu0 %v17853_v54  ;;  %16279 = vmatpush3.bf16.msra.mxu1 %v18572_v17  ;;  %v17857_v17 = vld [vmem:[%s18016_s18 + $0xb8] sm:$0xff]  }
 0x12a   : > { %16280 = vmatprep.subr.bf16.mxu1 %v17856_v40  ;;  %v13830_v15 = vld [vmem:[%s18009_s15 + $0x139] sm:$0xff] }
 0x12b   : > { %15921 = vmatpush3.bf16.msra.mxu0 %v17853_v54  ;;  %v13821_v54 = vld [vmem:[%s18009_s15 + $0xc9] sm:$0xff] }
 0x12c   : > { %15922 = vmatprep.subr.bf16.mxu0 %v17855_v53  ;;  %v18728_v23 = vpack.c.bf16 %v13821_v54, %v13820_v25  ;;  %v18758_v25 = vpack.c.bf16 %v14425_v45, %v14424_v44  ;;  %v13828_v54 = vld [vmem:[%s18009_s15 + $0x121] sm:$0xff]  ;;  %v13833_v44 = vld [vmem:[%s18009_s15 + $0x159] sm:$0xff] }
 0x12d   : > { %16281 = vmatpush3.bf16.msra.mxu1 %v17856_v40  ;;  %v14419_v40 = vld [vmem:[%s18009_s15 + $0x279] sm:$0xff]  ;;  %v14430_v45 = vld [vmem:[%s18009_s15 + $0x301] sm:$0xff] }
 0x12e   : > { %15891 = vmatmul.mubr.msk.bf16.gmra.mrb[4].mxu0 %vm462_vm0, %v18669_v2  ;;  %16282 = vmatprep.subr.bf16.mxu1 %v17858_v3 }
 0x12f   : > { %16251 = vmatmul.mubr.msk.bf16.gmra.mrb[4].mxu1 %vm462_vm0, %v18672_v16  ;;  %15894 = vmatprep.mubr.msk.bf16.mxu0 %vm462_vm0, %v18674_v19 }
 0x130   : > { %16254 = vmatprep.mubr.msk.bf16.mxu1 %vm462_vm0, %v18676_v20  ;;  %15923 = vmatpush3.bf16.msra.mxu0 %v17855_v53  ;;  %v18730_v53 = vpack.c.bf16 %v14419_v40, %v14418_v60  ;;  %v13829_v60 = vld [vmem:[%s18009_s15 + $0x129] sm:$0xff]  ;;  %v14426_v40 = vld [vmem:[%s18009_s15 + $0x2d1] sm:$0xff] }
 0x131   : > { %15924 = vmatprep.subr.bf16.mxu0 %v17857_v17  ;;  %16283 = vmatpush3.bf16.msra.mxu1 %v17858_v3  ;;  %v13824_v3 = vld [vmem:[%s18009_s15 + $0xf1] sm:$0xff] }
 0x132   : > { %16284 = vmatprep.subr.bf16.mxu1 %v17859_v31 }
 0x134   : > { %15925 = vmatpush3.bf16.msra.mxu0 %v17857_v17  ;;  %v13825_v17 = vld [vmem:[%s18009_s15 + $0xf9] sm:$0xff] }
 0x135   : > { %16285 = vmatpush3.bf16.msra.mxu1 %v17859_v31  ;;  %15958 = vmatprep.subr.bf16.mxu0 %v18697_v59  ;;  %v14422_v31 = vld [vmem:[%s18009_s15 + $0x2a1] sm:$0xff]  ;;  %v18752_v56 = vpack.c.bf16 %v13825_v17, %v13824_v3  ;;  %v14429_v3 = vld [vmem:[%s18009_s15 + $0x2f1] sm:$0xff]  ;;  %v18776_v17 = vpack.c.bf16 %v13829_v60, %v13828_v54  ;;  %v14431_v54 = vld [vmem:[%s18009_s15 + $0x309] sm:$0xff] }
 0x136   : > { %15895 = vmatmul.mubr.msk.bf16.gmra.mrb[8].mxu0 %vm462_vm0, %v18699_v9  ;;  %16318 = vmatprep.subr.bf16.mxu1 %v18702_v10  ;;  %v18754_v57 = vpack.c.bf16 %v14423_v33, %v14422_v31  ;;  %v18778_v31 = vpack.c.bf16 %v14427_v41, %v14426_v40  ;;  %v18780_v33 = vpack.c.bf16 %v13831_v5, %v13830_v15  ;;  %v13834_v60 = vld [vmem:[%s18009_s15 + $0x169] sm:$0xff]  ;;  %v13835_v40 = vld [vmem:[%s18009_s15 + $0x171] sm:$0xff]  ;;  %v14432_v41 = vld [vmem:[%s18009_s15 + $0x319] sm:$0xff] }
 0x137   : > { %16255 = vmatmul.mubr.msk.bf16.gmra.mrb[8].mxu1 %vm462_vm0, %v18704_v11  ;;  %15898 = vmatprep.mubr.msk.bf16.mxu0 %vm462_vm0, %v18706_v12  ;;  %v18782_v34 = vpack.c.bf16 %v14429_v3, %v14428_v18  ;;  %v14433_v15 = vld [vmem:[%s18009_s15 + $0x321] sm:$0xff]  ;;  %v18800_v5 = vpack.c.bf16 %v13833_v44, %v13832_v35  ;;  %v18802_v18 = vpack.c.bf16 %v14431_v54, %v14430_v45  ;;  %v13837_v35 = vld [vmem:[%s18009_s15 + $0x189] sm:$0xff]  ;;  %v14434_v44 = vld [vmem:[%s18009_s15 + $0x331] sm:$0xff] }
 0x138   : > { %16258 = vmatprep.mubr.msk.bf16.mxu1 %vm462_vm0, %v18708_v24  ;;  %21301 = vst [vmem:[#allocation8_spill] sm:$0xff] %v18780_v33  ;;  %v18804_v3 = vpack.c.bf16 %v13835_v40, %v13834_v60  ;;  %v14435_v45 = vld [vmem:[%s18009_s15 + $0x339] sm:$0xff]  ;;  %v17861_v40 = vld [vmem:[%s18016_s18 + $0xc8] sm:$0xff]  }
 0x139   : > { %21302 = vst [vmem:[#allocation9_spill] sm:$0xff] %v18782_v34  ;;  %v18822_v60 = vpack.c.bf16 %v14435_v45, %v14434_v44  ;;  %v14513_v44 = vld [vmem:[%s18009_s15 + $0x218] sm:$0xff] }
 0x13e   : > { %15899 = vmatmul.mubr.msk.bf16.gmra.mrb[12].mxu0 %vm462_vm0, %v18728_v23 }
 0x13f   : > { %16259 = vmatmul.mubr.msk.bf16.gmra.mrb[12].mxu1 %vm462_vm0, %v18730_v53  ;;  %15902 = vmatprep.mubr.msk.bf16.mxu0 %vm462_vm0, %v18732_v0 }
 0x140   : > { %16262 = vmatprep.mubr.msk.bf16.mxu1 %vm462_vm0, %v18734_v1 }
 0x146   : > { %15903 = vmatmul.mubr.msk.bf16.gmra.mrb[16].mxu0 %vm462_vm0, %v18752_v56 }
 0x147   : > { %16263 = vmatmul.mubr.msk.bf16.gmra.mrb[16].mxu1 %vm462_vm0, %v18754_v57  ;;  %15906 = vmatprep.mubr.msk.bf16.mxu0 %vm462_vm0, %v18756_v58 }
 0x148   : > { %16266 = vmatprep.mubr.msk.bf16.mxu1 %vm462_vm0, %v18758_v25 }
 0x14e   : > { %15907 = vmatmul.mubr.msk.bf16.gmra.mrb[20].mxu0 %vm462_vm0, %v18776_v17 }
 0x14f   : > { %16267 = vmatmul.mubr.msk.bf16.gmra.mrb[20].mxu1 %vm462_vm0, %v18778_v31  ;;  %15910 = vmatprep.mubr.msk.bf16.mxu0 %vm462_vm0, %v18780_v33  ;;  %v18806_v33 = vpack.c.bf16 %v14433_v15, %v14432_v41  ;;  %v13914_v41 = vld [vmem:[%s18009_s15 + $0x60] sm:$0xff]  ;;  %v13915_v15 = vld [vmem:[%s18009_s15 + $0x68] sm:$0xff] }
 0x150   : > { %16270 = vmatprep.mubr.msk.bf16.mxu1 %vm462_vm0, %v18782_v34  ;;  %v13836_v34 = vld [vmem:[%s18009_s15 + $0x181] sm:$0xff] }
 0x151   : > { %v18820_v54 = vpack.c.bf16 %v13837_v35, %v13836_v34  ;;  %v17864_v34 = vld [vmem:[%s18016_s18 + $0xc8] sm:$0xff]   ;;  %v14512_v35 = vld [vmem:[%s18009_s15 + $0x210] sm:$0xff] }
 0x156   : > { %15911 = vmatmul.mubr.msk.bf16.gmra.mrb[24].mxu0 %vm462_vm0, %v18800_v5 }
 0x157   : > { %16271 = vmatmul.mubr.msk.bf16.gmra.mrb[24].mxu1 %vm462_vm0, %v18802_v18  ;;  %15914 = vmatprep.mubr.msk.bf16.mxu0 %vm462_vm0, %v18804_v3 }
 0x158   : > { %16274 = vmatprep.mubr.msk.bf16.mxu1 %vm462_vm0, %v18806_v33 }
 0x15e   : > { %15915 = vmatmul.mubr.msk.bf16.gmra.mrb[28].mxu0 %vm462_vm0, %v18820_v54 }
 0x15f   : > { %16275 = vmatmul.mubr.msk.bf16.gmra.mrb[28].mxu1 %vm462_vm0, %v18822_v60  ;;  %15926 = vmatprep.mubr.msk.bf16.mxu0 %vm462_vm0, %v18354_v62  ;;  %v17863_v62 = vld [vmem:[%s18016_s18 + $0xd0] sm:$0xff]  }
 0x160   : > { %16286 = vmatprep.mubr.msk.bf16.mxu1 %vm462_vm0, %v18356_v63  ;;  %v17866_v63 = vld [vmem:[%s18016_s18 + $0xd0] sm:$0xff]  }
 0x166   : > { %15927 = vmatmul.mubr.msk.bf16.vlgmr.msra.gmra.mrb[0].mxu0 %vm462_vm0, %v18358_v4  ;;  %v17865_v4 = vld [vmem:[%s18016_s18 + $0xd8] sm:$0xff]  }
 0x167   : > { %16287 = vmatmul.mubr.msk.bf16.vlgmr.msra.gmra.mrb[0].mxu1 %vm462_vm0, %v18360_v6  ;;  %15959 = vmatpush3.bf16.msra.mxu0 %v18697_v59  ;;  %v17867_v6 = vld [vmem:[%s18016_s18 + $0xd8] sm:$0xff]  }
 0x168   : > { %15930 = vmatprep.mubr.msk.bf16.mxu0 %vm462_vm0, %v18383_v30  ;;  %16290 = vmatprep.mubr.msk.bf16.mxu1 %vm462_vm0, %v18386_v36  ;;  %v17868_v30 = vld [vmem:[%s18016_s18 + $0xe0] sm:$0xff]   ;;  %v14510_v59 = vld [vmem:[%s18009_s15 + $0x1f8] sm:$0xff] }
 0x169   : > { %15960 = vmatprep.subr.bf16.mxu0 %v17861_v40  ;;  %16319 = vmatpush3.bf16.msra.mxu1 %v18702_v10  ;;  %v18858_v36 = vld [vmem:[%s18016_s18 + $0xe0] sm:$0xff]  }
 0x16a   : > { %16320 = vmatprep.subr.bf16.mxu1 %v17864_v34  ;;  %v14511_v10 = vld [vmem:[%s18009_s15 + $0x200] sm:$0xff] }
 0x16b   : > { %15961 = vmatpush3.bf16.msra.mxu0 %v17861_v40  ;;  %v6992_v40 = vpack.c.bf16 %v14511_v10, %v14510_v59  ;;  %v13922_v59 = vld [vmem:[%s18009_s15 + $0xc0] sm:$0xff]  ;;  %v13923_v10 = vld [vmem:[%s18009_s15 + $0xc8] sm:$0xff] }
 0x16c   : > { %15962 = vmatprep.subr.bf16.mxu0 %v17863_v62 }
 0x16d   : > { %16321 = vmatpush3.bf16.msra.mxu1 %v17864_v34  ;;  %v2410_v34 = vpack.c.bf16 %v13915_v15, %v13914_v41  ;;  %v14520_v41 = vld [vmem:[%s18009_s15 + $0x270] sm:$0xff]  ;;  %v14521_v15 = vld [vmem:[%s18009_s15 + $0x278] sm:$0xff] }
 0x16e   : > { %15931 = vmatmul.mubr.msk.bf16.gmra.mrb[4].mxu0 %vm462_vm0, %v18388_v37  ;;  %16322 = vmatprep.subr.bf16.mxu1 %v17866_v63  ;;  %v21303_v37 = vld [vmem:[#allocation3_spill] sm:$0xff] }
 0x16f   : > { %16291 = vmatmul.mubr.msk.bf16.gmra.mrb[4].mxu1 %vm462_vm0, %v18390_v38  ;;  %15934 = vmatprep.mubr.msk.bf16.mxu0 %vm462_vm0, %v18413_v55  ;;  %v21304_v38 = vld [vmem:[#allocation4_spill] sm:$0xff]  ;;  %v21305_v55 = vld [vmem:[#allocation5_spill] sm:$0xff] }
 0x170   : > { %16294 = vmatprep.mubr.msk.bf16.mxu1 %vm462_vm0, %v18418_v61  ;;  %15963 = vmatpush3.bf16.msra.mxu0 %v17863_v62  ;;  %v21306_v61 = vld [vmem:[#allocation6_spill] sm:$0xff]  ;;  %v6993_v62 = vpack.c.bf16 %v14513_v44, %v14512_v35  ;;  %v18959_v35 = vld [vmem:[%s18016_s18 + $0x100] sm:$0xff]  }
 0x171   : > { %15964 = vmatprep.subr.bf16.mxu0 %v17865_v4  ;;  %16323 = vmatpush3.bf16.msra.mxu1 %v17866_v63  ;;  %v17869_v63 = vld [vmem:[%s18016_s18 + $0xe8] sm:$0xff]  }
 0x172   : > { %16324 = vmatprep.subr.bf16.mxu1 %v17867_v6 }
 0x174   : > { %15965 = vmatpush3.bf16.msra.mxu0 %v17865_v4  ;;  %v13916_v4 = vld [vmem:[%s18009_s15 + $0x78] sm:$0xff] }
 0x175   : > { %16325 = vmatpush3.bf16.msra.mxu1 %v17867_v6  ;;  %15998 = vmatprep.subr.bf16.mxu0 %v17868_v30  ;;  %v17872_v6 = vld [vmem:[%s18016_s18 + $0xe8] sm:$0xff]  }
 0x176   : > { %15935 = vmatmul.mubr.msk.bf16.gmra.mrb[8].mxu0 %vm462_vm0, %v18420_v7  ;;  %16358 = vmatprep.subr.bf16.mxu1 %v18858_v36  ;;  %v21307_v7 = vld [vmem:[#allocation7_spill] sm:$0xff] }
 0x177   : > { %16295 = vmatmul.mubr.msk.bf16.gmra.mrb[8].mxu1 %vm462_vm0, %v18422_v8  ;;  %15938 = vmatprep.mubr.msk.bf16.mxu0 %vm462_vm0, %v18442_v28  ;;  %v13888_v8 = vld [vmem:[%s18009_s15 + $0x182] sm:$0xff]  ;;  %v13889_v28 = vld [vmem:[%s18009_s15 + $0x18a] sm:$0xff] }
 0x178   : > { %16298 = vmatprep.mubr.msk.bf16.mxu1 %vm462_vm0, %v18444_v29  ;;  %v14486_v29 = vld [vmem:[%s18009_s15 + $0x332] sm:$0xff] }
 0x17e   : > { %15939 = vmatmul.mubr.msk.bf16.gmra.mrb[12].mxu0 %vm462_vm0, %v18446_v32  ;;  %v14487_v32 = vld [vmem:[%s18009_s15 + $0x33a] sm:$0xff] }
 0x17f   : > { %16299 = vmatmul.mubr.msk.bf16.gmra.mrb[12].mxu1 %vm462_vm0, %v18448_v39  ;;  %15942 = vmatprep.mubr.msk.bf16.mxu0 %vm462_vm0, %v18466_v13  ;;  %v13910_v39 = vld [vmem:[%s18009_s15 + $0x30] sm:$0xff]  ;;  %v13911_v13 = vld [vmem:[%s18009_s15 + $0x38] sm:$0xff] }
 0x180   : > { %16302 = vmatprep.mubr.msk.bf16.mxu1 %vm462_vm0, %v18468_v14  ;;  %v14508_v14 = vld [vmem:[%s18009_s15 + $0x1e0] sm:$0xff] }
 0x186   : > { %15943 = vmatmul.mubr.msk.bf16.gmra.mrb[16].mxu0 %vm462_vm0, %v21303_v37  ;;  %v13917_v37 = vld [vmem:[%s18009_s15 + $0x80] sm:$0xff] }
 0x187   : > { %16303 = vmatmul.mubr.msk.bf16.gmra.mrb[16].mxu1 %vm462_vm0, %v21304_v38  ;;  %15946 = vmatprep.mubr.msk.bf16.mxu0 %vm462_vm0, %v18490_v50  ;;  %v14509_v50 = vld [vmem:[%s18009_s15 + $0x1e8] sm:$0xff] }
 0x188   : > { %16306 = vmatprep.mubr.msk.bf16.mxu1 %vm462_vm0, %v21305_v55  ;;  %v14514_v38 = vld [vmem:[%s18009_s15 + $0x228] sm:$0xff]  ;;  %v14515_v55 = vld [vmem:[%s18009_s15 + $0x230] sm:$0xff] }
 0x18e   : > { %15947 = vmatmul.mubr.msk.bf16.gmra.mrb[20].mxu0 %vm462_vm0, %v21306_v61  ;;  %v13918_v61 = vld [vmem:[%s18009_s15 + $0x90] sm:$0xff] }
 0x18f   : > { %16307 = vmatmul.mubr.msk.bf16.gmra.mrb[20].mxu1 %vm462_vm0, %v21307_v7  ;;  %15950 = vmatprep.mubr.msk.bf16.mxu0 %vm462_vm0, %v18514_v48  ;;  %v2408_v48 = vpack.c.bf16 %v13911_v13, %v13910_v39  ;;  %v13919_v7 = vld [vmem:[%s18009_s15 + $0x98] sm:$0xff]  ;;  %v6994_v39 = vpack.c.bf16 %v14515_v55, %v14514_v38  ;;  %v13926_v38 = vld [vmem:[%s18009_s15 + $0xf0] sm:$0xff] }
 0x190   : > { %16310 = vmatprep.mubr.msk.bf16.mxu1 %vm462_vm0, %v18516_v49  ;;  %v6991_v49 = vpack.c.bf16 %v14509_v50, %v14508_v14  ;;  %v2412_v13 = vpack.c.bf16 %v13919_v7, %v13918_v61  ;;  %v17873_v50 = vld [vmem:[%s18016_s18 + $0xf8] sm:$0xff]   ;;  %v14524_v61 = vld [vmem:[%s18009_s15 + $0x2a0] sm:$0xff]  ;;  %v14525_v7 = vld [vmem:[%s18009_s15 + $0x2a8] sm:$0xff] }
 0x191   : > { %v13927_v55 = vld [vmem:[%s18009_s15 + $0xf8] sm:$0xff] }
 0x196   : > { %15951 = vmatmul.mubr.msk.bf16.gmra.mrb[24].mxu0 %vm462_vm0, %v18518_v52  ;;  %v18911_v52 = vpack.c.bf16 %v14487_v32, %v14486_v29  ;;  %v14517_v29 = vld [vmem:[%s18009_s15 + $0x248] sm:$0xff]  ;;  %v2411_v32 = vpack.c.bf16 %v13917_v37, %v13916_v4  ;;  %v13925_v4 = vld [vmem:[%s18009_s15 + $0xe0] sm:$0xff]  ;;  %v14523_v37 = vld [vmem:[%s18009_s15 + $0x290] sm:$0xff] }
 0x197   : > { %16311 = vmatmul.mubr.msk.bf16.gmra.mrb[24].mxu1 %vm462_vm0, %v18520_v51  ;;  %15954 = vmatprep.mubr.msk.bf16.mxu0 %vm462_vm0, %v18534_v21  ;;  %v18909_v51 = vpack.c.bf16 %v13889_v28, %v13888_v8  ;;  %v13912_v21 = vld [vmem:[%s18009_s15 + $0x48] sm:$0xff]  ;;  %v17871_v8 = vld [vmem:[%s18016_s18 + $0xf0] sm:$0xff]   ;;  %v14516_v28 = vld [vmem:[%s18009_s15 + $0x240] sm:$0xff] }
 0x198   : > { %16314 = vmatprep.mubr.msk.bf16.mxu1 %vm462_vm0, %v18536_v22  ;;  %v13913_v22 = vld [vmem:[%s18009_s15 + $0x50] sm:$0xff]  ;;  %v6995_v14 = vpack.c.bf16 %v14517_v29, %v14516_v28  ;;  %v2416_v29 = vpack.c.bf16 %v13927_v55, %v13926_v38 }
 0x199   : > { %v2409_v45 = vpack.c.bf16 %v13913_v22, %v13912_v21  ;;  %v14518_v21 = vld [vmem:[%s18009_s15 + $0x258] sm:$0xff]  ;;  %v14519_v22 = vld [vmem:[%s18009_s15 + $0x260] sm:$0xff] }
 0x19e   : > { %15955 = vmatmul.mubr.msk.bf16.gmra.mrb[28].mxu0 %vm462_vm0, %v18909_v51 }
 0x19f   : > { %16315 = vmatmul.mubr.msk.bf16.gmra.mrb[28].mxu1 %vm462_vm0, %v18911_v52  ;;  %15966 = vmatprep.mubr.msk.bf16.mxu0 %vm462_vm0, %v2408_v48  ;;  %v13920_v48 = vld [vmem:[%s18009_s15 + $0xa8] sm:$0xff] }
 0x1a0   : > { %16326 = vmatprep.mubr.msk.bf16.mxu1 %vm462_vm0, %v6991_v49  ;;  %v13921_v49 = vld [vmem:[%s18009_s15 + $0xb0] sm:$0xff] }
 0x1a1   : > { %v2413_v44 = vpack.c.bf16 %v13921_v49, %v13920_v48  ;;  %v14528_v48 = vld [vmem:[%s18009_s15 + $0x2d0] sm:$0xff]  ;;  %v14529_v49 = vld [vmem:[%s18009_s15 + $0x2d8] sm:$0xff] }
 0x1a6   : > { %15967 = vmatmul.mubr.msk.bf16.vlgmr.msra.gmra.mrb[0].mxu0 %vm462_vm0, %v2409_v45  ;;  %v18962_v45 = vld [vmem:[%s18016_s18 + $0x100] sm:$0xff]  }
 0x1a7   : > { %16327 = vmatmul.mubr.msk.bf16.vlgmr.msra.gmra.mrb[0].mxu1 %vm462_vm0, %v6992_v40  ;;  %15999 = vmatpush3.bf16.msra.mxu0 %v17868_v30  ;;  %v17874_v30 = vld [vmem:[%s18016_s18 + $0xf0] sm:$0xff]   ;;  %v6996_v40 = vpack.c.bf16 %v14519_v22, %v14518_v21 }
 0x1a8   : > { %15970 = vmatprep.mubr.msk.bf16.mxu0 %vm462_vm0, %v2410_v34  ;;  %16330 = vmatprep.mubr.msk.bf16.mxu1 %vm462_vm0, %v6993_v62  ;;  %v2414_v34 = vpack.c.bf16 %v13923_v10, %v13922_v59  ;;  %v6997_v62 = vpack.c.bf16 %v14521_v15, %v14520_v41  ;;  %v7001_v10 = vpack.c.bf16 %v14529_v49, %v14528_v48  ;;  %v13932_v41 = vld [vmem:[%s18009_s15 + $0x138] sm:$0xff]  ;;  %v13933_v15 = vld [vmem:[%s18009_s15 + $0x140] sm:$0xff] }
 0x1a9   : > { %16000 = vmatprep.subr.bf16.mxu0 %v17869_v63  ;;  %16359 = vmatpush3.bf16.msra.mxu1 %v18858_v36  ;;  %v17875_v36 = vld [vmem:[%s18016_s18 + $0xf8] sm:$0xff]   ;;  %v14021_v49 = vld [vmem:[%s18009_s15 + $0x82] sm:$0xff] }
 0x1aa   : > { %16360 = vmatprep.subr.bf16.mxu1 %v17872_v6  ;;  %v14020_v48 = vld [vmem:[%s18009_s15 + $0x7a] sm:$0xff] }
 0x1ab   : > { %16001 = vmatpush3.bf16.msra.mxu0 %v17869_v63  ;;  %v13924_v63 = vld [vmem:[%s18009_s15 + $0xd8] sm:$0xff] }
 0x1ac   : > { %16002 = vmatprep.subr.bf16.mxu0 %v17871_v8 }
 0x1ad   : > { %16361 = vmatpush3.bf16.msra.mxu1 %v17872_v6  ;;  %v14522_v6 = vld [vmem:[%s18009_s15 + $0x288] sm:$0xff] }
 0x1ae   : > { %15971 = vmatmul.mubr.msk.bf16.gmra.mrb[4].mxu0 %vm462_vm0, %v2411_v32  ;;  %16362 = vmatprep.subr.bf16.mxu1 %v17874_v30  ;;  %v6998_v28 = vpack.c.bf16 %v14523_v37, %v14522_v6  ;;  %v6999_v32 = vpack.c.bf16 %v14525_v7, %v14524_v61  ;;  %v2419_v6 = vpack.c.bf16 %v13933_v15, %v13932_v41  ;;  %v13936_v61 = vld [vmem:[%s18009_s15 + $0x168] sm:$0xff]  ;;  %v13937_v7 = vld [vmem:[%s18009_s15 + $0x170] sm:$0xff] }
 0x1af   : > { %16331 = vmatmul.mubr.msk.bf16.gmra.mrb[4].mxu1 %vm462_vm0, %v6994_v39  ;;  %15974 = vmatprep.mubr.msk.bf16.mxu0 %vm462_vm0, %v2412_v13  ;;  %v13929_v39 = vld [vmem:[%s18009_s15 + $0x110] sm:$0xff]  ;;  %v14526_v13 = vld [vmem:[%s18009_s15 + $0x2b8] sm:$0xff]  ;;  %v14620_v41 = vld [vmem:[%s18009_s15 + $0x242] sm:$0xff] }
 0x1b0   : > { %16334 = vmatprep.mubr.msk.bf16.mxu1 %vm462_vm0, %v6995_v14  ;;  %16003 = vmatpush3.bf16.msra.mxu0 %v17871_v8  ;;  %v2415_v8 = vpack.c.bf16 %v13925_v4, %v13924_v63  ;;  %v14527_v14 = vld [vmem:[%s18009_s15 + $0x2c0] sm:$0xff]  ;;  %v14533_v4 = vld [vmem:[%s18009_s15 + $0x308] sm:$0xff] }
 0x1b1   : > { %16004 = vmatprep.subr.bf16.mxu0 %v17873_v50  ;;  %16363 = vmatpush3.bf16.msra.mxu1 %v17874_v30  ;;  %v13928_v30 = vld [vmem:[%s18009_s15 + $0x108] sm:$0xff]  ;;  %v7000_v22 = vpack.c.bf16 %v14527_v14, %v14526_v13  ;;  %v14532_v63 = vld [vmem:[%s18009_s15 + $0x300] sm:$0xff]  ;;  %v14539_v14 = vld [vmem:[%s18009_s15 + $0x350] sm:$0xff] }
 0x1b2   : > { %16364 = vmatprep.subr.bf16.mxu1 %v17875_v36  ;;  %v2417_v21 = vpack.c.bf16 %v13929_v39, %v13928_v30  ;;  %v7003_v55 = vpack.c.bf16 %v14533_v4, %v14532_v63  ;;  %v13940_v30 = vld [vmem:[%s18009_s15 + $0x198] sm:$0xff]  ;;  %v13941_v39 = vld [vmem:[%s18009_s15 + $0x1a0] sm:$0xff]  ;;  %v14538_v13 = vld [vmem:[%s18009_s15 + $0x348] sm:$0xff] }
 0x1b3   : > { %v14621_v15 = vld [vmem:[%s18009_s15 + $0x24a] sm:$0xff]  ;;  %v14025_v4 = vld [vmem:[%s18009_s15 + $0xb2] sm:$0xff] }
 0x1b4   : > { %16005 = vmatpush3.bf16.msra.mxu0 %v17873_v50  ;;  %v13930_v50 = vld [vmem:[%s18009_s15 + $0x120] sm:$0xff]  ;;  %v14024_v63 = vld [vmem:[%s18009_s15 + $0xaa] sm:$0xff] }
 0x1b5   : > { %16365 = vmatpush3.bf16.msra.mxu1 %v17875_v36  ;;  %16038 = vmatprep.subr.bf16.mxu0 %v18959_v35  ;;  %v13931_v36 = vld [vmem:[%s18009_s15 + $0x128] sm:$0xff] }
 0x1b6   : > { %15975 = vmatmul.mubr.msk.bf16.gmra.mrb[8].mxu0 %vm462_vm0, %v2413_v44  ;;  %16398 = vmatprep.subr.bf16.mxu1 %v18962_v45  ;;  %v2418_v59 = vpack.c.bf16 %v13931_v36, %v13930_v50  ;;  %v14530_v44 = vld [vmem:[%s18009_s15 + $0x2e8] sm:$0xff]  ;;  %v2423_v50 = vpack.c.bf16 %v13941_v39, %v13940_v30  ;;  %v7006_v36 = vpack.c.bf16 %v14539_v14, %v14538_v13  ;;  %v14028_v30 = vld [vmem:[%s18009_s15 + $0xda] sm:$0xff]  ;;  %v14627_v14 = vld [vmem:[%s18009_s15 + $0x292] sm:$0xff] }
 0x1b7   : > { %16335 = vmatmul.mubr.msk.bf16.gmra.mrb[8].mxu1 %vm462_vm0, %v6996_v40  ;;  %15978 = vmatprep.mubr.msk.bf16.mxu0 %vm462_vm0, %v2414_v34  ;;  %v14531_v40 = vld [vmem:[%s18009_s15 + $0x2f0] sm:$0xff]  ;;  %v14029_v39 = vld [vmem:[%s18009_s15 + $0xe2] sm:$0xff] }
 0x1b8   : > { %16338 = vmatprep.mubr.msk.bf16.mxu1 %vm462_vm0, %v6997_v62  ;;  %v13934_v34 = vld [vmem:[%s18009_s15 + $0x150] sm:$0xff]  ;;  %v13935_v62 = vld [vmem:[%s18009_s15 + $0x158] sm:$0xff]  ;;  %v7002_v37 = vpack.c.bf16 %v14531_v40, %v14530_v44  ;;  %v3053_v44 = vpack.c.bf16 %v14021_v49, %v14020_v48  ;;  %v14639_v49 = vld [vmem:[%s18009_s15 + $0x322] sm:$0xff] }
 0x1b9   : > { %v2420_v38 = vpack.c.bf16 %v13935_v62, %v13934_v34  ;;  %v7637_v62 = vpack.c.bf16 %v14621_v15, %v14620_v41  ;;  %v14626_v13 = vld [vmem:[%s18009_s15 + $0x28a] sm:$0xff]  ;;  %v14638_v48 = vld [vmem:[%s18009_s15 + $0x31a] sm:$0xff]  ;;  %v14643_v15 = vld [vmem:[%s18009_s15 + $0x352] sm:$0xff] }
 0x1ba   : > { %v14642_v41 = vld [vmem:[%s18009_s15 + $0x34a] sm:$0xff] }
 0x1be   : > { %15979 = vmatmul.mubr.msk.bf16.gmra.mrb[12].mxu0 %vm462_vm0, %v2415_v8  ;;  %v14534_v8 = vld [vmem:[%s18009_s15 + $0x318] sm:$0xff] }
 0x1bf   : > { %16339 = vmatmul.mubr.msk.bf16.gmra.mrb[12].mxu1 %vm462_vm0, %v6998_v28  ;;  %15982 = vmatprep.mubr.msk.bf16.mxu0 %vm462_vm0, %v2416_v29  ;;  %v14535_v28 = vld [vmem:[%s18009_s15 + $0x320] sm:$0xff]  ;;  %v2421_v29 = vpack.c.bf16 %v13937_v7, %v13936_v61  ;;  %v14624_v61 = vld [vmem:[%s18009_s15 + $0x272] sm:$0xff] }
 0x1c0   : > { %16342 = vmatprep.mubr.msk.bf16.mxu1 %vm462_vm0, %v6999_v32  ;;  %v7004_v32 = vpack.c.bf16 %v14535_v28, %v14534_v8  ;;  %v14625_v7 = vld [vmem:[%s18009_s15 + $0x27a] sm:$0xff]  ;;  %v3055_v8 = vpack.c.bf16 %v14025_v4, %v14024_v63 }
 0x1c6   : > { %15983 = vmatmul.mubr.msk.bf16.gmra.mrb[16].mxu0 %vm462_vm0, %v2417_v21  ;;  %v14618_v21 = vld [vmem:[%s18009_s15 + $0x22a] sm:$0xff] }
 0x1c7   : > { %16343 = vmatmul.mubr.msk.bf16.gmra.mrb[16].mxu1 %vm462_vm0, %v7000_v22  ;;  %15986 = vmatprep.mubr.msk.bf16.mxu0 %vm462_vm0, %v2418_v59  ;;  %v14619_v22 = vld [vmem:[%s18009_s15 + $0x232] sm:$0xff] }
 0x1c8   : > { %16346 = vmatprep.mubr.msk.bf16.mxu1 %vm462_vm0, %v7001_v10  ;;  %v14022_v59 = vld [vmem:[%s18009_s15 + $0x92] sm:$0xff]  ;;  %v14023_v10 = vld [vmem:[%s18009_s15 + $0x9a] sm:$0xff]  ;;  %v7636_v40 = vpack.c.bf16 %v14619_v22, %v14618_v21  ;;  %v7646_v22 = vpack.c.bf16 %v14639_v49, %v14638_v48 }
 0x1c9   : > { %v3054_v34 = vpack.c.bf16 %v14023_v10, %v14022_v59  ;;  %v14044_v59 = vld [vmem:[%s18009_s15 + $0x19a] sm:$0xff]  ;;  %v14045_v10 = vld [vmem:[%s18009_s15 + $0x1a2] sm:$0xff] }
 0x1ce   : > { %15987 = vmatmul.mubr.msk.bf16.gmra.mrb[20].mxu0 %vm462_vm0, %v2419_v6  ;;  %v14622_v6 = vld [vmem:[%s18009_s15 + $0x25a] sm:$0xff] }
 0x1cf   : > { %16347 = vmatmul.mubr.msk.bf16.gmra.mrb[20].mxu1 %vm462_vm0, %v7002_v37  ;;  %15990 = vmatprep.mubr.msk.bf16.mxu0 %vm462_vm0, %v2420_v38  ;;  %v14623_v37 = vld [vmem:[%s18009_s15 + $0x262] sm:$0xff] }
 0x1d0   : > { %16350 = vmatprep.mubr.msk.bf16.mxu1 %vm462_vm0, %v7003_v55  ;;  %v14026_v38 = vld [vmem:[%s18009_s15 + $0xc2] sm:$0xff]  ;;  %v14027_v55 = vld [vmem:[%s18009_s15 + $0xca] sm:$0xff]  ;;  %v7638_v28 = vpack.c.bf16 %v14623_v37, %v14622_v6  ;;  %v19211_v6 = vld [vmem:[%s19202_s24] ss:$0 sm:$0xff] }
 0x1d1   : > { %v19214_v37 = vld [vmem:[%s19208_s27] ss:$0 sm:$0xff] }
 0x1d6   : > { %15991 = vmatmul.mubr.msk.bf16.gmra.mrb[24].mxu0 %vm462_vm0, %v2421_v29  ;;  %v3056_v29 = vpack.c.bf16 %v14027_v55, %v14026_v38 }
 0x1d7   : > { %16351 = vmatmul.mubr.msk.bf16.gmra.mrb[24].mxu1 %vm462_vm0, %v7004_v32  ;;  %15994 = vmatprep.mubr.msk.bf16.mxu0 %vm462_vm0, %v18623_v46  ;;  %v17877_v46 = vld [vmem:[%s18016_s18 + $0x108] sm:$0xff]   ;;  %v7639_v32 = vpack.c.bf16 %v14625_v7, %v14624_v61 }
 0x1d8   : > { %16354 = vmatprep.mubr.msk.bf16.mxu1 %vm462_vm0, %v18625_v47  ;;  %v17880_v47 = vld [vmem:[%s18016_s18 + $0x108] sm:$0xff]  }
 0x1de   : > { %15995 = vmatmul.mubr.msk.bf16.gmra.mrb[28].mxu0 %vm462_vm0, %v2423_v50  ;;  %v14030_v50 = vld [vmem:[%s18009_s15 + $0xf2] sm:$0xff] }
 0x1df   : > { %16355 = vmatmul.mubr.msk.bf16.gmra.mrb[28].mxu1 %vm462_vm0, %v7006_v36  ;;  %16006 = vmatprep.mubr.msk.bf16.mxu0 %vm462_vm0, %v18641_v26  ;;  %v17879_v26 = vld [vmem:[%s18016_s18 + $0x110] sm:$0xff]   ;;  %v14031_v36 = vld [vmem:[%s18009_s15 + $0xfa] sm:$0xff] }
 0x1e0   : > { %16366 = vmatprep.mubr.msk.bf16.mxu1 %vm462_vm0, %v18643_v27  ;;  %v17882_v27 = vld [vmem:[%s18016_s18 + $0x110] sm:$0xff]  }
 0x1e6   : > { %16007 = vmatmul.mubr.msk.bf16.vlgmr.msra.gmra.mrb[0].mxu0 %vm462_vm0, %v18645_v42  ;;  %v17881_v42 = vld [vmem:[%s18016_s18 + $0x118] sm:$0xff]  }
 0x1e7   : > { %16367 = vmatmul.mubr.msk.bf16.vlgmr.msra.gmra.mrb[0].mxu1 %vm462_vm0, %v18647_v43  ;;  %16039 = vmatpush3.bf16.msra.mxu0 %v18959_v35  ;;  %v17883_v43 = vld [vmem:[%s18016_s18 + $0x118] sm:$0xff]   ;;  %s448_s18 = scalar_lea.vmem %s21255_s6, %s21423_s10 }
 0x1e8   : > { %16010 = vmatprep.mubr.msk.bf16.mxu0 %vm462_vm0, %v18669_v2  ;;  %16370 = vmatprep.mubr.msk.bf16.mxu1 %vm462_vm0, %v18672_v16  ;;  %v21308_v2 = vld [vmem:[#allocation8_spill] sm:$0xff]  ;;  %v21309_v16 = vld [vmem:[#allocation9_spill] sm:$0xff] }
 0x1e9   : > { %16040 = vmatprep.subr.bf16.mxu0 %v17877_v46  ;;  %16399 = vmatpush3.bf16.msra.mxu1 %v18962_v45 }
 0x1ea   : > { %16400 = vmatprep.subr.bf16.mxu1 %v17880_v47 }
 0x1eb   : > { %16041 = vmatpush3.bf16.msra.mxu0 %v17877_v46  ;;  %v14628_v46 = vld [vmem:[%s18009_s15 + $0x2a2] sm:$0xff] }
 0x1ec   : > { %16042 = vmatprep.subr.bf16.mxu0 %v17879_v26 }
 0x1ed   : > { %16401 = vmatpush3.bf16.msra.mxu1 %v17880_v47  ;;  %v14629_v47 = vld [vmem:[%s18009_s15 + $0x2aa] sm:$0xff] }
 0x1ee   : > { %16011 = vmatmul.mubr.msk.bf16.gmra.mrb[4].mxu0 %vm462_vm0, %v18674_v19  ;;  %16402 = vmatprep.subr.bf16.mxu1 %v17882_v27  ;;  %v13992_v19 = vld [vmem:[%s18009_s15 + $0x199] sm:$0xff] }
 0x1ef   : > { %16371 = vmatmul.mubr.msk.bf16.gmra.mrb[4].mxu1 %vm462_vm0, %v18676_v20  ;;  %16014 = vmatprep.mubr.msk.bf16.mxu0 %vm462_vm0, %v18699_v9  ;;  %v13993_v20 = vld [vmem:[%s18009_s15 + $0x1a1] sm:$0xff]  ;;  %v14590_v9 = vld [vmem:[%s18009_s15 + $0x349] sm:$0xff] }
 0x1f0   : > { %16374 = vmatprep.mubr.msk.bf16.mxu1 %vm462_vm0, %v18704_v11  ;;  %16043 = vmatpush3.bf16.msra.mxu0 %v17879_v26  ;;  %v14591_v11 = vld [vmem:[%s18009_s15 + $0x351] sm:$0xff]  ;;  %v3057_v26 = vpack.c.bf16 %v14029_v39, %v14028_v30 }
 0x1f1   : > { %16044 = vmatprep.subr.bf16.mxu0 %v17881_v42  ;;  %16403 = vmatpush3.bf16.msra.mxu1 %v17882_v27  ;;  %v7640_v27 = vpack.c.bf16 %v14627_v14, %v14626_v13 }
 0x1f2   : > { %16404 = vmatprep.subr.bf16.mxu1 %v17883_v43 }
 0x1f4   : > { %16045 = vmatpush3.bf16.msra.mxu0 %v17881_v42  ;;  %v3058_v42 = vpack.c.bf16 %v14031_v36, %v14030_v50 }
 0x1f5   : > { %16405 = vmatpush3.bf16.msra.mxu1 %v17883_v43  ;;  %v7641_v43 = vpack.c.bf16 %v14629_v47, %v14628_v46 }
 0x1f6   : > { %16015 = vmatmul.mubr.msk.bf16.gmra.mrb[8].mxu0 %vm462_vm0, %v18706_v12  ;;  %v14014_v12 = vld [vmem:[%s18009_s15 + $0x32] sm:$0xff] }
 0x1f7   : > { %16375 = vmatmul.mubr.msk.bf16.gmra.mrb[8].mxu1 %vm462_vm0, %v18708_v24  ;;  %16018 = vmatprep.mubr.msk.bf16.mxu0 %vm462_vm0, %v18728_v23  ;;  %v14015_v24 = vld [vmem:[%s18009_s15 + $0x3a] sm:$0xff]  ;;  %v14612_v23 = vld [vmem:[%s18009_s15 + $0x1e2] sm:$0xff] }
 0x1f8   : > { %16378 = vmatprep.mubr.msk.bf16.mxu1 %vm462_vm0, %v18730_v53  ;;  %v14613_v53 = vld [vmem:[%s18009_s15 + $0x1ea] sm:$0xff] }
 0x1fe   : > { %16019 = vmatmul.mubr.msk.bf16.gmra.mrb[12].mxu0 %vm462_vm0, %v18732_v0  ;;  %v2744_v0 = vpack.c.bf16 %v13993_v20, %v13992_v19  ;;  %v14630_v19 = vld [vmem:[%s18009_s15 + $0x2ba] sm:$0xff]  ;;  %v14631_v20 = vld [vmem:[%s18009_s15 + $0x2c2] sm:$0xff] }
 0x1ff   : > { %16379 = vmatmul.mubr.msk.bf16.gmra.mrb[12].mxu1 %vm462_vm0, %v18734_v1  ;;  %16022 = vmatprep.mubr.msk.bf16.mxu0 %vm462_vm0, %v18752_v56  ;;  %v7327_v1 = vpack.c.bf16 %v14591_v11, %v14590_v9  ;;  %v3050_v56 = vpack.c.bf16 %v14015_v24, %v14014_v12  ;;  %v14034_v9 = vld [vmem:[%s18009_s15 + $0x122] sm:$0xff]  ;;  %v14035_v11 = vld [vmem:[%s18009_s15 + $0x12a] sm:$0xff]  ;;  %v14632_v12 = vld [vmem:[%s18009_s15 + $0x2d2] sm:$0xff] }
 0x200   : > { %16382 = vmatprep.mubr.msk.bf16.mxu1 %vm462_vm0, %v18754_v57  ;;  %v7633_v57 = vpack.c.bf16 %v14613_v53, %v14612_v23  ;;  %v14633_v24 = vld [vmem:[%s18009_s15 + $0x2da] sm:$0xff]  ;;  %v7642_v53 = vpack.c.bf16 %v14631_v20, %v14630_v19 }
 0x206   : > { %16023 = vmatmul.mubr.msk.bf16.gmra.mrb[16].mxu0 %vm462_vm0, %v18756_v58  ;;  %v14016_v58 = vld [vmem:[%s18009_s15 + $0x4a] sm:$0xff] }
 0x207   : > { %16383 = vmatmul.mubr.msk.bf16.gmra.mrb[16].mxu1 %vm462_vm0, %v18758_v25  ;;  %16026 = vmatprep.mubr.msk.bf16.mxu0 %vm462_vm0, %v18776_v17  ;;  %v14017_v25 = vld [vmem:[%s18009_s15 + $0x52] sm:$0xff]  ;;  %v14614_v17 = vld [vmem:[%s18009_s15 + $0x1fa] sm:$0xff] }
 0x208   : > { %16386 = vmatprep.mubr.msk.bf16.mxu1 %vm462_vm0, %v18778_v31  ;;  %v14615_v31 = vld [vmem:[%s18009_s15 + $0x202] sm:$0xff] }
 0x20e   : > { %16027 = vmatmul.mubr.msk.bf16.gmra.mrb[20].mxu0 %vm462_vm0, %v21308_v2  ;;  %v14032_v2 = vld [vmem:[%s18009_s15 + $0x10a] sm:$0xff] }
 0x20f   : > { %16387 = vmatmul.mubr.msk.bf16.gmra.mrb[20].mxu1 %vm462_vm0, %v21309_v16  ;;  %16030 = vmatprep.mubr.msk.bf16.mxu0 %vm462_vm0, %v18800_v5  ;;  %v14019_v5 = vld [vmem:[%s18009_s15 + $0x6a] sm:$0xff]  ;;  %v14033_v16 = vld [vmem:[%s18009_s15 + $0x112] sm:$0xff] }
 0x210   : > { %16390 = vmatprep.mubr.msk.bf16.mxu1 %vm462_vm0, %v18802_v18  ;;  %v14616_v18 = vld [vmem:[%s18009_s15 + $0x212] sm:$0xff]  ;;  %v3059_v23 = vpack.c.bf16 %v14033_v16, %v14032_v2 }
 0x216   : > { %16031 = vmatmul.mubr.msk.bf16.gmra.mrb[24].mxu0 %vm462_vm0, %v18804_v3  ;;  %v14617_v3 = vld [vmem:[%s18009_s15 + $0x21a] sm:$0xff] }
 0x217   : > { %16391 = vmatmul.mubr.msk.bf16.gmra.mrb[24].mxu1 %vm462_vm0, %v18806_v33  ;;  %16034 = vmatprep.mubr.msk.bf16.mxu0 %vm462_vm0, %v18820_v54  ;;  %v14018_v33 = vld [vmem:[%s18009_s15 + $0x62] sm:$0xff]  ;;  %v3051_v54 = vpack.c.bf16 %v14017_v25, %v14016_v58  ;;  %v7635_v45 = vpack.c.bf16 %v14617_v3, %v14616_v18  ;;  %v14634_v58 = vld [vmem:[%s18009_s15 + $0x2ea] sm:$0xff]  ;;  %v14635_v25 = vld [vmem:[%s18009_s15 + $0x2f2] sm:$0xff] }
 0x218   : > { %16394 = vmatprep.mubr.msk.bf16.mxu1 %vm462_vm0, %v18822_v60  ;;  %v7634_v60 = vpack.c.bf16 %v14615_v31, %v14614_v17  ;;  %v3052_v35 = vpack.c.bf16 %v14019_v5, %v14018_v33  ;;  %v14038_v17 = vld [vmem:[%s18009_s15 + $0x152] sm:$0xff]  ;;  %v14039_v31 = vld [vmem:[%s18009_s15 + $0x15a] sm:$0xff]  ;;  %v14636_v33 = vld [vmem:[%s18009_s15 + $0x302] sm:$0xff]  ;;  %v7644_v3 = vpack.c.bf16 %v14635_v25, %v14634_v58 }
 0x219   : > { %v14637_v5 = vld [vmem:[%s18009_s15 + $0x30a] sm:$0xff] }
 0x21e   : > { %16035 = vmatmul.mubr.msk.bf16.gmra.mrb[28].mxu0 %vm462_vm0, %v2744_v0  ;;  %v3060_v0 = vpack.c.bf16 %v14035_v11, %v14034_v9 }
 0x21f   : > { %16395 = vmatmul.mubr.msk.bf16.gmra.mrb[28].mxu1 %vm462_vm0, %v7327_v1  ;;  %16046 = vmatprep.mubr.msk.bf16.mxu0 %vm462_vm0, %v3050_v56  ;;  %v7643_v1 = vpack.c.bf16 %v14633_v24, %v14632_v12  ;;  %v14036_v56 = vld [vmem:[%s18009_s15 + $0x13a] sm:$0xff] }
 0x220   : > { %16406 = vmatprep.mubr.msk.bf16.mxu1 %vm462_vm0, %v7633_v57  ;;  %v14037_v57 = vld [vmem:[%s18009_s15 + $0x142] sm:$0xff] }
 0x221   : > { %v3061_v18 = vpack.c.bf16 %v14037_v57, %v14036_v56 }
 0x226   : > { %16047 = vmatmul.mubr.msk.bf16.vlgmr.msra.gmra.mrb[0].mxu0 %vm462_vm0, %v3051_v54  ;;  %v3062_v54 = vpack.c.bf16 %v14039_v31, %v14038_v17 }
 0x227   : > { %16407 = vmatmul.mubr.msk.bf16.vlgmr.msra.gmra.mrb[0].mxu1 %vm462_vm0, %v7634_v60  ;;  %16050 = vmatprep.mubr.msk.bf16.mxu0 %vm462_vm0, %v3052_v35  ;;  %v7645_v60 = vpack.c.bf16 %v14637_v5, %v14636_v33  ;;  %v14040_v35 = vld [vmem:[%s18009_s15 + $0x16a] sm:$0xff] }
 0x228   : > { %16410 = vmatprep.mubr.msk.bf16.mxu1 %vm462_vm0, %v7635_v45  ;;  %v14041_v45 = vld [vmem:[%s18009_s15 + $0x172] sm:$0xff]  ;;  %s445_s15 = scalar_lea.vmem %s21254_s5, %s21423_s10 }
 0x229   : > { %v3063_v21 = vpack.c.bf16 %v14041_v45, %v14040_v35 }
 0x22e   : > { %16051 = vmatmul.mubr.msk.bf16.gmra.mrb[4].mxu0 %vm462_vm0, %v3053_v44  ;;  %v3065_v44 = vpack.c.bf16 %v14045_v10, %v14044_v59 }
 0x22f   : > { %16411 = vmatmul.mubr.msk.bf16.gmra.mrb[4].mxu1 %vm462_vm0, %v7636_v40  ;;  %16054 = vmatprep.mubr.msk.bf16.mxu0 %vm462_vm0, %v3054_v34  ;;  %v7648_v40 = vpack.c.bf16 %v14643_v15, %v14642_v41  ;;  %v17940_v34 = vmov 1983009808  }
 0x230   : > { %16414 = vmatprep.mubr.msk.bf16.mxu1 %vm462_vm0, %v7637_v62  ;;  %v3451_v62 = vlaneseq }
 0x232   : > { %v3452_v4 = vshrl.u32 %v3451_v62, 7 }
 0x234   : > { %v19222_v13 = vsub.s32 0, %v3452_v4 }
 0x236   : > { %16055 = vmatmul.mubr.msk.bf16.gmra.mrb[8].mxu0 %vm462_vm0, %v3055_v8  ;;  %21311 = vst [vmem:[#allocation4_spill] sm:$0xff] %v19222_v13 }
 0x237   : > { %16415 = vmatmul.mubr.msk.bf16.gmra.mrb[8].mxu1 %vm462_vm0, %v7638_v28  ;;  %16058 = vmatprep.mubr.msk.bf16.mxu0 %vm462_vm0, %v3056_v29 }
 0x238   : > { %16418 = vmatprep.mubr.msk.bf16.mxu1 %vm462_vm0, %v7639_v32 }
 0x23e   : > { %16059 = vmatmul.mubr.msk.bf16.gmra.mrb[12].mxu0 %vm462_vm0, %v3057_v26 }
 0x23f   : > { %16419 = vmatmul.mubr.msk.bf16.gmra.mrb[12].mxu1 %vm462_vm0, %v7640_v27  ;;  %16062 = vmatprep.mubr.msk.bf16.mxu0 %vm462_vm0, %v3058_v42 }
 0x240   : > { %16422 = vmatprep.mubr.msk.bf16.mxu1 %vm462_vm0, %v7641_v43 }
 0x246   : > { %16063 = vmatmul.mubr.msk.bf16.gmra.mrb[16].mxu0 %vm462_vm0, %v3059_v23 }
 0x247   : > { %16423 = vmatmul.mubr.msk.bf16.gmra.mrb[16].mxu1 %vm462_vm0, %v7642_v53  ;;  %16066 = vmatprep.mubr.msk.bf16.mxu0 %vm462_vm0, %v3060_v0 }
 0x248   : > { %16426 = vmatprep.mubr.msk.bf16.mxu1 %vm462_vm0, %v7643_v1 }
 0x24e   : > { %16067 = vmatmul.mubr.msk.bf16.gmra.mrb[20].mxu0 %vm462_vm0, %v3061_v18 }
 0x24f   : > { %16427 = vmatmul.mubr.msk.bf16.gmra.mrb[20].mxu1 %vm462_vm0, %v7644_v3  ;;  %16070 = vmatprep.mubr.msk.bf16.mxu0 %vm462_vm0, %v3062_v54 }
 0x250   : > { %16430 = vmatprep.mubr.msk.bf16.mxu1 %vm462_vm0, %v7645_v60 }
 0x256   : > { %16071 = vmatmul.mubr.msk.bf16.gmra.mrb[24].mxu0 %vm462_vm0, %v3063_v21 }
 0x257   : > { %16431 = vmatmul.mubr.msk.bf16.gmra.mrb[24].mxu1 %vm462_vm0, %v7646_v22  ;;  %16074 = vmatprep.mubr.msk.bf16.mxu0 %vm462_vm0, %v18909_v51  ;;  %v17884_v51 = vld [vmem:[%s19195_s21 + $0x20] sm:$0xff]  }
 0x258   : > { %16434 = vmatprep.mubr.msk.bf16.mxu1 %vm462_vm0, %v18911_v52  ;;  %16438 = vmatprep.subr.bf16.mxu0 %v17884_v51  ;;  %v3449_v52 = vunpack.c.l.s4 %v17940_v34 }
 0x259   : > { %16439 = vmatpush3.bf16.msra.mxu0 %v17884_v51 }
 0x25a   : > { %v3450_v63 = vunpack.c.0.s8 %v3449_v52 }
 0x25c   : > { %v19217_v61 = vsub.s32 %v3450_v63, %v3452_v4 }
 0x25e   : > { %16075 = vmatmul.mubr.msk.bf16.gmra.mrb[28].mxu0 %vm462_vm0, %v3065_v44  ;;  %21310 = vst [vmem:[#allocation3_spill] sm:$0xff] %v19217_v61 }
 0x25f   : > { %16435 = vmatmul.mubr.msk.bf16.gmra.mrb[28].mxu1 %vm462_vm0, %v7648_v40 }
 0x2f9   : > { %v16048_v38 = vpop.f32.mrb[0].mxu0 }
 0x2fa   : > { %v3347_v55 = vmul.f32 %v16048_v38, %v19211_v6  ;;  %v16408_v7 = vpop.f32.mrb[0].mxu1  ;;  %v3180_v8 = vpop.f32.mrb[1].mxu0 }
 0x2fb   : > { %v7924_v28 = vmul.f32 %v16408_v7, %v19211_v6  ;;  %v3345_v29 = vmul.f32 %v19211_v6, %v3180_v8  ;;  %v7763_v32 = vpop.f32.mrb[1].mxu1  ;;  %v16049_v30 = vpop.f32.mrb[2].mxu0 }
 0x2fc   : > { %v3385_v39 = vadd.f32 %v19214_v37, %v3347_v55  ;;  %v7922_v14 = vmul.f32 %v19211_v6, %v7763_v32  ;;  %v3348_v50 = vmul.f32 %v16049_v30, %v19211_v6  ;;  %v16409_v36 = vpop.f32.mrb[2].mxu1  ;;  %v3183_v46 = vpop.f32.mrb[3].mxu0 }
 0x2fd   : > { %v7956_v47 = vadd.f32 %v19214_v37, %v7924_v28  ;;  %v3383_v26 = vadd.f32 %v19214_v37, %v3345_v29  ;;  %v19229_v27 = vmul.f32 %v16409_v36, %v19211_v6  ;;  %v19232_v42 = vmul.f32 %v19211_v6, %v3183_v46  ;;  %v19234_v43 = vpop.f32.mrb[3].mxu1 }
 0x2fe   : > { %v3481_v2 = vcombine.high %v3385_v39, %v3385_v39  ;;  %v3488_v16 = vrot.slane %v3385_v39, %v19217_v61  ;;  %v7954_v19 = vadd.f32 %v19214_v37, %v7922_v14  ;;  %v19239_v20 = vadd.f32 %v19214_v37, %v3348_v50 }
 0x2ff   : > { %v8052_v9 = vcombine.high %v7956_v47, %v7956_v47  ;;  %v8059_v11 = vrot.slane %v7956_v47, %v19217_v61  ;;  %v3447_v12 = vcombine.high %v3383_v26, %v3383_v26  ;;  %v3454_v24 = vrot.slane %v3383_v26, %v19217_v61 }
 0x300   : > { %v3495_v23 = vrot.slane %v3481_v2, %v19217_v61  ;;  %v3496_v53 = vcombine.high %v3488_v16, %v3488_v16  ;;  %v14132_v0 = vrot.slane %v3488_v16, 9  ;;  %v8018_v1 = vcombine.high %v7954_v19, %v7954_v19 }
 0x301   : > { %v8066_v56 = vrot.slane %v8052_v9, %v19217_v61  ;;  %v8067_v57 = vcombine.high %v8059_v11, %v8059_v11  ;;  %v14728_v58 = vrot.slane %v8059_v11, 9  ;;  %v3461_v25 = vrot.slane %v3447_v12, %v19217_v61  ;;  %v19246_v17 = vpop.f32.mrb[4].mxu0 }
 0x302   : > { %v3497_v31 = vcombine.high %v3495_v23, %v3495_v23  ;;  %v14133_v33 = vrot.slane %v3496_v53, 9  ;;  %v14134_v5 = vrot.slane %v3495_v23, 9  ;;  %v4567_v18 = vmax.f32 %v3488_v16, %v14132_v0  ;;  %v19248_v3 = vpop.f32.mrb[4].mxu1  ;;  %v19250_v54 = vpop.f32.mrb[5].mxu0 }
 0x303   : > { %v8068_v60 = vcombine.high %v8066_v56, %v8066_v56  ;;  %v14729_v35 = vrot.slane %v8067_v57, 9  ;;  %v14730_v45 = vrot.slane %v8066_v56, 9  ;;  %v19252_v48 = vmax.f32 %v8059_v11, %v14728_v58  ;;  %v19254_v49 = vpop.f32.mrb[5].mxu1  ;;  %v19256_v21 = vpop.f32.mrb[6].mxu0 }
 0x304   : > { %v14135_v22 = vrot.slane %v3497_v31, 9  ;;  %v4568_v59 = vmax.f32 %v3496_v53, %v14133_v33  ;;  %v4569_v10 = vmax.f32 %v3495_v23, %v14134_v5  ;;  %v3462_v41 = vcombine.high %v3454_v24, %v3454_v24  ;;  %v19258_v15 = vpop.f32.mrb[6].mxu1  ;;  %v19260_v44 = vpop.f32.mrb[7].mxu0 }
 0x305   : > { %v14731_v40 = vrot.slane %v8068_v60, 9  ;;  %v9139_v51 = vmax.f32 %v8067_v57, %v14729_v35  ;;  %v9140_v34 = vmax.f32 %v8066_v56, %v14730_v45  ;;  %v3463_v52 = vcombine.high %v3461_v25, %v3461_v25  ;;  %v19262_v62 = vpop.f32.mrb[7].mxu1 }
 0x306   : > { %v4570_v63 = vmax.f32 %v3497_v31, %v14135_v22  ;;  %v14068_v4 = vrot.slane %v3454_v24, 9  ;;  %v14069_v38 = vrot.slane %v3462_v41, 9  ;;  %v14070_v55 = vrot.slane %v3461_v25, 9 }
 0x307   : > { %v9141_v7 = vmax.f32 %v8068_v60, %v14731_v40  ;;  %v14071_v8 = vrot.slane %v3463_v52, 9  ;;  %v8025_v28 = vrot.slane %v7954_v19, %v19217_v61  ;;  %v8032_v29 = vrot.slane %v8018_v1, %v19217_v61 }
 0x308   : > { %v4311_v32 = vmax.f32 %v3454_v24, %v14068_v4  ;;  %v4312_v30 = vmax.f32 %v3462_v41, %v14069_v38  ;;  %v4313_v39 = vmax.f32 %v3461_v25, %v14070_v55  ;;  %v3498_v14 = vcombine.high %v19239_v20, %v19239_v20 }
 0x309   : > { %v4314_v50 = vmax.f32 %v3463_v52, %v14071_v8  ;;  %v8033_v36 = vcombine.high %v8025_v28, %v8025_v28  ;;  %v8034_v46 = vcombine.high %v8032_v29, %v8032_v29  ;;  %v14664_v47 = vrot.slane %v8025_v28, 9  ;;  %v19268_v26 = vpop.f32.mrb[8].mxu0 }
 0x30a   : > { %v4631_v2 = vmax.f32 %v4311_v32, %v4567_v18  ;;  %v4632_v16 = vmax.f32 %v4312_v30, %v4568_v59  ;;  %v4633_v9 = vmax.f32 %v4313_v39, %v4569_v10  ;;  %v14666_v11 = vrot.slane %v8032_v29, 9  ;;  %v19270_v12 = vpop.f32.mrb[8].mxu1  ;;  %v19272_v19 = vpop.f32.mrb[9].mxu0 }
 0x30b   : > { %v4634_v24 = vmax.f32 %v4314_v50, %v4570_v63  ;;  %v14665_v23 = vrot.slane %v8033_v36, 9  ;;  %v14667_v53 = vrot.slane %v8034_v46, 9  ;;  %v8882_v0 = vmax.f32 %v8025_v28, %v14664_v47  ;;  %v19274_v1 = vpop.f32.mrb[9].mxu1  ;;  %v19276_v56 = vpop.f32.mrb[10].mxu0 }
 0x30c   : > { %v4762_v57 = vrot.slane %v4631_v2, %v19222_v13  ;;  %v4766_v58 = vrot.slane %v4632_v16, %v19222_v13  ;;  %v4770_v25 = vrot.slane %v4633_v9, %v19222_v13  ;;  %v8884_v31 = vmax.f32 %v8032_v29, %v14666_v11  ;;  %v19281_v33 = vpop.f32.mrb[10].mxu1  ;;  %v19283_v5 = vpop.f32.mrb[11].mxu0 }
 0x30d   : > { %v4774_v18 = vrot.slane %v4634_v24, %v19222_v13  ;;  %v8883_v60 = vmax.f32 %v8033_v36, %v14665_v23  ;;  %v8885_v35 = vmax.f32 %v8034_v46, %v14667_v53  ;;  %v9202_v45 = vmax.f32 %v8882_v0, %v19252_v48  ;;  %v19287_v22 = vpop.f32.mrb[11].mxu1 }
 0x30e   : > { %v5016_v59 = vsel %vm5015_vm1, %v4766_v58, %v4762_v57  ;;  %v9204_v10 = vmax.f32 %v8884_v31, %v9140_v34  ;;  %v3505_v41 = vrot.slane %v19239_v20, %v19217_v61  ;;  %v3512_v40 = vrot.slane %v3498_v14, %v19217_v61 }
 0x30f   : > { %v5018_v52 = vsel %vm5017_vm2, %v4770_v25, %v5016_v59  ;;  %v9203_v63 = vmax.f32 %v8883_v60, %v9139_v51  ;;  %v9205_v4 = vmax.f32 %v8885_v35, %v9141_v7  ;;  %v9333_v38 = vrot.slane %v9202_v45, %v19222_v13 }
 0x310   : > { %v9341_v55 = vrot.slane %v9204_v10, %v19222_v13  ;;  %v3513_v8 = vcombine.high %v3505_v41, %v3505_v41  ;;  %v3514_v48 = vcombine.high %v3512_v40, %v3512_v40  ;;  %v14136_v28 = vrot.slane %v3505_v41, 9 }
 0x311   : > { %v9337_v29 = vrot.slane %v9203_v63, %v19222_v13  ;;  %v9345_v34 = vrot.slane %v9205_v4, %v19222_v13  ;;  %v14138_v32 = vrot.slane %v3512_v40, 9  ;;  %v7957_v20 = vadd.f32 %v19214_v37, %v19229_v27  ;;  %v19300_v30 = vpop.f32.mrb[12].mxu0 }
 0x312   : > { %v14137_v39 = vrot.slane %v3513_v8, 9  ;;  %v14139_v51 = vrot.slane %v3514_v48, 9  ;;  %v19302_v7 = vmax.f32 %v3505_v41, %v14136_v28  ;;  %v3384_v14 = vadd.f32 %v19214_v37, %v19232_v42  ;;  %v19306_v50 = vpop.f32.mrb[12].mxu1  ;;  %v19308_v36 = vpop.f32.mrb[13].mxu0 }
 0x313   : > { %v9586_v46 = vsel %vm5015_vm1, %v9337_v29, %v9333_v38  ;;  %v4573_v47 = vmax.f32 %v3512_v40, %v14138_v32  ;;  %v8069_v2 = vcombine.high %v7957_v20, %v7957_v20  ;;  %v8076_v16 = vrot.slane %v7957_v20, %v19217_v61  ;;  %v19312_v27 = vpop.f32.mrb[13].mxu1  ;;  %v19314_v9 = vpop.f32.mrb[14].mxu0 }
 0x314   : > { %v9587_v11 = vsel %vm5017_vm2, %v9341_v55, %v9586_v46  ;;  %v4572_v24 = vmax.f32 %v3513_v8, %v14137_v39  ;;  %v4574_v23 = vmax.f32 %v3514_v48, %v14139_v51  ;;  %v3464_v53 = vcombine.high %v3384_v14, %v3384_v14  ;;  %v19317_v42 = vpop.f32.mrb[14].mxu1  ;;  %v19319_v0 = vpop.f32.mrb[15].mxu0 }
 0x315   : > { %v8083_v57 = vrot.slane %v8069_v2, %v19217_v61  ;;  %v8084_v58 = vcombine.high %v8076_v16, %v8076_v16  ;;  %v14732_v25 = vrot.slane %v8076_v16, 9  ;;  %v3471_v31 = vrot.slane %v3384_v14, %v19217_v61  ;;  %v19323_v60 = vpop.f32.mrb[15].mxu1 }
 0x316   : > { %v3478_v35 = vrot.slane %v3464_v53, %v19217_v61  ;;  %v5020_v45 = vsel %vm5019_vm3, %v4774_v18, %v5018_v52  ;;  %v7923_v59 = vmul.f32 %v19211_v6, %v19234_v43  ;;  %v19330_v10 = vsel %vm5019_vm3, %v9345_v34, %v9587_v11 }
 0x317   : > { %v8085_v41 = vcombine.high %v8083_v57, %v8083_v57  ;;  %v14733_v40 = vrot.slane %v8084_v58, 9  ;;  %v14734_v63 = vrot.slane %v8083_v57, 9  ;;  %v9142_v4 = vmax.f32 %v8076_v16, %v14732_v25 }
 0x318   : > { %v3479_v38 = vcombine.high %v3471_v31, %v3471_v31  ;;  %v3480_v55 = vcombine.high %v3478_v35, %v3478_v35  ;;  %v14072_v8 = vrot.slane %v3471_v31, 9  ;;  %v14074_v48 = vrot.slane %v3478_v35, 9 }
 0x319   : > { %v14735_v28 = vrot.slane %v8085_v41, 9  ;;  %v9143_v29 = vmax.f32 %v8084_v58, %v14733_v40  ;;  %v9144_v32 = vmax.f32 %v8083_v57, %v14734_v63  ;;  %v7955_v18 = vadd.f32 %v19214_v37, %v7923_v59  ;;  %v19333_v43 = vpop.f32.mrb[16].mxu0 }
 0x31a   : > { %v14073_v52 = vrot.slane %v3479_v38, 9  ;;  %v14075_v34 = vrot.slane %v3480_v55, 9  ;;  %v4315_v20 = vmax.f32 %v3471_v31, %v14072_v8  ;;  %v4317_v39 = vmax.f32 %v3478_v35, %v14074_v48  ;;  %v19338_v16 = vpop.f32.mrb[16].mxu1  ;;  %v17885_v35 = vld [vmem:[%s19195_s21 + $0x28] sm:$0xff]  }
 0x31b   : > { %v9145_v51 = vmax.f32 %v8085_v41, %v14735_v28  ;;  %v8035_v14 = vcombine.high %v7955_v18, %v7955_v18  ;;  %v8042_v46 = vrot.slane %v7955_v18, %v19217_v61  ;;  %v3351_v2 = vmul.f32 %v19246_v17, %v19211_v6  ;;  %16440 = vmatprep.subr.bf16.mxu0 %v17885_v35 }
 0x31c   : > { %v4316_v11 = vmax.f32 %v3479_v38, %v14073_v52  ;;  %v4318_v53 = vmax.f32 %v3480_v55, %v14075_v34  ;;  %v4635_v57 = vmax.f32 %v4315_v20, %v19302_v7  ;;  %v4637_v58 = vmax.f32 %v4317_v39, %v4573_v47  ;;  %16441 = vmatpush3.bf16.msra.mxu0 %v17885_v35 }
 0x31d   : > { %v8049_v25 = vrot.slane %v8035_v14, %v19217_v61  ;;  %v8050_v59 = vcombine.high %v8042_v46, %v8042_v46  ;;  %v14668_v40 = vrot.slane %v8042_v46, 9  ;;  %v3389_v31 = vadd.f32 %v19214_v37, %v3351_v2 }
 0x31e   : > { %v4636_v41 = vmax.f32 %v4316_v11, %v4572_v24  ;;  %v4638_v63 = vmax.f32 %v4318_v53, %v4574_v23  ;;  %v4778_v8 = vrot.slane %v4635_v57, %v19222_v13  ;;  %v4786_v17 = vrot.slane %v4637_v58, %v19222_v13  ;;  %v19354_v11 = vpop.f32.mrb[17].mxu0  ;;  %v19356_v53 = vpop.f32.mrb[17].mxu1 }
 0x31f   : > { %v8051_v48 = vcombine.high %v8049_v25, %v8049_v25  ;;  %v14669_v28 = vrot.slane %v8050_v59, 9  ;;  %v14670_v38 = vrot.slane %v8049_v25, 9  ;;  %v8886_v55 = vmax.f32 %v8042_v46, %v14668_v40  ;;  %21312 = vst [vmem:[#allocation5_spill] sm:$0xff] %v19356_v53 }
 0x320   : > { %v4782_v7 = vrot.slane %v4636_v41, %v19222_v13  ;;  %v4790_v47 = vrot.slane %v4638_v63, %v19222_v13  ;;  %v5022_v18 = vsel %vm5021_vm4, %v4778_v8, %v5020_v45  ;;  %v3549_v52 = vcombine.high %v3389_v31, %v3389_v31 }
 0x321   : > { %v14671_v34 = vrot.slane %v8051_v48, 9  ;;  %v8887_v24 = vmax.f32 %v8050_v59, %v14669_v28  ;;  %v8888_v23 = vmax.f32 %v8049_v25, %v14670_v38  ;;  %v9206_v20 = vmax.f32 %v8886_v55, %v9142_v4 }
 0x322   : > { %v5024_v39 = vsel %vm5023_vm5, %v4782_v7, %v5022_v18  ;;  %v3556_v14 = vrot.slane %v3389_v31, %v19217_v61  ;;  %v3563_v2 = vrot.slane %v3549_v52, %v19217_v61  ;;  %v7928_v46 = vmul.f32 %v19248_v3, %v19211_v6 }
 0x323   : > { %v5026_v45 = vsel %vm5025_vm6, %v4786_v17, %v5024_v39  ;;  %v8889_v57 = vmax.f32 %v8051_v48, %v14671_v34  ;;  %v9207_v58 = vmax.f32 %v8887_v24, %v9143_v29  ;;  %v9208_v59 = vmax.f32 %v8888_v23, %v9144_v32  ;;  %v19382_v23 = vpop.f32.mrb[18].mxu0 }
 0x324   : > { %v5028_v4 = vsel %vm5027_vm7, %v4790_v47, %v5026_v45  ;;  %v9349_v25 = vrot.slane %v9206_v20, %v19222_v13  ;;  %v3564_v40 = vcombine.high %v3556_v14, %v3556_v14  ;;  %v3565_v31 = vcombine.high %v3563_v2, %v3563_v2  ;;  %21313 = vst [vmem:[#allocation6_spill] sm:$0xff] %v19382_v23 }
 0x325   : > { %5086 = vst.msk [vmem:[#allocation2 + $0x11] sm:$0xff] %vm462_vm0, %v5028_v4  ;;  %v9209_v35 = vmax.f32 %v8889_v57, %v9145_v51  ;;  %v9353_v3 = vrot.slane %v9207_v58, %v19222_v13  ;;  %v9357_v41 = vrot.slane %v9208_v59, %v19222_v13  ;;  %v14140_v63 = vrot.slane %v3556_v14, 9 }
 0x326   : > { %v9589_v8 = vsel %vm5021_vm4, %v9349_v25, %v19330_v10  ;;  %v14141_v17 = vrot.slane %v3564_v40, 9  ;;  %v14142_v29 = vrot.slane %v3563_v2, 9  ;;  %v14143_v32 = vrot.slane %v3565_v31, 9 }
 0x327   : > { %v9361_v48 = vrot.slane %v9209_v35, %v19222_v13  ;;  %v9590_v28 = vsel %vm5023_vm5, %v9353_v3, %v9589_v8  ;;  %v19368_v38 = vmax.f32 %v3556_v14, %v14140_v63  ;;  %v7960_v55 = vadd.f32 %v19214_v37, %v7928_v46 }
 0x328   : > { %v9591_v51 = vsel %vm5025_vm6, %v9357_v41, %v9590_v28  ;;  %v19372_v7 = vmax.f32 %v3564_v40, %v14141_v17  ;;  %v19374_v47 = vmax.f32 %v3563_v2, %v14142_v29  ;;  %v19376_v18 = vmax.f32 %v3565_v31, %v14143_v32  ;;  %v19405_v41 = vpop.f32.mrb[18].mxu1 }
 0x329   : > { %v9592_v10 = vsel %vm5027_vm7, %v9361_v48, %v9591_v51  ;;  %v8120_v52 = vcombine.high %v7960_v55, %v7960_v55  ;;  %v8127_v34 = vrot.slane %v7960_v55, %v19217_v61  ;;  %v3349_v24 = vmul.f32 %v19211_v6, %v19250_v54  ;;  %21314 = vst [vmem:[#allocation7_spill] sm:$0xff] %v19405_v41 }
 0x32a   : > { %9651 = vst.msk [vmem:[#allocation2 + $0xb1] sm:$0xff] %vm462_vm0, %v9592_v10  ;;  %v7926_v20 = vmul.f32 %v19211_v6, %v19254_v49  ;;  %v3352_v39 = vmul.f32 %v19256_v21, %v19211_v6  ;;  %v7929_v14 = vmul.f32 %v19258_v15, %v19211_v6  ;;  %v3350_v2 = vmul.f32 %v19211_v6, %v19260_v44 }
 0x32b   : > { %v8134_v46 = vrot.slane %v8120_v52, %v19217_v61  ;;  %v8135_v45 = vcombine.high %v8127_v34, %v8127_v34  ;;  %v14736_v54 = vrot.slane %v8127_v34, 9  ;;  %v3387_v57 = vadd.f32 %v19214_v37, %v3349_v24 }
 0x32c   : > { %v7958_v58 = vadd.f32 %v19214_v37, %v7926_v20  ;;  %v3390_v59 = vadd.f32 %v19214_v37, %v3352_v39  ;;  %v19398_v49 = vadd.f32 %v19214_v37, %v7929_v14  ;;  %v19401_v21 = vadd.f32 %v19214_v37, %v3350_v2 }
 0x32d   : > { %v8136_v15 = vcombine.high %v8134_v46, %v8134_v46  ;;  %v14737_v4 = vrot.slane %v8135_v45, 9  ;;  %v14738_v25 = vrot.slane %v8134_v46, 9  ;;  %v9146_v44 = vmax.f32 %v8127_v34, %v14736_v54 }
 0x32e   : > { %v3515_v40 = vcombine.high %v3387_v57, %v3387_v57  ;;  %v3522_v31 = vrot.slane %v3387_v57, %v19217_v61  ;;  %v8086_v35 = vcombine.high %v7958_v58, %v7958_v58  ;;  %v8093_v3 = vrot.slane %v7958_v58, %v19217_v61 }
 0x32f   : > { %v14739_v63 = vrot.slane %v8136_v15, 9  ;;  %v9147_v8 = vmax.f32 %v8135_v45, %v14737_v4  ;;  %v9148_v17 = vmax.f32 %v8134_v46, %v14738_v25  ;;  %v3566_v29 = vcombine.high %v3390_v59, %v3390_v59 }
 0x330   : > { %v3529_v32 = vrot.slane %v3515_v40, %v19217_v61  ;;  %v3530_v48 = vcombine.high %v3522_v31, %v3522_v31  ;;  %v14076_v28 = vrot.slane %v3522_v31, 9  ;;  %v8100_v55 = vrot.slane %v8086_v35, %v19217_v61 }
 0x331   : > { %v9149_v51 = vmax.f32 %v8136_v15, %v14739_v63  ;;  %v8101_v10 = vcombine.high %v8093_v3, %v8093_v3  ;;  %v14672_v52 = vrot.slane %v8093_v3, 9  ;;  %v3573_v34 = vrot.slane %v3390_v59, %v19217_v61 }
 0x332   : > { %v3531_v24 = vcombine.high %v3529_v32, %v3529_v32  ;;  %v14077_v20 = vrot.slane %v3530_v48, 9  ;;  %v14078_v39 = vrot.slane %v3529_v32, 9  ;;  %v4319_v14 = vmax.f32 %v3522_v31, %v14076_v28  ;;  %v19414_v28 = vpop.f32.mrb[19].mxu0 }
 0x333   : > { %v8102_v2 = vcombine.high %v8100_v55, %v8100_v55  ;;  %v14673_v54 = vrot.slane %v8101_v10, 9  ;;  %v14674_v45 = vrot.slane %v8100_v55, 9  ;;  %v8890_v46 = vmax.f32 %v8093_v3, %v14672_v52 }
 0x334   : > { %v14079_v57 = vrot.slane %v3531_v24, 9  ;;  %v4320_v58 = vmax.f32 %v3530_v48, %v14077_v20  ;;  %v4321_v4 = vmax.f32 %v3529_v32, %v14078_v39  ;;  %v4639_v25 = vmax.f32 %v4319_v14, %v19368_v38 }
 0x335   : > { %v14675_v40 = vrot.slane %v8102_v2, 9  ;;  %v8891_v35 = vmax.f32 %v8101_v10, %v14673_v54  ;;  %v8892_v15 = vmax.f32 %v8100_v55, %v14674_v45  ;;  %v9210_v63 = vmax.f32 %v8890_v46, %v9146_v44 }
 0x336   : > { %v4322_v41 = vmax.f32 %v3531_v24, %v14079_v57  ;;  %v4640_v59 = vmax.f32 %v4320_v58, %v19372_v7  ;;  %v4641_v23 = vmax.f32 %v4321_v4, %v19374_v47  ;;  %v4794_v31 = vrot.slane %v4639_v25, %v19222_v13  ;;  %v19421_v7 = vpop.f32.mrb[19].mxu1 }
 0x337   : > { %v8893_v53 = vmax.f32 %v8102_v2, %v14675_v40  ;;  %v9211_v3 = vmax.f32 %v8891_v35, %v9147_v8  ;;  %v9212_v52 = vmax.f32 %v8892_v15, %v9148_v17  ;;  %v9365_v32 = vrot.slane %v9210_v63, %v19222_v13 }
 0x338   : > { %v4642_v38 = vmax.f32 %v4322_v41, %v19376_v18  ;;  %v4798_v48 = vrot.slane %v4640_v59, %v19222_v13  ;;  %v4802_v44 = vrot.slane %v4641_v23, %v19222_v13  ;;  %v3580_v55 = vrot.slane %v3566_v29, %v19217_v61 }
 0x339   : > { %v9213_v47 = vmax.f32 %v8893_v53, %v9149_v51  ;;  %v9369_v10 = vrot.slane %v9211_v3, %v19222_v13  ;;  %v9373_v24 = vrot.slane %v9212_v52, %v19222_v13  ;;  %v3581_v20 = vcombine.high %v3573_v34, %v3573_v34 }
 0x33a   : > { %v4806_v8 = vrot.slane %v4642_v38, %v19222_v13  ;;  %v5029_v17 = vsel %vm5015_vm1, %v4798_v48, %v4794_v31  ;;  %v3582_v39 = vcombine.high %v3580_v55, %v3580_v55  ;;  %v14144_v18 = vrot.slane %v3573_v34, 9 }
 0x33b   : > { %v5030_v41 = vsel %vm5017_vm2, %v4802_v44, %v5029_v17  ;;  %v9377_v23 = vrot.slane %v9213_v47, %v19222_v13  ;;  %v9593_v29 = vsel %vm5015_vm1, %v9369_v10, %v9365_v32  ;;  %v14145_v14 = vrot.slane %v3581_v20, 9 }
 0x33c   : > { %v9594_v53 = vsel %vm5017_vm2, %v9373_v24, %v9593_v29  ;;  %v14146_v51 = vrot.slane %v3580_v55, 9  ;;  %v14147_v2 = vrot.slane %v3582_v39, 9  ;;  %v4579_v54 = vmax.f32 %v3573_v34, %v14144_v18 }
 0x33d   : > { %v4580_v45 = vmax.f32 %v3581_v20, %v14145_v14  ;;  %v8137_v46 = vcombine.high %v19398_v49, %v19398_v49  ;;  %v8144_v57 = vrot.slane %v19398_v49, %v19217_v61  ;;  %v3532_v58 = vcombine.high %v19401_v21, %v19401_v21 }
 0x33e   : > { %v4581_v4 = vmax.f32 %v3580_v55, %v14146_v51  ;;  %v4582_v25 = vmax.f32 %v3582_v39, %v14147_v2  ;;  %v3539_v40 = vrot.slane %v19401_v21, %v19217_v61  ;;  %v5031_v35 = vsel %vm5019_vm3, %v4806_v8, %v5030_v41 }
 0x33f   : > { %v8151_v15 = vrot.slane %v8137_v46, %v19217_v61  ;;  %v8152_v34 = vcombine.high %v8144_v57, %v8144_v57  ;;  %v14740_v63 = vrot.slane %v8144_v57, 9  ;;  %v3546_v59 = vrot.slane %v3532_v58, %v19217_v61 }
 0x340   : > { %v3547_v31 = vcombine.high %v3539_v40, %v3539_v40  ;;  %v14080_v3 = vrot.slane %v3539_v40, 9  ;;  %v7927_v49 = vmul.f32 %v19211_v6, %v19262_v62  ;;  %v19445_v52 = vsel %vm5019_vm3, %v9377_v23, %v9594_v53 }
 0x341   : > { %v8153_v32 = vcombine.high %v8151_v15, %v8151_v15  ;;  %v14741_v38 = vrot.slane %v8152_v34, 9  ;;  %v14742_v48 = vrot.slane %v8151_v15, 9  ;;  %v9150_v21 = vmax.f32 %v8144_v57, %v14740_v63 }
 0x342   : > { %v3548_v44 = vcombine.high %v3546_v59, %v3546_v59  ;;  %v14081_v55 = vrot.slane %v3547_v31, 9  ;;  %v14082_v47 = vrot.slane %v3546_v59, 9  ;;  %v4323_v10 = vmax.f32 %v3539_v40, %v14080_v3 }
 0x343   : > { %v14743_v24 = vrot.slane %v8153_v32, 9  ;;  %v9151_v20 = vmax.f32 %v8152_v34, %v14741_v38  ;;  %v9152_v8 = vmax.f32 %v8151_v15, %v14742_v48  ;;  %v7959_v17 = vadd.f32 %v19214_v37, %v7927_v49 }
 0x344   : > { %v14083_v39 = vrot.slane %v3548_v44, 9  ;;  %v4324_v18 = vmax.f32 %v3547_v31, %v14081_v55  ;;  %v4325_v41 = vmax.f32 %v3546_v59, %v14082_v47  ;;  %v4643_v62 = vmax.f32 %v4323_v10, %v4579_v54 }
 0x345   : > { %v9153_v29 = vmax.f32 %v8153_v32, %v14743_v24  ;;  %v8103_v23 = vcombine.high %v7959_v17, %v7959_v17  ;;  %v8110_v14 = vrot.slane %v7959_v17, %v19217_v61  ;;  %v3355_v53 = vmul.f32 %v19268_v26, %v19211_v6 }
 0x346   : > { %v4326_v51 = vmax.f32 %v3548_v44, %v14083_v39  ;;  %v4644_v2 = vmax.f32 %v4324_v18, %v4580_v45  ;;  %v4645_v46 = vmax.f32 %v4325_v41, %v4581_v4  ;;  %v4810_v57 = vrot.slane %v4643_v62, %v19222_v13 }
 0x347   : > { %v8117_v58 = vrot.slane %v8103_v23, %v19217_v61  ;;  %v8118_v40 = vcombine.high %v8110_v14, %v8110_v14  ;;  %v14676_v15 = vrot.slane %v8110_v14, 9  ;;  %v3393_v34 = vadd.f32 %v19214_v37, %v3355_v53 }
 0x348   : > { %v4646_v63 = vmax.f32 %v4326_v51, %v4582_v25  ;;  %v4814_v54 = vrot.slane %v4644_v2, %v19222_v13  ;;  %v4818_v59 = vrot.slane %v4645_v46, %v19222_v13  ;;  %v5032_v31 = vsel %vm5021_vm4, %v4810_v57, %v5031_v35 }
 0x349   : > { %v8119_v3 = vcombine.high %v8117_v58, %v8117_v58  ;;  %v14677_v26 = vrot.slane %v8118_v40, 9  ;;  %v14678_v49 = vrot.slane %v8117_v58, 9  ;;  %v8894_v45 = vmax.f32 %v8110_v14, %v14676_v15 }
 0x34a   : > { %v4822_v4 = vrot.slane %v4646_v63, %v19222_v13  ;;  %v5033_v32 = vsel %vm5023_vm5, %v4814_v54, %v5032_v31  ;;  %v3617_v38 = vcombine.high %v3393_v34, %v3393_v34  ;;  %v3624_v48 = vrot.slane %v3393_v34, %v19217_v61  ;;  %v19477_v34 = vpop.f32.mrb[20].mxu1 }
 0x34b   : > { %v5034_v44 = vsel %vm5025_vm6, %v4818_v59, %v5033_v32  ;;  %v14679_v25 = vrot.slane %v8119_v3, 9  ;;  %v8895_v55 = vmax.f32 %v8118_v40, %v14677_v26  ;;  %v8896_v47 = vmax.f32 %v8117_v58, %v14678_v49  ;;  %v19469_v58 = vpop.f32.mrb[20].mxu0 }
 0x34c   : > { %v5035_v10 = vsel %vm5027_vm7, %v4822_v4, %v5034_v44  ;;  %v9214_v24 = vmax.f32 %v8894_v45, %v9150_v21  ;;  %v3631_v35 = vrot.slane %v3617_v38, %v19217_v61  ;;  %v3632_v17 = vcombine.high %v3624_v48, %v3624_v48  ;;  %v19485_v31 = vpop.f32.mrb[21].mxu0 }
 0x34d   : > { %5087 = vst.msk [vmem:[#allocation2 + $0x21] sm:$0xff] %vm462_vm0, %v5035_v10  ;;  %v8897_v39 = vmax.f32 %v8119_v3, %v14679_v25  ;;  %v9215_v18 = vmax.f32 %v8895_v55, %v9151_v20  ;;  %v9216_v41 = vmax.f32 %v8896_v47, %v9152_v8  ;;  %v14148_v62 = vrot.slane %v3624_v48, 9  ;;  %v19516_v47 = vpop.f32.mrb[22].mxu0 }
 0x34e   : > { %v9381_v23 = vrot.slane %v9214_v24, %v19222_v13  ;;  %v3633_v14 = vcombine.high %v3631_v35, %v3631_v35  ;;  %v14149_v53 = vrot.slane %v3632_v17, 9  ;;  %v14150_v51 = vrot.slane %v3631_v35, 9 }
 0x34f   : > { %v9217_v2 = vmax.f32 %v8897_v39, %v9153_v29  ;;  %v9385_v46 = vrot.slane %v9215_v18, %v19222_v13  ;;  %v9389_v57 = vrot.slane %v9216_v41, %v19222_v13  ;;  %v19467_v21 = vmax.f32 %v3624_v48, %v14148_v62 }
 0x350   : > { %v9596_v40 = vsel %vm5021_vm4, %v9381_v23, %v19445_v52  ;;  %v14151_v20 = vrot.slane %v3633_v14, 9  ;;  %v19473_v8 = vmax.f32 %v3632_v17, %v14149_v53  ;;  %v19475_v15 = vmax.f32 %v3631_v35, %v14150_v51  ;;  %v19487_v52 = vpop.f32.mrb[21].mxu1 }
 0x351   : > { %v9393_v29 = vrot.slane %v9217_v2, %v19222_v13  ;;  %v9597_v63 = vsel %vm5023_vm5, %v9385_v46, %v9596_v40  ;;  %v7932_v54 = vmul.f32 %v19270_v12, %v19211_v6  ;;  %v3353_v59 = vmul.f32 %v19211_v6, %v19272_v19  ;;  %v19525_v53 = vpop.f32.mrb[22].mxu1 }
 0x352   : > { %v9598_v3 = vsel %vm5025_vm6, %v9389_v57, %v9597_v63  ;;  %v19490_v26 = vmax.f32 %v3633_v14, %v14151_v20  ;;  %v7930_v49 = vmul.f32 %v19211_v6, %v19274_v1  ;;  %v3356_v45 = vmul.f32 %v19276_v56, %v19211_v6 }
 0x353   : > { %v9599_v4 = vsel %vm5027_vm7, %v9393_v29, %v9598_v3  ;;  %v7964_v12 = vadd.f32 %v19214_v37, %v7932_v54  ;;  %v3391_v19 = vadd.f32 %v19214_v37, %v3353_v59  ;;  %v19501_v32 = vmul.f32 %v19281_v33, %v19211_v6 }
 0x354   : > { %9652 = vst.msk [vmem:[#allocation2 + $0xc1] sm:$0xff] %vm462_vm0, %v9599_v4  ;;  %v7962_v38 = vadd.f32 %v19214_v37, %v7930_v49  ;;  %v3394_v48 = vadd.f32 %v19214_v37, %v3356_v45  ;;  %v19508_v1 = vmul.f32 %v19211_v6, %v19283_v5  ;;  %v19512_v56 = vmul.f32 %v19211_v6, %v19287_v22 }
 0x355   : > { %v8188_v44 = vcombine.high %v7964_v12, %v7964_v12  ;;  %v8195_v25 = vrot.slane %v7964_v12, %v19217_v61  ;;  %v3583_v55 = vcombine.high %v3391_v19, %v3391_v19  ;;  %v3590_v33 = vrot.slane %v3391_v19, %v19217_v61 }
 0x356   : > { %v8154_v10 = vcombine.high %v7962_v38, %v7962_v38  ;;  %v8161_v24 = vrot.slane %v7962_v38, %v19217_v61  ;;  %v3634_v35 = vcombine.high %v3394_v48, %v3394_v48  ;;  %v19520_v17 = vrot.slane %v3394_v48, %v19217_v61 }
 0x357   : > { %v8202_v5 = vrot.slane %v8188_v44, %v19217_v61  ;;  %v8203_v39 = vcombine.high %v8195_v25, %v8195_v25  ;;  %v14744_v22 = vrot.slane %v8195_v25, 9  ;;  %v3597_v18 = vrot.slane %v3583_v55, %v19217_v61 }
 0x358   : > { %v3598_v41 = vcombine.high %v3590_v33, %v3590_v33  ;;  %v14084_v62 = vrot.slane %v3590_v33, 9  ;;  %v8168_v23 = vrot.slane %v8154_v10, %v19217_v61  ;;  %v8169_v14 = vcombine.high %v8161_v24, %v8161_v24 }
 0x359   : > { %v8204_v51 = vcombine.high %v8202_v5, %v8202_v5  ;;  %v14745_v2 = vrot.slane %v8203_v39, 9  ;;  %v14746_v46 = vrot.slane %v8202_v5, 9  ;;  %v9154_v57 = vmax.f32 %v8195_v25, %v14744_v22 }
 0x35a   : > { %v3599_v40 = vcombine.high %v3597_v18, %v3597_v18  ;;  %v14085_v20 = vrot.slane %v3598_v41, 9  ;;  %v14086_v29 = vrot.slane %v3597_v18, 9  ;;  %v4327_v63 = vmax.f32 %v3590_v33, %v14084_v62 }
 0x35b   : > { %v14747_v54 = vrot.slane %v8204_v51, 9  ;;  %v9155_v59 = vmax.f32 %v8203_v39, %v14745_v2  ;;  %v9156_v3 = vmax.f32 %v8202_v5, %v14746_v46  ;;  %v8170_v49 = vcombine.high %v8168_v23, %v8168_v23 }
 0x35c   : > { %v14087_v45 = vrot.slane %v3599_v40, 9  ;;  %v4328_v4 = vmax.f32 %v3598_v41, %v14085_v20  ;;  %v4329_v12 = vmax.f32 %v3597_v18, %v14086_v29  ;;  %v4647_v19 = vmax.f32 %v4327_v63, %v19467_v21  ;;  %v19531_v41 = vpop.f32.mrb[23].mxu0  ;;  %v17886_v63 = vld [vmem:[%s19195_s21 + $0x30] sm:$0xff]  }
 0x35d   : > { %v9157_v38 = vmax.f32 %v8204_v51, %v14747_v54  ;;  %v14680_v48 = vrot.slane %v8161_v24, 9  ;;  %v14681_v44 = vrot.slane %v8169_v14, 9  ;;  %v14682_v55 = vrot.slane %v8168_v23, 9  ;;  %16442 = vmatprep.subr.bf16.mxu0 %v17886_v63 }
 0x35e   : > { %v4330_v10 = vmax.f32 %v3599_v40, %v14087_v45  ;;  %v4648_v25 = vmax.f32 %v4328_v4, %v19473_v8  ;;  %v4649_v22 = vmax.f32 %v4329_v12, %v19475_v15  ;;  %v4826_v33 = vrot.slane %v4647_v19, %v19222_v13  ;;  %16443 = vmatpush3.bf16.msra.mxu0 %v17886_v63 }
 0x35f   : > { %v14683_v62 = vrot.slane %v8170_v49, 9  ;;  %v8898_v39 = vmax.f32 %v8161_v24, %v14680_v48  ;;  %v8899_v5 = vmax.f32 %v8169_v14, %v14681_v44  ;;  %v8900_v2 = vmax.f32 %v8168_v23, %v14682_v55 }
 0x360   : > { %v4650_v21 = vmax.f32 %v4330_v10, %v19490_v26  ;;  %v4830_v18 = vrot.slane %v4648_v25, %v19222_v13  ;;  %v4834_v51 = vrot.slane %v4649_v22, %v19222_v13  ;;  %v3648_v46 = vrot.slane %v3634_v35, %v19217_v61  ;;  %v17887_v22 = vld [vmem:[%s19195_s21 + $0x38] sm:$0xff]  }
 0x361   : > { %v8901_v8 = vmax.f32 %v8170_v49, %v14683_v62  ;;  %v9218_v40 = vmax.f32 %v8898_v39, %v9154_v57  ;;  %v9219_v15 = vmax.f32 %v8899_v5, %v9155_v59  ;;  %v9220_v20 = vmax.f32 %v8900_v2, %v9156_v3  ;;  %v19545_v57 = vpop.f32.mrb[23].mxu1  ;;  %16444 = vmatprep.subr.bf16.mxu0 %v17887_v22 }
 0x362   : > { %v4838_v29 = vrot.slane %v4650_v21, %v19222_v13  ;;  %v5036_v24 = vsel %vm5015_vm1, %v4830_v18, %v4826_v33  ;;  %v3649_v23 = vcombine.high %v19520_v17, %v19520_v17  ;;  %v3650_v14 = vcombine.high %v3648_v46, %v3648_v46  ;;  %16445 = vmatpush3.bf16.msra.mxu0 %v17887_v22 }
 0x363   : > { %v5037_v26 = vsel %vm5017_vm2, %v4834_v51, %v5036_v24  ;;  %v9221_v54 = vmax.f32 %v8901_v8, %v9157_v38  ;;  %v9397_v45 = vrot.slane %v9218_v40, %v19222_v13  ;;  %v9401_v35 = vrot.slane %v9219_v15, %v19222_v13  ;;  %v19570_v40 = vpop.f32.mrb[24].mxu0 }
 0x364   : > { %v9405_v59 = vrot.slane %v9220_v20, %v19222_v13  ;;  %v14152_v3 = vrot.slane %v19520_v17, 9  ;;  %v14153_v49 = vrot.slane %v3649_v23, 9  ;;  %v14154_v4 = vrot.slane %v3648_v46, 9  ;;  %21315 = vst [vmem:[#allocation8_spill] sm:$0xff] %v19570_v40 }
 0x365   : > { %v9409_v12 = vrot.slane %v9221_v54, %v19222_v13  ;;  %v9600_v19 = vsel %vm5015_vm1, %v9401_v35, %v9397_v45  ;;  %v14155_v48 = vrot.slane %v3650_v14, 9  ;;  %v7965_v38 = vadd.f32 %v19214_v37, %v19501_v32 }
 0x366   : > { %v9601_v44 = vsel %vm5017_vm2, %v9405_v59, %v9600_v19  ;;  %v4587_v55 = vmax.f32 %v19520_v17, %v14152_v3  ;;  %v4588_v10 = vmax.f32 %v3649_v23, %v14153_v49  ;;  %v4589_v25 = vmax.f32 %v3648_v46, %v14154_v4 }
 0x367   : > { %v19556_v33 = vmax.f32 %v3650_v14, %v14155_v48  ;;  %v8205_v62 = vcombine.high %v7965_v38, %v7965_v38  ;;  %v8212_v39 = vrot.slane %v7965_v38, %v19217_v61  ;;  %v3392_v5 = vadd.f32 %v19214_v37, %v19508_v1 }
 0x368   : > { %v5038_v2 = vsel %vm5019_vm3, %v4838_v29, %v5037_v26  ;;  %v7963_v32 = vadd.f32 %v19214_v37, %v19512_v56  ;;  %v19565_v21 = vsel %vm5019_vm3, %v9409_v12, %v9601_v44  ;;  %v3359_v17 = vmul.f32 %v19300_v30, %v19211_v6  ;;  %v19575_v56 = vld [vmem:[%s19208_s27] ss:$0 sm:$0xff] }
 0x369   : > { %v8219_v18 = vrot.slane %v8205_v62, %v19217_v61  ;;  %v8220_v51 = vcombine.high %v8212_v39, %v8212_v39  ;;  %v14748_v46 = vrot.slane %v8212_v39, 9  ;;  %v3600_v8 = vcombine.high %v3392_v5, %v3392_v5 }
 0x36a   : > { %v3607_v1 = vrot.slane %v3392_v5, %v19217_v61  ;;  %v8171_v15 = vcombine.high %v7963_v32, %v7963_v32  ;;  %v8178_v37 = vrot.slane %v7963_v32, %v19217_v61  ;;  %v3397_v20 = vadd.f32 %v19575_v56, %v3359_v17  ;;  %v19580_v32 = vpop.f32.mrb[24].mxu1 }
 0x36b   : > { %v8221_v29 = vcombine.high %v8219_v18, %v8219_v18  ;;  %v14749_v6 = vrot.slane %v8220_v51, 9  ;;  %v14750_v30 = vrot.slane %v8219_v18, 9  ;;  %v9158_v24 = vmax.f32 %v8212_v39, %v14748_v46 }
 0x36c   : > { %v3614_v23 = vrot.slane %v3600_v8, %v19217_v61  ;;  %v3615_v14 = vcombine.high %v3607_v1, %v3607_v1  ;;  %v14088_v63 = vrot.slane %v3607_v1, 9  ;;  %v8185_v26 = vrot.slane %v8171_v15, %v19217_v61 }
 0x36d   : > { %v14751_v54 = vrot.slane %v8221_v29, 9  ;;  %v9159_v45 = vmax.f32 %v8220_v51, %v14749_v6  ;;  %v9160_v35 = vmax.f32 %v8219_v18, %v14750_v30  ;;  %v8186_v59 = vcombine.high %v8178_v37, %v8178_v37 }
 0x36e   : > { %v3616_v3 = vcombine.high %v3614_v23, %v3614_v23  ;;  %v14089_v49 = vrot.slane %v3615_v14, 9  ;;  %v14090_v4 = vrot.slane %v3614_v23, 9  ;;  %v4331_v12 = vmax.f32 %v3607_v1, %v14088_v63 }
 0x36f   : > { %v9161_v19 = vmax.f32 %v8221_v29, %v14751_v54  ;;  %v8187_v48 = vcombine.high %v8185_v26, %v8185_v26  ;;  %v14684_v38 = vrot.slane %v8178_v37, 9  ;;  %v14685_v44 = vrot.slane %v8186_v59, 9 }
 0x370   : > { %v14091_v22 = vrot.slane %v3616_v3, 9  ;;  %v4332_v62 = vmax.f32 %v3615_v14, %v14089_v49  ;;  %v4333_v39 = vmax.f32 %v3614_v23, %v14090_v4  ;;  %v4651_v5 = vmax.f32 %v4331_v12, %v4587_v55  ;;  %v19599_v12 = vpop.f32.mrb[25].mxu1 }
 0x371   : > { %v14686_v17 = vrot.slane %v8185_v26, 9  ;;  %v14687_v46 = vrot.slane %v8187_v48, 9  ;;  %v8902_v8 = vmax.f32 %v8178_v37, %v14684_v38  ;;  %v8903_v51 = vmax.f32 %v8186_v59, %v14685_v44 }
 0x372   : > { %v4334_v18 = vmax.f32 %v3616_v3, %v14091_v22  ;;  %v4652_v15 = vmax.f32 %v4332_v62, %v4588_v10  ;;  %v4653_v6 = vmax.f32 %v4333_v39, %v4589_v25  ;;  %v4842_v30 = vrot.slane %v4651_v5, %v19222_v13  ;;  %v19589_v25 = vpop.f32.mrb[25].mxu0  ;;  %v19607_v22 = vld [vmem:[%s19202_s24] ss:$0 sm:$0xff] }
 0x373   : > { %v8904_v1 = vmax.f32 %v8185_v26, %v14686_v17  ;;  %v8905_v29 = vmax.f32 %v8187_v48, %v14687_v46  ;;  %v9222_v63 = vmax.f32 %v8902_v8, %v9158_v24  ;;  %v9223_v54 = vmax.f32 %v8903_v51, %v9159_v45 }
 0x374   : > { %v4654_v40 = vmax.f32 %v4334_v18, %v19556_v33  ;;  %v4846_v23 = vrot.slane %v4652_v15, %v19222_v13  ;;  %v4850_v55 = vrot.slane %v4653_v6, %v19222_v13  ;;  %v5039_v14 = vsel %vm5021_vm4, %v4842_v30, %v5038_v2  ;;  %v19619_v6 = vpop.f32.mrb[26].mxu0 }
 0x375   : > { %v9224_v49 = vmax.f32 %v8904_v1, %v9160_v35  ;;  %v9225_v37 = vmax.f32 %v8905_v29, %v9161_v19  ;;  %v9413_v59 = vrot.slane %v9222_v63, %v19222_v13  ;;  %v9417_v10 = vrot.slane %v9223_v54, %v19222_v13 }
 0x376   : > { %v4854_v26 = vrot.slane %v4654_v40, %v19222_v13  ;;  %v5040_v24 = vsel %vm5023_vm5, %v4846_v23, %v5039_v14  ;;  %v3685_v33 = vcombine.high %v3397_v20, %v3397_v20  ;;  %v3692_v45 = vrot.slane %v3397_v20, %v19217_v61 }
 0x377   : > { %v5041_v3 = vsel %vm5025_vm6, %v4850_v55, %v5040_v24  ;;  %v9421_v2 = vrot.slane %v9224_v49, %v19222_v13  ;;  %v9425_v35 = vrot.slane %v9225_v37, %v19222_v13  ;;  %v9603_v4 = vsel %vm5021_vm4, %v9413_v59, %v19565_v21 }
 0x378   : > { %v5042_v19 = vsel %vm5027_vm7, %v4854_v26, %v5041_v3  ;;  %v9604_v40 = vsel %vm5023_vm5, %v9417_v10, %v9603_v4  ;;  %v3699_v48 = vrot.slane %v3685_v33, %v19217_v61  ;;  %v3700_v38 = vcombine.high %v3692_v45, %v3692_v45 }
 0x379   : > { %5088 = vst.msk [vmem:[#allocation2 + $0x31] sm:$0xff] %vm462_vm0, %v5042_v19  ;;  %v9605_v20 = vsel %vm5025_vm6, %v9421_v2, %v9604_v40  ;;  %v14156_v44 = vrot.slane %v3692_v45, 9  ;;  %v7936_v62 = vmul.f32 %v19607_v22, %v19306_v50  ;;  %v3357_v21 = vmul.f32 %v19607_v22, %v19308_v36 }
 0x37a   : > { %v9606_v39 = vsel %vm5027_vm7, %v9425_v35, %v9605_v20  ;;  %v3701_v5 = vcombine.high %v3699_v48, %v3699_v48  ;;  %v14157_v17 = vrot.slane %v3700_v38, 9  ;;  %v14158_v46 = vrot.slane %v3699_v48, 9 }
 0x37b   : > { %9653 = vst.msk [vmem:[#allocation2 + $0xd1] sm:$0xff] %vm462_vm0, %v9606_v39  ;;  %v4591_v8 = vmax.f32 %v3692_v45, %v14156_v44  ;;  %v7968_v51 = vadd.f32 %v19575_v56, %v7936_v62  ;;  %v3395_v18 = vadd.f32 %v19575_v56, %v3357_v21  ;;  %v7934_v15 = vmul.f32 %v19607_v22, %v19312_v27  ;;  %v19635_v21 = vpop.f32.mrb[26].mxu1 }
 0x37c   : > { %v14159_v50 = vrot.slane %v3701_v5, 9  ;;  %v4592_v30 = vmax.f32 %v3700_v38, %v14157_v17  ;;  %v4593_v36 = vmax.f32 %v3699_v48, %v14158_v46  ;;  %v3360_v1 = vmul.f32 %v19607_v22, %v19314_v9 }
 0x37d   : > { %v8256_v29 = vcombine.high %v7968_v51, %v7968_v51  ;;  %v8263_v63 = vrot.slane %v7968_v51, %v19217_v61  ;;  %v3651_v54 = vcombine.high %v3395_v18, %v3395_v18  ;;  %v3658_v23 = vrot.slane %v3395_v18, %v19217_v61 }
 0x37e   : > { %v4594_v55 = vmax.f32 %v3701_v5, %v14159_v50  ;;  %v7966_v14 = vadd.f32 %v19575_v56, %v7934_v15  ;;  %v3398_v49 = vadd.f32 %v19575_v56, %v3360_v1  ;;  %v19629_v27 = vmul.f32 %v19607_v22, %v19317_v42 }
 0x37f   : > { %v8270_v37 = vrot.slane %v8256_v29, %v19217_v61  ;;  %v8271_v59 = vcombine.high %v8263_v63, %v8263_v63  ;;  %v14752_v10 = vrot.slane %v8263_v63, 9  ;;  %v3665_v9 = vrot.slane %v3651_v54, %v19217_v61 }
 0x380   : > { %v3666_v26 = vcombine.high %v3658_v23, %v3658_v23  ;;  %v14092_v24 = vrot.slane %v3658_v23, 9  ;;  %v8222_v33 = vcombine.high %v7966_v14, %v7966_v14  ;;  %v8229_v45 = vrot.slane %v7966_v14, %v19217_v61 }
 0x381   : > { %v8272_v3 = vcombine.high %v8270_v37, %v8270_v37  ;;  %v14753_v2 = vrot.slane %v8271_v59, 9  ;;  %v14754_v35 = vrot.slane %v8270_v37, 9  ;;  %v9162_v4 = vmax.f32 %v8263_v63, %v14752_v10 }
 0x382   : > { %v3667_v19 = vcombine.high %v3665_v9, %v3665_v9  ;;  %v14093_v40 = vrot.slane %v3666_v26, 9  ;;  %v14094_v48 = vrot.slane %v3665_v9, 9  ;;  %v4335_v42 = vmax.f32 %v3658_v23, %v14092_v24 }
 0x383   : > { %v14755_v38 = vrot.slane %v8272_v3, 9  ;;  %v9163_v20 = vmax.f32 %v8271_v59, %v14753_v2  ;;  %v9164_v44 = vmax.f32 %v8270_v37, %v14754_v35  ;;  %v8236_v62 = vrot.slane %v8222_v33, %v19217_v61 }
 0x384   : > { %v14095_v39 = vrot.slane %v3667_v19, 9  ;;  %v4336_v5 = vmax.f32 %v3666_v26, %v14093_v40  ;;  %v4337_v17 = vmax.f32 %v3665_v9, %v14094_v48  ;;  %v4655_v46 = vmax.f32 %v4335_v42, %v4591_v8  ;;  %v19645_v42 = vpop.f32.mrb[27].mxu0 }
 0x385   : > { %v9165_v51 = vmax.f32 %v8272_v3, %v14755_v38  ;;  %v8237_v18 = vcombine.high %v8229_v45, %v8229_v45  ;;  %v8238_v15 = vcombine.high %v8236_v62, %v8236_v62  ;;  %v14688_v50 = vrot.slane %v8229_v45, 9  ;;  %v19647_v38 = vpop.f32.mrb[27].mxu1 }
 0x386   : > { %v4338_v1 = vmax.f32 %v3667_v19, %v14095_v39  ;;  %v4656_v29 = vmax.f32 %v4336_v5, %v4592_v30  ;;  %v4657_v63 = vmax.f32 %v4337_v17, %v4593_v36  ;;  %v4858_v54 = vrot.slane %v4655_v46, %v19222_v13 }
 0x387   : > { %v14689_v23 = vrot.slane %v8237_v18, 9  ;;  %v14690_v14 = vrot.slane %v8236_v62, 9  ;;  %v14691_v37 = vrot.slane %v8238_v15, 9  ;;  %v8906_v59 = vmax.f32 %v8229_v45, %v14688_v50 }
 0x388   : > { %v4658_v10 = vmax.f32 %v4338_v1, %v4594_v55  ;;  %v4862_v24 = vrot.slane %v4656_v29, %v19222_v13  ;;  %v4866_v26 = vrot.slane %v4657_v63, %v19222_v13  ;;  %v3702_v9 = vcombine.high %v3398_v49, %v3398_v49 }
 0x389   : > { %v8907_v8 = vmax.f32 %v8237_v18, %v14689_v23  ;;  %v8908_v33 = vmax.f32 %v8236_v62, %v14690_v14  ;;  %v8909_v3 = vmax.f32 %v8238_v15, %v14691_v37  ;;  %v9226_v2 = vmax.f32 %v8906_v59, %v9162_v4 }
 0x38a   : > { %v4870_v35 = vrot.slane %v4658_v10, %v19222_v13  ;;  %v5043_v30 = vsel %vm5015_vm1, %v4862_v24, %v4858_v54  ;;  %v3709_v36 = vrot.slane %v3398_v49, %v19217_v61  ;;  %v3716_v19 = vrot.slane %v3702_v9, %v19217_v61 }
 0x38b   : > { %v5044_v45 = vsel %vm5017_vm2, %v4866_v26, %v5043_v30  ;;  %v9227_v55 = vmax.f32 %v8907_v8, %v9163_v20  ;;  %v9228_v40 = vmax.f32 %v8908_v33, %v9164_v44  ;;  %v9229_v48 = vmax.f32 %v8909_v3, %v9165_v51 }
 0x38c   : > { %v9429_v62 = vrot.slane %v9226_v2, %v19222_v13  ;;  %v3717_v4 = vcombine.high %v3709_v36, %v3709_v36  ;;  %v3718_v39 = vcombine.high %v3716_v19, %v3716_v19  ;;  %v14160_v5 = vrot.slane %v3709_v36, 9 }
 0x38d   : > { %v9433_v17 = vrot.slane %v9227_v55, %v19222_v13  ;;  %v9437_v49 = vrot.slane %v9228_v40, %v19222_v13  ;;  %v9441_v46 = vrot.slane %v9229_v48, %v19222_v13  ;;  %v14162_v18 = vrot.slane %v3716_v19, 9  ;;  %v19682_v40 = vpop.f32.mrb[28].mxu0 }
 0x38e   : > { %v14161_v15 = vrot.slane %v3717_v4, 9  ;;  %v14163_v20 = vrot.slane %v3718_v39, 9  ;;  %v4595_v44 = vmax.f32 %v3709_v36, %v14160_v5  ;;  %v7969_v51 = vadd.f32 %v19575_v56, %v19629_v27 }
 0x38f   : > { %v9607_v50 = vsel %vm5015_vm1, %v9433_v17, %v9429_v62  ;;  %v4597_v1 = vmax.f32 %v3716_v19, %v14162_v18  ;;  %v3358_v29 = vmul.f32 %v19607_v22, %v19319_v0  ;;  %v5045_v63 = vsel %vm5019_vm3, %v4870_v35, %v5044_v45 }
 0x390   : > { %v9608_v54 = vsel %vm5017_vm2, %v9437_v49, %v9607_v50  ;;  %v4596_v23 = vmax.f32 %v3717_v4, %v14161_v15  ;;  %v4598_v14 = vmax.f32 %v3718_v39, %v14163_v20  ;;  %v8273_v37 = vcombine.high %v7969_v51, %v7969_v51 }
 0x391   : > { %v8280_v59 = vrot.slane %v7969_v51, %v19217_v61  ;;  %v3396_v10 = vadd.f32 %v19575_v56, %v3358_v29  ;;  %v7935_v27 = vmul.f32 %v19607_v22, %v19323_v60  ;;  %v19665_v24 = vsel %vm5019_vm3, %v9441_v46, %v9608_v54 }
 0x392   : > { %v8287_v26 = vrot.slane %v8273_v37, %v19217_v61  ;;  %v3363_v0 = vmul.f32 %v19607_v22, %v19333_v43  ;;  %v19672_v9 = vmul.f32 %v19607_v22, %v19338_v16  ;;  %v19676_v8 = vmul.f32 %v19607_v22, %v19354_v11 }
 0x393   : > { %v8288_v33 = vcombine.high %v8280_v59, %v8280_v59  ;;  %v14756_v3 = vrot.slane %v8280_v59, 9  ;;  %v3668_v2 = vcombine.high %v3396_v10, %v3396_v10  ;;  %v3675_v60 = vrot.slane %v3396_v10, %v19217_v61 }
 0x394   : > { %v8289_v35 = vcombine.high %v8287_v26, %v8287_v26  ;;  %v14758_v30 = vrot.slane %v8287_v26, 9  ;;  %v7967_v36 = vadd.f32 %v19575_v56, %v7935_v27  ;;  %v3401_v19 = vadd.f32 %v19575_v56, %v3363_v0 }
 0x395   : > { %v14757_v43 = vrot.slane %v8288_v33, 9  ;;  %v9166_v45 = vmax.f32 %v8280_v59, %v14756_v3  ;;  %v3682_v16 = vrot.slane %v3668_v2, %v19217_v61  ;;  %v3683_v55 = vcombine.high %v3675_v60, %v3675_v60 }
 0x396   : > { %v14759_v11 = vrot.slane %v8289_v35, 9  ;;  %v9168_v48 = vmax.f32 %v8287_v26, %v14758_v30  ;;  %v14096_v62 = vrot.slane %v3675_v60, 9  ;;  %v8239_v4 = vcombine.high %v7967_v36, %v7967_v36  ;;  %v19686_v26 = vpop.f32.mrb[28].mxu1 }
 0x397   : > { %v9167_v39 = vmax.f32 %v8288_v33, %v14757_v43  ;;  %v3684_v5 = vcombine.high %v3682_v16, %v3682_v16  ;;  %v14097_v17 = vrot.slane %v3683_v55, 9  ;;  %v14098_v49 = vrot.slane %v3682_v16, 9 }
 0x398   : > { %v9169_v46 = vmax.f32 %v8289_v35, %v14759_v11  ;;  %v4339_v18 = vmax.f32 %v3675_v60, %v14096_v62  ;;  %v8246_v15 = vrot.slane %v7967_v36, %v19217_v61  ;;  %v8253_v20 = vrot.slane %v8239_v4, %v19217_v61  ;;  %v19691_v11 = vpop.f32.mrb[29].mxu0 }
 0x399   : > { %v14099_v51 = vrot.slane %v3684_v5, 9  ;;  %v4340_v50 = vmax.f32 %v3683_v55, %v14097_v17  ;;  %v4341_v29 = vmax.f32 %v3682_v16, %v14098_v49  ;;  %v3753_v54 = vcombine.high %v3401_v19, %v3401_v19 }
 0x39a   : > { %v4659_v37 = vmax.f32 %v4339_v18, %v4595_v44  ;;  %v8254_v59 = vcombine.high %v8246_v15, %v8246_v15  ;;  %v8255_v10 = vcombine.high %v8253_v20, %v8253_v20  ;;  %v14692_v27 = vrot.slane %v8246_v15, 9 }
 0x39b   : > { %v4342_v0 = vmax.f32 %v3684_v5, %v14099_v51  ;;  %v4660_v33 = vmax.f32 %v4340_v50, %v4596_v23  ;;  %v4661_v3 = vmax.f32 %v4341_v29, %v4597_v1  ;;  %v14694_v2 = vrot.slane %v8253_v20, 9 }
 0x39c   : > { %v4874_v60 = vrot.slane %v4659_v37, %v19222_v13  ;;  %v14693_v35 = vrot.slane %v8254_v59, 9  ;;  %v14695_v30 = vrot.slane %v8255_v10, 9  ;;  %v8910_v36 = vmax.f32 %v8246_v15, %v14692_v27  ;;  %v19702_v37 = vpop.f32.mrb[29].mxu1 }
 0x39d   : > { %v4662_v43 = vmax.f32 %v4342_v0, %v4598_v14  ;;  %v4878_v55 = vrot.slane %v4660_v33, %v19222_v13  ;;  %v4882_v16 = vrot.slane %v4661_v3, %v19222_v13  ;;  %v8912_v44 = vmax.f32 %v8253_v20, %v14694_v2  ;;  %v21316_v2 = vld [vmem:[#allocation5_spill] sm:$0xff] }
 0x39e   : > { %v5046_v62 = vsel %vm5021_vm4, %v4874_v60, %v5045_v63  ;;  %v8911_v4 = vmax.f32 %v8254_v59, %v14693_v35  ;;  %v8913_v5 = vmax.f32 %v8255_v10, %v14695_v30  ;;  %v9230_v23 = vmax.f32 %v8910_v36, %v9166_v45 }
 0x39f   : > { %v4886_v1 = vrot.slane %v4662_v43, %v19222_v13  ;;  %v5047_v17 = vsel %vm5023_vm5, %v4878_v55, %v5046_v62  ;;  %v9232_v49 = vmax.f32 %v8912_v44, %v9168_v48  ;;  %v3760_v18 = vrot.slane %v3401_v19, %v19217_v61 }
 0x3a0   : > { %v5048_v14 = vsel %vm5025_vm6, %v4882_v16, %v5047_v17  ;;  %v9231_v15 = vmax.f32 %v8911_v4, %v9167_v39  ;;  %v9233_v51 = vmax.f32 %v8913_v5, %v9169_v46  ;;  %v9445_v20 = vrot.slane %v9230_v23, %v19222_v13  ;;  %v21317_v4 = vld [vmem:[#allocation6_spill] sm:$0xff] }
 0x3a1   : > { %v5049_v50 = vsel %vm5027_vm7, %v4886_v1, %v5048_v14  ;;  %v9453_v63 = vrot.slane %v9232_v49, %v19222_v13  ;;  %v3767_v29 = vrot.slane %v3753_v54, %v19217_v61  ;;  %v3768_v45 = vcombine.high %v3760_v18, %v3760_v18 }
 0x3a2   : > { %5089 = vst.msk [vmem:[#allocation2 + $0x41] sm:$0xff] %vm462_vm0, %v5049_v50  ;;  %v9449_v48 = vrot.slane %v9231_v15, %v19222_v13  ;;  %v9457_v19 = vrot.slane %v9233_v51, %v19222_v13  ;;  %v9610_v39 = vsel %vm5021_vm4, %v9445_v20, %v19665_v24  ;;  %v14164_v46 = vrot.slane %v3760_v18, 9 }
 0x3a3   : > { %v3769_v59 = vcombine.high %v3767_v29, %v3767_v29  ;;  %v14165_v10 = vrot.slane %v3768_v45, 9  ;;  %v14166_v27 = vrot.slane %v3767_v29, 9  ;;  %v7972_v0 = vadd.f32 %v19575_v56, %v19672_v9 }
 0x3a4   : > { %v9611_v54 = vsel %vm5023_vm5, %v9449_v48, %v9610_v39  ;;  %v4599_v33 = vmax.f32 %v3760_v18, %v14164_v46  ;;  %v3399_v3 = vadd.f32 %v19575_v56, %v19676_v8  ;;  %v7938_v60 = vmul.f32 %v19607_v22, %v21316_v2  ;;  %v19726_v18 = vpop.f32.mrb[30].mxu0 }
 0x3a5   : > { %v9612_v35 = vsel %vm5025_vm6, %v9453_v63, %v9611_v54  ;;  %v14167_v30 = vrot.slane %v3769_v59, 9  ;;  %v4600_v24 = vmax.f32 %v3768_v45, %v14165_v10  ;;  %v4601_v36 = vmax.f32 %v3767_v29, %v14166_v27 }
 0x3a6   : > { %v9613_v43 = vsel %vm5027_vm7, %v9457_v19, %v9612_v35  ;;  %v8324_v55 = vcombine.high %v7972_v0, %v7972_v0  ;;  %v8331_v16 = vrot.slane %v7972_v0, %v19217_v61  ;;  %v3719_v9 = vcombine.high %v3399_v3, %v3399_v3 }
 0x3a7   : > { %9654 = vst.msk [vmem:[#allocation2 + $0xe1] sm:$0xff] %vm462_vm0, %v9613_v43  ;;  %v4602_v44 = vmax.f32 %v3769_v59, %v14167_v30  ;;  %v3726_v62 = vrot.slane %v3399_v3, %v19217_v61  ;;  %v7970_v8 = vadd.f32 %v19575_v56, %v7938_v60  ;;  %v3364_v5 = vmul.f32 %v19607_v22, %v21317_v4  ;;  %v19729_v59 = vpop.f32.mrb[30].mxu1 }
 0x3a8   : > { %v8338_v23 = vrot.slane %v8324_v55, %v19217_v61  ;;  %v8339_v1 = vcombine.high %v8331_v16, %v8331_v16  ;;  %v14760_v17 = vrot.slane %v8331_v16, 9  ;;  %v3733_v49 = vrot.slane %v3719_v9, %v19217_v61  ;;  %21318 = vst [vmem:[#allocation9_spill] sm:$0xff] %v19729_v59 }
 0x3a9   : > { %v3734_v14 = vcombine.high %v3726_v62, %v3726_v62  ;;  %v14100_v15 = vrot.slane %v3726_v62, 9  ;;  %v8290_v51 = vcombine.high %v7970_v8, %v7970_v8  ;;  %v8297_v20 = vrot.slane %v7970_v8, %v19217_v61 }
 0x3aa   : > { %v8340_v50 = vcombine.high %v8338_v23, %v8338_v23  ;;  %v14761_v63 = vrot.slane %v8339_v1, 9  ;;  %v14762_v29 = vrot.slane %v8338_v23, 9  ;;  %v9170_v45 = vmax.f32 %v8331_v16, %v14760_v17 }
 0x3ab   : > { %v3735_v48 = vcombine.high %v3733_v49, %v3733_v49  ;;  %v14101_v19 = vrot.slane %v3734_v14, 9  ;;  %v14102_v39 = vrot.slane %v3733_v49, 9  ;;  %v4343_v46 = vmax.f32 %v3726_v62, %v14100_v15 }
 0x3ac   : > { %v14763_v10 = vrot.slane %v8340_v50, 9  ;;  %v9171_v27 = vmax.f32 %v8339_v1, %v14761_v63  ;;  %v9172_v0 = vmax.f32 %v8338_v23, %v14762_v29  ;;  %v8304_v54 = vrot.slane %v8290_v51, %v19217_v61 }
 0x3ad   : > { %v14103_v3 = vrot.slane %v3735_v48, 9  ;;  %v4344_v2 = vmax.f32 %v3734_v14, %v14101_v19  ;;  %v4345_v60 = vmax.f32 %v3733_v49, %v14102_v39  ;;  %v4663_v35 = vmax.f32 %v4343_v46, %v4599_v33 }
 0x3ae   : > { %v9173_v30 = vmax.f32 %v8340_v50, %v14763_v10  ;;  %v8305_v43 = vcombine.high %v8297_v20, %v8297_v20  ;;  %v8306_v55 = vcombine.high %v8304_v54, %v8304_v54  ;;  %v14696_v9 = vrot.slane %v8297_v20, 9  ;;  %v19740_v10 = vpop.f32.mrb[31].mxu0 }
 0x3af   : > { %v4346_v16 = vmax.f32 %v3735_v48, %v14103_v3  ;;  %v4664_v8 = vmax.f32 %v4344_v2, %v4600_v24  ;;  %v4665_v4 = vmax.f32 %v4345_v60, %v4601_v36  ;;  %v4890_v62 = vrot.slane %v4663_v35, %v19222_v13  ;;  %v21319_v35 = vld [vmem:[#allocation7_spill] sm:$0xff] }
 0x3b0   : > { %v14697_v17 = vrot.slane %v8305_v43, 9  ;;  %v14698_v15 = vrot.slane %v8304_v54, 9  ;;  %v14699_v59 = vrot.slane %v8306_v55, 9  ;;  %v8914_v1 = vmax.f32 %v8297_v20, %v14696_v9 }
 0x3b1   : > { %v4666_v23 = vmax.f32 %v4346_v16, %v4602_v44  ;;  %v4894_v51 = vrot.slane %v4664_v8, %v19222_v13  ;;  %v4898_v14 = vrot.slane %v4665_v4, %v19222_v13  ;;  %v3402_v33 = vadd.f32 %v19575_v56, %v3364_v5 }
 0x3b2   : > { %v8915_v49 = vmax.f32 %v8305_v43, %v14697_v17  ;;  %v8916_v50 = vmax.f32 %v8304_v54, %v14698_v15  ;;  %v8917_v63 = vmax.f32 %v8306_v55, %v14699_v59  ;;  %v9234_v29 = vmax.f32 %v8914_v1, %v9170_v45 }
 0x3b3   : > { %v4902_v24 = vrot.slane %v4666_v23, %v19222_v13  ;;  %v5050_v36 = vsel %vm5015_vm1, %v4894_v51, %v4890_v62  ;;  %v3770_v48 = vcombine.high %v3402_v33, %v3402_v33  ;;  %v3777_v19 = vrot.slane %v3402_v33, %v19217_v61 }
 0x3b4   : > { %v5051_v20 = vsel %vm5017_vm2, %v4898_v14, %v5050_v36  ;;  %v9235_v44 = vmax.f32 %v8915_v49, %v9171_v27  ;;  %v9236_v39 = vmax.f32 %v8916_v50, %v9172_v0  ;;  %v9237_v46 = vmax.f32 %v8917_v63, %v9173_v30  ;;  %v19749_v27 = vpop.f32.mrb[31].mxu1 }
 0x3b5   : > { %v9461_v5 = vrot.slane %v9234_v29, %v19222_v13  ;;  %v3784_v54 = vrot.slane %v3770_v48, %v19217_v61  ;;  %v3785_v59 = vcombine.high %v3777_v19, %v3777_v19  ;;  %v14168_v45 = vrot.slane %v3777_v19, 9 }
 0x3b6   : > { %v9465_v3 = vrot.slane %v9235_v44, %v19222_v13  ;;  %v9469_v2 = vrot.slane %v9236_v39, %v19222_v13  ;;  %v9473_v60 = vrot.slane %v9237_v46, %v19222_v13  ;;  %v7941_v43 = vmul.f32 %v19607_v22, %v21319_v35 }
 0x3b7   : > { %v3786_v0 = vcombine.high %v3784_v54, %v3784_v54  ;;  %v14169_v30 = vrot.slane %v3785_v59, 9  ;;  %v14170_v55 = vrot.slane %v3784_v54, 9  ;;  %v19751_v9 = vmax.f32 %v3777_v19, %v14168_v45 }
 0x3b8   : > { %v9614_v16 = vsel %vm5015_vm1, %v9465_v3, %v9461_v5  ;;  %v7973_v8 = vadd.f32 %v19575_v56, %v7941_v43  ;;  %v3362_v4 = vmul.f32 %v19607_v22, %v19414_v28  ;;  %v19758_v62 = vsel %vm5019_vm3, %v4902_v24, %v5051_v20 }
 0x3b9   : > { %v9615_v17 = vsel %vm5017_vm2, %v9469_v2, %v9614_v16  ;;  %v14171_v15 = vrot.slane %v3786_v0, 9  ;;  %v19761_v1 = vmax.f32 %v3785_v59, %v14169_v30  ;;  %v19763_v23 = vmax.f32 %v3784_v54, %v14170_v55 }
 0x3ba   : > { %v8341_v51 = vcombine.high %v7973_v8, %v7973_v8  ;;  %v8348_v14 = vrot.slane %v7973_v8, %v19217_v61  ;;  %v3400_v33 = vadd.f32 %v19575_v56, %v3362_v4  ;;  %v7939_v49 = vmul.f32 %v19607_v22, %v19421_v7 }
 0x3bb   : > { %v19769_v50 = vmax.f32 %v3786_v0, %v14171_v15  ;;  %v19772_v28 = vsel %vm5019_vm3, %v9473_v60, %v9615_v17  ;;  %v21266_v48 = vmov 0.0   ;;  %v3367_v20 = vmul.f32 %v19607_v22, %v19469_v58 }
 0x3bc   : > { %v8355_v63 = vrot.slane %v8341_v51, %v19217_v61  ;;  %v8356_v29 = vcombine.high %v8348_v14, %v8348_v14  ;;  %v14764_v24 = vrot.slane %v8348_v14, 9  ;;  %v3736_v36 = vcombine.high %v3400_v33, %v3400_v33  ;;  %463 = vst.msk [vmem:[#allocation2] sm:$0xff] %vm462_vm0, %v21266_v48  ;;  %466 = vst.msk [vmem:[#allocation2 + $0xa0] sm:$0xff] %vm462_vm0, %v21266_v48 }
 0x3bd   : > { %465 = vst.msk [vmem:[#allocation2 + $0x8] sm:$0x3] %vm464_vm8, %v21266_v48  ;;  %470 = vst.msk [vmem:[#allocation2 + $0x98] sm:$0x3] %vm464_vm8, %v21266_v48  ;;  %v3743_v7 = vrot.slane %v3400_v33, %v19217_v61  ;;  %v7971_v19 = vadd.f32 %v19575_v56, %v7939_v49  ;;  %v19793_v44 = vmul.f32 %v19607_v22, %v19477_v34 }
 0x3be   : > { %467 = vst.msk [vmem:[#allocation2 + $0xa8] sm:$0x3] %vm464_vm8, %v21266_v48  ;;  %472 = vst.msk [vmem:[#allocation2 + $0x138] sm:$0x3] %vm464_vm8, %v21266_v48  ;;  %v8357_v39 = vcombine.high %v8355_v63, %v8355_v63  ;;  %v14765_v46 = vrot.slane %v8356_v29, 9  ;;  %v14766_v5 = vrot.slane %v8355_v63, 9  ;;  %v9174_v54 = vmax.f32 %v8348_v14, %v14764_v24 }
 0x3bf   : > { %469 = vst.msk [vmem:[#allocation2 + $0x90] sm:$0xff] %vm462_vm0, %v21266_v48  ;;  %471 = vst.msk [vmem:[#allocation2 + $0x130] sm:$0xff] %vm462_vm0, %v21266_v48  ;;  %v3750_v59 = vrot.slane %v3736_v36, %v19217_v61  ;;  %v3751_v45 = vcombine.high %v3743_v7, %v3743_v7  ;;  %v14104_v3 = vrot.slane %v3743_v7, 9  ;;  %v8307_v2 = vcombine.high %v7971_v19, %v7971_v19 }
 0x3c0   : > { %v14767_v60 = vrot.slane %v8357_v39, 9  ;;  %v9175_v35 = vmax.f32 %v8356_v29, %v14765_v46  ;;  %v9176_v43 = vmax.f32 %v8355_v63, %v14766_v5  ;;  %v8314_v0 = vrot.slane %v7971_v19, %v19217_v61  ;;  %496 = vst.msk [vmem:[#allocation2 + $0x69] sm:$0x1] %vm474_vm9, %v21266_v48  ;;  %497 = vst.msk [vmem:[#allocation2 + $0x79] sm:$0x1] %vm474_vm9, %v21266_v48 }
 0x3c1   : > { %v3752_v30 = vcombine.high %v3750_v59, %v3750_v59  ;;  %v14105_v58 = vrot.slane %v3751_v45, 9  ;;  %v14106_v55 = vrot.slane %v3750_v59, 9  ;;  %v4347_v16 = vmax.f32 %v3743_v7, %v14104_v3  ;;  %475 = vst.msk [vmem:[#allocation2 + $0x10] sm:$0x1] %vm474_vm9, %v21266_v48  ;;  %476 = vst.msk [vmem:[#allocation2 + $0x20] sm:$0x1] %vm474_vm9, %v21266_v48 }
 0x3c2   : > { %v9177_v34 = vmax.f32 %v8357_v39, %v14767_v60  ;;  %v8321_v8 = vrot.slane %v8307_v2, %v19217_v61  ;;  %v8322_v4 = vcombine.high %v8314_v0, %v8314_v0  ;;  %v14700_v17 = vrot.slane %v8314_v0, 9  ;;  %477 = vst.msk [vmem:[#allocation2 + $0x30] sm:$0x1] %vm474_vm9, %v21266_v48  ;;  %478 = vst.msk [vmem:[#allocation2 + $0x40] sm:$0x1] %vm474_vm9, %v21266_v48 }
 0x3c3   : > { %v14107_v15 = vrot.slane %v3752_v30, 9  ;;  %v4348_v51 = vmax.f32 %v3751_v45, %v14105_v58  ;;  %v4349_v14 = vmax.f32 %v3750_v59, %v14106_v55  ;;  %v4667_v33 = vmax.f32 %v4347_v16, %v19751_v9  ;;  %v9692_v59 = vld [vmem:[#allocation2 + $0x11] sm:$0xff]  ;;  %479 = vst.msk [vmem:[#allocation2 + $0x50] sm:$0x1] %vm474_vm9, %v21266_v48  ;;  %480 = vst.msk [vmem:[#allocation2 + $0x60] sm:$0x1] %vm474_vm9, %v21266_v48 }
 0x3c4   : > { %v8323_v49 = vcombine.high %v8321_v8, %v8321_v8  ;;  %v14701_v24 = vrot.slane %v8322_v4, 9  ;;  %v14702_v29 = vrot.slane %v8321_v8, 9  ;;  %v8918_v63 = vmax.f32 %v8314_v0, %v14700_v17  ;;  %v9691_v45 = vld [vmem:[#allocation2 + $0x1] sm:$0xff]  ;;  %481 = vst.msk [vmem:[#allocation2 + $0x70] sm:$0x1] %vm474_vm9, %v21266_v48 }
 0x3c5   : > { %v4350_v36 = vmax.f32 %v3752_v30, %v14107_v15  ;;  %v4668_v19 = vmax.f32 %v4348_v51, %v19761_v1  ;;  %v4669_v7 = vmax.f32 %v4349_v14, %v19763_v23  ;;  %v4906_v39 = vrot.slane %v4667_v33, %v19222_v13  ;;  %v17889_v1 = vld [vmem:[%s19195_s21 + $0x100] sm:$0xff]   ;;  %v17890_v33 = vld [vmem:[%s19195_s21 + $0x108] sm:$0xff]   ;;  %482 = vst.msk [vmem:[#allocation2 + $0x80] sm:$0x1] %vm474_vm9, %v21266_v48 }
 0x3c6   : > { %v14703_v46 = vrot.slane %v8323_v49, 9  ;;  %v8919_v5 = vmax.f32 %v8322_v4, %v14701_v24  ;;  %v8920_v3 = vmax.f32 %v8321_v8, %v14702_v29  ;;  %v9238_v2 = vmax.f32 %v8918_v63, %v9174_v54  ;;  %17150 = vmatprep.subr.bf16.mxu1 %v17889_v1  ;;  %v19829_v63 = vld [vmem:[%s19195_s21] sm:$0xff]   ;;  %483 = vst.msk [vmem:[#allocation2 + $0xb0] sm:$0x1] %vm474_vm9, %v21266_v48 }
 0x3c7   : > { %v4670_v9 = vmax.f32 %v4350_v36, %v19769_v50  ;;  %v4910_v60 = vrot.slane %v4668_v19, %v19222_v13  ;;  %v4914_v58 = vrot.slane %v4669_v7, %v19222_v13  ;;  %v5053_v0 = vsel %vm5021_vm4, %v4906_v39, %v19758_v62  ;;  %17154 = vmatpush3.bf16.msra.mxu1 %v17889_v1  ;;  %v17893_v1 = vld [vmem:[%s19195_s21 + $0x118] sm:$0xff]  }
 0x3c8   : > { %v8921_v30 = vmax.f32 %v8323_v49, %v14703_v46  ;;  %v9239_v23 = vmax.f32 %v8919_v5, %v9175_v35  ;;  %v9240_v55 = vmax.f32 %v8920_v3, %v9176_v43  ;;  %v9477_v16 = vrot.slane %v9238_v2, %v19222_v13  ;;  %17151 = vmatprep.subr.bf16.mxu1 %v17890_v33 }
 0x3c9   : > { %v4918_v54 = vrot.slane %v4670_v9, %v19222_v13  ;;  %v5054_v8 = vsel %vm5023_vm5, %v4910_v60, %v5053_v0  ;;  %v9707_v4 = vpack.c.bf16 %v9692_v59, %v9691_v45  ;;  %v3405_v50 = vadd.f32 %v19575_v56, %v3367_v20  ;;  %16462 = vmatprep.subr.bf16.mxu0 %v19829_v63 }
 0x3ca   : > { %v5055_v17 = vsel %vm5025_vm6, %v4914_v58, %v5054_v8  ;;  %v9241_v15 = vmax.f32 %v8921_v30, %v9177_v34  ;;  %v9481_v62 = vrot.slane %v9239_v23, %v19222_v13  ;;  %v9485_v35 = vrot.slane %v9240_v55, %v19222_v13  ;;  %484 = vst.msk [vmem:[#allocation2 + $0xc0] sm:$0x1] %vm474_vm9, %v21266_v48 }
 0x3cb   : > { %v5056_v43 = vsel %vm5027_vm7, %v4918_v54, %v5055_v17  ;;  %v9617_v51 = vsel %vm5021_vm4, %v9477_v16, %v19772_v28  ;;  %16446 = vmatprep.mubr.msk.bf16.mxu0 %vm462_vm0, %v9707_v4  ;;  %v3821_v14 = vcombine.high %v3405_v50, %v3405_v50  ;;  %v3828_v20 = vrot.slane %v3405_v50, %v19217_v61  ;;  %v17892_v28 = vld [vmem:[%s19195_s21 + $0x110] sm:$0xff]  }
 0x3cc   : > { %5090 = vst.msk [vmem:[#allocation2 + $0x51] sm:$0xff] %vm462_vm0, %v5056_v43  ;;  %v9489_v34 = vrot.slane %v9241_v15, %v19222_v13  ;;  %v9618_v49 = vsel %vm5023_vm5, %v9481_v62, %v9617_v51  ;;  %v7976_v24 = vadd.f32 %v19575_v56, %v19793_v44  ;;  %v3365_v29 = vmul.f32 %v19607_v22, %v19485_v31 }
 0x3cd   : > { %v9619_v36 = vsel %vm5025_vm6, %v9485_v35, %v9618_v49  ;;  %v3835_v19 = vrot.slane %v3821_v14, %v19217_v61  ;;  %v3836_v7 = vcombine.high %v3828_v20, %v3828_v20  ;;  %v14172_v39 = vrot.slane %v3828_v20, 9  ;;  %17155 = vmatpush3.bf16.msra.mxu1 %v17890_v33  ;;  %485 = vst.msk [vmem:[#allocation2 + $0xd0] sm:$0x1] %vm474_vm9, %v21266_v48 }
 0x3ce   : > { %v9620_v46 = vsel %vm5027_vm7, %v9489_v34, %v9619_v36  ;;  %v8392_v5 = vcombine.high %v7976_v24, %v7976_v24  ;;  %v8399_v3 = vrot.slane %v7976_v24, %v19217_v61  ;;  %v3403_v44 = vadd.f32 %v19575_v56, %v3365_v29  ;;  %17152 = vmatprep.subr.bf16.mxu1 %v17892_v28 }
 0x3cf   : > { %9655 = vst.msk [vmem:[#allocation2 + $0xf1] sm:$0xff] %vm462_vm0, %v9620_v46  ;;  %v3837_v31 = vcombine.high %v3835_v19, %v3835_v19  ;;  %v14173_v2 = vrot.slane %v3836_v7, 9  ;;  %v14174_v45 = vrot.slane %v3835_v19, 9  ;;  %v4607_v59 = vmax.f32 %v3828_v20, %v14172_v39 }
 0x3d0   : > { %v8406_v9 = vrot.slane %v8392_v5, %v19217_v61  ;;  %v8407_v60 = vcombine.high %v8399_v3, %v8399_v3  ;;  %v14768_v58 = vrot.slane %v8399_v3, 9  ;;  %v3787_v0 = vcombine.high %v3403_v44, %v3403_v44  ;;  %486 = vst.msk [vmem:[#allocation2 + $0xe0] sm:$0x1] %vm474_vm9, %v21266_v48  ;;  %487 = vst.msk [vmem:[#allocation2 + $0xf0] sm:$0x1] %vm474_vm9, %v21266_v48 }
 0x3d1   : > { %v14175_v30 = vrot.slane %v3837_v31, 9  ;;  %v4608_v23 = vmax.f32 %v3836_v7, %v14173_v2  ;;  %v4609_v55 = vmax.f32 %v3835_v19, %v14174_v45  ;;  %v3794_v16 = vrot.slane %v3403_v44, %v19217_v61  ;;  %17156 = vmatpush3.bf16.msra.mxu1 %v17892_v28  ;;  %488 = vst.msk [vmem:[#allocation2 + $0x100] sm:$0x1] %vm474_vm9, %v21266_v48 }
 0x3d2   : > { %v8408_v54 = vcombine.high %v8406_v9, %v8406_v9  ;;  %v14769_v8 = vrot.slane %v8407_v60, 9  ;;  %v14770_v4 = vrot.slane %v8406_v9, 9  ;;  %v9178_v50 = vmax.f32 %v8399_v3, %v14768_v58  ;;  %17153 = vmatprep.subr.bf16.mxu1 %v17893_v1  ;;  %489 = vst.msk [vmem:[#allocation2 + $0x110] sm:$0x1] %vm474_vm9, %v21266_v48  ;;  %490 = vst.msk [vmem:[#allocation2 + $0x120] sm:$0x1] %vm474_vm9, %v21266_v48 }
 0x3d3   : > { %v4610_v17 = vmax.f32 %v3837_v31, %v14175_v30  ;;  %v3801_v15 = vrot.slane %v3787_v0, %v19217_v61  ;;  %v3802_v62 = vcombine.high %v3794_v16, %v3794_v16  ;;  %v14108_v35 = vrot.slane %v3794_v16, 9  ;;  %491 = vst.msk [vmem:[#allocation2 + $0x19] sm:$0x1] %vm474_vm9, %v21266_v48  ;;  %492 = vst.msk [vmem:[#allocation2 + $0x29] sm:$0x1] %vm474_vm9, %v21266_v48 }
 0x3d4   : > { %v14771_v43 = vrot.slane %v8408_v54, 9  ;;  %v9179_v51 = vmax.f32 %v8407_v60, %v14769_v8  ;;  %v9180_v14 = vmax.f32 %v8406_v9, %v14770_v4  ;;  %v7942_v20 = vmul.f32 %v19607_v22, %v19487_v52  ;;  %493 = vst.msk [vmem:[#allocation2 + $0x39] sm:$0x1] %vm474_vm9, %v21266_v48  ;;  %494 = vst.msk [vmem:[#allocation2 + $0x49] sm:$0x1] %vm474_vm9, %v21266_v48 }
 0x3d5   : > { %v3803_v33 = vcombine.high %v3801_v15, %v3801_v15  ;;  %v14109_v34 = vrot.slane %v3802_v62, 9  ;;  %v14110_v49 = vrot.slane %v3801_v15, 9  ;;  %v4351_v24 = vmax.f32 %v3794_v16, %v14108_v35  ;;  %17157 = vmatpush3.bf16.msra.mxu1 %v17893_v1  ;;  %495 = vst.msk [vmem:[#allocation2 + $0x59] sm:$0x1] %vm474_vm9, %v21266_v48  ;;  %498 = vst.msk [vmem:[#allocation2 + $0x89] sm:$0x1] %vm474_vm9, %v21266_v48 }
 0x3d6   : > { %v9181_v29 = vmax.f32 %v8408_v54, %v14771_v43  ;;  %v7974_v36 = vadd.f32 %v19575_v56, %v7942_v20  ;;  %v3368_v19 = vmul.f32 %v19607_v22, %v19516_v47  ;;  %v7945_v28 = vmul.f32 %v19607_v22, %v19525_v53  ;;  %499 = vst.msk [vmem:[#allocation2 + $0xb9] sm:$0x1] %vm474_vm9, %v21266_v48 }
 0x3d7   : > { %v14111_v7 = vrot.slane %v3803_v33, 9  ;;  %v4352_v39 = vmax.f32 %v3802_v62, %v14109_v34  ;;  %v4353_v46 = vmax.f32 %v3801_v15, %v14110_v49  ;;  %v4671_v5 = vmax.f32 %v4351_v24, %v4607_v59  ;;  %500 = vst.msk [vmem:[#allocation2 + $0xc9] sm:$0x1] %vm474_vm9, %v21266_v48  ;;  %501 = vst.msk [vmem:[#allocation2 + $0xd9] sm:$0x1] %vm474_vm9, %v21266_v48 }
 0x3d8   : > { %v8358_v52 = vcombine.high %v7974_v36, %v7974_v36  ;;  %v8365_v3 = vrot.slane %v7974_v36, %v19217_v61  ;;  %v3406_v44 = vadd.f32 %v19575_v56, %v3368_v19  ;;  %v7977_v31 = vadd.f32 %v19575_v56, %v7945_v28  ;;  %502 = vst.msk [vmem:[#allocation2 + $0xe9] sm:$0x1] %vm474_vm9, %v21266_v48 }
 0x3d9   : > { %v4354_v2 = vmax.f32 %v3803_v33, %v14111_v7  ;;  %v4672_v45 = vmax.f32 %v4352_v39, %v4608_v23  ;;  %v4673_v9 = vmax.f32 %v4353_v46, %v4609_v55  ;;  %v4922_v47 = vrot.slane %v4671_v5, %v19222_v13  ;;  %503 = vst.msk [vmem:[#allocation2 + $0xf9] sm:$0x1] %vm474_vm9, %v21266_v48 }
 0x3da   : > { %v8372_v60 = vrot.slane %v8358_v52, %v19217_v61  ;;  %v8373_v53 = vcombine.high %v8365_v3, %v8365_v3  ;;  %v14704_v58 = vrot.slane %v8365_v3, 9  ;;  %v3838_v0 = vcombine.high %v3406_v44, %v3406_v44  ;;  %504 = vst.msk [vmem:[#allocation2 + $0x109] sm:$0x1] %vm474_vm9, %v21266_v48  ;;  %505 = vst.msk [vmem:[#allocation2 + $0x119] sm:$0x1] %vm474_vm9, %v21266_v48 }
 0x3db   : > { %v4674_v30 = vmax.f32 %v4354_v2, %v4610_v17  ;;  %v4926_v59 = vrot.slane %v4672_v45, %v19222_v13  ;;  %v4930_v1 = vrot.slane %v4673_v9, %v19222_v13  ;;  %v3845_v16 = vrot.slane %v3406_v44, %v19217_v61  ;;  %506 = vst.msk [vmem:[#allocation2 + $0x129] sm:$0x1] %vm474_vm9, %v21266_v48  ;;  %v9667_v48 = vld [vmem:[#allocation2 + $0xa0] sm:$0xff] }
 0x3dc   : > { %v8374_v54 = vcombine.high %v8372_v60, %v8372_v60  ;;  %v14705_v8 = vrot.slane %v8373_v53, 9  ;;  %v14706_v56 = vrot.slane %v8372_v60, 9  ;;  %v8922_v4 = vmax.f32 %v8365_v3, %v14704_v58 }
 0x3dd   : > { %v4934_v23 = vrot.slane %v4674_v30, %v19222_v13  ;;  %v5057_v55 = vsel %vm5015_vm1, %v4926_v59, %v4922_v47  ;;  %v3852_v15 = vrot.slane %v3838_v0, %v19217_v61  ;;  %v3853_v62 = vcombine.high %v3845_v16, %v3845_v16 }
 0x3de   : > { %v5058_v35 = vsel %vm5017_vm2, %v4930_v1, %v5057_v55  ;;  %v14707_v17 = vrot.slane %v8374_v54, 9  ;;  %v8923_v43 = vmax.f32 %v8373_v53, %v14705_v8  ;;  %v8924_v20 = vmax.f32 %v8372_v60, %v14706_v56  ;;  %v19884_v1 = vld [vmem:[%s19208_s27] ss:$0 sm:$0xff] }
 0x3df   : > { %v9242_v33 = vmax.f32 %v8922_v4, %v9178_v50  ;;  %v3854_v34 = vcombine.high %v3852_v15, %v3852_v15  ;;  %v14176_v49 = vrot.slane %v3845_v16, 9  ;;  %v14177_v24 = vrot.slane %v3853_v62, 9 }
 0x3e0   : > { %v8925_v36 = vmax.f32 %v8374_v54, %v14707_v17  ;;  %v9243_v19 = vmax.f32 %v8923_v43, %v9179_v51  ;;  %v9244_v28 = vmax.f32 %v8924_v20, %v9180_v14  ;;  %v14178_v7 = vrot.slane %v3852_v15, 9  ;;  %v21320_v54 = vld [vmem:[#allocation8_spill] sm:$0xff] }
 0x3e1   : > { %v9493_v39 = vrot.slane %v9242_v33, %v19222_v13  ;;  %v14179_v46 = vrot.slane %v3854_v34, 9  ;;  %v19863_v5 = vmax.f32 %v3845_v16, %v14176_v49  ;;  %v19865_v52 = vmax.f32 %v3853_v62, %v14177_v24 }
 0x3e2   : > { %v9245_v3 = vmax.f32 %v8925_v36, %v9181_v29  ;;  %v9497_v44 = vrot.slane %v9243_v19, %v19222_v13  ;;  %v9501_v50 = vrot.slane %v9244_v28, %v19222_v13  ;;  %v19869_v2 = vmax.f32 %v3852_v15, %v14178_v7 }
 0x3e3   : > { %v19871_v45 = vmax.f32 %v3854_v34, %v14179_v46  ;;  %v8409_v51 = vcombine.high %v7977_v31, %v7977_v31  ;;  %v8416_v14 = vrot.slane %v7977_v31, %v19217_v61  ;;  %v3366_v9 = vmul.f32 %v19607_v22, %v19531_v41 }
 0x3e4   : > { %v9505_v47 = vrot.slane %v9245_v3, %v19222_v13  ;;  %v9621_v60 = vsel %vm5015_vm1, %v9497_v44, %v9493_v39  ;;  %v5059_v29 = vsel %vm5019_vm3, %v4934_v23, %v5058_v35  ;;  %v7943_v53 = vmul.f32 %v19607_v22, %v19545_v57 }
 0x3e5   : > { %v9622_v58 = vsel %vm5017_vm2, %v9501_v50, %v9621_v60  ;;  %v8423_v0 = vrot.slane %v8409_v51, %v19217_v61  ;;  %v8424_v30 = vcombine.high %v8416_v14, %v8416_v14  ;;  %v14772_v59 = vrot.slane %v8416_v14, 9 }
 0x3e6   : > { %v3404_v31 = vadd.f32 %v19884_v1, %v3366_v9  ;;  %v7975_v41 = vadd.f32 %v19884_v1, %v7943_v53  ;;  %v9623_v16 = vsel %vm5019_vm3, %v9505_v47, %v9622_v58  ;;  %v3371_v8 = vmul.f32 %v19607_v22, %v21320_v54 }
 0x3e7   : > { %v8425_v56 = vcombine.high %v8423_v0, %v8423_v0  ;;  %v14773_v4 = vrot.slane %v8424_v30, 9  ;;  %v14774_v57 = vrot.slane %v8423_v0, 9  ;;  %v9182_v23 = vmax.f32 %v8416_v14, %v14772_v59 }
 0x3e8   : > { %v3804_v55 = vcombine.high %v3404_v31, %v3404_v31  ;;  %v3811_v15 = vrot.slane %v3404_v31, %v19217_v61  ;;  %v8375_v62 = vcombine.high %v7975_v41, %v7975_v41  ;;  %v8382_v35 = vrot.slane %v7975_v41, %v19217_v61 }
 0x3e9   : > { %v14775_v17 = vrot.slane %v8425_v56, 9  ;;  %v9183_v43 = vmax.f32 %v8424_v30, %v14773_v4  ;;  %v9184_v20 = vmax.f32 %v8423_v0, %v14774_v57  ;;  %v3409_v33 = vadd.f32 %v19884_v1, %v3371_v8 }
 0x3ea   : > { %v3818_v34 = vrot.slane %v3804_v55, %v19217_v61  ;;  %v3819_v49 = vcombine.high %v3811_v15, %v3811_v15  ;;  %v14112_v24 = vrot.slane %v3811_v15, 9  ;;  %v8389_v22 = vrot.slane %v8375_v62, %v19217_v61 }
 0x3eb   : > { %v9185_v36 = vmax.f32 %v8425_v56, %v14775_v17  ;;  %v8390_v19 = vcombine.high %v8382_v35, %v8382_v35  ;;  %v14708_v28 = vrot.slane %v8382_v35, 9  ;;  %v3889_v7 = vcombine.high %v3409_v33, %v3409_v33 }
 0x3ec   : > { %v3820_v39 = vcombine.high %v3818_v34, %v3818_v34  ;;  %v14113_v46 = vrot.slane %v3819_v49, 9  ;;  %v14114_v3 = vrot.slane %v3818_v34, 9  ;;  %v4355_v44 = vmax.f32 %v3811_v15, %v14112_v24 }
 0x3ed   : > { %v8391_v50 = vcombine.high %v8389_v22, %v8389_v22  ;;  %v14709_v51 = vrot.slane %v8390_v19, 9  ;;  %v14710_v14 = vrot.slane %v8389_v22, 9  ;;  %v8926_v9 = vmax.f32 %v8382_v35, %v14708_v28 }
 0x3ee   : > { %v14115_v47 = vrot.slane %v3820_v39, 9  ;;  %v4356_v60 = vmax.f32 %v3819_v49, %v14113_v46  ;;  %v4357_v53 = vmax.f32 %v3818_v34, %v14114_v3  ;;  %v4675_v58 = vmax.f32 %v4355_v44, %v19863_v5 }
 0x3ef   : > { %v14711_v0 = vrot.slane %v8391_v50, 9  ;;  %v8927_v30 = vmax.f32 %v8390_v19, %v14709_v51  ;;  %v8928_v59 = vmax.f32 %v8389_v22, %v14710_v14  ;;  %v9246_v31 = vmax.f32 %v8926_v9, %v9182_v23 }
 0x3f0   : > { %v4358_v41 = vmax.f32 %v3820_v39, %v14115_v47  ;;  %v4676_v54 = vmax.f32 %v4356_v60, %v19865_v52  ;;  %v4677_v8 = vmax.f32 %v4357_v53, %v19869_v2  ;;  %v4938_v56 = vrot.slane %v4675_v58, %v19222_v13 }
 0x3f1   : > { %v8929_v4 = vmax.f32 %v8391_v50, %v14711_v0  ;;  %v9247_v57 = vmax.f32 %v8927_v30, %v9183_v43  ;;  %v9248_v55 = vmax.f32 %v8928_v59, %v9184_v20  ;;  %v9509_v15 = vrot.slane %v9246_v31, %v19222_v13 }
 0x3f2   : > { %v4678_v62 = vmax.f32 %v4358_v41, %v19871_v45  ;;  %v4942_v5 = vrot.slane %v4676_v54, %v19222_v13  ;;  %v4946_v35 = vrot.slane %v4677_v8, %v19222_v13  ;;  %v5060_v23 = vsel %vm5021_vm4, %v4938_v56, %v5059_v29 }
 0x3f3   : > { %v9249_v17 = vmax.f32 %v8929_v4, %v9185_v36  ;;  %v9513_v52 = vrot.slane %v9247_v57, %v19222_v13  ;;  %v9517_v2 = vrot.slane %v9248_v55, %v19222_v13  ;;  %v9624_v34 = vsel %vm5021_vm4, %v9509_v15, %v9623_v16  ;;  %v19916_v36 = vld [vmem:[%s19202_s24] ss:$0 sm:$0xff] }
 0x3f4   : > { %v4950_v43 = vrot.slane %v4678_v62, %v19222_v13  ;;  %v5061_v20 = vsel %vm5023_vm5, %v4942_v5, %v5060_v23  ;;  %v3896_v49 = vrot.slane %v3409_v33, %v19217_v61  ;;  %v3903_v45 = vrot.slane %v3889_v7, %v19217_v61 }
 0x3f5   : > { %v5062_v24 = vsel %vm5025_vm6, %v4946_v35, %v5061_v20  ;;  %v9521_v22 = vrot.slane %v9249_v17, %v19222_v13  ;;  %v9625_v29 = vsel %vm5023_vm5, %v9513_v52, %v9624_v34  ;;  %v7948_v19 = vmul.f32 %v19916_v36, %v19580_v32 }
 0x3f6   : > { %v5063_v16 = vsel %vm5027_vm7, %v4950_v43, %v5062_v24  ;;  %v9626_v28 = vsel %vm5025_vm6, %v9517_v2, %v9625_v29  ;;  %v3904_v39 = vcombine.high %v3896_v49, %v3896_v49  ;;  %v3905_v46 = vcombine.high %v3903_v45, %v3903_v45 }
 0x3f7   : > { %5091 = vst.msk [vmem:[#allocation2 + $0x61] sm:$0xff] %vm462_vm0, %v5063_v16  ;;  %v9627_v33 = vsel %vm5027_vm7, %v9521_v22, %v9626_v28  ;;  %v14180_v7 = vrot.slane %v3896_v49, 9  ;;  %v14182_v3 = vrot.slane %v3903_v45, 9  ;;  %v7980_v44 = vadd.f32 %v19884_v1, %v7948_v19 }
 0x3f8   : > { %9656 = vst.msk [vmem:[#allocation2 + $0x101] sm:$0xff] %vm462_vm0, %v9627_v33  ;;  %v14181_v50 = vrot.slane %v3904_v39, 9  ;;  %v14183_v51 = vrot.slane %v3905_v46, 9  ;;  %v3369_v32 = vmul.f32 %v19916_v36, %v19589_v25  ;;  %v7946_v14 = vmul.f32 %v19916_v36, %v19599_v12 }
 0x3f9   : > { %v4615_v9 = vmax.f32 %v3896_v49, %v14180_v7  ;;  %v4617_v47 = vmax.f32 %v3903_v45, %v14182_v3  ;;  %v8460_v60 = vcombine.high %v7980_v44, %v7980_v44  ;;  %v8467_v53 = vrot.slane %v7980_v44, %v19217_v61 }
 0x3fa   : > { %v4616_v58 = vmax.f32 %v3904_v39, %v14181_v50  ;;  %v4618_v0 = vmax.f32 %v3905_v46, %v14183_v51  ;;  %v3407_v30 = vadd.f32 %v19884_v1, %v3369_v32  ;;  %v7978_v59 = vadd.f32 %v19884_v1, %v7946_v14 }
 0x3fb   : > { %v8474_v31 = vrot.slane %v8460_v60, %v19217_v61  ;;  %v8475_v41 = vcombine.high %v8467_v53, %v8467_v53  ;;  %v14776_v54 = vrot.slane %v8467_v53, 9  ;;  %v3372_v25 = vmul.f32 %v19916_v36, %v19619_v6 }
 0x3fc   : > { %v3855_v8 = vcombine.high %v3407_v30, %v3407_v30  ;;  %v3862_v12 = vrot.slane %v3407_v30, %v19217_v61  ;;  %v8426_v56 = vcombine.high %v7978_v59, %v7978_v59  ;;  %v8433_v4 = vrot.slane %v7978_v59, %v19217_v61 }
 0x3fd   : > { %v8476_v57 = vcombine.high %v8474_v31, %v8474_v31  ;;  %v14777_v55 = vrot.slane %v8475_v41, 9  ;;  %v14778_v15 = vrot.slane %v8474_v31, 9  ;;  %v9186_v62 = vmax.f32 %v8467_v53, %v14776_v54 }
 0x3fe   : > { %v3869_v5 = vrot.slane %v3855_v8, %v19217_v61  ;;  %v3870_v35 = vcombine.high %v3862_v12, %v3862_v12  ;;  %v14116_v23 = vrot.slane %v3862_v12, 9  ;;  %v8440_v17 = vrot.slane %v8426_v56, %v19217_v61 }
 0x3ff   : > { %v14779_v52 = vrot.slane %v8476_v57, 9  ;;  %v9187_v2 = vmax.f32 %v8475_v41, %v14777_v55  ;;  %v9188_v34 = vmax.f32 %v8474_v31, %v14778_v15  ;;  %v8441_v6 = vcombine.high %v8433_v4, %v8433_v4 }
 0x400   : > { %v3871_v43 = vcombine.high %v3869_v5, %v3869_v5  ;;  %v14117_v20 = vrot.slane %v3870_v35, 9  ;;  %v14118_v49 = vrot.slane %v3869_v5, 9  ;;  %v4359_v45 = vmax.f32 %v3862_v12, %v14116_v23 }
 0x401   : > { %v9189_v24 = vmax.f32 %v8476_v57, %v14779_v52  ;;  %v8442_v22 = vcombine.high %v8440_v17, %v8440_v17  ;;  %v14712_v29 = vrot.slane %v8433_v4, 9  ;;  %v14713_v19 = vrot.slane %v8441_v6, 9 }
 0x402   : > { %v14119_v16 = vrot.slane %v3871_v43, 9  ;;  %v4360_v28 = vmax.f32 %v3870_v35, %v14117_v20  ;;  %v4361_v39 = vmax.f32 %v3869_v5, %v14118_v49  ;;  %v4679_v46 = vmax.f32 %v4359_v45, %v4615_v9 }
 0x403   : > { %v14714_v33 = vrot.slane %v8440_v17, 9  ;;  %v14715_v7 = vrot.slane %v8442_v22, 9  ;;  %v8930_v3 = vmax.f32 %v8433_v4, %v14712_v29  ;;  %v8931_v44 = vmax.f32 %v8441_v6, %v14713_v19  ;;  %v19972_v19 = vld [vmem:[#allocation2 + $0x21] sm:$0xff] }
 0x404   : > { %v4362_v50 = vmax.f32 %v3871_v43, %v14119_v16  ;;  %v4680_v51 = vmax.f32 %v4360_v28, %v4616_v58  ;;  %v4681_v32 = vmax.f32 %v4361_v39, %v4617_v47  ;;  %v4954_v14 = vrot.slane %v4679_v46, %v19222_v13  ;;  %v19964_v43 = vld [vmem:[#allocation2 + $0x31] sm:$0xff]  ;;  %v17891_v46 = vld [vmem:[%s19195_s21 + $0x8] sm:$0xff]  }
 0x405   : > { %v8932_v60 = vmax.f32 %v8440_v17, %v14714_v33  ;;  %v8933_v53 = vmax.f32 %v8442_v22, %v14715_v7  ;;  %v9250_v30 = vmax.f32 %v8930_v3, %v9186_v62  ;;  %v9251_v59 = vmax.f32 %v8931_v44, %v9187_v2 }
 0x406   : > { %v4682_v31 = vmax.f32 %v4362_v50, %v4618_v0  ;;  %v4958_v41 = vrot.slane %v4680_v51, %v19222_v13  ;;  %v4962_v54 = vrot.slane %v4681_v32, %v19222_v13  ;;  %v3410_v9 = vadd.f32 %v19884_v1, %v3372_v25 }
 0x407   : > { %v9252_v8 = vmax.f32 %v8932_v60, %v9188_v34  ;;  %v9253_v12 = vmax.f32 %v8933_v53, %v9189_v24  ;;  %v9525_v56 = vrot.slane %v9250_v30, %v19222_v13  ;;  %v9529_v58 = vrot.slane %v9251_v59, %v19222_v13 }
 0x408   : > { %v4966_v47 = vrot.slane %v4682_v31, %v19222_v13  ;;  %v5064_v4 = vsel %vm5015_vm1, %v4958_v41, %v4954_v14  ;;  %v3906_v57 = vcombine.high %v3410_v9, %v3410_v9  ;;  %v3913_v55 = vrot.slane %v3410_v9, %v19217_v61 }
 0x409   : > { %v5065_v0 = vsel %vm5017_vm2, %v4962_v54, %v5064_v4  ;;  %v9533_v15 = vrot.slane %v9252_v8, %v19222_v13  ;;  %v9537_v62 = vrot.slane %v9253_v12, %v19222_v13  ;;  %v9628_v25 = vsel %vm5015_vm1, %v9529_v58, %v9525_v56  ;;  %v17894_v8 = vld [vmem:[%s19195_s21 + $0x10] sm:$0xff]  }
 0x40a   : > { %v3920_v5 = vrot.slane %v3906_v57, %v19217_v61  ;;  %v3921_v35 = vcombine.high %v3913_v55, %v3913_v55  ;;  %v14184_v23 = vrot.slane %v3913_v55, 9  ;;  %v7949_v17 = vmul.f32 %v19916_v36, %v19635_v21 }
 0x40b   : > { %v9629_v52 = vsel %vm5017_vm2, %v9533_v15, %v9628_v25  ;;  %v3370_v2 = vmul.f32 %v19916_v36, %v19645_v42  ;;  %v19960_v34 = vsel %vm5019_vm3, %v4966_v47, %v5065_v0  ;;  %v7947_v6 = vmul.f32 %v19916_v36, %v19647_v38 }
 0x40c   : > { %v3922_v20 = vcombine.high %v3920_v5, %v3920_v5  ;;  %v14185_v49 = vrot.slane %v3921_v35, 9  ;;  %v14186_v45 = vrot.slane %v3920_v5, 9  ;;  %v4619_v24 = vmax.f32 %v3913_v55, %v14184_v23 }
 0x40d   : > { %v7981_v21 = vadd.f32 %v19884_v1, %v7949_v17  ;;  %v3408_v22 = vadd.f32 %v19884_v1, %v3370_v2  ;;  %v7979_v29 = vadd.f32 %v19884_v1, %v7947_v6  ;;  %v19970_v42 = vsel %vm5019_vm3, %v9537_v62, %v9629_v52  ;;  %v17895_v17 = vld [vmem:[%s19195_s21 + $0x18] sm:$0xff]  }
 0x40e   : > { %v14187_v16 = vrot.slane %v3922_v20, 9  ;;  %v4620_v28 = vmax.f32 %v3921_v35, %v14185_v49  ;;  %v4621_v38 = vmax.f32 %v3920_v5, %v14186_v45  ;;  %v9708_v39 = vpack.c.bf16 %v19964_v43, %v19972_v19 }
 0x40f   : > { %v8477_v33 = vcombine.high %v7981_v21, %v7981_v21  ;;  %v8484_v7 = vrot.slane %v7981_v21, %v19217_v61  ;;  %v3872_v3 = vcombine.high %v3408_v22, %v3408_v22  ;;  %v3879_v44 = vrot.slane %v3408_v22, %v19217_v61 }
 0x410   : > { %v4622_v50 = vmax.f32 %v3922_v20, %v14187_v16  ;;  %v8443_v51 = vcombine.high %v7979_v29, %v7979_v29  ;;  %v8450_v32 = vrot.slane %v7979_v29, %v19217_v61  ;;  %16447 = vmatmul.mubr.msk.bf16.vlgmr.msra.gmra.mrb[32].mxu0 %vm462_vm0, %v9708_v39  ;;  %v3375_v14 = vmul.f32 %v19916_v36, %v19682_v40 }
 0x411   : > { %v8491_v60 = vrot.slane %v8477_v33, %v19217_v61  ;;  %v8492_v53 = vcombine.high %v8484_v7, %v8484_v7  ;;  %v14780_v30 = vrot.slane %v8484_v7, 9  ;;  %v3886_v59 = vrot.slane %v3872_v3, %v19217_v61  ;;  %16463 = vmatpush3.bf16.msra.mxu0 %v19829_v63 }
 0x412   : > { %v3887_v31 = vcombine.high %v3879_v44, %v3879_v44  ;;  %v14120_v41 = vrot.slane %v3879_v44, 9  ;;  %v8457_v54 = vrot.slane %v8443_v51, %v19217_v61  ;;  %v8458_v9 = vcombine.high %v8450_v32, %v8450_v32  ;;  %16464 = vmatprep.subr.bf16.mxu0 %v17891_v46 }
 0x413   : > { %v8493_v12 = vcombine.high %v8491_v60, %v8491_v60  ;;  %v14781_v56 = vrot.slane %v8492_v53, 9  ;;  %v14782_v58 = vrot.slane %v8491_v60, 9  ;;  %v9190_v40 = vmax.f32 %v8484_v7, %v14780_v30 }
 0x414   : > { %v3888_v47 = vcombine.high %v3886_v59, %v3886_v59  ;;  %v14121_v4 = vrot.slane %v3887_v31, 9  ;;  %v14122_v57 = vrot.slane %v3886_v59, 9  ;;  %v4363_v55 = vmax.f32 %v3879_v44, %v14120_v41  ;;  %v19995_v44 = vld [vmem:[%s19195_s21 + $0x40] sm:$0xff]  }
 0x415   : > { %v14783_v0 = vrot.slane %v8493_v12, 9  ;;  %v9191_v15 = vmax.f32 %v8492_v53, %v14781_v56  ;;  %v9192_v62 = vmax.f32 %v8491_v60, %v14782_v58  ;;  %v8459_v63 = vcombine.high %v8457_v54, %v8457_v54  ;;  %16465 = vmatpush3.bf16.msra.mxu0 %v17891_v46 }
 0x416   : > { %v14123_v25 = vrot.slane %v3888_v47, 9  ;;  %v4364_v5 = vmax.f32 %v3887_v31, %v14121_v4  ;;  %v4365_v35 = vmax.f32 %v3886_v59, %v14122_v57  ;;  %v4683_v23 = vmax.f32 %v4363_v55, %v4619_v24  ;;  %16466 = vmatprep.subr.bf16.mxu0 %v17894_v8 }
 0x417   : > { %v9193_v52 = vmax.f32 %v8493_v12, %v14783_v0  ;;  %v14716_v2 = vrot.slane %v8450_v32, 9  ;;  %v14717_v6 = vrot.slane %v8458_v9, 9  ;;  %v14718_v20 = vrot.slane %v8457_v54, 9 }
 0x418   : > { %v4366_v49 = vmax.f32 %v3888_v47, %v14123_v25  ;;  %v4684_v45 = vmax.f32 %v4364_v5, %v4620_v28  ;;  %v4685_v21 = vmax.f32 %v4365_v35, %v4621_v38  ;;  %v4970_v22 = vrot.slane %v4683_v23, %v19222_v13 }
 0x419   : > { %v14719_v29 = vrot.slane %v8459_v63, 9  ;;  %v8934_v16 = vmax.f32 %v8450_v32, %v14716_v2  ;;  %v8935_v39 = vmax.f32 %v8458_v9, %v14717_v6  ;;  %v8936_v46 = vmax.f32 %v8457_v54, %v14718_v20  ;;  %16467 = vmatpush3.bf16.msra.mxu0 %v17894_v8 }
 0x41a   : > { %v4686_v33 = vmax.f32 %v4366_v49, %v4622_v50  ;;  %v4974_v24 = vrot.slane %v4684_v45, %v19222_v13  ;;  %v4978_v7 = vrot.slane %v4685_v21, %v19222_v13  ;;  %v5067_v3 = vsel %vm5021_vm4, %v4970_v22, %v19960_v34  ;;  %16468 = vmatprep.subr.bf16.mxu0 %v17895_v17 }
 0x41b   : > { %v8937_v28 = vmax.f32 %v8459_v63, %v14719_v29  ;;  %v9254_v38 = vmax.f32 %v8934_v16, %v9190_v40  ;;  %v9255_v51 = vmax.f32 %v8935_v39, %v9191_v15  ;;  %v9256_v60 = vmax.f32 %v8936_v46, %v9192_v62 }
 0x41c   : > { %v4982_v32 = vrot.slane %v4686_v33, %v19222_v13  ;;  %v5068_v53 = vsel %vm5023_vm5, %v4974_v24, %v5067_v3  ;;  %v3413_v50 = vadd.f32 %v19884_v1, %v3375_v14  ;;  %v7952_v30 = vmul.f32 %v19916_v36, %v19686_v26 }
 0x41d   : > { %v5069_v59 = vsel %vm5025_vm6, %v4978_v7, %v5068_v53  ;;  %v9257_v31 = vmax.f32 %v8937_v28, %v9193_v52  ;;  %v9541_v34 = vrot.slane %v9254_v38, %v19222_v13  ;;  %v9545_v41 = vrot.slane %v9255_v51, %v19222_v13  ;;  %16469 = vmatpush3.bf16.msra.mxu0 %v17895_v17 }
 0x41e   : > { %v5070_v54 = vsel %vm5027_vm7, %v4982_v32, %v5069_v59  ;;  %v9549_v9 = vrot.slane %v9256_v60, %v19222_v13  ;;  %v3957_v8 = vcombine.high %v3413_v50, %v3413_v50  ;;  %v3964_v12 = vrot.slane %v3413_v50, %v19217_v61  ;;  %16486 = vmatprep.subr.bf16.mxu0 %v19995_v44 }
 0x41f   : > { %5092 = vst.msk [vmem:[#allocation2 + $0x71] sm:$0xff] %vm462_vm0, %v5070_v54  ;;  %v9553_v26 = vrot.slane %v9257_v31, %v19222_v13  ;;  %v9631_v14 = vsel %vm5021_vm4, %v9541_v34, %v19970_v42  ;;  %v7984_v56 = vadd.f32 %v19884_v1, %v7952_v30  ;;  %v3373_v58 = vmul.f32 %v19916_v36, %v19691_v11  ;;  %v21321_v30 = vld [vmem:[#allocation9_spill] sm:$0xff] }
 0x420   : > { %v9632_v40 = vsel %vm5023_vm5, %v9545_v41, %v9631_v14  ;;  %v3971_v47 = vrot.slane %v3957_v8, %v19217_v61  ;;  %v3972_v4 = vcombine.high %v3964_v12, %v3964_v12  ;;  %v14188_v57 = vrot.slane %v3964_v12, 9 }
 0x421   : > { %v9633_v55 = vsel %vm5025_vm6, %v9549_v9, %v9632_v40  ;;  %v8528_v0 = vcombine.high %v7984_v56, %v7984_v56  ;;  %v8535_v15 = vrot.slane %v7984_v56, %v19217_v61  ;;  %v3411_v62 = vadd.f32 %v19884_v1, %v3373_v58 }
 0x422   : > { %v9634_v42 = vsel %vm5027_vm7, %v9553_v26, %v9633_v55  ;;  %v3973_v63 = vcombine.high %v3971_v47, %v3971_v47  ;;  %v14189_v25 = vrot.slane %v3972_v4, 9  ;;  %v14190_v5 = vrot.slane %v3971_v47, 9 }
 0x423   : > { %9657 = vst.msk [vmem:[#allocation2 + $0x111] sm:$0xff] %vm462_vm0, %v9634_v42  ;;  %v4623_v11 = vmax.f32 %v3964_v12, %v14188_v57  ;;  %v8542_v35 = vrot.slane %v8528_v0, %v19217_v61  ;;  %v8543_v23 = vcombine.high %v8535_v15, %v8535_v15  ;;  %v14784_v17 = vrot.slane %v8535_v15, 9 }
 0x424   : > { %v14191_v52 = vrot.slane %v3973_v63, 9  ;;  %v4624_v2 = vmax.f32 %v3972_v4, %v14189_v25  ;;  %v4625_v6 = vmax.f32 %v3971_v47, %v14190_v5  ;;  %v3923_v20 = vcombine.high %v3411_v62, %v3411_v62 }
 0x425   : > { %v8544_v49 = vcombine.high %v8542_v35, %v8542_v35  ;;  %v14785_v45 = vrot.slane %v8543_v23, 9  ;;  %v14786_v21 = vrot.slane %v8542_v35, 9  ;;  %v9194_v22 = vmax.f32 %v8535_v15, %v14784_v17 }
 0x426   : > { %v4626_v29 = vmax.f32 %v3973_v63, %v14191_v52  ;;  %v3930_v16 = vrot.slane %v3411_v62, %v19217_v61  ;;  %v3937_v39 = vrot.slane %v3923_v20, %v19217_v61  ;;  %v7950_v46 = vmul.f32 %v19916_v36, %v19702_v37 }
 0x427   : > { %v14787_v33 = vrot.slane %v8544_v49, 9  ;;  %v9195_v24 = vmax.f32 %v8543_v23, %v14785_v45  ;;  %v9196_v7 = vmax.f32 %v8542_v35, %v14786_v21  ;;  %v3376_v3 = vmul.f32 %v19916_v36, %v19726_v18 }
 0x428   : > { %v3938_v28 = vcombine.high %v3930_v16, %v3930_v16  ;;  %v3939_v38 = vcombine.high %v3937_v39, %v3937_v39  ;;  %v14124_v51 = vrot.slane %v3930_v16, 9  ;;  %v14126_v60 = vrot.slane %v3937_v39, 9 }
 0x429   : > { %v9197_v32 = vmax.f32 %v8544_v49, %v14787_v33  ;;  %v7982_v53 = vadd.f32 %v19884_v1, %v7950_v46  ;;  %v3414_v50 = vadd.f32 %v19884_v1, %v3376_v3  ;;  %v7953_v59 = vmul.f32 %v19916_v36, %v21321_v30 }
 0x42a   : > { %v14125_v31 = vrot.slane %v3938_v28, 9  ;;  %v14127_v37 = vrot.slane %v3939_v38, 9  ;;  %v4367_v34 = vmax.f32 %v3930_v16, %v14124_v51  ;;  %v4369_v41 = vmax.f32 %v3937_v39, %v14126_v60  ;;  %v20049_v51 = vld [vmem:[#allocation2 + $0x51] sm:$0xff] }
 0x42b   : > { %v8494_v54 = vcombine.high %v7982_v53, %v7982_v53  ;;  %v8501_v9 = vrot.slane %v7982_v53, %v19217_v61  ;;  %v3974_v18 = vcombine.high %v3414_v50, %v3414_v50  ;;  %v3981_v8 = vrot.slane %v3414_v50, %v19217_v61 }
 0x42c   : > { %v4368_v12 = vmax.f32 %v3938_v28, %v14125_v31  ;;  %v4370_v26 = vmax.f32 %v3939_v38, %v14127_v37  ;;  %v4687_v14 = vmax.f32 %v4367_v34, %v4623_v11  ;;  %v4689_v56 = vmax.f32 %v4369_v41, %v4625_v6  ;;  %v20063_v37 = vld [vmem:[#allocation2 + $0x41] sm:$0xff]  ;;  %v20065_v34 = vld [vmem:[#allocation2 + $0x71] sm:$0xff] }
 0x42d   : > { %v8508_v58 = vrot.slane %v8494_v54, %v19217_v61  ;;  %v8509_v40 = vcombine.high %v8501_v9, %v8501_v9  ;;  %v14720_v47 = vrot.slane %v8501_v9, 9  ;;  %v3988_v4 = vrot.slane %v3974_v18, %v19217_v61 }
 0x42e   : > { %v4688_v57 = vmax.f32 %v4368_v12, %v4624_v2  ;;  %v4690_v55 = vmax.f32 %v4370_v26, %v4626_v29  ;;  %v4986_v0 = vrot.slane %v4687_v14, %v19222_v13  ;;  %v4994_v15 = vrot.slane %v4689_v56, %v19222_v13  ;;  %v20078_v12 = vld [vmem:[#allocation2 + $0x61] sm:$0xff]  ;;  %v20080_v14 = vld [vmem:[#allocation2 + $0xb1] sm:$0xff] }
 0x42f   : > { %v8510_v62 = vcombine.high %v8508_v58, %v8508_v58  ;;  %v14721_v42 = vrot.slane %v8509_v40, 9  ;;  %v14722_v63 = vrot.slane %v8508_v58, 9  ;;  %v8938_v25 = vmax.f32 %v8501_v9, %v14720_v47  ;;  %v9699_v26 = vld [vmem:[#allocation2 + $0xa1] sm:$0xff] }
 0x430   : > { %v4990_v5 = vrot.slane %v4688_v57, %v19222_v13  ;;  %v4998_v11 = vrot.slane %v4690_v55, %v19222_v13  ;;  %v3989_v35 = vcombine.high %v3981_v8, %v3981_v8  ;;  %v3990_v23 = vcombine.high %v3988_v4, %v3988_v4 }
 0x431   : > { %v14723_v17 = vrot.slane %v8510_v62, 9  ;;  %v8939_v52 = vmax.f32 %v8509_v40, %v14721_v42  ;;  %v8940_v6 = vmax.f32 %v8508_v58, %v14722_v63  ;;  %v9258_v20 = vmax.f32 %v8938_v25, %v9194_v22 }
 0x432   : > { %v5071_v2 = vsel %vm5015_vm1, %v4990_v5, %v4986_v0  ;;  %v14192_v49 = vrot.slane %v3981_v8, 9  ;;  %v14193_v45 = vrot.slane %v3989_v35, 9  ;;  %v14194_v21 = vrot.slane %v3988_v4, 9 }
 0x433   : > { %v5072_v29 = vsel %vm5017_vm2, %v4994_v15, %v5071_v2  ;;  %v8941_v16 = vmax.f32 %v8510_v62, %v14723_v17  ;;  %v9259_v39 = vmax.f32 %v8939_v52, %v9195_v24  ;;  %v9260_v46 = vmax.f32 %v8940_v6, %v9196_v7 }
 0x434   : > { %v9557_v33 = vrot.slane %v9258_v20, %v19222_v13  ;;  %v14195_v3 = vrot.slane %v3990_v23, 9  ;;  %v20045_v28 = vmax.f32 %v3981_v8, %v14192_v49  ;;  %v20047_v38 = vmax.f32 %v3989_v35, %v14193_v45 }
 0x435   : > { %v9261_v22 = vmax.f32 %v8941_v16, %v9197_v32  ;;  %v9561_v60 = vrot.slane %v9259_v39, %v19222_v13  ;;  %v9565_v53 = vrot.slane %v9260_v46, %v19222_v13  ;;  %v20053_v50 = vmax.f32 %v3988_v4, %v14194_v21 }
 0x436   : > { %v20055_v30 = vmax.f32 %v3990_v23, %v14195_v3  ;;  %v7985_v24 = vadd.f32 %v19884_v1, %v7953_v59  ;;  %v3374_v7 = vmul.f32 %v19916_v36, %v19740_v10  ;;  %v20061_v31 = vsel %vm5019_vm3, %v4998_v11, %v5072_v29 }
 0x437   : > { %v9569_v32 = vrot.slane %v9261_v22, %v19222_v13  ;;  %v9635_v41 = vsel %vm5015_vm1, %v9561_v60, %v9557_v33  ;;  %v7951_v54 = vmul.f32 %v19916_v36, %v19749_v27  ;;  %v20073_v59 = vpack.c.bf16 %v20049_v51, %v20063_v37 }
 0x438   : > { %v9636_v10 = vsel %vm5017_vm2, %v9565_v53, %v9635_v41  ;;  %v8545_v9 = vcombine.high %v7985_v24, %v7985_v24  ;;  %v8552_v18 = vrot.slane %v7985_v24, %v19217_v61  ;;  %v3412_v8 = vadd.f32 %v19884_v1, %v3374_v7 }
 0x439   : > { %v7983_v56 = vadd.f32 %v19884_v1, %v7951_v54  ;;  %v20084_v27 = vsel %vm5019_vm3, %v9569_v32, %v9636_v10  ;;  %16450 = vmatprep.mubr.msk.bf16.mxu0 %vm462_vm0, %v20073_v59  ;;  %v20090_v36 = vpack.c.bf16 %v20065_v34, %v20078_v12  ;;  %v9711_v0 = vpack.c.bf16 %v20080_v14, %v9699_v26 }
 0x43a   : > { %v8559_v58 = vrot.slane %v8545_v9, %v19217_v61  ;;  %v8560_v40 = vcombine.high %v8552_v18, %v8552_v18  ;;  %v14788_v47 = vrot.slane %v8552_v18, 9  ;;  %v3940_v4 = vcombine.high %v3412_v8, %v3412_v8 }
 0x43b   : > { %v3947_v1 = vrot.slane %v3412_v8, %v19217_v61  ;;  %v8511_v57 = vcombine.high %v7983_v56, %v7983_v56  ;;  %v8518_v55 = vrot.slane %v7983_v56, %v19217_v61  ;;  %16451 = vmatmul.mubr.msk.bf16.gmra.mrb[36].mxu0 %vm462_vm0, %v20090_v36  ;;  %v20169_v56 = vld [vmem:[#allocation2 + $0x72] sm:$0xff] }
 0x43c   : > { %v8561_v15 = vcombine.high %v8559_v58, %v8559_v58  ;;  %v14789_v62 = vrot.slane %v8560_v40, 9  ;;  %v14790_v42 = vrot.slane %v8559_v58, 9  ;;  %v9198_v63 = vmax.f32 %v8552_v18, %v14788_v47  ;;  %16454 = vmatprep.mubr.msk.bf16.mxu0 %vm462_vm0, %v9711_v0  ;;  %v20182_v0 = vld [vmem:[#allocation2 + $0xc1] sm:$0xff] }
 0x43d   : > { %v3954_v25 = vrot.slane %v3940_v4, %v19217_v61  ;;  %v3955_v5 = vcombine.high %v3947_v1, %v3947_v1  ;;  %v14128_v11 = vrot.slane %v3947_v1, 9  ;;  %v8525_v35 = vrot.slane %v8511_v57, %v19217_v61 }
 0x43e   : > { %v14791_v23 = vrot.slane %v8561_v15, 9  ;;  %v9199_v17 = vmax.f32 %v8560_v40, %v14789_v62  ;;  %v9200_v52 = vmax.f32 %v8559_v58, %v14790_v42  ;;  %v8526_v6 = vcombine.high %v8518_v55, %v8518_v55  ;;  %v20171_v58 = vld [vmem:[#allocation2 + $0xd1] sm:$0xff] }
 0x43f   : > { %v3956_v20 = vcombine.high %v3954_v25, %v3954_v25  ;;  %v14129_v2 = vrot.slane %v3955_v5, 9  ;;  %v14130_v49 = vrot.slane %v3954_v25, 9  ;;  %v4371_v45 = vmax.f32 %v3947_v1, %v14128_v11 }
 0x440   : > { %v9201_v21 = vmax.f32 %v8561_v15, %v14791_v23  ;;  %v8527_v29 = vcombine.high %v8525_v35, %v8525_v35  ;;  %v14724_v16 = vrot.slane %v8518_v55, 9  ;;  %v14725_v39 = vrot.slane %v8526_v6, 9  ;;  %v20184_v15 = vld [vmem:[#allocation2 + $0xf1] sm:$0xff] }
 0x441   : > { %v14131_v46 = vrot.slane %v3956_v20, 9  ;;  %v4372_v33 = vmax.f32 %v3955_v5, %v14129_v2  ;;  %v4373_v3 = vmax.f32 %v3954_v25, %v14130_v49  ;;  %v4691_v22 = vmax.f32 %v4371_v45, %v20045_v28  ;;  %v11179_v2 = vld [vmem:[#allocation2 + $0x92] sm:$0xff]  ;;  %v9659_v49 = vld [vmem:[#allocation2] sm:$0xff] }
 0x442   : > { %v14726_v60 = vrot.slane %v8525_v35, 9  ;;  %v14727_v53 = vrot.slane %v8527_v29, 9  ;;  %v8942_v24 = vmax.f32 %v8518_v55, %v14724_v16  ;;  %v8943_v7 = vmax.f32 %v8526_v6, %v14725_v39  ;;  %v20180_v55 = vld [vmem:[#allocation2 + $0x62] sm:$0xff]  ;;  %v20221_v45 = vld [vmem:[#allocation2 + $0x10] sm:$0xff] }
 0x443   : > { %v4374_v32 = vmax.f32 %v3956_v20, %v14131_v46  ;;  %v4692_v41 = vmax.f32 %v4372_v33, %v20047_v38  ;;  %v4693_v54 = vmax.f32 %v4373_v3, %v20053_v50  ;;  %v5002_v10 = vrot.slane %v4691_v22, %v19222_v13  ;;  %v20219_v20 = vld [vmem:[#allocation2 + $0x111] sm:$0xff]  ;;  %v20227_v16 = vld [vmem:[#allocation2 + $0x42] sm:$0xff] }
 0x444   : > { %v8944_v9 = vmax.f32 %v8525_v35, %v14726_v60  ;;  %v8945_v18 = vmax.f32 %v8527_v29, %v14727_v53  ;;  %v9262_v8 = vmax.f32 %v8942_v24, %v9198_v63  ;;  %v9263_v26 = vmax.f32 %v8943_v7, %v9199_v17  ;;  %v20201_v35 = vld [vmem:[#allocation2 + $0xe1] sm:$0xff]  ;;  %v20231_v46 = vld [vmem:[#allocation2 + $0xd2] sm:$0xff] }
 0x445   : > { %v4694_v28 = vmax.f32 %v4374_v32, %v20055_v30  ;;  %v5006_v40 = vrot.slane %v4692_v41, %v19222_v13  ;;  %v5010_v47 = vrot.slane %v4693_v54, %v19222_v13  ;;  %v5074_v38 = vsel %vm5021_vm4, %v5002_v10, %v20061_v31  ;;  %v20225_v29 = vld [vmem:[#allocation2 + $0x22] sm:$0xff]  ;;  %v20242_v53 = vld [vmem:[#allocation2 + $0x12] sm:$0xff] }
 0x446   : > { %v9264_v50 = vmax.f32 %v8944_v9, %v9200_v52  ;;  %v9265_v4 = vmax.f32 %v8945_v18, %v9201_v21  ;;  %v9573_v1 = vrot.slane %v9262_v8, %v19222_v13  ;;  %v9577_v57 = vrot.slane %v9263_v26, %v19222_v13  ;;  %v20223_v21 = vld [vmem:[#allocation2 + $0x101] sm:$0xff]  ;;  %v20244_v24 = vld [vmem:[#allocation2 + $0x32] sm:$0xff] }
 0x447   : > { %v5014_v30 = vrot.slane %v4694_v28, %v19222_v13  ;;  %v5075_v62 = vsel %vm5023_vm5, %v5006_v40, %v5074_v38  ;;  %v20190_v42 = vpack.c.bf16 %v20169_v56, %v20180_v55  ;;  %v20194_v31 = vpack.c.bf16 %v20171_v58, %v20182_v0  ;;  %v20229_v39 = vld [vmem:[#allocation2 + $0xc2] sm:$0xff]  ;;  %v20254_v54 = vld [vmem:[#allocation2 + $0x52] sm:$0xff] }
 0x448   : > { %v5076_v63 = vsel %vm5025_vm6, %v5010_v47, %v5075_v62  ;;  %v9581_v25 = vrot.slane %v9264_v50, %v19222_v13  ;;  %v9585_v5 = vrot.slane %v9265_v4, %v19222_v13  ;;  %v9638_v11 = vsel %vm5021_vm4, %v9573_v1, %v20084_v27  ;;  %v20237_v3 = vld [vmem:[#allocation2 + $0xe2] sm:$0xff]  ;;  %v20269_v40 = vld [vmem:[#allocation2 + $0xf2] sm:$0xff] }
 0x449   : > { %v5077_v23 = vsel %vm5027_vm7, %v5014_v30, %v5076_v63  ;;  %v9639_v17 = vsel %vm5023_vm5, %v9577_v57, %v9638_v11  ;;  %16642 = vmatprep.mubr.msk.bf16.mxu1 %vm462_vm0, %v20190_v42  ;;  %16455 = vmatmul.mubr.msk.bf16.gmra.mrb[40].mxu0 %vm462_vm0, %v20194_v31  ;;  %v20211_v52 = vpack.c.bf16 %v20184_v15, %v20201_v35  ;;  %v20240_v60 = vld [vmem:[#allocation2 + $0x102] sm:$0xff]  ;;  %v20272_v47 = vld [vmem:[#allocation2 + $0xb2] sm:$0xff] }
 0x44a   : > { %5093 = vst.msk [vmem:[#allocation2 + $0x81] sm:$0xff] %vm462_vm0, %v5077_v23  ;;  %v9640_v27 = vsel %vm5025_vm6, %v9581_v25, %v9639_v17  ;;  %v20235_v33 = vpack.c.bf16 %v20219_v20, %v20223_v21  ;;  %v9675_v22 = vpack.c.bf16 %v20221_v45, %v9659_v49  ;;  %v20267_v28 = vpack.c.bf16 %v20231_v46, %v20229_v39  ;;  %v20276_v50 = vld [vmem:[#allocation2 + $0x112] sm:$0xff]  ;;  %v20297_v11 = vld [vmem:[#allocation2 + $0x20] sm:$0xff]  ;;  %v17901_v13 = vld [vmem:[%s19195_s21 + $0x68] sm:$0xff]  }
 0x44b   : > { %21322 = vst [vmem:[#allocation5_spill] sm:$0xff] %v20211_v52  ;;  %v9641_v6 = vsel %vm5027_vm7, %v9585_v5, %v9640_v27  ;;  %16458 = vmatprep.mubr.msk.bf16.mxu0 %vm462_vm0, %v20211_v52  ;;  %v20289_v63 = vld [vmem:[#allocation2 + $0x30] sm:$0xff]  ;;  %v20303_v17 = vld [vmem:[#allocation2 + $0x40] sm:$0xff]  ;;  %v17897_v27 = vld [vmem:[%s19195_s21 + $0x48] sm:$0xff]   ;;  %v11194_v49 = vpack.c.bf16 %v20276_v50, %v20240_v60  ;;  %v20362_v7 = vpack.c.bf16 %v20244_v24, %v20225_v29 }
 0x44c   : > { %9658 = vst.msk [vmem:[#allocation2 + $0x121] sm:$0xff] %vm462_vm0, %v9641_v6  ;;  %21323 = vst [vmem:[#allocation6_spill] sm:$0xff] %v20235_v33  ;;  %v20295_v5 = vld [vmem:[#allocation2 + $0x50] sm:$0xff]  ;;  %v20301_v23 = vpack.c.bf16 %v20289_v63, %v20297_v11  ;;  %v9665_v62 = vld [vmem:[#allocation2 + $0x60] sm:$0xff]  ;;  %v20367_v61 = vpack.c.bf16 %v20254_v54, %v20227_v16 }
 0x44d   : > { %v20308_v6 = vpack.c.bf16 %v20295_v5, %v20303_v17  ;;  %v20327_v25 = vld [vmem:[#allocation2 + $0xb0] sm:$0xff]  ;;  %v17899_v57 = vld [vmem:[%s19195_s21 + $0x58] sm:$0xff]   ;;  %v17900_v8 = vld [vmem:[%s19195_s21 + $0x60] sm:$0xff]   ;;  %21324 = vst [vmem:[#allocation7_spill] sm:$0xff] %v20362_v7 }
 0x44e   : > { %v11187_v30 = vld [vmem:[#allocation2 + $0x132] sm:$0xff]  ;;  %v9679_v1 = vpack.c.bf16 %v20327_v25, %v9667_v48  ;;  %v9669_v9 = vld [vmem:[#allocation2 + $0xc0] sm:$0xff] }
 0x44f   : > { %v20342_v18 = vld [vmem:[#allocation2 + $0xf0] sm:$0xff]  ;;  %v9671_v10 = vld [vmem:[#allocation2 + $0xe0] sm:$0xff] }
 0x451   : > { %v20250_v41 = vld [vmem:[#allocation2 + $0x82] sm:$0xff]  ;;  %16459 = vmatmul.mubr.msk.bf16.gmra.mrb[44].mxu0 %vm462_vm0, %v20235_v33  ;;  %v17903_v33 = vld [vmem:[%s19195_s21 + $0x78] sm:$0xff]  }
 0x452   : > { %v11191_v26 = vpack.c.bf16 %v11179_v2, %v20250_v41  ;;  %16470 = vmatprep.mubr.msk.bf16.mxu0 %vm462_vm0, %v9675_v22  ;;  %v20314_v2 = vpack.c.bf16 %v20269_v40, %v20237_v3  ;;  %v17898_v22 = vld [vmem:[%s19195_s21 + $0x50] sm:$0xff]  }
 0x453   : > { %v20278_v4 = vld [vmem:[#allocation2 + $0x122] sm:$0xff] }
 0x454   : > { %16643 = vmatmul.mubr.msk.bf16.vlgmr.msra.gmra.mrb[32].mxu1 %vm462_vm0, %v11191_v26  ;;  %v20324_v26 = vld [vmem:[#allocation2 + $0x70] sm:$0xff]  ;;  %v11195_v38 = vpack.c.bf16 %v11187_v30, %v20278_v4  ;;  %v20348_v30 = vpack.c.bf16 %v20342_v18, %v9671_v10 }
 0x455   : > { %16646 = vmatprep.mubr.msk.bf16.mxu1 %vm462_vm0, %v20267_v28 }
 0x459   : > { %16471 = vmatmul.mubr.msk.bf16.vlgmr.msra.gmra.mrb[32].mxu0 %vm462_vm0, %v20301_v23 }
 0x45a   : > { %16474 = vmatprep.mubr.msk.bf16.mxu0 %vm462_vm0, %v20308_v6  ;;  %16487 = vmatpush3.bf16.msra.mxu0 %v19995_v44  ;;  %v20330_v44 = vpack.c.bf16 %v20324_v26, %v9665_v62 }
 0x45b   : > { %16488 = vmatprep.subr.bf16.mxu0 %v17897_v27 }
 0x45c   : > { %16647 = vmatmul.mubr.msk.bf16.gmra.mrb[36].mxu1 %vm462_vm0, %v20314_v2 }
 0x45d   : > { %16650 = vmatprep.mubr.msk.bf16.mxu1 %vm462_vm0, %v11194_v49 }
 0x45e   : > { %16489 = vmatpush3.bf16.msra.mxu0 %v17897_v27  ;;  %v20340_v27 = vld [vmem:[#allocation2 + $0xd0] sm:$0xff] }
 0x45f   : > { %16490 = vmatprep.subr.bf16.mxu0 %v17898_v22  ;;  %v20345_v48 = vpack.c.bf16 %v20340_v27, %v9669_v9 }
 0x461   : > { %16475 = vmatmul.mubr.msk.bf16.gmra.mrb[36].mxu0 %vm462_vm0, %v20330_v44 }
 0x462   : > { %16478 = vmatprep.mubr.msk.bf16.mxu0 %vm462_vm0, %v9679_v1  ;;  %16491 = vmatpush3.bf16.msra.mxu0 %v17898_v22  ;;  %v10013_v1 = vld [vmem:[#allocation2 + $0x2] sm:$0xff] }
 0x463   : > { %16492 = vmatprep.subr.bf16.mxu0 %v17899_v57  ;;  %v9673_v22 = vld [vmem:[#allocation2 + $0x100] sm:$0xff]  ;;  %v10029_v32 = vpack.c.bf16 %v20242_v53, %v10013_v1  ;;  %v17902_v1 = vld [vmem:[%s19195_s21 + $0x70] sm:$0xff]  }
 0x464   : > { %16651 = vmatmul.mubr.msk.bf16.gmra.mrb[40].mxu1 %vm462_vm0, %v11195_v38  ;;  %v9674_v38 = vld [vmem:[#allocation2 + $0x110] sm:$0xff] }
 0x466   : > { %16493 = vmatpush3.bf16.msra.mxu0 %v17899_v57  ;;  %v20354_v57 = vpack.c.bf16 %v9674_v38, %v9673_v22 }
 0x467   : > { %16510 = vmatprep.subr.bf16.mxu0 %v17900_v8 }
 0x469   : > { %16479 = vmatmul.mubr.msk.bf16.gmra.mrb[40].mxu0 %vm462_vm0, %v20345_v48 }
 0x46a   : > { %16482 = vmatprep.mubr.msk.bf16.mxu0 %vm462_vm0, %v20348_v30 }
 0x471   : > { %16483 = vmatmul.mubr.msk.bf16.gmra.mrb[44].mxu0 %vm462_vm0, %v20354_v57 }
 0x472   : > { %16494 = vmatprep.mubr.msk.bf16.mxu0 %vm462_vm0, %v10029_v32  ;;  %v10021_v32 = vld [vmem:[#allocation2 + $0xa2] sm:$0xff] }
 0x473   : > { %v10033_v52 = vpack.c.bf16 %v20272_v47, %v10021_v32 }
 0x479   : > { %16495 = vmatmul.mubr.msk.bf16.vlgmr.msra.gmra.mrb[32].mxu0 %vm462_vm0, %v20362_v7  ;;  %v17904_v7 = vld [vmem:[%s19195_s21 + $0x80] sm:$0xff]  }
 0x47a   : > { %16498 = vmatprep.mubr.msk.bf16.mxu0 %vm462_vm0, %v20367_v61  ;;  %16511 = vmatpush3.bf16.msra.mxu0 %v17900_v8  ;;  %v17906_v8 = vld [vmem:[%s19195_s21 + $0x90] sm:$0xff]  }
 0x47b   : > { %16512 = vmatprep.subr.bf16.mxu0 %v17901_v13 }
 0x47e   : > { %16513 = vmatpush3.bf16.msra.mxu0 %v17901_v13  ;;  %v10222_v13 = vpack.c.bf16 %v20297_v11, %v20221_v45  ;;  %v17907_v11 = vld [vmem:[%s19195_s21 + $0x98] sm:$0xff]  }
 0x47f   : > { %16514 = vmatprep.subr.bf16.mxu0 %v17902_v1 }
 0x481   : > { %16499 = vmatmul.mubr.msk.bf16.gmra.mrb[36].mxu0 %vm462_vm0, %v20190_v42  ;;  %v10223_v42 = vpack.c.bf16 %v20303_v17, %v20289_v63  ;;  %v10226_v63 = vpack.c.bf16 %v9669_v9, %v20327_v25  ;;  %v20408_v9 = vld [vmem:[#allocation2 + $0x120] sm:$0xff]  ;;  %v10399_v17 = vld [vmem:[#allocation2 + $0x11] sm:$0xff] }
 0x482   : > { %16502 = vmatprep.mubr.msk.bf16.mxu0 %vm462_vm0, %v10033_v52  ;;  %16515 = vmatpush3.bf16.msra.mxu0 %v17902_v1  ;;  %v17905_v52 = vld [vmem:[%s19195_s21 + $0x88] sm:$0xff]   ;;  %v10229_v25 = vpack.c.bf16 %v20408_v9, %v9674_v38  ;;  %v21329_v38 = vpack.c.bf16 %v20225_v29, %v20242_v53  ;;  %v21332_v29 = vpack.c.bf16 %v20250_v41, %v20169_v56  ;;  %v17919_v41 = vld [vmem:[%s19195_s21 + $0xf8] sm:$0xff]   ;;  %v21337_v1 = vld [vmem:[#allocation5_spill] sm:$0xff] }
 0x483   : > { %16516 = vmatprep.subr.bf16.mxu0 %v17903_v33  ;;  %v21334_v53 = vpack.c.bf16 %v20237_v3, %v20231_v46  ;;  %v21335_v56 = vpack.c.bf16 %v20240_v60, %v20269_v40  ;;  %v17918_v46 = vld [vmem:[%s19195_s21 + $0xf0] sm:$0xff]  }
 0x484   : > { %v10793_v3 = vld [vmem:[#allocation2 + $0x90] sm:$0xff] }
 0x485   : > { %v10801_v40 = vld [vmem:[#allocation2 + $0x130] sm:$0xff] }
 0x486   : > { %16517 = vmatpush3.bf16.msra.mxu0 %v17903_v33  ;;  %v10224_v33 = vpack.c.bf16 %v9665_v62, %v20295_v5  ;;  %v10227_v62 = vpack.c.bf16 %v9671_v10, %v20340_v27  ;;  %v10228_v5 = vpack.c.bf16 %v9673_v22, %v20342_v18  ;;  %v10416_v10 = vpack.c.bf16 %v20063_v37, %v19964_v43  ;;  %v17909_v18 = vld [vmem:[%s19195_s21 + $0xa8] sm:$0xff]   ;;  %v17911_v43 = vld [vmem:[%s19195_s21 + $0xb8] sm:$0xff]  }
 0x487   : > { %16534 = vmatprep.subr.bf16.mxu0 %v17904_v7  ;;  %v21326_v37 = vpack.c.bf16 %v20182_v0, %v20080_v14  ;;  %v20442_v14 = vld [vmem:[#allocation2 + $0x121] sm:$0xff]  ;;  %v17931_v22 = vld [vmem:[%s19195_s21 + $0x118] sm:$0xff]  }
 0x488   : > { %v10422_v0 = vpack.c.bf16 %v20442_v14, %v20219_v20  ;;  %v17914_v20 = vld [vmem:[%s19195_s21 + $0xd0] sm:$0xff]  }
 0x489   : > { %16503 = vmatmul.mubr.msk.bf16.gmra.mrb[40].mxu0 %vm462_vm0, %v20267_v28  ;;  %v20395_v28 = vld [vmem:[#allocation2 + $0x80] sm:$0xff] }
 0x48a   : > { %16506 = vmatprep.mubr.msk.bf16.mxu0 %vm462_vm0, %v20314_v2  ;;  %v10225_v45 = vpack.c.bf16 %v20395_v28, %v20324_v26  ;;  %v10415_v2 = vpack.c.bf16 %v19972_v19, %v10399_v17  ;;  %v17910_v26 = vld [vmem:[%s19195_s21 + $0xb0] sm:$0xff]   ;;  %v20423_v19 = vld [vmem:[#allocation2 + $0x81] sm:$0xff]  ;;  %v10805_v60 = vpack.c.bf16 %v10793_v3, %v20395_v28 }
 0x48b   : > { %v10418_v27 = vpack.c.bf16 %v20423_v19, %v20065_v34  ;;  %v21327_v34 = vpack.c.bf16 %v20201_v35, %v20171_v58  ;;  %v17913_v58 = vld [vmem:[%s19195_s21 + $0xc8] sm:$0xff]   ;;  %v21330_v35 = vpack.c.bf16 %v20227_v16, %v20244_v24  ;;  %v21333_v16 = vpack.c.bf16 %v20229_v39, %v20272_v47  ;;  %v10980_v47 = vld [vmem:[#allocation2 + $0x31] sm:$0xff] }
 0x48c   : > { %v21336_v39 = vpack.c.bf16 %v20278_v4, %v20276_v50  ;;  %v17917_v24 = vld [vmem:[%s19195_s21 + $0xe8] sm:$0xff]   ;;  %v10809_v50 = vpack.c.bf16 %v10801_v40, %v20408_v9  ;;  %v14966_v9 = vld [vmem:[%s20546_s12 + $0x40] sm:$0xff]  ;;  %v14968_v17 = vld [vmem:[%s20546_s12 + $0x50] sm:$0xff] }
 0x48d   : > { %v10979_v4 = vld [vmem:[#allocation2 + $0x21] sm:$0xff] }
 0x48e   : > { %v20584_v40 = vld [vmem:[%s20546_s12] sm:$0xff] }
 0x491   : > { %16507 = vmatmul.mubr.msk.bf16.gmra.mrb[44].mxu0 %vm462_vm0, %v11194_v49  ;;  %v21325_v49 = vpack.c.bf16 %v20078_v12, %v20049_v51  ;;  %v17912_v51 = vld [vmem:[%s19195_s21 + $0xc0] sm:$0xff]   ;;  %v21328_v12 = vpack.c.bf16 %v20223_v21, %v20184_v15  ;;  %v21331_v15 = vpack.c.bf16 %v20180_v55, %v20254_v54  ;;  %v17915_v21 = vld [vmem:[%s19195_s21 + $0xd8] sm:$0xff]  }
 0x492   : > { %16518 = vmatprep.mubr.msk.bf16.mxu0 %vm462_vm0, %v10222_v13  ;;  %v17916_v55 = vld [vmem:[%s19195_s21 + $0xe0] sm:$0xff]   ;;  %v21338_v13 = vld [vmem:[#allocation6_spill] sm:$0xff] }
 0x493   : > { %v17928_v54 = vld [vmem:[%s19195_s21 + $0x100] sm:$0xff]  }
 0x499   : > { %16519 = vmatmul.mubr.msk.bf16.vlgmr.msra.gmra.mrb[32].mxu0 %vm462_vm0, %v10223_v42  ;;  %v10994_v42 = vld [vmem:[#allocation2 + $0x131] sm:$0xff] }
 0x49a   : > { %16522 = vmatprep.mubr.msk.bf16.mxu0 %vm462_vm0, %v10224_v33  ;;  %16535 = vmatpush3.bf16.msra.mxu0 %v17904_v7  ;;  %v17908_v7 = vld [vmem:[%s19195_s21 + $0xa0] sm:$0xff]  }
 0x49b   : > { %16536 = vmatprep.subr.bf16.mxu0 %v17905_v52 }
 0x49e   : > { %16537 = vmatpush3.bf16.msra.mxu0 %v17905_v52 }
 0x49f   : > { %16538 = vmatprep.subr.bf16.mxu0 %v17906_v8 }
 0x4a1   : > { %16523 = vmatmul.mubr.msk.bf16.gmra.mrb[36].mxu0 %vm462_vm0, %v10225_v45  ;;  %v21339_v45 = vld [vmem:[#allocation7_spill] sm:$0xff] }
 0x4a2   : > { %16526 = vmatprep.mubr.msk.bf16.mxu0 %vm462_vm0, %v10226_v63  ;;  %16539 = vmatpush3.bf16.msra.mxu0 %v17906_v8 }
 0x4a3   : > { %16540 = vmatprep.subr.bf16.mxu0 %v17907_v11 }
 0x4a6   : > { %16541 = vmatpush3.bf16.msra.mxu0 %v17907_v11 }
 0x4a7   : > { %16558 = vmatprep.subr.bf16.mxu0 %v17908_v7 }
 0x4a9   : > { %16527 = vmatmul.mubr.msk.bf16.gmra.mrb[40].mxu0 %vm462_vm0, %v10227_v62 }
 0x4aa   : > { %16530 = vmatprep.mubr.msk.bf16.mxu0 %vm462_vm0, %v10228_v5  ;;  %v21275_v5 = vmov 0.0|0.0  }
 0x4ab   : > { %16958 = vmatprep.subr.bf16.mxu1 %v21275_v5 }
 0x4b1   : > { %16531 = vmatmul.mubr.msk.bf16.gmra.mrb[44].mxu0 %vm462_vm0, %v10229_v25 }
 0x4b2   : > { %16542 = vmatprep.mubr.msk.bf16.mxu0 %vm462_vm0, %v10415_v2  ;;  %v14969_v2 = vld [vmem:[%s20546_s12 + $0x58] sm:$0xff] }
 0x4b9   : > { %16543 = vmatmul.mubr.msk.bf16.vlgmr.msra.gmra.mrb[32].mxu0 %vm462_vm0, %v10416_v10  ;;  %v14970_v10 = vld [vmem:[%s20546_s12 + $0x60] sm:$0xff] }
 0x4ba   : > { %16546 = vmatprep.mubr.msk.bf16.mxu0 %vm462_vm0, %v21325_v49  ;;  %16559 = vmatpush3.bf16.msra.mxu0 %v17908_v7  ;;  %v14971_v49 = vld [vmem:[%s20546_s12 + $0x68] sm:$0xff] }
 0x4bb   : > { %16560 = vmatprep.subr.bf16.mxu0 %v17909_v18 }
 0x4be   : > { %16561 = vmatpush3.bf16.msra.mxu0 %v17909_v18  ;;  %v16962_v18 = vpack.c.bf16 %v14969_v2, %v14968_v17 }
 0x4bf   : > { %16562 = vmatprep.subr.bf16.mxu0 %v17910_v26 }
 0x4c1   : > { %16547 = vmatmul.mubr.msk.bf16.gmra.mrb[36].mxu0 %vm462_vm0, %v10418_v27  ;;  %v14972_v27 = vld [vmem:[%s20546_s12 + $0x70] sm:$0xff] }
 0x4c2   : > { %16550 = vmatprep.mubr.msk.bf16.mxu0 %vm462_vm0, %v21326_v37  ;;  %16563 = vmatpush3.bf16.msra.mxu0 %v17910_v26  ;;  %v21340_v26 = vmov 0.0  }
 0x4c3   : > { %16564 = vmatprep.subr.bf16.mxu0 %v17911_v43  ;;  %16670 = vmatprep.mubr.msk.f32.mxu1 %vm17943_vm10, %v21340_v26 }
 0x4c6   : > { %16565 = vmatpush3.bf16.msra.mxu0 %v17911_v43  ;;  %v14973_v43 = vld [vmem:[%s20546_s12 + $0x78] sm:$0xff] }
 0x4c7   : > { %16582 = vmatprep.subr.bf16.mxu0 %v17912_v51  ;;  %v16968_v37 = vpack.c.bf16 %v14973_v43, %v14972_v27 }
 0x4c9   : > { %16551 = vmatmul.mubr.msk.bf16.gmra.mrb[40].mxu0 %vm462_vm0, %v21327_v34 }
 0x4ca   : > { %16554 = vmatprep.mubr.msk.bf16.mxu0 %vm462_vm0, %v21328_v12 }
 0x4d1   : > { %16555 = vmatmul.mubr.msk.bf16.gmra.mrb[44].mxu0 %vm462_vm0, %v10422_v0  ;;  %v20572_v0 = vld [vmem:[%s448_s18] ss:$0 sm:$0xff] }
 0x4d2   : > { %16566 = vmatprep.mubr.msk.bf16.mxu0 %vm462_vm0, %v21329_v38 }
 0x4d9   : > { %16567 = vmatmul.mubr.msk.bf16.vlgmr.msra.gmra.mrb[32].mxu0 %vm462_vm0, %v21330_v35 }
 0x4da   : > { %16570 = vmatprep.mubr.msk.bf16.mxu0 %vm462_vm0, %v21331_v15  ;;  %16583 = vmatpush3.bf16.msra.mxu0 %v17912_v51  ;;  %v20570_v51 = vld [vmem:[%s445_s15] ss:$0 sm:$0xff] }
 0x4db   : > { %16584 = vmatprep.subr.bf16.mxu0 %v17913_v58 }
 0x4de   : > { %16585 = vmatpush3.bf16.msra.mxu0 %v17913_v58 }
 0x4df   : > { %16586 = vmatprep.subr.bf16.mxu0 %v17914_v20 }
 0x4e1   : > { %16571 = vmatmul.mubr.msk.bf16.gmra.mrb[36].mxu0 %vm462_vm0, %v21332_v29 }
 0x4e2   : > { %16574 = vmatprep.mubr.msk.bf16.mxu0 %vm462_vm0, %v21333_v16  ;;  %16587 = vmatpush3.bf16.msra.mxu0 %v17914_v20 }
 0x4e3   : > { %16588 = vmatprep.subr.bf16.mxu0 %v17915_v21 }
 0x4e6   : > { %16589 = vmatpush3.bf16.msra.mxu0 %v17915_v21 }
 0x4e7   : > { %16606 = vmatprep.subr.bf16.mxu0 %v17916_v55 }
 0x4e9   : > { %16575 = vmatmul.mubr.msk.bf16.gmra.mrb[40].mxu0 %vm462_vm0, %v21334_v53 }
 0x4ea   : > { %16578 = vmatprep.mubr.msk.bf16.mxu0 %vm462_vm0, %v21335_v56 }
 0x4f1   : > { %16579 = vmatmul.mubr.msk.bf16.gmra.mrb[44].mxu0 %vm462_vm0, %v21336_v39 }
 0x4f2   : > { %16590 = vmatprep.mubr.msk.bf16.mxu0 %vm462_vm0, %v20301_v23  ;;  %v10995_v23 = vpack.c.bf16 %v10980_v47, %v10979_v4 }
 0x4f9   : > { %16591 = vmatmul.mubr.msk.bf16.vlgmr.msra.gmra.mrb[32].mxu0 %vm462_vm0, %v20308_v6  ;;  %v17929_v6 = vld [vmem:[%s19195_s21 + $0x108] sm:$0xff]  }
 0x4fa   : > { %16594 = vmatprep.mubr.msk.bf16.mxu0 %vm462_vm0, %v20330_v44  ;;  %16607 = vmatpush3.bf16.msra.mxu0 %v17916_v55  ;;  %v10986_v44 = vld [vmem:[#allocation2 + $0x91] sm:$0xff] }
 0x4fb   : > { %16608 = vmatprep.subr.bf16.mxu0 %v17917_v24 }
 0x4fe   : > { %16609 = vmatpush3.bf16.msra.mxu0 %v17917_v24 }
 0x4ff   : > { %16610 = vmatprep.subr.bf16.mxu0 %v17918_v46 }
 0x501   : > { %16595 = vmatmul.mubr.msk.bf16.gmra.mrb[36].mxu0 %vm462_vm0, %v10805_v60  ;;  %v21341_v60 = vld [vmem:[#allocation3_spill] sm:$0xff] }
 0x502   : > { %16598 = vmatprep.mubr.msk.bf16.mxu0 %vm462_vm0, %v20345_v48  ;;  %16611 = vmatpush3.bf16.msra.mxu0 %v17918_v46  ;;  %v10998_v48 = vpack.c.bf16 %v10986_v44, %v20423_v19  ;;  %v16965_v19 = vpack.c.bf16 %v14971_v49, %v14970_v10  ;;  %v20594_v44 = vld [vmem:[%s20546_s12 + $0x18] sm:$0xff] }
 0x503   : > { %16612 = vmatprep.subr.bf16.mxu0 %v17919_v41 }
 0x506   : > { %16613 = vmatpush3.bf16.msra.mxu0 %v17919_v41 }
 0x507   : > { %16630 = vmatprep.subr.bf16.mxu0 %v17928_v54 }
 0x509   : > { %16599 = vmatmul.mubr.msk.bf16.gmra.mrb[40].mxu0 %vm462_vm0, %v20348_v30  ;;  %v17930_v30 = vld [vmem:[%s19195_s21 + $0x110] sm:$0xff]   ;;  %s456_s21 = scalar_lea.vmem %s21257_s8, %s21423_s10 }
 0x50a   : > { %16602 = vmatprep.mubr.msk.bf16.mxu0 %vm462_vm0, %v20354_v57 }
 0x511   : > { %16603 = vmatmul.mubr.msk.bf16.gmra.mrb[44].mxu0 %vm462_vm0, %v10809_v50 }
 0x512   : > { %16614 = vmatprep.mubr.msk.bf16.mxu0 %vm462_vm0, %v10995_v23  ;;  %v20588_v23 = vld [vmem:[%s20546_s12 + $0x8] sm:$0xff] }
 0x519   : > { %16615 = vmatmul.mubr.msk.bf16.vlgmr.msra.gmra.mrb[32].mxu0 %vm462_vm0, %v20073_v59 }
 0x51a   : > { %16618 = vmatprep.mubr.msk.bf16.mxu0 %vm462_vm0, %v20090_v36  ;;  %16631 = vmatpush3.bf16.msra.mxu0 %v17928_v54 }
 0x51b   : > { %16632 = vmatprep.subr.bf16.mxu0 %v17929_v6 }
 0x51e   : > { %16633 = vmatpush3.bf16.msra.mxu0 %v17929_v6  ;;  %v20591_v6 = vld [vmem:[%s20546_s12 + $0x10] sm:$0xff] }
 0x51f   : > { %16634 = vmatprep.subr.bf16.mxu0 %v17930_v30 }
 0x521   : > { %16619 = vmatmul.mubr.msk.bf16.gmra.mrb[36].mxu0 %vm462_vm0, %v10998_v48 }
 0x522   : > { %16622 = vmatprep.mubr.msk.bf16.mxu0 %vm462_vm0, %v20194_v31  ;;  %16635 = vmatpush3.bf16.msra.mxu0 %v17930_v30  ;;  %v11002_v31 = vpack.c.bf16 %v10994_v42, %v20442_v14  ;;  %v20597_v30 = vld [vmem:[%s20546_s12 + $0x20] sm:$0xff] }
 0x523   : > { %16636 = vmatprep.subr.bf16.mxu0 %v17931_v22  ;;  %21342 = vst [vmem:[#allocation8_spill] sm:$0xff] %v20597_v30 }
 0x526   : > { %16637 = vmatpush3.bf16.msra.mxu0 %v17931_v22  ;;  %v20600_v22 = vld [vmem:[%s20546_s12 + $0x28] sm:$0xff] }
 0x527   : > { %v16644_v59 = vpop.f32.mrb[32].mxu1  ;;  %21343 = vst [vmem:[#allocation9_spill] sm:$0xff] %v20600_v22 }
 0x528   : > { %v11302_v36 = vpop.f32.mrb[33].mxu1 }
 0x529   : > { %v16645_v57 = vpop.f32.mrb[34].mxu1  ;;  %16623 = vmatmul.mubr.msk.bf16.gmra.mrb[40].mxu0 %vm462_vm0, %v21337_v1  ;;  %v20610_v1 = vld [vmem:[%s20546_s12 + $0x80] sm:$0xff] }
 0x52a   : > { %v11305_v32 = vpop.f32.mrb[35].mxu1  ;;  %16626 = vmatprep.mubr.msk.bf16.mxu0 %vm462_vm0, %v21338_v13  ;;  %21346 = vst [vmem:[#allocation7_spill] sm:$0xff] %v20610_v1 }
 0x52f   : > { %v20519_v52 = vpop.f32.mrb[36].mxu1 }
 0x530   : > { %v20522_v33 = vpop.f32.mrb[37].mxu1 }
 0x531   : > { %v20524_v8 = vpop.f32.mrb[38].mxu1  ;;  %16627 = vmatmul.mubr.msk.bf16.gmra.mrb[44].mxu0 %vm462_vm0, %v11002_v31 }
 0x532   : > { %v20527_v28 = vpop.f32.mrb[39].mxu1  ;;  %16638 = vmatprep.mubr.msk.bf16.mxu0 %vm462_vm0, %v21339_v45 }
 0x537   : > { %v20531_v11 = vpop.f32.mrb[40].mxu1 }
 0x538   : > { %v20533_v63 = vpop.f32.mrb[41].mxu1 }
 0x539   : > { %v20535_v7 = vpop.f32.mrb[42].mxu1  ;;  %16639 = vmatmul.mubr.msk.bf16.vlgmr.msra.gmra.mrb[32].mxu0 %vm462_vm0, %v20367_v61  ;;  %v14967_v61 = vld [vmem:[%s20546_s12 + $0x48] sm:$0xff] }
 0x53a   : > { %v20539_v62 = vpop.f32.mrb[43].mxu1  ;;  %v16959_v25 = vpack.c.bf16 %v14967_v61, %v14966_v9 }
 0x53c   : > { %16960 = vmatpush3.bf16.msra.mxu1 %v16959_v25 }
 0x53d   : > { %16961 = vmatprep.subr.bf16.mxu1 %v21275_v5 }
 0x540   : > { %16963 = vmatpush3.bf16.msra.mxu1 %v16962_v18 }
 0x541   : > { %16964 = vmatprep.subr.bf16.mxu1 %v21275_v5 }
 0x544   : > { %16966 = vmatpush3.bf16.msra.mxu1 %v16965_v19 }
 0x545   : > { %16967 = vmatprep.subr.bf16.mxu1 %v21275_v5 }
 0x548   : > { %16969 = vmatpush3.bf16.msra.mxu1 %v16968_v37 }
 0x549   : > { %16970 = vmatprep.subr.bf16.mxu1 %v21275_v5 }
 0x5f4   : > { %v16620_v34 = vpop.f32.mrb[36].mxu0 }
 0x5f5   : > { %v17158_v12 = vadd.f32 %v16644_v59, %v16620_v34  ;;  %v11109_v14 = vpop.f32.mrb[37].mxu0  ;;  %v20603_v59 = vld [vmem:[%s20546_s12 + $0x30] sm:$0xff] }
 0x5f6   : > { %v17159_v38 = vadd.f32 %v11302_v36, %v11109_v14  ;;  %v16621_v58 = vpop.f32.mrb[38].mxu0  ;;  %21344 = vst [vmem:[#allocation5_spill] sm:$0xff] %v20603_v59 }
 0x5f7   : > { %v11377_v35 = vmul.f32 %v17158_v12, %v20570_v51  ;;  %v17160_v15 = vadd.f32 %v16645_v57, %v16621_v58  ;;  %v11112_v20 = vpop.f32.mrb[39].mxu0  ;;  %v20607_v57 = vld [vmem:[%s20546_s12 + $0x38] sm:$0xff] }
 0x5f8   : > { %v11375_v21 = vmul.f32 %v17159_v38, %v20570_v51  ;;  %v17161_v29 = vadd.f32 %v11305_v32, %v11112_v20  ;;  %21345 = vst [vmem:[#allocation6_spill] sm:$0xff] %v20607_v57  ;;  %v20613_v32 = vld [vmem:[%s20546_s12 + $0x88] sm:$0xff] }
 0x5f9   : > { %v11399_v16 = vadd.f32 %v20572_v0, %v11377_v35  ;;  %v11378_v55 = vmul.f32 %v17160_v15, %v20570_v51  ;;  %21347 = vst [vmem:[#allocation3_spill] sm:$0xff] %v20613_v32 }
 0x5fa   : > { %v11397_v53 = vadd.f32 %v20572_v0, %v11375_v21  ;;  %v11376_v56 = vmul.f32 %v17161_v29, %v20570_v51 }
 0x5fb   : > { %v11400_v39 = vadd.f32 %v20572_v0, %v11378_v55  ;;  %v11527_v24 = vcombine.high %v11399_v16, %v11399_v16  ;;  %v11534_v41 = vrot.slane %v11399_v16, %v21341_v60 }
 0x5fc   : > { %v11398_v46 = vadd.f32 %v20572_v0, %v11376_v56  ;;  %v16624_v3 = vpop.f32.mrb[40].mxu0  ;;  %v11493_v47 = vcombine.high %v11397_v53, %v11397_v53  ;;  %v11500_v50 = vrot.slane %v11397_v53, %v21341_v60 }
 0x5fd   : > { %v11125_v54 = vpop.f32.mrb[41].mxu0  ;;  %v11541_v36 = vrot.slane %v11527_v24, %v21341_v60  ;;  %v11542_v13 = vcombine.high %v11534_v41, %v11534_v41  ;;  %v14914_v42 = vrot.slane %v11534_v41, 9  ;;  %v11544_v61 = vcombine.high %v11400_v39, %v11400_v39 }
 0x5fe   : > { %v16625_v4 = vpop.f32.mrb[42].mxu0  ;;  %v11507_v45 = vrot.slane %v11493_v47, %v21341_v60  ;;  %v11508_v9 = vcombine.high %v11500_v50, %v11500_v50  ;;  %v14910_v17 = vrot.slane %v11500_v50, 9  ;;  %v11551_v19 = vrot.slane %v11400_v39, %v21341_v60 }
 0x5ff   : > { %v11128_v48 = vpop.f32.mrb[43].mxu0  ;;  %v20626_v49 = vcombine.high %v11541_v36, %v11541_v36  ;;  %v17162_v27 = vadd.f32 %v20519_v52, %v16624_v3  ;;  %v17163_v43 = vadd.f32 %v20522_v33, %v11125_v54  ;;  %v14915_v34 = vrot.slane %v11542_v13, 9 }
 0x600   : > { %v14916_v12 = vrot.slane %v11541_v36, 9  ;;  %v20631_v14 = vmax.f32 %v11534_v41, %v14914_v42  ;;  %v11510_v38 = vcombine.high %v11398_v46, %v11398_v46  ;;  %v20633_v35 = vcombine.high %v11507_v45, %v11507_v45 }
 0x601   : > { %21348 = vst [vmem:[#allocation10_spill] sm:$0xff] %v20626_v49  ;;  %v14911_v15 = vrot.slane %v11508_v9, 9  ;;  %v11558_v20 = vrot.slane %v11544_v61, %v21341_v60  ;;  %v11381_v21 = vmul.f32 %v17162_v27, %v20570_v51  ;;  %v14912_v16 = vrot.slane %v11507_v45, 9 }
 0x602   : > { %21349 = vst [vmem:[#allocation11_spill] sm:$0xff] %v20631_v14  ;;  %21350 = vst [vmem:[#allocation12_spill] sm:$0xff] %v20633_v35  ;;  %v20639_v52 = vmax.f32 %v11500_v50, %v14910_v17  ;;  %v11379_v33 = vmul.f32 %v17163_v43, %v20570_v51  ;;  %v17164_v55 = vadd.f32 %v20524_v8, %v16625_v4  ;;  %v14946_v4 = vrot.slane %v11551_v19, 9 }
 0x603   : > { %v11559_v56 = vcombine.high %v11551_v19, %v11551_v19  ;;  %v11517_v39 = vrot.slane %v11398_v46, %v21341_v60  ;;  %v11403_v24 = vadd.f32 %v20572_v0, %v11381_v21  ;;  %v17165_v3 = vadd.f32 %v20527_v28, %v11128_v48 }
 0x604   : > { %v16628_v37 = vpop.f32.mrb[44].mxu0  ;;  %21351 = vst [vmem:[#allocation13_spill] sm:$0xff] %v20639_v52  ;;  %v11524_v54 = vrot.slane %v11510_v38, %v21341_v60  ;;  %v11401_v47 = vadd.f32 %v20572_v0, %v11379_v33  ;;  %v11382_v50 = vmul.f32 %v17164_v55, %v20570_v51  ;;  %v20652_v42 = vmax.f32 %v11542_v13, %v14915_v34 }
 0x605   : > { %v11141_v58 = vpop.f32.mrb[45].mxu0  ;;  %v20654_v8 = vcombine.high %v11558_v20, %v11558_v20  ;;  %v11595_v61 = vcombine.high %v11403_v24, %v11403_v24  ;;  %v14948_v17 = vrot.slane %v11558_v20, 9  ;;  %v11602_v46 = vrot.slane %v11403_v24, %v21341_v60 }
 0x606   : > { %v20637_v29 = vpop.f32.mrb[46].mxu0  ;;  %21352 = vst [vmem:[#allocation14_spill] sm:$0xff] %v20652_v42  ;;  %v11404_v27 = vadd.f32 %v20572_v0, %v11382_v50  ;;  %v17166_v28 = vadd.f32 %v20531_v11, %v16628_v37  ;;  %v20659_v48 = vmax.f32 %v11541_v36, %v14916_v12  ;;  %v14947_v43 = vrot.slane %v11559_v56, 9 }
 0x607   : > { %v20643_v53 = vpop.f32.mrb[47].mxu0  ;;  %21353 = vst [vmem:[#allocation15_spill] sm:$0xff] %v20654_v8  ;;  %v11525_v38 = vcombine.high %v11517_v39, %v11517_v39  ;;  %v11561_v21 = vcombine.high %v11401_v47, %v11401_v47  ;;  %v20662_v34 = vcombine.high %v11524_v54, %v11524_v54  ;;  %v14942_v55 = vrot.slane %v11517_v39, 9 }
 0x608   : > { %21354 = vst [vmem:[#allocation16_spill] sm:$0xff] %v20659_v48  ;;  %v11380_v41 = vmul.f32 %v17165_v3, %v20570_v51  ;;  %v20667_v24 = vmax.f32 %v11508_v9, %v14911_v15  ;;  %v20669_v50 = vmax.f32 %v11507_v45, %v14912_v16  ;;  %v11609_v11 = vrot.slane %v11595_v61, %v21341_v60 }
 0x609   : > { %21355 = vst [vmem:[#allocation17_spill] sm:$0xff] %v20662_v34  ;;  %v11568_v36 = vrot.slane %v11401_v47, %v21341_v60  ;;  %v20676_v10 = vmax.f32 %v11551_v19, %v14946_v4  ;;  %v20678_v13 = vmax.f32 %v11558_v20, %v14948_v17  ;;  %v11610_v2 = vcombine.high %v11602_v46, %v11602_v46 }
 0x60a   : > { %21356 = vst [vmem:[#allocation18_spill] sm:$0xff] %v20667_v24  ;;  %21357 = vst [vmem:[#allocation19_spill] sm:$0xff] %v20669_v50  ;;  %v20682_v25 = vmax.f32 %v11559_v56, %v14947_v43  ;;  %v14943_v9 = vrot.slane %v11525_v38, 9  ;;  %v14944_v45 = vrot.slane %v11524_v54, 9  ;;  %v11575_v15 = vrot.slane %v11561_v21, %v21341_v60 }
 0x60b   : > { %21358 = vst [vmem:[#allocation20_spill] sm:$0xff] %v20676_v10  ;;  %21359 = vst [vmem:[#allocation21_spill] sm:$0xff] %v20678_v13  ;;  %v20686_v47 = vmax.f32 %v11517_v39, %v14942_v55  ;;  %v14922_v61 = vrot.slane %v11602_v46, 9  ;;  %v11402_v12 = vadd.f32 %v20572_v0, %v11380_v41  ;;  %v20689_v19 = vcombine.high %v11609_v11, %v11609_v11 }
 0x60c   : > { %v16640_v33 = vpop.f32.mrb[32].mxu0  ;;  %21360 = vst [vmem:[#allocation22_spill] sm:$0xff] %v20682_v25  ;;  %v11576_v20 = vcombine.high %v11568_v36, %v11568_v36  ;;  %v14918_v4 = vrot.slane %v11568_v36, 9  ;;  %v11612_v17 = vcombine.high %v11404_v27, %v11404_v27  ;;  %v14923_v5 = vrot.slane %v11610_v2, 9 }
 0x60d   : > { %v20665_v18 = vpop.f32.mrb[33].mxu0  ;;  %v11619_v56 = vrot.slane %v11404_v27, %v21341_v60  ;;  %v11385_v43 = vmul.f32 %v17166_v28, %v20570_v51  ;;  %v17167_v31 = vadd.f32 %v20533_v63, %v11141_v58  ;;  %v20694_v21 = vmax.f32 %v11525_v38, %v14943_v9 }
 0x60e   : > { %v20673_v37 = vpop.f32.mrb[34].mxu0  ;;  %v20696_v16 = vmax.f32 %v11524_v54, %v14944_v45  ;;  %v14924_v39 = vrot.slane %v11609_v11, 9  ;;  %v20698_v55 = vcombine.high %v11575_v15, %v11575_v15  ;;  %v20700_v41 = vmax.f32 %v11602_v46, %v14922_v61 }
 0x60f   : > { %v20680_v3 = vpop.f32.mrb[35].mxu0  ;;  %21361 = vst [vmem:[#allocation23_spill] sm:$0xff] %v20694_v21  ;;  %v11578_v8 = vcombine.high %v11402_v12, %v11402_v12  ;;  %v11585_v49 = vrot.slane %v11402_v12, %v21341_v60  ;;  %v11407_v1 = vadd.f32 %v20572_v0, %v11385_v43  ;;  %v14919_v32 = vrot.slane %v11576_v20, 9 }
 0x610   : > { %21362 = vst [vmem:[#allocation24_spill] sm:$0xff] %v20696_v16  ;;  %v14920_v28 = vrot.slane %v11575_v15, 9  ;;  %v20705_v48 = vmax.f32 %v11568_v36, %v14918_v4  ;;  %v20707_v63 = vmax.f32 %v11610_v2, %v14923_v5  ;;  %v11626_v58 = vrot.slane %v11612_v17, %v21341_v60 }
 0x611   : > { %v11627_v54 = vcombine.high %v11619_v56, %v11619_v56  ;;  %v11383_v38 = vmul.f32 %v17167_v31, %v20570_v51  ;;  %v20711_v46 = vmax.f32 %v11609_v11, %v14924_v39  ;;  %v14954_v12 = vrot.slane %v11619_v56, 9 }
 0x612   : > { %v17168_v45 = vadd.f32 %v20535_v7, %v20637_v29  ;;  %v11592_v61 = vrot.slane %v11578_v8, %v21341_v60  ;;  %v11593_v43 = vcombine.high %v11585_v49, %v11585_v49  ;;  %v11663_v36 = vcombine.high %v11407_v1, %v11407_v1 }
 0x613   : > { %v11405_v5 = vadd.f32 %v20572_v0, %v11383_v38  ;;  %v11670_v2 = vrot.slane %v11407_v1, %v21341_v60  ;;  %v17169_v31 = vadd.f32 %v20539_v62, %v20643_v53  ;;  %v11373_v11 = vmul.f32 %v16640_v33, %v20570_v51 }
 0x614   : > { %v11386_v4 = vmul.f32 %v17168_v45, %v20570_v51  ;;  %v20723_v17 = vmax.f32 %v11576_v20, %v14919_v32  ;;  %v20725_v39 = vcombine.high %v11626_v58, %v11626_v58  ;;  %v14955_v7 = vrot.slane %v11627_v54, 9 }
 0x615   : > { %v14956_v29 = vrot.slane %v11626_v58, 9  ;;  %v14950_v8 = vrot.slane %v11585_v49, 9  ;;  %v11629_v27 = vcombine.high %v11405_v5, %v11405_v5  ;;  %v11384_v38 = vmul.f32 %v17169_v31, %v20570_v51 }
 0x616   : > { %v11408_v9 = vadd.f32 %v20572_v0, %v11386_v4  ;;  %v20729_v1 = vmax.f32 %v11575_v15, %v14920_v28  ;;  %v20731_v45 = vcombine.high %v11592_v61, %v11592_v61  ;;  %v11677_v62 = vrot.slane %v11663_v36, %v21341_v60 }
 0x617   : > { %v11395_v53 = vadd.f32 %v20572_v0, %v11373_v11  ;;  %v20735_v32 = vmax.f32 %v11619_v56, %v14954_v12  ;;  %v14951_v33 = vrot.slane %v11593_v43, 9  ;;  %v11678_v20 = vcombine.high %v11670_v2, %v11670_v2 }
 0x618   : > { %v11636_v13 = vrot.slane %v11405_v5, %v21341_v60  ;;  %v20739_v25 = vmax.f32 %v11626_v58, %v14956_v29  ;;  %v14952_v4 = vrot.slane %v11592_v61, 9  ;;  %v11406_v15 = vadd.f32 %v20572_v0, %v11384_v38 }
 0x619   : > { %v20742_v28 = vmax.f32 %v11627_v54, %v14955_v7  ;;  %v20744_v31 = vmax.f32 %v11585_v49, %v14950_v8  ;;  %v20747_v36 = vrot.slane %v11629_v27, %v21341_v60  ;;  %v11680_v56 = vcombine.high %v11408_v9, %v11408_v9 }
 0x61a   : > { %v20750_v11 = vcombine.high %v11677_v62, %v11677_v62  ;;  %v14930_v5 = vrot.slane %v11670_v2, 9  ;;  %v11459_v59 = vcombine.high %v11395_v53, %v11395_v53  ;;  %v20752_v42 = vmax.f32 %v11593_v43, %v14951_v33 }
 0x61b   : > { %v14931_v58 = vrot.slane %v11678_v20, 9  ;;  %v14932_v29 = vrot.slane %v11677_v62, 9  ;;  %v20754_v57 = vcombine.high %v11636_v13, %v11636_v13  ;;  %v20756_v54 = vmax.f32 %v11592_v61, %v14952_v4 }
 0x61c   : > { %21363 = vst [vmem:[#allocation25_spill] sm:$0xff] %v20750_v11  ;;  %v14926_v49 = vrot.slane %v11636_v13, 9  ;;  %v20759_v7 = vrot.slane %v11408_v9, %v21341_v60  ;;  %v11466_v27 = vrot.slane %v11395_v53, %v21341_v60  ;;  %v20764_v8 = vcombine.high %v20747_v36, %v20747_v36 }
 0x61d   : > { %v20767_v38 = vrot.slane %v11680_v56, %v21341_v60  ;;  %v11646_v43 = vcombine.high %v11406_v15, %v11406_v15  ;;  %v11371_v33 = vmul.f32 %v20570_v51, %v20665_v18  ;;  %v20772_v4 = vmax.f32 %v11670_v2, %v14930_v5 }
 0x61e   : > { %21364 = vst [vmem:[#allocation26_spill] sm:$0xff] %v20764_v8  ;;  %v20775_v9 = vrot.slane %v11406_v15, %v21341_v60  ;;  %v20778_v53 = vrot.slane %v11459_v59, %v21341_v60  ;;  %v20780_v12 = vmax.f32 %v11678_v20, %v14931_v58  ;;  %v20782_v14 = vmax.f32 %v11677_v62, %v14932_v29 }
 0x61f   : > { %21365 = vst [vmem:[#allocation27_spill] sm:$0xff] %v20772_v4  ;;  %v20786_v34 = vmax.f32 %v11636_v13, %v14926_v49  ;;  %v20790_v18 = vcombine.high %v20759_v7, %v20759_v7  ;;  %v11474_v15 = vcombine.high %v11466_v27, %v11466_v27  ;;  %v20796_v20 = vcombine.high %v20767_v38, %v20767_v38 }
 0x620   : > { %21366 = vst [vmem:[#allocation28_spill] sm:$0xff] %v20780_v12  ;;  %21367 = vst [vmem:[#allocation29_spill] sm:$0xff] %v20782_v14  ;;  %v20799_v62 = vrot.slane %v11646_v43, %v21341_v60  ;;  %v11393_v5 = vadd.f32 %v20572_v0, %v11371_v33  ;;  %v20804_v13 = vcombine.high %v20775_v9, %v20775_v9  ;;  %v14906_v49 = vrot.slane %v11466_v27, 9 }
 0x621   : > { %21368 = vst [vmem:[#allocation30_spill] sm:$0xff] %v20786_v34  ;;  %21369 = vst [vmem:[#allocation31_spill] sm:$0xff] %v20796_v20  ;;  %v20809_v29 = vcombine.high %v20778_v53, %v20778_v53  ;;  %v11374_v43 = vmul.f32 %v20673_v37, %v20570_v51  ;;  %v11372_v33 = vmul.f32 %v20570_v51, %v20680_v3  ;;  %v14907_v2 = vrot.slane %v11474_v15, 9  ;;  %v21370_v37 = vld [vmem:[#allocation4_spill] sm:$0xff] }
 0x622   : > { %v11425_v61 = vcombine.high %v11393_v5, %v11393_v5  ;;  %v11432_v59 = vrot.slane %v11393_v5, %v21341_v60  ;;  %v12034_v10 = vmax.f32 %v20723_v17, %v20752_v42  ;;  %v12033_v56 = vmax.f32 %v20705_v48, %v20744_v31 }
 0x623   : > { %v12035_v58 = vmax.f32 %v20729_v1, %v20756_v54  ;;  %v11396_v12 = vadd.f32 %v20572_v0, %v11374_v43  ;;  %v11394_v42 = vadd.f32 %v20572_v0, %v11372_v33  ;;  %v11861_v17 = vmax.f32 %v11466_v27, %v14906_v49 }
 0x624   : > { %v11439_v11 = vrot.slane %v11425_v61, %v21341_v60  ;;  %v11440_v14 = vcombine.high %v11432_v59, %v11432_v59  ;;  %v14902_v5 = vrot.slane %v11432_v59, 9  ;;  %v11862_v35 = vmax.f32 %v11474_v15, %v14907_v2 }
 0x625   : > { %v11476_v8 = vcombine.high %v11396_v12, %v11396_v12  ;;  %v11483_v1 = vrot.slane %v11396_v12, %v21341_v60  ;;  %v11442_v54 = vcombine.high %v11394_v42, %v11394_v42  ;;  %v11449_v61 = vrot.slane %v11394_v42, %v21341_v60 }
 0x626   : > { %v11441_v4 = vcombine.high %v11439_v11, %v11439_v11  ;;  %v14903_v48 = vrot.slane %v11440_v14, 9  ;;  %v14904_v31 = vrot.slane %v11439_v11, 9  ;;  %v11857_v50 = vmax.f32 %v11432_v59, %v14902_v5 }
 0x627   : > { %v12158_v16 = vrot.slane %v12033_v56, %v21370_v37  ;;  %v11490_v51 = vrot.slane %v11476_v8, %v21341_v60  ;;  %v11491_v3 = vcombine.high %v11483_v1, %v11483_v1  ;;  %v14938_v30 = vrot.slane %v11483_v1, 9 }
 0x628   : > { %v14905_v43 = vrot.slane %v11441_v4, 9  ;;  %v11456_v0 = vrot.slane %v11442_v54, %v21341_v60  ;;  %v11858_v27 = vmax.f32 %v11440_v14, %v14903_v48  ;;  %v11859_v49 = vmax.f32 %v11439_v11, %v14904_v31 }
 0x629   : > { %v11457_v33 = vcombine.high %v11449_v61, %v11449_v61  ;;  %v14934_v22 = vrot.slane %v11449_v61, 9  ;;  %v14939_v24 = vrot.slane %v11491_v3, 9  ;;  %v11989_v12 = vmax.f32 %v11483_v1, %v14938_v30 }
 0x62a   : > { %v21371_v21 = vrot.slane %v20698_v55, 9  ;;  %v21372_v15 = vrot.slane %v20731_v45, 9  ;;  %v11458_v59 = vcombine.high %v11456_v0, %v11456_v0  ;;  %v14936_v5 = vrot.slane %v11456_v0, 9 }
 0x62b   : > { %v14935_v8 = vrot.slane %v11457_v33, 9  ;;  %v11985_v42 = vmax.f32 %v11449_v61, %v14934_v22  ;;  %v11860_v34 = vmax.f32 %v11441_v4, %v14905_v43  ;;  %v11492_v60 = vcombine.high %v11490_v51, %v11490_v51 }
 0x62c   : > { %v11876_v2 = vmax.f32 %v20698_v55, %v21371_v21  ;;  %v12004_v56 = vmax.f32 %v20731_v45, %v21372_v15  ;;  %v14940_v14 = vrot.slane %v11490_v51, 9  ;;  %v12021_v11 = vmax.f32 %v11861_v17, %v11989_v12 }
 0x62d   : > { %v14937_v48 = vrot.slane %v11458_v59, 9  ;;  %v11986_v31 = vmax.f32 %v11457_v33, %v14935_v8  ;;  %v11987_v54 = vmax.f32 %v11456_v0, %v14936_v5  ;;  %v12017_v30 = vmax.f32 %v11857_v50, %v11985_v42 }
 0x62e   : > { %v11990_v1 = vmax.f32 %v11491_v3, %v14939_v24  ;;  %v12036_v20 = vmax.f32 %v11876_v2, %v12004_v56  ;;  %v12037_v21 = vmax.f32 %v20700_v41, %v20735_v32  ;;  %v12432_v55 = vrot.slane %v12021_v11, %v21370_v37 }
 0x62f   : > { %v11988_v45 = vmax.f32 %v11458_v59, %v14937_v48  ;;  %v12018_v15 = vmax.f32 %v11858_v27, %v11986_v31  ;;  %v12154_v52 = vrot.slane %v12017_v30, %v21370_v37  ;;  %v12019_v22 = vmax.f32 %v11859_v49, %v11987_v54 }
 0x630   : > { %v14941_v4 = vrot.slane %v11492_v60, 9  ;;  %v12075_v61 = vrot.slane %v12034_v10, %v21370_v37  ;;  %v12250_v17 = vrot.slane %v12035_v58, %v21370_v37  ;;  %v12436_v43 = vrot.slane %v12037_v21, %v21370_v37 }
 0x631   : > { %v12071_v24 = vrot.slane %v12018_v15, %v21370_v37  ;;  %v20848_v50 = vsel %vm5015_vm1, %v12158_v16, %v12154_v52  ;;  %v12246_v41 = vrot.slane %v12019_v22, %v21370_v37  ;;  %v12020_v32 = vmax.f32 %v11860_v34, %v11988_v45 }
 0x632   : > { %v11991_v3 = vmax.f32 %v11490_v51, %v14940_v14  ;;  %v12343_v0 = vrot.slane %v12036_v20, %v21370_v37  ;;  %v20853_v27 = vsel %vm5015_vm1, %v12436_v43, %v12432_v55  ;;  %v12022_v49 = vmax.f32 %v11862_v35, %v11990_v1 }
 0x633   : > { %v12076_v10 = vsel %vm5015_vm1, %v12075_v61, %v12071_v24  ;;  %v20857_v58 = vsel %vm5015_vm1, %v12250_v17, %v12246_v41  ;;  %v12339_v33 = vrot.slane %v12020_v32, %v21370_v37  ;;  %v12038_v52 = vmax.f32 %v20707_v63, %v20742_v28  ;;  %v21386_v17 = vld [vmem:[#allocation31_spill] sm:$0xff]  ;;  %v21387_v24 = vld [vmem:[#allocation30_spill] sm:$0xff] }
 0x634   : > { %v14963_v16 = vrot.slane %v20790_v18, 9  ;;  %v21373_v34 = vrot.slane %v20778_v53, 9  ;;  %v11992_v51 = vmax.f32 %v11492_v60, %v14941_v4  ;;  %16671 = vmatmul.mubr.msk.f32.vlgmr.msra.gmra.mrb[44].mxu1 %vm462_vm0, %v12076_v10  ;;  %v12525_v35 = vrot.slane %v12022_v49, %v21370_v37  ;;  %v21388_v32 = vld [vmem:[#allocation23_spill] sm:$0xff]  ;;  %v21390_v10 = vld [vmem:[#allocation9_spill] sm:$0xff] }
 0x635   : > { %v14964_v12 = vrot.slane %v20767_v38, 9  ;;  %v14960_v2 = vrot.slane %v20799_v62, 9  ;;  %v21374_v56 = vpack.c.bf16 %v20588_v23, %v20584_v40  ;;  %16689 = vmatprep.mubr.msk.f32.mxu1 %vm17943_vm10, %v21340_v26  ;;  %v20876_v63 = vsel %vm5015_vm1, %v12343_v0, %v12339_v33  ;;  %v21391_v33 = vld [vmem:[#allocation8_spill] sm:$0xff] }
 0x636   : > { %v11863_v20 = vmax.f32 %v20778_v53, %v21373_v34  ;;  %v12529_v28 = vrot.slane %v12038_v52, %v21370_v37  ;;  %v11662_v53 = vcombine.high %v20799_v62, %v20799_v62  ;;  %v21375_v59 = vrot.slane %v20809_v29, 9 }
 0x637   : > { %16972 = vmatpush3.bf16.msra.mxu1 %v21374_v56  ;;  %v21376_v5 = vmov 0.0|0.0   ;;  %v12039_v40 = vmax.f32 %v20711_v46, %v20739_v25  ;;  %v21377_v23 = vrot.slane %v20775_v9, 9  ;;  %v21378_v14 = vrot.slane %v20804_v13, 9 }
 0x638   : > { %v11864_v8 = vmax.f32 %v20809_v29, %v21375_v59  ;;  %16973 = vmatprep.subr.bf16.mxu1 %v21376_v5  ;;  %v12023_v42 = vmax.f32 %v11863_v20, %v11991_v3  ;;  %v20894_v48 = vsel %vm5015_vm1, %v12529_v28, %v12525_v35  ;;  %v21379_v31 = vrot.slane %v20689_v19, 9  ;;  %v21389_v3 = vld [vmem:[#allocation18_spill] sm:$0xff] }
 0x639   : > { %v12009_v60 = vmax.f32 %v20775_v9, %v21377_v23  ;;  %v12010_v11 = vmax.f32 %v20804_v13, %v21378_v14  ;;  %v12622_v30 = vrot.slane %v12039_v40, %v21370_v37  ;;  %v21380_v25 = vrot.slane %v20725_v39, 9  ;;  %v21397_v40 = vld [vmem:[#allocation26_spill] sm:$0xff] }
 0x63a   : > { %v11880_v29 = vmax.f32 %v20689_v19, %v21379_v31  ;;  %v12618_v54 = vrot.slane %v12023_v42, %v21370_v37  ;;  %v12024_v9 = vmax.f32 %v11864_v8, %v11992_v51  ;;  %v21381_v1 = vrot.slane %v20754_v57, 9 }
 0x63b   : > { %v12008_v46 = vmax.f32 %v20725_v39, %v21380_v25  ;;  %v21382_v21 = vrot.slane %v20747_v36, 9  ;;  %v21383_v45 = vrot.slane %v20759_v7, 9  ;;  %v12011_v15 = vmax.f32 %v20799_v62, %v14960_v2  ;;  %v21395_v2 = vld [vmem:[#allocation12_spill] sm:$0xff]  ;;  %v21402_v25 = vld [vmem:[#allocation11_spill] sm:$0xff] }
 0x63c   : > { %v11882_v13 = vmax.f32 %v20754_v57, %v21381_v1  ;;  %v21384_v22 = vpack.c.bf16 %v20594_v44, %v20591_v6  ;;  %v20919_v39 = vsel %vm5015_vm1, %v12622_v30, %v12618_v54  ;;  %v12711_v4 = vrot.slane %v12024_v9, %v21370_v37  ;;  %v21401_v30 = vld [vmem:[#allocation20_spill] sm:$0xff]  ;;  %v21403_v9 = vld [vmem:[#allocation6_spill] sm:$0xff]  ;;  %v21404_v1 = vld [vmem:[#allocation5_spill] sm:$0xff] }
 0x63d   : > { %v11883_v55 = vmax.f32 %v20747_v36, %v21382_v21  ;;  %v12013_v19 = vmax.f32 %v20759_v7, %v21383_v45  ;;  %v12040_v57 = vmax.f32 %v11880_v29, %v12008_v46  ;;  %v21385_v36 = vld [vmem:[#allocation13_spill] sm:$0xff]  ;;  %v14965_v43 = vrot.slane %v21386_v17, 9 }
 0x63e   : > { %16975 = vmatpush3.bf16.msra.mxu1 %v21384_v22  ;;  %v12025_v61 = vmax.f32 %v21385_v36, %v20686_v47  ;;  %v12014_v7 = vmax.f32 %v20790_v18, %v14963_v16  ;;  %v12015_v62 = vmax.f32 %v20767_v38, %v14964_v12  ;;  %v12041_v6 = vmax.f32 %v21387_v24, %v12009_v60  ;;  %v21393_v18 = vld [vmem:[#allocation24_spill] sm:$0xff]  ;;  %v21394_v16 = vld [vmem:[#allocation19_spill] sm:$0xff]  ;;  %v14978_v21 = vld [vmem:[%s20546_s12 + $0x90] sm:$0xff] }
 0x63f   : > { %16976 = vmatprep.subr.bf16.mxu1 %v21376_v5  ;;  %v14961_v44 = vrot.slane %v11662_v53, 9  ;;  %v12715_v41 = vrot.slane %v12040_v57, %v21370_v37  ;;  %v12026_v0 = vmax.f32 %v21389_v3, %v21388_v32  ;;  %v12042_v49 = vmax.f32 %v11882_v13, %v12010_v11  ;;  %v21399_v11 = vld [vmem:[#allocation17_spill] sm:$0xff]  ;;  %v21407_v57 = vld [vmem:[#allocation22_spill] sm:$0xff]  ;;  %v21411_v32 = vld [vmem:[#allocation16_spill] sm:$0xff] }
 0x640   : > { %v21392_v52 = vpack.c.bf16 %v21390_v10, %v21391_v33  ;;  %v12804_v47 = vrot.slane %v12025_v61, %v21370_v37  ;;  %v12808_v34 = vrot.slane %v12041_v6, %v21370_v37  ;;  %v12027_v38 = vmax.f32 %v21394_v16, %v21393_v18  ;;  %v21409_v61 = vld [vmem:[#allocation28_spill] sm:$0xff]  ;;  %v21412_v10 = vld [vmem:[#allocation29_spill] sm:$0xff]  ;;  %v21414_v18 = vld [vmem:[#allocation7_spill] sm:$0xff] }
 0x641   : > { %v12043_v20 = vmax.f32 %v11883_v55, %v12011_v15  ;;  %v20940_v51 = vsel %vm5015_vm1, %v12715_v41, %v12711_v4  ;;  %v12897_v35 = vrot.slane %v12026_v0, %v21370_v37  ;;  %v12901_v12 = vrot.slane %v12042_v49, %v21370_v37  ;;  %v14979_v55 = vld [vmem:[%s20546_s12 + $0x98] sm:$0xff]  ;;  %v21406_v15 = vld [vmem:[#allocation27_spill] sm:$0xff]  ;;  %v21410_v41 = vld [vmem:[#allocation21_spill] sm:$0xff] }
 0x642   : > { %16978 = vmatpush3.bf16.msra.mxu1 %v21392_v52  ;;  %v21396_v56 = vrot.slane %v21395_v2, 9  ;;  %v20948_v59 = vsel %vm5015_vm1, %v12808_v34, %v12804_v47  ;;  %v12990_v8 = vrot.slane %v12027_v38, %v21370_v37  ;;  %v21398_v23 = vrot.slane %v21397_v40, 9  ;;  %v21408_v4 = vld [vmem:[#allocation14_spill] sm:$0xff]  ;;  %v21413_v34 = vld [vmem:[#allocation3_spill] sm:$0xff] }
 0x643   : > { %16979 = vmatprep.subr.bf16.mxu1 %v21376_v5  ;;  %v12994_v42 = vrot.slane %v12043_v20, %v21370_v37  ;;  %v20956_v14 = vsel %vm5015_vm1, %v12901_v12, %v12897_v35  ;;  %v21400_v31 = vrot.slane %v21399_v11, 9  ;;  %v12012_v54 = vmax.f32 %v11662_v53, %v14961_v44  ;;  %v14980_v20 = vld [vmem:[%s20546_s12 + $0xa0] sm:$0xff]  ;;  %v14981_v35 = vld [vmem:[%s20546_s12 + $0xa8] sm:$0xff] }
 0x644   : > { %v11868_v28 = vmax.f32 %v21395_v2, %v21396_v56  ;;  %v11884_v60 = vmax.f32 %v21397_v40, %v21398_v23  ;;  %v12029_v46 = vmax.f32 %v21402_v25, %v21401_v30  ;;  %v21405_v13 = vpack.c.bf16 %v21403_v9, %v21404_v1  ;;  %v21416_v56 = vld [vmem:[#allocation10_spill] sm:$0xff]  ;;  %v14982_v9 = vld [vmem:[%s20546_s12 + $0xb0] sm:$0xff] }
 0x645   : > { %v11996_v29 = vmax.f32 %v21399_v11, %v21400_v31  ;;  %v20969_v45 = vsel %vm5015_vm1, %v12994_v42, %v12990_v8  ;;  %v12045_v22 = vmax.f32 %v21406_v15, %v12013_v19  ;;  %v12030_v36 = vmax.f32 %v21408_v4, %v21407_v57  ;;  %v21418_v42 = vld [vmem:[#allocation15_spill] sm:$0xff]  ;;  %v14983_v1 = vld [vmem:[%s20546_s12 + $0xb8] sm:$0xff]  ;;  %v14986_v15 = vld [vmem:[%s20546_s12 + $0xc8] sm:$0xff] }
 0x646   : > { %16981 = vmatpush3.bf16.msra.mxu1 %v21405_v13  ;;  %v12046_v24 = vmax.f32 %v21409_v61, %v12014_v7  ;;  %v12044_v6 = vmax.f32 %v11884_v60, %v12012_v54  ;;  %v13176_v44 = vrot.slane %v12029_v46, %v21370_v37  ;;  %v12031_v3 = vmax.f32 %v21411_v32, %v21410_v41  ;;  %v21420_v60 = vld [vmem:[#allocation25_spill] sm:$0xff]  ;;  %v14988_v4 = vld [vmem:[%s20546_s12 + $0xd8] sm:$0xff]  ;;  %v14990_v61 = vld [vmem:[%s20546_s12 + $0xe8] sm:$0xff] }
 0x647   : > { %16982 = vmatprep.subr.bf16.mxu1 %v21376_v5  ;;  %v12028_v53 = vmax.f32 %v11868_v28, %v11996_v29  ;;  %v13180_v0 = vrot.slane %v12045_v22, %v21370_v37  ;;  %v13269_v19 = vrot.slane %v12030_v36, %v21370_v37  ;;  %v12047_v33 = vmax.f32 %v21412_v10, %v12015_v62  ;;  %v14987_v57 = vld [vmem:[%s20546_s12 + $0xd0] sm:$0xff]  ;;  %v14989_v36 = vld [vmem:[%s20546_s12 + $0xe0] sm:$0xff]  ;;  %v14995_v41 = vld [vmem:[%s20546_s12 + $0x108] sm:$0xff] }
 0x648   : > { %v13273_v49 = vrot.slane %v12046_v24, %v21370_v37  ;;  %v16986_v7 = vpack.c.bf16 %v14979_v55, %v14978_v21  ;;  %v13087_v47 = vrot.slane %v12044_v6, %v21370_v37  ;;  %v21415_v16 = vpack.c.bf16 %v21413_v34, %v21414_v18  ;;  %v14985_v55 = vld [vmem:[%s20546_s12 + $0xc0] sm:$0xff]  ;;  %v14992_v6 = vld [vmem:[%s20546_s12 + $0xf8] sm:$0xff]  ;;  %v14999_v10 = vld [vmem:[%s20546_s12 + $0x128] sm:$0xff] }
 0x649   : > { %16690 = vmatmul.mubr.msk.f32.vlgmr.msra.gmra.mrb[46].mxu1 %vm462_vm0, %v20848_v50  ;;  %v13083_v52 = vrot.slane %v12028_v53, %v21370_v37  ;;  %v20993_v38 = vsel %vm5015_vm1, %v13180_v0, %v13176_v44  ;;  %v13362_v50 = vrot.slane %v12031_v3, %v21370_v37  ;;  %v13366_v2 = vrot.slane %v12047_v33, %v21370_v37  ;;  %v14991_v53 = vld [vmem:[%s20546_s12 + $0xf0] sm:$0xff]  ;;  %v14994_v44 = vld [vmem:[%s20546_s12 + $0x100] sm:$0xff]  ;;  %v14997_v0 = vld [vmem:[%s20546_s12 + $0x118] sm:$0xff] }
 0x64a   : > { %16984 = vmatpush3.bf16.msra.mxu1 %v21415_v16  ;;  %16708 = vmatprep.mubr.msk.f32.mxu1 %vm17943_vm10, %v21340_v26  ;;  %v20996_v62 = vsel %vm5015_vm1, %v13273_v49, %v13269_v19  ;;  %v21417_v28 = vrot.slane %v21416_v56, 9  ;;  %v21419_v40 = vrot.slane %v21418_v42, 9  ;;  %v21421_v11 = vrot.slane %v21420_v60, 9  ;;  %v14996_v3 = vld [vmem:[%s20546_s12 + $0x110] sm:$0xff]  ;;  %v14998_v49 = vld [vmem:[%s20546_s12 + $0x120] sm:$0xff]  ;;  %v15004_v34 = vld [vmem:[%s20546_s12 + $0x148] sm:$0xff] }
 0x64b   : > { %16985 = vmatprep.subr.bf16.mxu1 %v21376_v5  ;;  %v21003_v12 = vsel %vm5015_vm1, %v13087_v47, %v13083_v52  ;;  %v12016_v29 = vmax.f32 %v21386_v17, %v14965_v43  ;;  %v21017_v54 = vsel %vm5015_vm1, %v13366_v2, %v13362_v50  ;;  %v16989_v25 = vpack.c.bf16 %v14981_v35, %v14980_v20  ;;  %v15001_v52 = vld [vmem:[%s20546_s12 + $0x138] sm:$0xff]  ;;  %v15003_v47 = vld [vmem:[%s20546_s12 + $0x140] sm:$0xff]  ;;  %v15005_v16 = vld [vmem:[%s20546_s12 + $0x150] sm:$0xff] }
 0x64c   : > { %v11872_v8 = vmax.f32 %v21416_v56, %v21417_v28  ;;  %v12000_v23 = vmax.f32 %v21418_v42, %v21419_v40  ;;  %v11888_v31 = vmax.f32 %v21420_v60, %v21421_v11  ;;  %v16992_v17 = vpack.c.bf16 %v14983_v1, %v14982_v9  ;;  %v15006_v50 = vld [vmem:[%s20546_s12 + $0x158] sm:$0xff]  ;;  %v15007_v35 = vld [vmem:[%s20546_s12 + $0x160] sm:$0xff]  ;;  %v15008_v2 = vld [vmem:[%s20546_s12 + $0x168] sm:$0xff] }
 0x64d   : > { %v16995_v22 = vpack.c.bf16 %v14986_v15, %v14985_v55  ;;  %v17001_v24 = vpack.c.bf16 %v14990_v61, %v14989_v36  ;;  %v17007_v32 = vpack.c.bf16 %v14995_v41, %v14994_v44  ;;  %v17010_v19 = vpack.c.bf16 %v14997_v0, %v14996_v3  ;;  %v15009_v28 = vld [vmem:[%s20546_s12 + $0x170] sm:$0xff]  ;;  %v15012_v42 = vld [vmem:[%s20546_s12 + $0x180] sm:$0xff]  ;;  %v15013_v40 = vld [vmem:[%s20546_s12 + $0x188] sm:$0xff] }
 0x64e   : > { %v12032_v30 = vmax.f32 %v11872_v8, %v12000_v23  ;;  %16987 = vmatpush3.bf16.msra.mxu1 %v16986_v7  ;;  %v12048_v46 = vmax.f32 %v11888_v31, %v12016_v29  ;;  %v17013_v33 = vpack.c.bf16 %v14999_v10, %v14998_v49  ;;  %v15000_v7 = vld [vmem:[%s20546_s12 + $0x130] sm:$0xff]  ;;  %v17019_v18 = vpack.c.bf16 %v15004_v34, %v15003_v47  ;;  %v15010_v8 = vld [vmem:[%s20546_s12 + $0x178] sm:$0xff]  ;;  %v15016_v29 = vld [vmem:[%s20546_s12 + $0x1a0] sm:$0xff] }
 0x64f   : > { %16988 = vmatprep.subr.bf16.mxu1 %v21376_v5  ;;  %v17022_v20 = vpack.c.bf16 %v15006_v50, %v15005_v16  ;;  %v17025_v56 = vpack.c.bf16 %v15008_v2, %v15007_v35  ;;  %v17031_v23 = vpack.c.bf16 %v15013_v40, %v15012_v42  ;;  %v15014_v60 = vld [vmem:[%s20546_s12 + $0x190] sm:$0xff]  ;;  %v15015_v11 = vld [vmem:[%s20546_s12 + $0x198] sm:$0xff]  ;;  %v15021_v1 = vld [vmem:[%s20546_s12 + $0x1c0] sm:$0xff] }
 0x650   : > { %v13455_v13 = vrot.slane %v12032_v30, %v21370_v37  ;;  %v13459_v21 = vrot.slane %v12048_v46, %v21370_v37  ;;  %v16998_v37 = vpack.c.bf16 %v14988_v4, %v14987_v57  ;;  %v17034_v31 = vpack.c.bf16 %v15015_v11, %v15014_v60  ;;  %v15017_v30 = vld [vmem:[%s20546_s12 + $0x1a8] sm:$0xff]  ;;  %v15018_v46 = vld [vmem:[%s20546_s12 + $0x1b0] sm:$0xff]  ;;  %v15019_v9 = vld [vmem:[%s20546_s12 + $0x1b8] sm:$0xff] }
 0x651   : > { %v15024_v55 = vld [vmem:[%s20546_s12 + $0x1d8] sm:$0xff]  ;;  %v15026_v57 = vld [vmem:[%s20546_s12 + $0x1e8] sm:$0xff]  ;;  %v15030_v61 = vld [vmem:[%s20546_s12 + $0x200] sm:$0xff] }
 0x652   : > { %16990 = vmatpush3.bf16.msra.mxu1 %v16989_v25  ;;  %v21025_v43 = vsel %vm5015_vm1, %v13459_v21, %v13455_v13  ;;  %v17037_v25 = vpack.c.bf16 %v15017_v30, %v15016_v29  ;;  %v15022_v13 = vld [vmem:[%s20546_s12 + $0x1c8] sm:$0xff]  ;;  %v15028_v36 = vld [vmem:[%s20546_s12 + $0x1f8] sm:$0xff]  ;;  %v15034_v41 = vld [vmem:[%s20546_s12 + $0x220] sm:$0xff] }
 0x653   : > { %16991 = vmatprep.subr.bf16.mxu1 %v21376_v5  ;;  %v17043_v21 = vpack.c.bf16 %v15022_v13, %v15021_v1  ;;  %v15036_v0 = vld [vmem:[%s20546_s12 + $0x230] sm:$0xff]  ;;  %v15039_v49 = vld [vmem:[%s20546_s12 + $0x240] sm:$0xff]  ;;  %v15040_v10 = vld [vmem:[%s20546_s12 + $0x248] sm:$0xff] }
 0x654   : > { %v15043_v47 = vld [vmem:[%s20546_s12 + $0x260] sm:$0xff]  ;;  %v15044_v34 = vld [vmem:[%s20546_s12 + $0x268] sm:$0xff]  ;;  %v15045_v16 = vld [vmem:[%s20546_s12 + $0x270] sm:$0xff] }
 0x655   : > { %v15046_v50 = vld [vmem:[%s20546_s12 + $0x278] sm:$0xff]  ;;  %v15049_v35 = vld [vmem:[%s20546_s12 + $0x288] sm:$0xff]  ;;  %v15057_v11 = vld [vmem:[%s20546_s12 + $0x2c0] sm:$0xff] }
 0x656   : > { %16993 = vmatpush3.bf16.msra.mxu1 %v16992_v17  ;;  %v15023_v17 = vld [vmem:[%s20546_s12 + $0x1d0] sm:$0xff]  ;;  %v15053_v42 = vld [vmem:[%s20546_s12 + $0x2a8] sm:$0xff]  ;;  %v15055_v60 = vld [vmem:[%s20546_s12 + $0x2b8] sm:$0xff] }
 0x657   : > { %16994 = vmatprep.subr.bf16.mxu1 %v21376_v5  ;;  %v17046_v15 = vpack.c.bf16 %v15024_v55, %v15023_v17  ;;  %v15059_v30 = vld [vmem:[%s20546_s12 + $0x2d0] sm:$0xff]  ;;  %v15066_v17 = vld [vmem:[%s20546_s12 + $0x300] sm:$0xff]  ;;  %v15067_v55 = vld [vmem:[%s20546_s12 + $0x308] sm:$0xff] }
 0x658   : > { %v15063_v13 = vld [vmem:[%s20546_s12 + $0x2f0] sm:$0xff] }
 0x659   : > { %16709 = vmatmul.mubr.msk.f32.vlgmr.msra.gmra.mrb[48].mxu1 %vm462_vm0, %v20857_v58  ;;  %v17004_v58 = vpack.c.bf16 %v14992_v6, %v14991_v53  ;;  %v15032_v6 = vld [vmem:[%s20546_s12 + $0x210] sm:$0xff] }
 0x65a   : > { %16996 = vmatpush3.bf16.msra.mxu1 %v16995_v22  ;;  %16727 = vmatprep.mubr.msk.f32.mxu1 %vm17943_vm10, %v21340_v26  ;;  %v15025_v22 = vld [vmem:[%s20546_s12 + $0x1e0] sm:$0xff] }
 0x65b   : > { %16997 = vmatprep.subr.bf16.mxu1 %v21376_v5  ;;  %v17049_v4 = vpack.c.bf16 %v15026_v57, %v15025_v22  ;;  %v15068_v22 = vld [vmem:[%s20546_s12 + $0x310] sm:$0xff]  ;;  %v15069_v57 = vld [vmem:[%s20546_s12 + $0x318] sm:$0xff] }
 0x65e   : > { %16999 = vmatpush3.bf16.msra.mxu1 %v16998_v37  ;;  %v15027_v37 = vld [vmem:[%s20546_s12 + $0x1f0] sm:$0xff] }
 0x65f   : > { %17000 = vmatprep.subr.bf16.mxu1 %v21376_v5 }
 0x662   : > { %17002 = vmatpush3.bf16.msra.mxu1 %v17001_v24  ;;  %v15031_v24 = vld [vmem:[%s20546_s12 + $0x208] sm:$0xff] }
 0x663   : > { %17003 = vmatprep.subr.bf16.mxu1 %v21376_v5  ;;  %v17055_v53 = vpack.c.bf16 %v15031_v24, %v15030_v61  ;;  %v15072_v61 = vld [vmem:[%s20546_s12 + $0x330] sm:$0xff]  ;;  %v15073_v24 = vld [vmem:[%s20546_s12 + $0x338] sm:$0xff] }
 0x666   : > { %17005 = vmatpush3.bf16.msra.mxu1 %v17004_v58  ;;  %v15033_v58 = vld [vmem:[%s20546_s12 + $0x218] sm:$0xff] }
 0x667   : > { %17006 = vmatprep.subr.bf16.mxu1 %v21376_v5  ;;  %v17058_v44 = vpack.c.bf16 %v15033_v58, %v15032_v6  ;;  %v15076_v6 = vld [vmem:[%s20546_s12 + $0x348] sm:$0xff] }
 0x669   : > { %16728 = vmatmul.mubr.msk.f32.vlgmr.msra.gmra.mrb[50].mxu1 %vm462_vm0, %v20876_v63  ;;  %v17016_v63 = vpack.c.bf16 %v15001_v52, %v15000_v7  ;;  %v15041_v7 = vld [vmem:[%s20546_s12 + $0x250] sm:$0xff]  ;;  %v15042_v52 = vld [vmem:[%s20546_s12 + $0x258] sm:$0xff] }
 0x66a   : > { %17008 = vmatpush3.bf16.msra.mxu1 %v17007_v32  ;;  %16746 = vmatprep.mubr.msk.f32.mxu1 %vm17943_vm10, %v21340_v26  ;;  %v15035_v32 = vld [vmem:[%s20546_s12 + $0x228] sm:$0xff] }
 0x66b   : > { %17009 = vmatprep.subr.bf16.mxu1 %v21376_v5  ;;  %v17061_v3 = vpack.c.bf16 %v15035_v32, %v15034_v41  ;;  %v15078_v41 = vld [vmem:[%s20546_s12 + $0x358] sm:$0xff] }
 0x66e   : > { %17011 = vmatpush3.bf16.msra.mxu1 %v17010_v19  ;;  %v15037_v19 = vld [vmem:[%s20546_s12 + $0x238] sm:$0xff] }
 0x66f   : > { %17012 = vmatprep.subr.bf16.mxu1 %v21376_v5 }
 0x672   : > { %17014 = vmatpush3.bf16.msra.mxu1 %v17013_v33  ;;  %v17067_v33 = vpack.c.bf16 %v15040_v10, %v15039_v49  ;;  %v15082_v49 = vld [vmem:[%s20546_s12 + $0x378] sm:$0xff]  ;;  %v15084_v10 = vld [vmem:[%s20546_s12 + $0x380] sm:$0xff] }
 0x673   : > { %17015 = vmatprep.subr.bf16.mxu1 %v21376_v5 }
 0x676   : > { %17017 = vmatpush3.bf16.msra.mxu1 %v17016_v63  ;;  %v17070_v63 = vpack.c.bf16 %v15042_v52, %v15041_v7  ;;  %v15086_v52 = vld [vmem:[%s20546_s12 + $0x390] sm:$0xff] }
 0x677   : > { %17018 = vmatprep.subr.bf16.mxu1 %v21376_v5 }
 0x679   : > { %16747 = vmatmul.mubr.msk.f32.vlgmr.msra.gmra.mrb[52].mxu1 %vm462_vm0, %v20853_v27  ;;  %v17028_v27 = vpack.c.bf16 %v15010_v8, %v15009_v28  ;;  %v15051_v28 = vld [vmem:[%s20546_s12 + $0x298] sm:$0xff] }
 0x67a   : > { %17020 = vmatpush3.bf16.msra.mxu1 %v17019_v18  ;;  %16765 = vmatprep.mubr.msk.f32.mxu1 %vm17943_vm10, %v21340_v26  ;;  %v17073_v18 = vpack.c.bf16 %v15044_v34, %v15043_v47  ;;  %v15088_v34 = vld [vmem:[%s20546_s12 + $0x3a0] sm:$0xff] }
 0x67b   : > { %17021 = vmatprep.subr.bf16.mxu1 %v21376_v5 }
 0x67e   : > { %17023 = vmatpush3.bf16.msra.mxu1 %v17022_v20  ;;  %v15048_v20 = vld [vmem:[%s20546_s12 + $0x280] sm:$0xff] }
 0x67f   : > { %17024 = vmatprep.subr.bf16.mxu1 %v21376_v5  ;;  %v17079_v2 = vpack.c.bf16 %v15049_v35, %v15048_v20  ;;  %v15091_v20 = vld [vmem:[%s20546_s12 + $0x3b8] sm:$0xff] }
 0x682   : > { %17026 = vmatpush3.bf16.msra.mxu1 %v17025_v56  ;;  %v15050_v56 = vld [vmem:[%s20546_s12 + $0x290] sm:$0xff] }
 0x683   : > { %17027 = vmatprep.subr.bf16.mxu1 %v21376_v5  ;;  %v17082_v8 = vpack.c.bf16 %v15051_v28, %v15050_v56  ;;  %v15094_v56 = vld [vmem:[%s20546_s12 + $0x3c8] sm:$0xff] }
 0x686   : > { %17029 = vmatpush3.bf16.msra.mxu1 %v17028_v27  ;;  %v15052_v27 = vld [vmem:[%s20546_s12 + $0x2a0] sm:$0xff] }
 0x687   : > { %17030 = vmatprep.subr.bf16.mxu1 %v21376_v5  ;;  %v17085_v40 = vpack.c.bf16 %v15053_v42, %v15052_v27  ;;  %v15096_v27 = vld [vmem:[%s20546_s12 + $0x3d8] sm:$0xff] }
 0x689   : > { %16766 = vmatmul.mubr.msk.f32.vlgmr.msra.gmra.mrb[54].mxu1 %vm462_vm0, %v20894_v48  ;;  %v17040_v48 = vpack.c.bf16 %v15019_v9, %v15018_v46  ;;  %v15061_v9 = vld [vmem:[%s20546_s12 + $0x2e0] sm:$0xff] }
 0x68a   : > { %17032 = vmatpush3.bf16.msra.mxu1 %v17031_v23  ;;  %16784 = vmatprep.mubr.msk.f32.mxu1 %vm17943_vm10, %v21340_v26  ;;  %v15054_v23 = vld [vmem:[%s20546_s12 + $0x2b0] sm:$0xff] }
 0x68b   : > { %17033 = vmatprep.subr.bf16.mxu1 %v21376_v5 }
 0x68e   : > { %17035 = vmatpush3.bf16.msra.mxu1 %v17034_v31  ;;  %v15058_v31 = vld [vmem:[%s20546_s12 + $0x2c8] sm:$0xff] }
 0x68f   : > { %17036 = vmatprep.subr.bf16.mxu1 %v21376_v5  ;;  %v17091_v29 = vpack.c.bf16 %v15058_v31, %v15057_v11 }
 0x692   : > { %17038 = vmatpush3.bf16.msra.mxu1 %v17037_v25  ;;  %v15060_v25 = vld [vmem:[%s20546_s12 + $0x2d8] sm:$0xff] }
 0x693   : > { %17039 = vmatprep.subr.bf16.mxu1 %v21376_v5  ;;  %v17094_v46 = vpack.c.bf16 %v15060_v25, %v15059_v30  ;;  %v15100_v30 = vld [vmem:[%s20546_s12 + $0x3f8] sm:$0xff] }
 0x696   : > { %17041 = vmatpush3.bf16.msra.mxu1 %v17040_v48  ;;  %v15062_v48 = vld [vmem:[%s20546_s12 + $0x2e8] sm:$0xff] }
 0x697   : > { %17042 = vmatprep.subr.bf16.mxu1 %v21376_v5  ;;  %v17097_v1 = vpack.c.bf16 %v15062_v48, %v15061_v9 }
 0x699   : > { %16785 = vmatmul.mubr.msk.f32.vlgmr.msra.gmra.mrb[56].mxu1 %vm462_vm0, %v20919_v39  ;;  %v17052_v39 = vpack.c.bf16 %v15028_v36, %v15027_v37  ;;  %v15070_v37 = vld [vmem:[%s20546_s12 + $0x320] sm:$0xff]  ;;  %v15071_v36 = vld [vmem:[%s20546_s12 + $0x328] sm:$0xff] }
 0x69a   : > { %17044 = vmatpush3.bf16.msra.mxu1 %v17043_v21  ;;  %16803 = vmatprep.mubr.msk.f32.mxu1 %vm17943_vm10, %v21340_v26  ;;  %v15064_v21 = vld [vmem:[%s20546_s12 + $0x2f8] sm:$0xff] }
 0x69b   : > { %17045 = vmatprep.subr.bf16.mxu1 %v21376_v5 }
 0x69e   : > { %17047 = vmatpush3.bf16.msra.mxu1 %v17046_v15  ;;  %v17103_v15 = vpack.c.bf16 %v15067_v55, %v15066_v17 }
 0x69f   : > { %17048 = vmatprep.subr.bf16.mxu1 %v21376_v5 }
 0x6a2   : > { %17050 = vmatpush3.bf16.msra.mxu1 %v17049_v4  ;;  %v17106_v4 = vpack.c.bf16 %v15069_v57, %v15068_v22 }
 0x6a3   : > { %17051 = vmatprep.subr.bf16.mxu1 %v21376_v5 }
 0x6a6   : > { %17053 = vmatpush3.bf16.msra.mxu1 %v17052_v39  ;;  %v17109_v39 = vpack.c.bf16 %v15071_v36, %v15070_v37 }
 0x6a7   : > { %17054 = vmatprep.subr.bf16.mxu1 %v21376_v5 }
 0x6a9   : > { %16804 = vmatmul.mubr.msk.f32.vlgmr.msra.gmra.mrb[58].mxu1 %vm462_vm0, %v20940_v51  ;;  %v17064_v51 = vpack.c.bf16 %v15037_v19, %v15036_v0  ;;  %v15080_v0 = vld [vmem:[%s20546_s12 + $0x368] sm:$0xff] }
 0x6aa   : > { %17056 = vmatpush3.bf16.msra.mxu1 %v17055_v53  ;;  %16822 = vmatprep.mubr.msk.f32.mxu1 %vm17943_vm10, %v21340_v26  ;;  %v15075_v53 = vld [vmem:[%s20546_s12 + $0x340] sm:$0xff] }
 0x6ab   : > { %17057 = vmatprep.subr.bf16.mxu1 %v21376_v5  ;;  %v17115_v58 = vpack.c.bf16 %v15076_v6, %v15075_v53 }
 0x6ae   : > { %17059 = vmatpush3.bf16.msra.mxu1 %v17058_v44  ;;  %v15077_v44 = vld [vmem:[%s20546_s12 + $0x350] sm:$0xff] }
 0x6af   : > { %17060 = vmatprep.subr.bf16.mxu1 %v21376_v5  ;;  %v17118_v32 = vpack.c.bf16 %v15078_v41, %v15077_v44 }
 0x6b2   : > { %17062 = vmatpush3.bf16.msra.mxu1 %v17061_v3  ;;  %v15079_v3 = vld [vmem:[%s20546_s12 + $0x360] sm:$0xff] }
 0x6b3   : > { %17063 = vmatprep.subr.bf16.mxu1 %v21376_v5  ;;  %v17121_v19 = vpack.c.bf16 %v15080_v0, %v15079_v3 }
 0x6b6   : > { %17065 = vmatpush3.bf16.msra.mxu1 %v17064_v51  ;;  %v15081_v51 = vld [vmem:[%s20546_s12 + $0x370] sm:$0xff] }
 0x6b7   : > { %17066 = vmatprep.subr.bf16.mxu1 %v21376_v5 }
 0x6b9   : > { %16823 = vmatmul.mubr.msk.f32.vlgmr.msra.gmra.mrb[60].mxu1 %vm462_vm0, %v20948_v59  ;;  %v17076_v59 = vpack.c.bf16 %v15046_v50, %v15045_v16 }
 0x6ba   : > { %17068 = vmatpush3.bf16.msra.mxu1 %v17067_v33  ;;  %16841 = vmatprep.mubr.msk.f32.mxu1 %vm17943_vm10, %v21340_v26  ;;  %v15085_v33 = vld [vmem:[%s20546_s12 + $0x388] sm:$0xff] }
 0x6bb   : > { %17069 = vmatprep.subr.bf16.mxu1 %v21376_v5  ;;  %v17127_v7 = vpack.c.bf16 %v15085_v33, %v15084_v10 }
 0x6be   : > { %17071 = vmatpush3.bf16.msra.mxu1 %v17070_v63  ;;  %v15087_v63 = vld [vmem:[%s20546_s12 + $0x398] sm:$0xff] }
 0x6bf   : > { %17072 = vmatprep.subr.bf16.mxu1 %v21376_v5  ;;  %v17130_v47 = vpack.c.bf16 %v15087_v63, %v15086_v52  ;;  %v15102_v63 = vld [vmem:[%s456_s21] ss:$0 sm:$0xff] }
 0x6c2   : > { %17074 = vmatpush3.bf16.msra.mxu1 %v17073_v18  ;;  %v15089_v18 = vld [vmem:[%s20546_s12 + $0x3a8] sm:$0xff] }
 0x6c3   : > { %17075 = vmatprep.subr.bf16.mxu1 %v21376_v5 }
 0x6c6   : > { %17077 = vmatpush3.bf16.msra.mxu1 %v17076_v59  ;;  %v17133_v59 = vpack.c.bf16 %v15089_v18, %v15088_v34 }
 0x6c7   : > { %17078 = vmatprep.subr.bf16.mxu1 %v21376_v5 }
 0x6c9   : > { %16842 = vmatmul.mubr.msk.f32.vlgmr.msra.gmra.mrb[62].mxu1 %vm462_vm0, %v20956_v14  ;;  %v17088_v14 = vpack.c.bf16 %v15055_v60, %v15054_v23  ;;  %v15098_v23 = vld [vmem:[%s20546_s12 + $0x3e8] sm:$0xff] }
 0x6ca   : > { %17080 = vmatpush3.bf16.msra.mxu1 %v17079_v2  ;;  %16860 = vmatprep.mubr.msk.f32.mxu1 %vm17943_vm10, %v21340_v26  ;;  %v15093_v2 = vld [vmem:[%s20546_s12 + $0x3c0] sm:$0xff] }
 0x6cb   : > { %17081 = vmatprep.subr.bf16.mxu1 %v21376_v5  ;;  %v17139_v28 = vpack.c.bf16 %v15094_v56, %v15093_v2 }
 0x6ce   : > { %17083 = vmatpush3.bf16.msra.mxu1 %v17082_v8  ;;  %v15095_v8 = vld [vmem:[%s20546_s12 + $0x3d0] sm:$0xff] }
 0x6cf   : > { %17084 = vmatprep.subr.bf16.mxu1 %v21376_v5  ;;  %v17142_v42 = vpack.c.bf16 %v15096_v27, %v15095_v8 }
 0x6d2   : > { %17086 = vmatpush3.bf16.msra.mxu1 %v17085_v40  ;;  %v15097_v40 = vld [vmem:[%s20546_s12 + $0x3e0] sm:$0xff] }
 0x6d3   : > { %17087 = vmatprep.subr.bf16.mxu1 %v21376_v5  ;;  %v17145_v31 = vpack.c.bf16 %v15098_v23, %v15097_v40 }
 0x6d6   : > { %17089 = vmatpush3.bf16.msra.mxu1 %v17088_v14 }
 0x6d7   : > { %17090 = vmatprep.subr.bf16.mxu1 %v21376_v5 }
 0x6d9   : > { %16861 = vmatmul.mubr.msk.f32.vlgmr.msra.gmra.mrb[64].mxu1 %vm462_vm0, %v20969_v45  ;;  %v17100_v45 = vpack.c.bf16 %v15064_v21, %v15063_v13 }
 0x6da   : > { %17092 = vmatpush3.bf16.msra.mxu1 %v17091_v29  ;;  %16879 = vmatprep.mubr.msk.f32.mxu1 %vm17943_vm10, %v21340_v26  ;;  %v15099_v29 = vld [vmem:[%s20546_s12 + $0x3f0] sm:$0xff] }
 0x6db   : > { %17093 = vmatprep.subr.bf16.mxu1 %v21376_v5 }
 0x6de   : > { %17095 = vmatpush3.bf16.msra.mxu1 %v17094_v46 }
 0x6df   : > { %17096 = vmatprep.subr.bf16.mxu1 %v21376_v5 }
 0x6e2   : > { %17098 = vmatpush3.bf16.msra.mxu1 %v17097_v1 }
 0x6e3   : > { %17099 = vmatprep.subr.bf16.mxu1 %v21376_v5 }
 0x6e6   : > { %17101 = vmatpush3.bf16.msra.mxu1 %v17100_v45 }
 0x6e7   : > { %17102 = vmatprep.subr.bf16.mxu1 %v21376_v5 }
 0x6e9   : > { %16880 = vmatmul.mubr.msk.f32.vlgmr.msra.gmra.mrb[66].mxu1 %vm462_vm0, %v21003_v12  ;;  %v17112_v12 = vpack.c.bf16 %v15073_v24, %v15072_v61 }
 0x6ea   : > { %17104 = vmatpush3.bf16.msra.mxu1 %v17103_v15  ;;  %16898 = vmatprep.mubr.msk.f32.mxu1 %vm17943_vm10, %v21340_v26 }
 0x6eb   : > { %17105 = vmatprep.subr.bf16.mxu1 %v21376_v5 }
 0x6ee   : > { %17107 = vmatpush3.bf16.msra.mxu1 %v17106_v4 }
 0x6ef   : > { %17108 = vmatprep.subr.bf16.mxu1 %v21376_v5 }
 0x6f2   : > { %17110 = vmatpush3.bf16.msra.mxu1 %v17109_v39 }
 0x6f3   : > { %17111 = vmatprep.subr.bf16.mxu1 %v21376_v5 }
 0x6f6   : > { %17113 = vmatpush3.bf16.msra.mxu1 %v17112_v12 }
 0x6f7   : > { %17114 = vmatprep.subr.bf16.mxu1 %v21376_v5 }
 0x6f9   : > { %16899 = vmatmul.mubr.msk.f32.vlgmr.msra.gmra.mrb[68].mxu1 %vm462_vm0, %v20993_v38  ;;  %v17124_v38 = vpack.c.bf16 %v15082_v49, %v15081_v51 }
 0x6fa   : > { %17116 = vmatpush3.bf16.msra.mxu1 %v17115_v58  ;;  %16917 = vmatprep.mubr.msk.f32.mxu1 %vm17943_vm10, %v21340_v26 }
 0x6fb   : > { %17117 = vmatprep.subr.bf16.mxu1 %v21376_v5 }
 0x6fe   : > { %17119 = vmatpush3.bf16.msra.mxu1 %v17118_v32 }
 0x6ff   : > { %17120 = vmatprep.subr.bf16.mxu1 %v21376_v5 }
 0x702   : > { %17122 = vmatpush3.bf16.msra.mxu1 %v17121_v19 }
 0x703   : > { %17123 = vmatprep.subr.bf16.mxu1 %v21376_v5 }
 0x706   : > { %17125 = vmatpush3.bf16.msra.mxu1 %v17124_v38 }
 0x707   : > { %17126 = vmatprep.subr.bf16.mxu1 %v21376_v5  ;;  %v12145_v16 = vpop.f32.mrb[44].mxu1 }
 0x708   : > { %v16672_v50 = vpop.f32.mrb[45].mxu1 }
 0x709   : > { %16918 = vmatmul.mubr.msk.f32.vlgmr.msra.gmra.mrb[70].mxu1 %vm462_vm0, %v20996_v62  ;;  %v15090_v62 = vld [vmem:[%s20546_s12 + $0x3b0] sm:$0xff] }
 0x70a   : > { %17128 = vmatpush3.bf16.msra.mxu1 %v17127_v7  ;;  %16936 = vmatprep.mubr.msk.f32.mxu1 %vm17943_vm10, %v21340_v26  ;;  %v17136_v35 = vpack.c.bf16 %v15091_v20, %v15090_v62 }
 0x70b   : > { %17129 = vmatprep.subr.bf16.mxu1 %v21376_v5 }
 0x70e   : > { %17131 = vmatpush3.bf16.msra.mxu1 %v17130_v47 }
 0x70f   : > { %17132 = vmatprep.subr.bf16.mxu1 %v21376_v5 }
 0x712   : > { %17134 = vmatpush3.bf16.msra.mxu1 %v17133_v59 }
 0x713   : > { %17135 = vmatprep.subr.bf16.mxu1 %v21376_v5 }
 0x716   : > { %17137 = vmatpush3.bf16.msra.mxu1 %v17136_v35 }
 0x717   : > { %17138 = vmatprep.subr.bf16.mxu1 %v21376_v5 }
 0x719   : > { %16937 = vmatmul.mubr.msk.f32.vlgmr.msra.gmra.mrb[72].mxu1 %vm462_vm0, %v21017_v54  ;;  %v17148_v54 = vpack.c.bf16 %v15100_v30, %v15099_v29 }
 0x71a   : > { %17140 = vmatpush3.bf16.msra.mxu1 %v17139_v28  ;;  %16955 = vmatprep.mubr.msk.f32.mxu1 %vm17943_vm10, %v21340_v26 }
 0x71b   : > { %17141 = vmatprep.subr.bf16.mxu1 %v21376_v5 }
 0x71c   : > { %v12228_v60 = vpop.f32.mrb[46].mxu1 }
 0x71d   : > { %v12229_v14 = vadd.f32 %v12228_v60, %v12145_v16  ;;  %v16691_v11 = vpop.f32.mrb[47].mxu1 }
 0x71e   : > { %17143 = vmatpush3.bf16.msra.mxu1 %v17142_v42 }
 0x71f   : > { %17144 = vmatprep.subr.bf16.mxu1 %v21376_v5 }
 0x722   : > { %17146 = vmatpush3.bf16.msra.mxu1 %v17145_v31 }
 0x723   : > { %17147 = vmatprep.subr.bf16.mxu1 %v21376_v5 }
 0x726   : > { %17149 = vmatpush3.bf16.msra.mxu1 %v17148_v54 }
 0x729   : > { %16956 = vmatmul.mubr.msk.f32.vlgmr.msra.gmra.mrb[74].mxu1 %vm462_vm0, %v21025_v43 }
 0x72c   : > { %v12320_v26 = vpop.f32.mrb[48].mxu1 }
 0x72d   : > { %v12324_v25 = vadd.f32 %v12320_v26, %v12229_v14  ;;  %v16710_v46 = vpop.f32.mrb[49].mxu1 }
 0x73c   : > { %v12413_v9 = vpop.f32.mrb[50].mxu1 }
 0x73d   : > { %v12417_v48 = vadd.f32 %v12413_v9, %v12324_v25  ;;  %v16729_v1 = vpop.f32.mrb[51].mxu1 }
 0x74c   : > { %v12506_v13 = vpop.f32.mrb[52].mxu1 }
 0x74d   : > { %v12510_v21 = vadd.f32 %v12506_v13, %v12417_v48  ;;  %v16748_v45 = vpop.f32.mrb[53].mxu1 }
 0x75c   : > { %v12599_v17 = vpop.f32.mrb[54].mxu1 }
 0x75d   : > { %v12603_v55 = vadd.f32 %v12599_v17, %v12510_v21  ;;  %v16767_v15 = vpop.f32.mrb[55].mxu1 }
 0x76c   : > { %v12692_v22 = vpop.f32.mrb[56].mxu1 }
 0x76d   : > { %v12696_v57 = vadd.f32 %v12692_v22, %v12603_v55  ;;  %v16786_v4 = vpop.f32.mrb[57].mxu1 }
 0x77c   : > { %v12785_v5 = vpop.f32.mrb[58].mxu1 }
 0x77d   : > { %v12789_v37 = vadd.f32 %v12785_v5, %v12696_v57  ;;  %v16805_v36 = vpop.f32.mrb[59].mxu1 }
 0x78c   : > { %v12878_v39 = vpop.f32.mrb[60].mxu1 }
 0x78d   : > { %v12882_v43 = vadd.f32 %v12878_v39, %v12789_v37  ;;  %v16824_v61 = vpop.f32.mrb[61].mxu1 }
 0x79c   : > { %v12971_v24 = vpop.f32.mrb[62].mxu1 }
 0x79d   : > { %v12975_v12 = vadd.f32 %v12971_v24, %v12882_v43  ;;  %v16843_v53 = vpop.f32.mrb[63].mxu1 }
 0x7ac   : > { %v13064_v6 = vpop.f32.mrb[64].mxu1 }
 0x7ad   : > { %v13068_v58 = vadd.f32 %v13064_v6, %v12975_v12  ;;  %v16862_v44 = vpop.f32.mrb[65].mxu1 }
 0x7bc   : > { %v13157_v41 = vpop.f32.mrb[66].mxu1 }
 0x7bd   : > { %v13161_v32 = vadd.f32 %v13157_v41, %v13068_v58  ;;  %v16881_v3 = vpop.f32.mrb[67].mxu1 }
 0x7cc   : > { %v13250_v0 = vpop.f32.mrb[68].mxu1 }
 0x7cd   : > { %v13254_v19 = vadd.f32 %v13250_v0, %v13161_v32  ;;  %v16900_v51 = vpop.f32.mrb[69].mxu1 }
 0x7dc   : > { %v13343_v49 = vpop.f32.mrb[70].mxu1 }
 0x7dd   : > { %v13347_v38 = vadd.f32 %v13343_v49, %v13254_v19  ;;  %v16919_v10 = vpop.f32.mrb[71].mxu1 }
 0x7ec   : > { %v13436_v33 = vpop.f32.mrb[72].mxu1 }
 0x7ed   : > { %v13440_v7 = vadd.f32 %v13436_v33, %v13347_v38  ;;  %v16938_v52 = vpop.f32.mrb[73].mxu1 }
 0x7fc   : > { %v13529_v47 = vpop.f32.mrb[74].mxu1 }
 0x7fd   : > { %v13533_v34 = vadd.f32 %v13529_v47, %v13440_v7  ;;  %v16957_v18 = vpop.f32.mrb[75].mxu1 }
 0x7ff   : > { %v13540_v16 = vadd.f32 %v15102_v63, %v13533_v34 }
 0x801   : > { %v13541_v50 = vsub.f32 0.0, %v13540_v16 }
 0x803   : > { %v13542_v59 = vmul.f32 1.442695, %v13541_v50 }
 0x805   : > { %17920 = vpow2.f32 %v13542_v59 }
 0x80f   : > { %v17921_v62 = vpop.eup %17920 }
 0x810   : > { %v13544_v20 = vadd.f32 1.0, %v17921_v62 }
 0x812   : > { %17922 = vrcp.f32 %v13544_v20 }
 0x81c   : > { %v17923_v35 = vpop.eup %17922 }
 0x81d   : > { %13548 = vst.msk [vmem:[%s460_s25] sm:$0x3] %vm13547_vm11, %v17923_v35 }
 0x81e PF: > { %s19_s30 = sadd.s32 1, %s17938_s30  }
 0x81f   : > { %p16_p4 = scmp.ge.s32.totalorder %s19_s30, 9  }
 0x821   :  { %18 = sbr.rel (!%p16_p4) target bundleno = 1 (0x1), region = 134 }

</bundles_post_ra>
